<compile_context>
chip_gen: v6e
topology: v6e:2x2x1
jax: 0.10.0
libtpu: 0.0.40
codegen_flags: <defaults>
</compile_context>

<pallas_src>
import functools

import jax
import jax.numpy as jnp
from jax import lax
from jax.experimental import pallas as pl
from jax.experimental.pallas import tpu as pltpu

EPS = 1e-5  # PyTorch BatchNorm2d default


# ----------------------------------------------------------------------------
# Pallas kernels
# ----------------------------------------------------------------------------
def _conv3x3_kernel(x_ref, w_ref, b_ref, o_ref, pad_ref):
    # Front conv: whole batch, one grid step, single im2col matmul.
    #   x_ref:  (N, H, W, Cin)          w_ref: (9*Cin, Cout)   b_ref: (1, Cout)
    #   o_ref:  (N, H, W, Cout)         pad_ref: VMEM (N, H+2, W+2, Cin) scratch
    N, H, W, Cin = x_ref.shape
    Cout = o_ref.shape[3]
    n = N * H * W

    # zero-padded halo built in VMEM (no wrapper-side jnp.pad / extra HBM copy)
    pad_ref[...] = jnp.zeros_like(pad_ref)
    pad_ref[:, 1:H + 1, 1:W + 1, :] = x_ref[...].astype(jnp.float32)

    # im2col: (N*H*W, 9*Cin), then ONE MXU matmul with K = 9*Cin
    cols = [pad_ref[:, kh:kh + H, kw:kw + W, :].reshape(n, Cin)
            for kh in range(3) for kw in range(3)]
    im2col = jnp.concatenate(cols, axis=-1)
    acc = jnp.dot(im2col, w_ref[...], preferred_element_type=jnp.float32)
    acc = acc + b_ref[...]
    o_ref[...] = acc.reshape(N, H, W, Cout).astype(o_ref.dtype)


def _local_bn_relu_conv_kernel(x_ref, g_ref, be_ref, w_ref, b_ref, o_ref,
                               pad_ref, *, eps):
    # One spatial patch (whole batch) of LocalConv2dReLU:
    #   BatchNorm (batch stats over N*ph*pw) -> ReLU -> 3x3 conv (pad=1).
    #   x_ref:  (1, N, ph, pw, C)       g_ref/be_ref: (1, 1, C)
    #   w_ref:  (1, 9*C, half)          b_ref: (1, 1, half)
    #   o_ref:  (1, N, ph, pw, half)    pad_ref: VMEM (N, ph+2, pw+2, C)
    _, N, ph, pw, C = x_ref.shape
    half = o_ref.shape[4]
    n = N * ph * pw

    x = x_ref[0].astype(jnp.float32).reshape(n, C)
    mean = jnp.sum(x, axis=0, keepdims=True) / n
    cen = x - mean
    var = jnp.sum(cen * cen, axis=0, keepdims=True) / n
    act = jnp.maximum(cen * lax.rsqrt(var + eps) * g_ref[0] + be_ref[0], 0.0)

    # zero halo for padding=1 at the patch borders (matches PyTorch per-patch conv)
    pad_ref[...] = jnp.zeros_like(pad_ref)
    pad_ref[:, 1:ph + 1, 1:pw + 1, :] = act.reshape(N, ph, pw, C)

    cols = [pad_ref[:, kh:kh + ph, kw:kw + pw, :].reshape(n, C)
            for kh in range(3) for kw in range(3)]
    im2col = jnp.concatenate(cols, axis=-1)                 # (n, 9*C)
    acc = jnp.dot(im2col, w_ref[0], preferred_element_type=jnp.float32)
    acc = acc + b_ref[0]
    o_ref[0] = acc.reshape(N, ph, pw, half).astype(o_ref.dtype)


def _add_bn_relu_kernel(x_ref, b1_ref, b2_ref, g_ref, be_ref, o_ref, *, eps):
    # Final stage: out = ReLU(BatchNorm(x + concat(b1, b2, channel)))
    N, H, W, C = x_ref.shape
    n = N * H * W
    local = jnp.concatenate([b1_ref[...].astype(jnp.float32),
                             b2_ref[...].astype(jnp.float32)], axis=-1)
    s = (x_ref[...].astype(jnp.float32) + local).reshape(n, C)
    mean = jnp.sum(s, axis=0, keepdims=True) / n
    cen = s - mean
    var = jnp.sum(cen * cen, axis=0, keepdims=True) / n
    z = cen * lax.rsqrt(var + eps) * g_ref[...] + be_ref[...]
    o_ref[...] = jnp.maximum(z, 0.0).reshape(N, H, W, C).astype(o_ref.dtype)


# ----------------------------------------------------------------------------
# Pallas wrappers
# ----------------------------------------------------------------------------
def conv3x3(x, w, b):
    """3x3 conv, stride 1, padding 1.  x: (N,H,W,Cin); w: (3,3,Cin,Cout)."""
    N, H, W, Cin = x.shape
    Cout = w.shape[-1]
    w2 = w.reshape(9 * Cin, Cout)          # im2col weight layout (kh, kw, cin)
    b2 = b.reshape(1, Cout)
    return pl.pallas_call(
        _conv3x3_kernel,
        out_shape=jax.ShapeDtypeStruct((N, H, W, Cout), x.dtype),
        grid=(1,),
        in_specs=[
            pl.BlockSpec((N, H, W, Cin), lambda i: (0, 0, 0, 0)),
            pl.BlockSpec((9 * Cin, Cout), lambda i: (0, 0)),
            pl.BlockSpec((1, Cout), lambda i: (0, 0)),
        ],
        out_specs=pl.BlockSpec((N, H, W, Cout), lambda i: (0, 0, 0, 0)),
        scratch_shapes=[pltpu.VMEM((N, H + 2, W + 2, Cin), jnp.float32)],
    )(x, w2, b2)


def local_conv_branch(x, br, local_h, local_w, eps=EPS):
    """LocalConv2dReLU branch: one fused pallas_call, grid over patches."""
    N, H, W, C = x.shape
    ph, pw = H // local_h, W // local_w
    P = local_h * local_w
    half = br["w"].shape[-1]

    # Patch-major view (P, N, ph, pw, C): keeps block trailing dims == array
    # dims so the (8,128) block constraint never bites (pw can be 4).
    xp = x.reshape(N, local_h, ph, local_w, pw, C)
    xp = jnp.transpose(xp, (1, 3, 0, 2, 4, 5)).reshape(P, N, ph, pw, C)

    gam = br["bn_gamma"].reshape(P, 1, C)
    bet = br["bn_beta"].reshape(P, 1, C)
    w = br["w"].reshape(P, 9 * C, half)    # (kh, kw, cin) -> 9*C rows
    b = br["b"].reshape(P, 1, half)

    yp = pl.pallas_call(
        functools.partial(_local_bn_relu_conv_kernel, eps=eps),
        out_shape=jax.ShapeDtypeStruct((P, N, ph, pw, half), x.dtype),
        grid=(P,),
        in_specs=[
            pl.BlockSpec((1, N, ph, pw, C), lambda p: (p, 0, 0, 0, 0)),
            pl.BlockSpec((1, 1, C), lambda p: (p, 0, 0)),
            pl.BlockSpec((1, 1, C), lambda p: (p, 0, 0)),
            pl.BlockSpec((1, 9 * C, half), lambda p: (p, 0, 0)),
            pl.BlockSpec((1, 1, half), lambda p: (p, 0, 0)),
        ],
        out_specs=pl.BlockSpec((1, N, ph, pw, half), lambda p: (p, 0, 0, 0, 0)),
        scratch_shapes=[pltpu.VMEM((N, ph + 2, pw + 2, C), jnp.float32)],
        compiler_params=pltpu.CompilerParams(
            dimension_semantics=("parallel",)),
    )(xp, gam, bet, w, b)

    # Stitch patches back: (P, N, ph, pw, half) -> (N, H, W, half)
    y = yp.reshape(local_h, local_w, N, ph, pw, half)
    y = jnp.transpose(y, (2, 0, 3, 1, 4, 5)).reshape(N, H, W, half)
    return y


def add_concat_bn_relu(x, b1, b2, gamma, beta, eps=EPS):
    N, H, W, C = x.shape
    half = b1.shape[-1]
    g = gamma.reshape(1, C)
    b = beta.reshape(1, C)
    return pl.pallas_call(
        functools.partial(_add_bn_relu_kernel, eps=eps),
        out_shape=jax.ShapeDtypeStruct(x.shape, x.dtype),
        grid=(1,),
        in_specs=[
            pl.BlockSpec((N, H, W, C), lambda i: (0, 0, 0, 0)),
            pl.BlockSpec((N, H, W, half), lambda i: (0, 0, 0, 0)),
            pl.BlockSpec((N, H, W, half), lambda i: (0, 0, 0, 0)),
            pl.BlockSpec((1, C), lambda i: (0, 0)),
            pl.BlockSpec((1, C), lambda i: (0, 0)),
        ],
        out_specs=pl.BlockSpec((N, H, W, C), lambda i: (0, 0, 0, 0)),
    )(x, b1, b2, g, b)


# ----------------------------------------------------------------------------
# Parameters + forward orchestration
# ----------------------------------------------------------------------------
def _branch_params(key, n_patches, cin, cout):
    kw, kb = jax.random.split(key)
    return {
        "w": 0.1 * jax.random.normal(kw, (n_patches, 3, 3, cin, cout), jnp.float32),
        "b": 0.1 * jax.random.normal(kb, (n_patches, cout), jnp.float32),
        # PyTorch BatchNorm2d default init: weight=1, bias=0
        "bn_gamma": jnp.ones((n_patches, cin), jnp.float32),
        "bn_beta": jnp.zeros((n_patches, cin), jnp.float32),
    }


def init_mlb_params(key, in_channels, out_channels, local_group):
    half = out_channels // 2
    n1 = local_group[0][0] * local_group[0][1]
    n2 = local_group[1][0] * local_group[1][1]
    k0, k1, k2, k3 = jax.random.split(key, 4)
    return {
        "conv_w": 0.1 * jax.random.normal(
            k0, (3, 3, in_channels, out_channels), jnp.float32),
        "conv_b": 0.1 * jax.random.normal(k1, (out_channels,), jnp.float32),
        "branch1": _branch_params(k2, n1, out_channels, half),
        "branch2": _branch_params(k3, n2, out_channels, half),
        "bn_gamma": jnp.ones((out_channels,), jnp.float32),
        "bn_beta": jnp.zeros((out_channels,), jnp.float32),
    }


def mlb_forward(x_nhwc, params, local_group):
    # TODO(synk): BatchNorm running-stat (momentum) buffers are not tracked;
    # kernels implement training-mode batch statistics only.
    x = conv3x3(x_nhwc, params["conv_w"], params["conv_b"])
    b1 = local_conv_branch(x, params["branch1"],
                           local_group[0][0], local_group[0][1])
    b2 = local_conv_branch(x, params["branch2"],
                           local_group[1][0], local_group[1][1])
    return add_concat_bn_relu(x, b1, b2, params["bn_gamma"], params["bn_beta"])


# ----------------------------------------------------------------------------
if __name__ == "__main__":
    key = jax.random.PRNGKey(0)
    k_x, k_p = jax.random.split(key)

    # Small shapes consistent with the module: NCHW input like PyTorch.
    N, Cin, H, W = 2, 4, 16, 16
    Cout = 8
    local_group = [[2, 2], [4, 4]]   # branch1: 8x8 patches, branch2: 4x4 patches

    x_nchw = jax.random.normal(k_x, (N, Cin, H, W), jnp.float32)
    params = init_mlb_params(k_p, Cin, Cout, local_group)

    # NCHW -> NHWC for the Pallas kernels.
    x_nhwc = jnp.transpose(x_nchw, (0, 2, 3, 1))

    fwd = jax.jit(functools.partial(mlb_forward, local_group=local_group))
    out_nhwc = fwd(x_nhwc, params)
    out_nchw = jnp.transpose(out_nhwc, (0, 3, 1, 2))   # back to PyTorch layout
    jax.block_until_ready(out_nchw)

    assert out_nchw.shape == (N, Cout, H, W), out_nchw.shape
    assert bool(jnp.all(jnp.isfinite(out_nchw)))
    print("KERNEL_OK")
</pallas_src>

<mosaic_0001>
module attributes {stable_mosaic.version = 11 : i64} {
  func.func @_conv3x3_kernel(%arg0: i32, %arg1: memref<2x16x16x4xf32, #tpu.memory_space<vmem>>, %arg2: memref<36x8xf32, #tpu.memory_space<vmem>>, %arg3: memref<1x8xf32, #tpu.memory_space<vmem>>, %arg4: memref<2x16x16x8xf32, #tpu.memory_space<vmem>>, %arg5: memref<2x18x18x4xf32, #tpu.memory_space<vmem>>) attributes {dimension_semantics = [#tpu.dimension_semantics<arbitrary>], iteration_bounds = array<i64: 1>, scalar_prefetch = 0 : i64, scratch_operands = 1 : i64, tpu.core_type = #tpu.core_type<tc>, window_params = [{pipeline_mode = #tpu.pipeline_mode<synchronous>, transform_indices = @transform_0, window_bounds = array<i64: 2, 16, 16, 4>}, {pipeline_mode = #tpu.pipeline_mode<synchronous>, transform_indices = @transform_1, window_bounds = array<i64: 36, 8>}, {pipeline_mode = #tpu.pipeline_mode<synchronous>, transform_indices = @transform_2, window_bounds = array<i64: 1, 8>}, {pipeline_mode = #tpu.pipeline_mode<synchronous>, transform_indices = @transform_3, window_bounds = array<i64: 2, 16, 16, 8>}]} {
    %cst = arith.constant 0.000000e+00 : f32
    %0 = vector.broadcast %cst : f32 to vector<2x18x18x4xf32>
    %c0 = arith.constant 0 : index
    %c0_0 = arith.constant 0 : index
    %c0_1 = arith.constant 0 : index
    %c0_2 = arith.constant 0 : index
    %1 = vector.load %arg5[%c0, %c0_0, %c0_1, %c0_2] : memref<2x18x18x4xf32, #tpu.memory_space<vmem>>, vector<2x18x18x4xf32>
    tpu.vector_store %arg5[%c0, %c0_0, %c0_1, %c0_2], %0 {strides = array<i32>} : memref<2x18x18x4xf32, #tpu.memory_space<vmem>>, vector<2x18x18x4xf32>,
    %c0_3 = arith.constant 0 : index
    %c0_4 = arith.constant 0 : index
    %c0_5 = arith.constant 0 : index
    %c0_6 = arith.constant 0 : index
    %2 = vector.load %arg1[%c0_3, %c0_4, %c0_5, %c0_6] : memref<2x16x16x4xf32, #tpu.memory_space<vmem>>, vector<2x16x16x4xf32>
    %c0_7 = arith.constant 0 : index
    %c1 = arith.constant 1 : index
    %c1_8 = arith.constant 1 : index
    %c0_9 = arith.constant 0 : index
    %3 = vector.load %arg5[%c0_7, %c1, %c1_8, %c0_9] : memref<2x18x18x4xf32, #tpu.memory_space<vmem>>, vector<2x16x16x4xf32>
    tpu.vector_store %arg5[%c0_7, %c1, %c1_8, %c0_9], %2 {strides = array<i32>} : memref<2x18x18x4xf32, #tpu.memory_space<vmem>>, vector<2x16x16x4xf32>,
    %c0_10 = arith.constant 0 : index
    %c0_11 = arith.constant 0 : index
    %c0_12 = arith.constant 0 : index
    %c0_13 = arith.constant 0 : index
    %4 = vector.load %arg5[%c0_10, %c0_11, %c0_12, %c0_13] : memref<2x18x18x4xf32, #tpu.memory_space<vmem>>, vector<2x16x16x4xf32>
    %5 = vector.shape_cast %4 : vector<2x16x16x4xf32> to vector<512x4xf32>
    %c0_14 = arith.constant 0 : index
    %c0_15 = arith.constant 0 : index
    %c1_16 = arith.constant 1 : index
    %c0_17 = arith.constant 0 : index
    %6 = vector.load %arg5[%c0_14, %c0_15, %c1_16, %c0_17] : memref<2x18x18x4xf32, #tpu.memory_space<vmem>>, vector<2x16x16x4xf32>
    %7 = vector.shape_cast %6 : vector<2x16x16x4xf32> to vector<512x4xf32>
    %c0_18 = arith.constant 0 : index
    %c0_19 = arith.constant 0 : index
    %c2 = arith.constant 2 : index
    %c0_20 = arith.constant 0 : index
    %8 = vector.load %arg5[%c0_18, %c0_19, %c2, %c0_20] : memref<2x18x18x4xf32, #tpu.memory_space<vmem>>, vector<2x16x16x4xf32>
    %9 = vector.shape_cast %8 : vector<2x16x16x4xf32> to vector<512x4xf32>
    %c0_21 = arith.constant 0 : index
    %c1_22 = arith.constant 1 : index
    %c0_23 = arith.constant 0 : index
    %c0_24 = arith.constant 0 : index
    %10 = vector.load %arg5[%c0_21, %c1_22, %c0_23, %c0_24] : memref<2x18x18x4xf32, #tpu.memory_space<vmem>>, vector<2x16x16x4xf32>
    %11 = vector.shape_cast %10 : vector<2x16x16x4xf32> to vector<512x4xf32>
    %c0_25 = arith.constant 0 : index
    %c1_26 = arith.constant 1 : index
    %c1_27 = arith.constant 1 : index
    %c0_28 = arith.constant 0 : index
    %12 = vector.load %arg5[%c0_25, %c1_26, %c1_27, %c0_28] : memref<2x18x18x4xf32, #tpu.memory_space<vmem>>, vector<2x16x16x4xf32>
    %13 = vector.shape_cast %12 : vector<2x16x16x4xf32> to vector<512x4xf32>
    %c0_29 = arith.constant 0 : index
    %c1_30 = arith.constant 1 : index
    %c2_31 = arith.constant 2 : index
    %c0_32 = arith.constant 0 : index
    %14 = vector.load %arg5[%c0_29, %c1_30, %c2_31, %c0_32] : memref<2x18x18x4xf32, #tpu.memory_space<vmem>>, vector<2x16x16x4xf32>
    %15 = vector.shape_cast %14 : vector<2x16x16x4xf32> to vector<512x4xf32>
    %c0_33 = arith.constant 0 : index
    %c2_34 = arith.constant 2 : index
    %c0_35 = arith.constant 0 : index
    %c0_36 = arith.constant 0 : index
    %16 = vector.load %arg5[%c0_33, %c2_34, %c0_35, %c0_36] : memref<2x18x18x4xf32, #tpu.memory_space<vmem>>, vector<2x16x16x4xf32>
    %17 = vector.shape_cast %16 : vector<2x16x16x4xf32> to vector<512x4xf32>
    %c0_37 = arith.constant 0 : index
    %c2_38 = arith.constant 2 : index
    %c1_39 = arith.constant 1 : index
    %c0_40 = arith.constant 0 : index
    %18 = vector.load %arg5[%c0_37, %c2_38, %c1_39, %c0_40] : memref<2x18x18x4xf32, #tpu.memory_space<vmem>>, vector<2x16x16x4xf32>
    %19 = vector.shape_cast %18 : vector<2x16x16x4xf32> to vector<512x4xf32>
    %c0_41 = arith.constant 0 : index
    %c2_42 = arith.constant 2 : index
    %c2_43 = arith.constant 2 : index
    %c0_44 = arith.constant 0 : index
    %20 = vector.load %arg5[%c0_41, %c2_42, %c2_43, %c0_44] : memref<2x18x18x4xf32, #tpu.memory_space<vmem>>, vector<2x16x16x4xf32>
    %21 = vector.shape_cast %20 : vector<2x16x16x4xf32> to vector<512x4xf32>
    %22 = tpu.concatenate %5, %7, %9, %11, %13, %15, %17, %19, %21 in 1 : vector<512x4xf32>, vector<512x4xf32>, vector<512x4xf32>, vector<512x4xf32>, vector<512x4xf32>, vector<512x4xf32>, vector<512x4xf32>, vector<512x4xf32>, vector<512x4xf32> -> vector<512x36xf32>
    %c0_45 = arith.constant 0 : index
    %c0_46 = arith.constant 0 : index
    %23 = vector.load %arg2[%c0_45, %c0_46] : memref<36x8xf32, #tpu.memory_space<vmem>>, vector<36x8xf32>
    %cst_47 = arith.constant dense<0.000000e+00> : vector<512x8xf32>
    %24 = tpu.matmul %22, %23, %cst_47 {dimension_numbers = #tpu.dot_dimension_numbers<[1], [0], [0], [1], [0, 0, 1, 1], [], []>} : vector<512x36xf32>, vector<36x8xf32>, vector<512x8xf32> -> vector<512x8xf32>
    %c0_48 = arith.constant 0 : index
    %c0_49 = arith.constant 0 : index
    %25 = vector.load %arg3[%c0_48, %c0_49] : memref<1x8xf32, #tpu.memory_space<vmem>>, vector<1x8xf32>
    %26 = vector.broadcast %25 : vector<1x8xf32> to vector<512x8xf32>
    %27 = arith.addf %24, %26 : vector<512x8xf32>
    %28 = vector.shape_cast %27 : vector<512x8xf32> to vector<2x16x16x8xf32>
    %c0_50 = arith.constant 0 : index
    %c0_51 = arith.constant 0 : index
    %c0_52 = arith.constant 0 : index
    %c0_53 = arith.constant 0 : index
    %29 = vector.load %arg4[%c0_50, %c0_51, %c0_52, %c0_53] : memref<2x16x16x8xf32, #tpu.memory_space<vmem>>, vector<2x16x16x8xf32>
    tpu.vector_store %arg4[%c0_50, %c0_51, %c0_52, %c0_53], %28 {strides = array<i32>} : memref<2x16x16x8xf32, #tpu.memory_space<vmem>>, vector<2x16x16x8xf32>,
    return
  }
  func.func @transform_0(%arg0: i32) -> (i32, i32, i32, i32) {
    %c0_i32 = arith.constant 0 : i32
    %c0_i32_0 = arith.constant 0 : i32
    %c0_i32_1 = arith.constant 0 : i32
    %c0_i32_2 = arith.constant 0 : i32
    %c0_i32_3 = arith.constant 0 : i32
    return %c0_i32, %c0_i32_0, %c0_i32_1, %c0_i32_2 : i32, i32, i32, i32
  }
  func.func @transform_1(%arg0: i32) -> (i32, i32) {
    %c0_i32 = arith.constant 0 : i32
    %c0_i32_0 = arith.constant 0 : i32
    %c0_i32_1 = arith.constant 0 : i32
    return %c0_i32, %c0_i32_0 : i32, i32
  }
  func.func @transform_2(%arg0: i32) -> (i32, i32) {
    %c0_i32 = arith.constant 0 : i32
    %c0_i32_0 = arith.constant 0 : i32
    %c0_i32_1 = arith.constant 0 : i32
    return %c0_i32, %c0_i32_0 : i32, i32
  }
  func.func @transform_3(%arg0: i32) -> (i32, i32, i32, i32) {
    %c0_i32 = arith.constant 0 : i32
    %c0_i32_0 = arith.constant 0 : i32
    %c0_i32_1 = arith.constant 0 : i32
    %c0_i32_2 = arith.constant 0 : i32
    %c0_i32_3 = arith.constant 0 : i32
    return %c0_i32, %c0_i32_0, %c0_i32_1, %c0_i32_2 : i32, i32, i32, i32
  }
}

module attributes {stable_mosaic.version = 11 : i64} {
  func.func @_local_bn_relu_conv_kernel(%arg0: i32, %arg1: memref<1x2x4x4x8xf32, #tpu.memory_space<vmem>>, %arg2: memref<1x1x8xf32, #tpu.memory_space<vmem>>, %arg3: memref<1x1x8xf32, #tpu.memory_space<vmem>>, %arg4: memref<1x72x4xf32, #tpu.memory_space<vmem>>, %arg5: memref<1x1x4xf32, #tpu.memory_space<vmem>>, %arg6: memref<1x2x4x4x4xf32, #tpu.memory_space<vmem>>, %arg7: memref<2x6x6x8xf32, #tpu.memory_space<vmem>>) attributes {dimension_semantics = [#tpu.dimension_semantics<parallel>], iteration_bounds = array<i64: 16>, scalar_prefetch = 0 : i64, scratch_operands = 1 : i64, tpu.core_type = #tpu.core_type<tc>, window_params = [{transform_indices = @transform_0, window_bounds = array<i64: 1, 2, 4, 4, 8>}, {transform_indices = @transform_1, window_bounds = array<i64: 1, 1, 8>}, {transform_indices = @transform_2, window_bounds = array<i64: 1, 1, 8>}, {transform_indices = @transform_3, window_bounds = array<i64: 1, 72, 4>}, {transform_indices = @transform_4, window_bounds = array<i64: 1, 1, 4>}, {transform_indices = @transform_5, window_bounds = array<i64: 1, 2, 4, 4, 4>}]} {
    %c0 = arith.constant 0 : index
    %c0_0 = arith.constant 0 : index
    %c0_1 = arith.constant 0 : index
    %c0_2 = arith.constant 0 : index
    %c0_3 = arith.constant 0 : index
    %0 = vector.load %arg1[%c0, %c0_0, %c0_1, %c0_2, %c0_3] : memref<1x2x4x4x8xf32, #tpu.memory_space<vmem>>, vector<1x2x4x4x8xf32>
    %1 = vector.shape_cast %0 : vector<1x2x4x4x8xf32> to vector<2x4x4x8xf32>
    %2 = vector.shape_cast %1 : vector<2x4x4x8xf32> to vector<32x8xf32>
    %cst = arith.constant dense<0.000000e+00> : vector<8xf32>
    %3 = vector.multi_reduction <add>, %2, %cst [0] : vector<32x8xf32> to vector<8xf32>
    %4 = vector.shape_cast %3 : vector<8xf32> to vector<1x8xf32>
    %cst_4 = arith.constant 3.200000e+01 : f32
    %5 = vector.broadcast %cst_4 : f32 to vector<1x8xf32>
    %6 = arith.divf %4, %5 : vector<1x8xf32>
    %7 = vector.broadcast %6 : vector<1x8xf32> to vector<32x8xf32>
    %8 = arith.subf %2, %7 : vector<32x8xf32>
    %9 = arith.mulf %8, %8 : vector<32x8xf32>
    %cst_5 = arith.constant dense<0.000000e+00> : vector<8xf32>
    %10 = vector.multi_reduction <add>, %9, %cst_5 [0] : vector<32x8xf32> to vector<8xf32>
    %11 = vector.shape_cast %10 : vector<8xf32> to vector<1x8xf32>
    %cst_6 = arith.constant 3.200000e+01 : f32
    %12 = vector.broadcast %cst_6 : f32 to vector<1x8xf32>
    %13 = arith.divf %11, %12 : vector<1x8xf32>
    %cst_7 = arith.constant 9.99999974E-6 : f32
    %14 = vector.broadcast %cst_7 : f32 to vector<1x8xf32>
    %15 = arith.addf %13, %14 : vector<1x8xf32>
    %16 = math.rsqrt %15 : vector<1x8xf32>
    %17 = vector.broadcast %16 : vector<1x8xf32> to vector<32x8xf32>
    %18 = arith.mulf %8, %17 : vector<32x8xf32>
    %c0_8 = arith.constant 0 : index
    %c0_9 = arith.constant 0 : index
    %c0_10 = arith.constant 0 : index
    %19 = vector.load %arg2[%c0_8, %c0_9, %c0_10] : memref<1x1x8xf32, #tpu.memory_space<vmem>>, vector<1x1x8xf32>
    %20 = vector.shape_cast %19 : vector<1x1x8xf32> to vector<1x8xf32>
    %21 = vector.broadcast %20 : vector<1x8xf32> to vector<32x8xf32>
    %22 = arith.mulf %18, %21 : vector<32x8xf32>
    %c0_11 = arith.constant 0 : index
    %c0_12 = arith.constant 0 : index
    %c0_13 = arith.constant 0 : index
    %23 = vector.load %arg3[%c0_11, %c0_12, %c0_13] : memref<1x1x8xf32, #tpu.memory_space<vmem>>, vector<1x1x8xf32>
    %24 = vector.shape_cast %23 : vector<1x1x8xf32> to vector<1x8xf32>
    %25 = vector.broadcast %24 : vector<1x8xf32> to vector<32x8xf32>
    %26 = arith.addf %22, %25 : vector<32x8xf32>
    %cst_14 = arith.constant 0.000000e+00 : f32
    %27 = vector.broadcast %cst_14 : f32 to vector<32x8xf32>
    %28 = arith.maximumf %26, %27 : vector<32x8xf32>
    %cst_15 = arith.constant 0.000000e+00 : f32
    %29 = vector.broadcast %cst_15 : f32 to vector<2x6x6x8xf32>
    %c0_16 = arith.constant 0 : index
    %c0_17 = arith.constant 0 : index
    %c0_18 = arith.constant 0 : index
    %c0_19 = arith.constant 0 : index
    %30 = vector.load %arg7[%c0_16, %c0_17, %c0_18, %c0_19] : memref<2x6x6x8xf32, #tpu.memory_space<vmem>>, vector<2x6x6x8xf32>
    tpu.vector_store %arg7[%c0_16, %c0_17, %c0_18, %c0_19], %29 {strides = array<i32>} : memref<2x6x6x8xf32, #tpu.memory_space<vmem>>, vector<2x6x6x8xf32>,
    %31 = vector.shape_cast %28 : vector<32x8xf32> to vector<2x4x4x8xf32>
    %c0_20 = arith.constant 0 : index
    %c1 = arith.constant 1 : index
    %c1_21 = arith.constant 1 : index
    %c0_22 = arith.constant 0 : index
    %32 = vector.load %arg7[%c0_20, %c1, %c1_21, %c0_22] : memref<2x6x6x8xf32, #tpu.memory_space<vmem>>, vector<2x4x4x8xf32>
    tpu.vector_store %arg7[%c0_20, %c1, %c1_21, %c0_22], %31 {strides = array<i32>} : memref<2x6x6x8xf32, #tpu.memory_space<vmem>>, vector<2x4x4x8xf32>,
    %c0_23 = arith.constant 0 : index
    %c0_24 = arith.constant 0 : index
    %c0_25 = arith.constant 0 : index
    %c0_26 = arith.constant 0 : index
    %33 = vector.load %arg7[%c0_23, %c0_24, %c0_25, %c0_26] : memref<2x6x6x8xf32, #tpu.memory_space<vmem>>, vector<2x4x4x8xf32>
    %34 = vector.shape_cast %33 : vector<2x4x4x8xf32> to vector<32x8xf32>
    %c0_27 = arith.constant 0 : index
    %c0_28 = arith.constant 0 : index
    %c1_29 = arith.constant 1 : index
    %c0_30 = arith.constant 0 : index
    %35 = vector.load %arg7[%c0_27, %c0_28, %c1_29, %c0_30] : memref<2x6x6x8xf32, #tpu.memory_space<vmem>>, vector<2x4x4x8xf32>
    %36 = vector.shape_cast %35 : vector<2x4x4x8xf32> to vector<32x8xf32>
    %c0_31 = arith.constant 0 : index
    %c0_32 = arith.constant 0 : index
    %c2 = arith.constant 2 : index
    %c0_33 = arith.constant 0 : index
    %37 = vector.load %arg7[%c0_31, %c0_32, %c2, %c0_33] : memref<2x6x6x8xf32, #tpu.memory_space<vmem>>, vector<2x4x4x8xf32>
    %38 = vector.shape_cast %37 : vector<2x4x4x8xf32> to vector<32x8xf32>
    %c0_34 = arith.constant 0 : index
    %c1_35 = arith.constant 1 : index
    %c0_36 = arith.constant 0 : index
    %c0_37 = arith.constant 0 : index
    %39 = vector.load %arg7[%c0_34, %c1_35, %c0_36, %c0_37] : memref<2x6x6x8xf32, #tpu.memory_space<vmem>>, vector<2x4x4x8xf32>
    %40 = vector.shape_cast %39 : vector<2x4x4x8xf32> to vector<32x8xf32>
    %c0_38 = arith.constant 0 : index
    %c1_39 = arith.constant 1 : index
    %c1_40 = arith.constant 1 : index
    %c0_41 = arith.constant 0 : index
    %41 = vector.load %arg7[%c0_38, %c1_39, %c1_40, %c0_41] : memref<2x6x6x8xf32, #tpu.memory_space<vmem>>, vector<2x4x4x8xf32>
    %42 = vector.shape_cast %41 : vector<2x4x4x8xf32> to vector<32x8xf32>
    %c0_42 = arith.constant 0 : index
    %c1_43 = arith.constant 1 : index
    %c2_44 = arith.constant 2 : index
    %c0_45 = arith.constant 0 : index
    %43 = vector.load %arg7[%c0_42, %c1_43, %c2_44, %c0_45] : memref<2x6x6x8xf32, #tpu.memory_space<vmem>>, vector<2x4x4x8xf32>
    %44 = vector.shape_cast %43 : vector<2x4x4x8xf32> to vector<32x8xf32>
    %c0_46 = arith.constant 0 : index
    %c2_47 = arith.constant 2 : index
    %c0_48 = arith.constant 0 : index
    %c0_49 = arith.constant 0 : index
    %45 = vector.load %arg7[%c0_46, %c2_47, %c0_48, %c0_49] : memref<2x6x6x8xf32, #tpu.memory_space<vmem>>, vector<2x4x4x8xf32>
    %46 = vector.shape_cast %45 : vector<2x4x4x8xf32> to vector<32x8xf32>
    %c0_50 = arith.constant 0 : index
    %c2_51 = arith.constant 2 : index
    %c1_52 = arith.constant 1 : index
    %c0_53 = arith.constant 0 : index
    %47 = vector.load %arg7[%c0_50, %c2_51, %c1_52, %c0_53] : memref<2x6x6x8xf32, #tpu.memory_space<vmem>>, vector<2x4x4x8xf32>
    %48 = vector.shape_cast %47 : vector<2x4x4x8xf32> to vector<32x8xf32>
    %c0_54 = arith.constant 0 : index
    %c2_55 = arith.constant 2 : index
    %c2_56 = arith.constant 2 : index
    %c0_57 = arith.constant 0 : index
    %49 = vector.load %arg7[%c0_54, %c2_55, %c2_56, %c0_57] : memref<2x6x6x8xf32, #tpu.memory_space<vmem>>, vector<2x4x4x8xf32>
    %50 = vector.shape_cast %49 : vector<2x4x4x8xf32> to vector<32x8xf32>
    %51 = tpu.concatenate %34, %36, %38, %40, %42, %44, %46, %48, %50 in 1 : vector<32x8xf32>, vector<32x8xf32>, vector<32x8xf32>, vector<32x8xf32>, vector<32x8xf32>, vector<32x8xf32>, vector<32x8xf32>, vector<32x8xf32>, vector<32x8xf32> -> vector<32x72xf32>
    %c0_58 = arith.constant 0 : index
    %c0_59 = arith.constant 0 : index
    %c0_60 = arith.constant 0 : index
    %52 = vector.load %arg4[%c0_58, %c0_59, %c0_60] : memref<1x72x4xf32, #tpu.memory_space<vmem>>, vector<1x72x4xf32>
    %53 = vector.shape_cast %52 : vector<1x72x4xf32> to vector<72x4xf32>
    %cst_61 = arith.constant dense<0.000000e+00> : vector<32x4xf32>
    %54 = tpu.matmul %51, %53, %cst_61 {dimension_numbers = #tpu.dot_dimension_numbers<[1], [0], [0], [1], [0, 0, 1, 1], [], []>} : vector<32x72xf32>, vector<72x4xf32>, vector<32x4xf32> -> vector<32x4xf32>
    %c0_62 = arith.constant 0 : index
    %c0_63 = arith.constant 0 : index
    %c0_64 = arith.constant 0 : index
    %55 = vector.load %arg5[%c0_62, %c0_63, %c0_64] : memref<1x1x4xf32, #tpu.memory_space<vmem>>, vector<1x1x4xf32>
    %56 = vector.shape_cast %55 : vector<1x1x4xf32> to vector<1x4xf32>
    %57 = vector.broadcast %56 : vector<1x4xf32> to vector<32x4xf32>
    %58 = arith.addf %54, %57 : vector<32x4xf32>
    %59 = vector.shape_cast %58 : vector<32x4xf32> to vector<2x4x4x4xf32>
    %c0_65 = arith.constant 0 : index
    %c0_66 = arith.constant 0 : index
    %c0_67 = arith.constant 0 : index
    %c0_68 = arith.constant 0 : index
    %c0_69 = arith.constant 0 : index
    %60 = vector.load %arg6[%c0_65, %c0_66, %c0_67, %c0_68, %c0_69] : memref<1x2x4x4x4xf32, #tpu.memory_space<vmem>>, vector<1x2x4x4x4xf32>
    %61 = vector.shape_cast %60 : vector<1x2x4x4x4xf32> to vector<2x4x4x4xf32>
    %62 = vector.shape_cast %59 : vector<2x4x4x4xf32> to vector<1x2x4x4x4xf32>
    tpu.vector_store %arg6[%c0_65, %c0_66, %c0_67, %c0_68, %c0_69], %62 {strides = array<i32>} : memref<1x2x4x4x4xf32, #tpu.memory_space<vmem>>, vector<1x2x4x4x4xf32>,
    return
  }
  func.func @transform_0(%arg0: i32) -> (i32, i32, i32, i32, i32) {
    %c0_i32 = arith.constant 0 : i32
    %c0_i32_0 = arith.constant 0 : i32
    %c0_i32_1 = arith.constant 0 : i32
    %c0_i32_2 = arith.constant 0 : i32
    %c0_i32_3 = arith.constant 0 : i32
    return %arg0, %c0_i32, %c0_i32_0, %c0_i32_1, %c0_i32_2 : i32, i32, i32, i32, i32
  }
  func.func @transform_1(%arg0: i32) -> (i32, i32, i32) {
    %c0_i32 = arith.constant 0 : i32
    %c0_i32_0 = arith.constant 0 : i32
    %c0_i32_1 = arith.constant 0 : i32
    return %arg0, %c0_i32, %c0_i32_0 : i32, i32, i32
  }
  func.func @transform_2(%arg0: i32) -> (i32, i32, i32) {
    %c0_i32 = arith.constant 0 : i32
    %c0_i32_0 = arith.constant 0 : i32
    %c0_i32_1 = arith.constant 0 : i32
    return %arg0, %c0_i32, %c0_i32_0 : i32, i32, i32
  }
  func.func @transform_3(%arg0: i32) -> (i32, i32, i32) {
    %c0_i32 = arith.constant 0 : i32
    %c0_i32_0 = arith.constant 0 : i32
    %c0_i32_1 = arith.constant 0 : i32
    return %arg0, %c0_i32, %c0_i32_0 : i32, i32, i32
  }
  func.func @transform_4(%arg0: i32) -> (i32, i32, i32) {
    %c0_i32 = arith.constant 0 : i32
    %c0_i32_0 = arith.constant 0 : i32
    %c0_i32_1 = arith.constant 0 : i32
    return %arg0, %c0_i32, %c0_i32_0 : i32, i32, i32
  }
  func.func @transform_5(%arg0: i32) -> (i32, i32, i32, i32, i32) {
    %c0_i32 = arith.constant 0 : i32
    %c0_i32_0 = arith.constant 0 : i32
    %c0_i32_1 = arith.constant 0 : i32
    %c0_i32_2 = arith.constant 0 : i32
    %c0_i32_3 = arith.constant 0 : i32
    return %arg0, %c0_i32, %c0_i32_0, %c0_i32_1, %c0_i32_2 : i32, i32, i32, i32, i32
  }
}

module attributes {stable_mosaic.version = 11 : i64} {
  func.func @_local_bn_relu_conv_kernel(%arg0: i32, %arg1: memref<1x2x8x8x8xf32, #tpu.memory_space<vmem>>, %arg2: memref<1x1x8xf32, #tpu.memory_space<vmem>>, %arg3: memref<1x1x8xf32, #tpu.memory_space<vmem>>, %arg4: memref<1x72x4xf32, #tpu.memory_space<vmem>>, %arg5: memref<1x1x4xf32, #tpu.memory_space<vmem>>, %arg6: memref<1x2x8x8x4xf32, #tpu.memory_space<vmem>>, %arg7: memref<2x10x10x8xf32, #tpu.memory_space<vmem>>) attributes {dimension_semantics = [#tpu.dimension_semantics<parallel>], iteration_bounds = array<i64: 4>, scalar_prefetch = 0 : i64, scratch_operands = 1 : i64, tpu.core_type = #tpu.core_type<tc>, window_params = [{transform_indices = @transform_0, window_bounds = array<i64: 1, 2, 8, 8, 8>}, {transform_indices = @transform_1, window_bounds = array<i64: 1, 1, 8>}, {transform_indices = @transform_2, window_bounds = array<i64: 1, 1, 8>}, {transform_indices = @transform_3, window_bounds = array<i64: 1, 72, 4>}, {transform_indices = @transform_4, window_bounds = array<i64: 1, 1, 4>}, {transform_indices = @transform_5, window_bounds = array<i64: 1, 2, 8, 8, 4>}]} {
    %c0 = arith.constant 0 : index
    %c0_0 = arith.constant 0 : index
    %c0_1 = arith.constant 0 : index
    %c0_2 = arith.constant 0 : index
    %c0_3 = arith.constant 0 : index
    %0 = vector.load %arg1[%c0, %c0_0, %c0_1, %c0_2, %c0_3] : memref<1x2x8x8x8xf32, #tpu.memory_space<vmem>>, vector<1x2x8x8x8xf32>
    %1 = vector.shape_cast %0 : vector<1x2x8x8x8xf32> to vector<2x8x8x8xf32>
    %2 = vector.shape_cast %1 : vector<2x8x8x8xf32> to vector<128x8xf32>
    %cst = arith.constant dense<0.000000e+00> : vector<8xf32>
    %3 = vector.multi_reduction <add>, %2, %cst [0] : vector<128x8xf32> to vector<8xf32>
    %4 = vector.shape_cast %3 : vector<8xf32> to vector<1x8xf32>
    %cst_4 = arith.constant 1.280000e+02 : f32
    %5 = vector.broadcast %cst_4 : f32 to vector<1x8xf32>
    %6 = arith.divf %4, %5 : vector<1x8xf32>
    %7 = vector.broadcast %6 : vector<1x8xf32> to vector<128x8xf32>
    %8 = arith.subf %2, %7 : vector<128x8xf32>
    %9 = arith.mulf %8, %8 : vector<128x8xf32>
    %cst_5 = arith.constant dense<0.000000e+00> : vector<8xf32>
    %10 = vector.multi_reduction <add>, %9, %cst_5 [0] : vector<128x8xf32> to vector<8xf32>
    %11 = vector.shape_cast %10 : vector<8xf32> to vector<1x8xf32>
    %cst_6 = arith.constant 1.280000e+02 : f32
    %12 = vector.broadcast %cst_6 : f32 to vector<1x8xf32>
    %13 = arith.divf %11, %12 : vector<1x8xf32>
    %cst_7 = arith.constant 9.99999974E-6 : f32
    %14 = vector.broadcast %cst_7 : f32 to vector<1x8xf32>
    %15 = arith.addf %13, %14 : vector<1x8xf32>
    %16 = math.rsqrt %15 : vector<1x8xf32>
    %17 = vector.broadcast %16 : vector<1x8xf32> to vector<128x8xf32>
    %18 = arith.mulf %8, %17 : vector<128x8xf32>
    %c0_8 = arith.constant 0 : index
    %c0_9 = arith.constant 0 : index
    %c0_10 = arith.constant 0 : index
    %19 = vector.load %arg2[%c0_8, %c0_9, %c0_10] : memref<1x1x8xf32, #tpu.memory_space<vmem>>, vector<1x1x8xf32>
    %20 = vector.shape_cast %19 : vector<1x1x8xf32> to vector<1x8xf32>
    %21 = vector.broadcast %20 : vector<1x8xf32> to vector<128x8xf32>
    %22 = arith.mulf %18, %21 : vector<128x8xf32>
    %c0_11 = arith.constant 0 : index
    %c0_12 = arith.constant 0 : index
    %c0_13 = arith.constant 0 : index
    %23 = vector.load %arg3[%c0_11, %c0_12, %c0_13] : memref<1x1x8xf32, #tpu.memory_space<vmem>>, vector<1x1x8xf32>
    %24 = vector.shape_cast %23 : vector<1x1x8xf32> to vector<1x8xf32>
    %25 = vector.broadcast %24 : vector<1x8xf32> to vector<128x8xf32>
    %26 = arith.addf %22, %25 : vector<128x8xf32>
    %cst_14 = arith.constant 0.000000e+00 : f32
    %27 = vector.broadcast %cst_14 : f32 to vector<128x8xf32>
    %28 = arith.maximumf %26, %27 : vector<128x8xf32>
    %cst_15 = arith.constant 0.000000e+00 : f32
    %29 = vector.broadcast %cst_15 : f32 to vector<2x10x10x8xf32>
    %c0_16 = arith.constant 0 : index
    %c0_17 = arith.constant 0 : index
    %c0_18 = arith.constant 0 : index
    %c0_19 = arith.constant 0 : index
    %30 = vector.load %arg7[%c0_16, %c0_17, %c0_18, %c0_19] : memref<2x10x10x8xf32, #tpu.memory_space<vmem>>, vector<2x10x10x8xf32>
    tpu.vector_store %arg7[%c0_16, %c0_17, %c0_18, %c0_19], %29 {strides = array<i32>} : memref<2x10x10x8xf32, #tpu.memory_space<vmem>>, vector<2x10x10x8xf32>,
    %31 = vector.shape_cast %28 : vector<128x8xf32> to vector<2x8x8x8xf32>
    %c0_20 = arith.constant 0 : index
    %c1 = arith.constant 1 : index
    %c1_21 = arith.constant 1 : index
    %c0_22 = arith.constant 0 : index
    %32 = vector.load %arg7[%c0_20, %c1, %c1_21, %c0_22] : memref<2x10x10x8xf32, #tpu.memory_space<vmem>>, vector<2x8x8x8xf32>
    tpu.vector_store %arg7[%c0_20, %c1, %c1_21, %c0_22], %31 {strides = array<i32>} : memref<2x10x10x8xf32, #tpu.memory_space<vmem>>, vector<2x8x8x8xf32>,
    %c0_23 = arith.constant 0 : index
    %c0_24 = arith.constant 0 : index
    %c0_25 = arith.constant 0 : index
    %c0_26 = arith.constant 0 : index
    %33 = vector.load %arg7[%c0_23, %c0_24, %c0_25, %c0_26] : memref<2x10x10x8xf32, #tpu.memory_space<vmem>>, vector<2x8x8x8xf32>
    %34 = vector.shape_cast %33 : vector<2x8x8x8xf32> to vector<128x8xf32>
    %c0_27 = arith.constant 0 : index
    %c0_28 = arith.constant 0 : index
    %c1_29 = arith.constant 1 : index
    %c0_30 = arith.constant 0 : index
    %35 = vector.load %arg7[%c0_27, %c0_28, %c1_29, %c0_30] : memref<2x10x10x8xf32, #tpu.memory_space<vmem>>, vector<2x8x8x8xf32>
    %36 = vector.shape_cast %35 : vector<2x8x8x8xf32> to vector<128x8xf32>
    %c0_31 = arith.constant 0 : index
    %c0_32 = arith.constant 0 : index
    %c2 = arith.constant 2 : index
    %c0_33 = arith.constant 0 : index
    %37 = vector.load %arg7[%c0_31, %c0_32, %c2, %c0_33] : memref<2x10x10x8xf32, #tpu.memory_space<vmem>>, vector<2x8x8x8xf32>
    %38 = vector.shape_cast %37 : vector<2x8x8x8xf32> to vector<128x8xf32>
    %c0_34 = arith.constant 0 : index
    %c1_35 = arith.constant 1 : index
    %c0_36 = arith.constant 0 : index
    %c0_37 = arith.constant 0 : index
    %39 = vector.load %arg7[%c0_34, %c1_35, %c0_36, %c0_37] : memref<2x10x10x8xf32, #tpu.memory_space<vmem>>, vector<2x8x8x8xf32>
    %40 = vector.shape_cast %39 : vector<2x8x8x8xf32> to vector<128x8xf32>
    %c0_38 = arith.constant 0 : index
    %c1_39 = arith.constant 1 : index
    %c1_40 = arith.constant 1 : index
    %c0_41 = arith.constant 0 : index
    %41 = vector.load %arg7[%c0_38, %c1_39, %c1_40, %c0_41] : memref<2x10x10x8xf32, #tpu.memory_space<vmem>>, vector<2x8x8x8xf32>
    %42 = vector.shape_cast %41 : vector<2x8x8x8xf32> to vector<128x8xf32>
    %c0_42 = arith.constant 0 : index
    %c1_43 = arith.constant 1 : index
    %c2_44 = arith.constant 2 : index
    %c0_45 = arith.constant 0 : index
    %43 = vector.load %arg7[%c0_42, %c1_43, %c2_44, %c0_45] : memref<2x10x10x8xf32, #tpu.memory_space<vmem>>, vector<2x8x8x8xf32>
    %44 = vector.shape_cast %43 : vector<2x8x8x8xf32> to vector<128x8xf32>
    %c0_46 = arith.constant 0 : index
    %c2_47 = arith.constant 2 : index
    %c0_48 = arith.constant 0 : index
    %c0_49 = arith.constant 0 : index
    %45 = vector.load %arg7[%c0_46, %c2_47, %c0_48, %c0_49] : memref<2x10x10x8xf32, #tpu.memory_space<vmem>>, vector<2x8x8x8xf32>
    %46 = vector.shape_cast %45 : vector<2x8x8x8xf32> to vector<128x8xf32>
    %c0_50 = arith.constant 0 : index
    %c2_51 = arith.constant 2 : index
    %c1_52 = arith.constant 1 : index
    %c0_53 = arith.constant 0 : index
    %47 = vector.load %arg7[%c0_50, %c2_51, %c1_52, %c0_53] : memref<2x10x10x8xf32, #tpu.memory_space<vmem>>, vector<2x8x8x8xf32>
    %48 = vector.shape_cast %47 : vector<2x8x8x8xf32> to vector<128x8xf32>
    %c0_54 = arith.constant 0 : index
    %c2_55 = arith.constant 2 : index
    %c2_56 = arith.constant 2 : index
    %c0_57 = arith.constant 0 : index
    %49 = vector.load %arg7[%c0_54, %c2_55, %c2_56, %c0_57] : memref<2x10x10x8xf32, #tpu.memory_space<vmem>>, vector<2x8x8x8xf32>
    %50 = vector.shape_cast %49 : vector<2x8x8x8xf32> to vector<128x8xf32>
    %51 = tpu.concatenate %34, %36, %38, %40, %42, %44, %46, %48, %50 in 1 : vector<128x8xf32>, vector<128x8xf32>, vector<128x8xf32>, vector<128x8xf32>, vector<128x8xf32>, vector<128x8xf32>, vector<128x8xf32>, vector<128x8xf32>, vector<128x8xf32> -> vector<128x72xf32>
    %c0_58 = arith.constant 0 : index
    %c0_59 = arith.constant 0 : index
    %c0_60 = arith.constant 0 : index
    %52 = vector.load %arg4[%c0_58, %c0_59, %c0_60] : memref<1x72x4xf32, #tpu.memory_space<vmem>>, vector<1x72x4xf32>
    %53 = vector.shape_cast %52 : vector<1x72x4xf32> to vector<72x4xf32>
    %cst_61 = arith.constant dense<0.000000e+00> : vector<128x4xf32>
    %54 = tpu.matmul %51, %53, %cst_61 {dimension_numbers = #tpu.dot_dimension_numbers<[1], [0], [0], [1], [0, 0, 1, 1], [], []>} : vector<128x72xf32>, vector<72x4xf32>, vector<128x4xf32> -> vector<128x4xf32>
    %c0_62 = arith.constant 0 : index
    %c0_63 = arith.constant 0 : index
    %c0_64 = arith.constant 0 : index
    %55 = vector.load %arg5[%c0_62, %c0_63, %c0_64] : memref<1x1x4xf32, #tpu.memory_space<vmem>>, vector<1x1x4xf32>
    %56 = vector.shape_cast %55 : vector<1x1x4xf32> to vector<1x4xf32>
    %57 = vector.broadcast %56 : vector<1x4xf32> to vector<128x4xf32>
    %58 = arith.addf %54, %57 : vector<128x4xf32>
    %59 = vector.shape_cast %58 : vector<128x4xf32> to vector<2x8x8x4xf32>
    %c0_65 = arith.constant 0 : index
    %c0_66 = arith.constant 0 : index
    %c0_67 = arith.constant 0 : index
    %c0_68 = arith.constant 0 : index
    %c0_69 = arith.constant 0 : index
    %60 = vector.load %arg6[%c0_65, %c0_66, %c0_67, %c0_68, %c0_69] : memref<1x2x8x8x4xf32, #tpu.memory_space<vmem>>, vector<1x2x8x8x4xf32>
    %61 = vector.shape_cast %60 : vector<1x2x8x8x4xf32> to vector<2x8x8x4xf32>
    %62 = vector.shape_cast %59 : vector<2x8x8x4xf32> to vector<1x2x8x8x4xf32>
    tpu.vector_store %arg6[%c0_65, %c0_66, %c0_67, %c0_68, %c0_69], %62 {strides = array<i32>} : memref<1x2x8x8x4xf32, #tpu.memory_space<vmem>>, vector<1x2x8x8x4xf32>,
    return
  }
  func.func @transform_0(%arg0: i32) -> (i32, i32, i32, i32, i32) {
    %c0_i32 = arith.constant 0 : i32
    %c0_i32_0 = arith.constant 0 : i32
    %c0_i32_1 = arith.constant 0 : i32
    %c0_i32_2 = arith.constant 0 : i32
    %c0_i32_3 = arith.constant 0 : i32
    return %arg0, %c0_i32, %c0_i32_0, %c0_i32_1, %c0_i32_2 : i32, i32, i32, i32, i32
  }
  func.func @transform_1(%arg0: i32) -> (i32, i32, i32) {
    %c0_i32 = arith.constant 0 : i32
    %c0_i32_0 = arith.constant 0 : i32
    %c0_i32_1 = arith.constant 0 : i32
    return %arg0, %c0_i32, %c0_i32_0 : i32, i32, i32
  }
  func.func @transform_2(%arg0: i32) -> (i32, i32, i32) {
    %c0_i32 = arith.constant 0 : i32
    %c0_i32_0 = arith.constant 0 : i32
    %c0_i32_1 = arith.constant 0 : i32
    return %arg0, %c0_i32, %c0_i32_0 : i32, i32, i32
  }
  func.func @transform_3(%arg0: i32) -> (i32, i32, i32) {
    %c0_i32 = arith.constant 0 : i32
    %c0_i32_0 = arith.constant 0 : i32
    %c0_i32_1 = arith.constant 0 : i32
    return %arg0, %c0_i32, %c0_i32_0 : i32, i32, i32
  }
  func.func @transform_4(%arg0: i32) -> (i32, i32, i32) {
    %c0_i32 = arith.constant 0 : i32
    %c0_i32_0 = arith.constant 0 : i32
    %c0_i32_1 = arith.constant 0 : i32
    return %arg0, %c0_i32, %c0_i32_0 : i32, i32, i32
  }
  func.func @transform_5(%arg0: i32) -> (i32, i32, i32, i32, i32) {
    %c0_i32 = arith.constant 0 : i32
    %c0_i32_0 = arith.constant 0 : i32
    %c0_i32_1 = arith.constant 0 : i32
    %c0_i32_2 = arith.constant 0 : i32
    %c0_i32_3 = arith.constant 0 : i32
    return %arg0, %c0_i32, %c0_i32_0, %c0_i32_1, %c0_i32_2 : i32, i32, i32, i32, i32
  }
}

module attributes {stable_mosaic.version = 11 : i64} {
  func.func @_add_bn_relu_kernel(%arg0: i32, %arg1: memref<2x16x16x8xf32, #tpu.memory_space<vmem>>, %arg2: memref<2x16x16x4xf32, #tpu.memory_space<vmem>>, %arg3: memref<2x16x16x4xf32, #tpu.memory_space<vmem>>, %arg4: memref<1x8xf32, #tpu.memory_space<vmem>>, %arg5: memref<1x8xf32, #tpu.memory_space<vmem>>, %arg6: memref<2x16x16x8xf32, #tpu.memory_space<vmem>>) attributes {dimension_semantics = [#tpu.dimension_semantics<arbitrary>], iteration_bounds = array<i64: 1>, scalar_prefetch = 0 : i64, scratch_operands = 0 : i64, tpu.core_type = #tpu.core_type<tc>, window_params = [{pipeline_mode = #tpu.pipeline_mode<synchronous>, transform_indices = @transform_0, window_bounds = array<i64: 2, 16, 16, 8>}, {pipeline_mode = #tpu.pipeline_mode<synchronous>, transform_indices = @transform_1, window_bounds = array<i64: 2, 16, 16, 4>}, {pipeline_mode = #tpu.pipeline_mode<synchronous>, transform_indices = @transform_2, window_bounds = array<i64: 2, 16, 16, 4>}, {pipeline_mode = #tpu.pipeline_mode<synchronous>, transform_indices = @transform_3, window_bounds = array<i64: 1, 8>}, {pipeline_mode = #tpu.pipeline_mode<synchronous>, transform_indices = @transform_4, window_bounds = array<i64: 1, 8>}, {pipeline_mode = #tpu.pipeline_mode<synchronous>, transform_indices = @transform_5, window_bounds = array<i64: 2, 16, 16, 8>}]} {
    %c0 = arith.constant 0 : index
    %c0_0 = arith.constant 0 : index
    %c0_1 = arith.constant 0 : index
    %c0_2 = arith.constant 0 : index
    %0 = vector.load %arg2[%c0, %c0_0, %c0_1, %c0_2] : memref<2x16x16x4xf32, #tpu.memory_space<vmem>>, vector<2x16x16x4xf32>
    %c0_3 = arith.constant 0 : index
    %c0_4 = arith.constant 0 : index
    %c0_5 = arith.constant 0 : index
    %c0_6 = arith.constant 0 : index
    %1 = vector.load %arg3[%c0_3, %c0_4, %c0_5, %c0_6] : memref<2x16x16x4xf32, #tpu.memory_space<vmem>>, vector<2x16x16x4xf32>
    %2 = tpu.concatenate %0, %1 in 3 : vector<2x16x16x4xf32>, vector<2x16x16x4xf32> -> vector<2x16x16x8xf32>
    %c0_7 = arith.constant 0 : index
    %c0_8 = arith.constant 0 : index
    %c0_9 = arith.constant 0 : index
    %c0_10 = arith.constant 0 : index
    %3 = vector.load %arg1[%c0_7, %c0_8, %c0_9, %c0_10] : memref<2x16x16x8xf32, #tpu.memory_space<vmem>>, vector<2x16x16x8xf32>
    %4 = arith.addf %3, %2 : vector<2x16x16x8xf32>
    %5 = vector.shape_cast %4 : vector<2x16x16x8xf32> to vector<512x8xf32>
    %cst = arith.constant dense<0.000000e+00> : vector<8xf32>
    %6 = vector.multi_reduction <add>, %5, %cst [0] : vector<512x8xf32> to vector<8xf32>
    %7 = vector.shape_cast %6 : vector<8xf32> to vector<1x8xf32>
    %cst_11 = arith.constant 5.120000e+02 : f32
    %8 = vector.broadcast %cst_11 : f32 to vector<1x8xf32>
    %9 = arith.divf %7, %8 : vector<1x8xf32>
    %10 = vector.broadcast %9 : vector<1x8xf32> to vector<512x8xf32>
    %11 = arith.subf %5, %10 : vector<512x8xf32>
    %12 = arith.mulf %11, %11 : vector<512x8xf32>
    %cst_12 = arith.constant dense<0.000000e+00> : vector<8xf32>
    %13 = vector.multi_reduction <add>, %12, %cst_12 [0] : vector<512x8xf32> to vector<8xf32>
    %14 = vector.shape_cast %13 : vector<8xf32> to vector<1x8xf32>
    %cst_13 = arith.constant 5.120000e+02 : f32
    %15 = vector.broadcast %cst_13 : f32 to vector<1x8xf32>
    %16 = arith.divf %14, %15 : vector<1x8xf32>
    %cst_14 = arith.constant 9.99999974E-6 : f32
    %17 = vector.broadcast %cst_14 : f32 to vector<1x8xf32>
    %18 = arith.addf %16, %17 : vector<1x8xf32>
    %19 = math.rsqrt %18 : vector<1x8xf32>
    %20 = vector.broadcast %19 : vector<1x8xf32> to vector<512x8xf32>
    %21 = arith.mulf %11, %20 : vector<512x8xf32>
    %c0_15 = arith.constant 0 : index
    %c0_16 = arith.constant 0 : index
    %22 = vector.load %arg4[%c0_15, %c0_16] : memref<1x8xf32, #tpu.memory_space<vmem>>, vector<1x8xf32>
    %23 = vector.broadcast %22 : vector<1x8xf32> to vector<512x8xf32>
    %24 = arith.mulf %21, %23 : vector<512x8xf32>
    %c0_17 = arith.constant 0 : index
    %c0_18 = arith.constant 0 : index
    %25 = vector.load %arg5[%c0_17, %c0_18] : memref<1x8xf32, #tpu.memory_space<vmem>>, vector<1x8xf32>
    %26 = vector.broadcast %25 : vector<1x8xf32> to vector<512x8xf32>
    %27 = arith.addf %24, %26 : vector<512x8xf32>
    %cst_19 = arith.constant 0.000000e+00 : f32
    %28 = vector.broadcast %cst_19 : f32 to vector<512x8xf32>
    %29 = arith.maximumf %27, %28 : vector<512x8xf32>
    %30 = vector.shape_cast %29 : vector<512x8xf32> to vector<2x16x16x8xf32>
    %c0_20 = arith.constant 0 : index
    %c0_21 = arith.constant 0 : index
    %c0_22 = arith.constant 0 : index
    %c0_23 = arith.constant 0 : index
    %31 = vector.load %arg6[%c0_20, %c0_21, %c0_22, %c0_23] : memref<2x16x16x8xf32, #tpu.memory_space<vmem>>, vector<2x16x16x8xf32>
    tpu.vector_store %arg6[%c0_20, %c0_21, %c0_22, %c0_23], %30 {strides = array<i32>} : memref<2x16x16x8xf32, #tpu.memory_space<vmem>>, vector<2x16x16x8xf32>,
    return
  }
  func.func @transform_0(%arg0: i32) -> (i32, i32, i32, i32) {
    %c0_i32 = arith.constant 0 : i32
    %c0_i32_0 = arith.constant 0 : i32
    %c0_i32_1 = arith.constant 0 : i32
    %c0_i32_2 = arith.constant 0 : i32
    %c0_i32_3 = arith.constant 0 : i32
    return %c0_i32, %c0_i32_0, %c0_i32_1, %c0_i32_2 : i32, i32, i32, i32
  }
  func.func @transform_1(%arg0: i32) -> (i32, i32, i32, i32) {
    %c0_i32 = arith.constant 0 : i32
    %c0_i32_0 = arith.constant 0 : i32
    %c0_i32_1 = arith.constant 0 : i32
    %c0_i32_2 = arith.constant 0 : i32
    %c0_i32_3 = arith.constant 0 : i32
    return %c0_i32, %c0_i32_0, %c0_i32_1, %c0_i32_2 : i32, i32, i32, i32
  }
  func.func @transform_2(%arg0: i32) -> (i32, i32, i32, i32) {
    %c0_i32 = arith.constant 0 : i32
    %c0_i32_0 = arith.constant 0 : i32
    %c0_i32_1 = arith.constant 0 : i32
    %c0_i32_2 = arith.constant 0 : i32
    %c0_i32_3 = arith.constant 0 : i32
    return %c0_i32, %c0_i32_0, %c0_i32_1, %c0_i32_2 : i32, i32, i32, i32
  }
  func.func @transform_3(%arg0: i32) -> (i32, i32) {
    %c0_i32 = arith.constant 0 : i32
    %c0_i32_0 = arith.constant 0 : i32
    %c0_i32_1 = arith.constant 0 : i32
    return %c0_i32, %c0_i32_0 : i32, i32
  }
  func.func @transform_4(%arg0: i32) -> (i32, i32) {
    %c0_i32 = arith.constant 0 : i32
    %c0_i32_0 = arith.constant 0 : i32
    %c0_i32_1 = arith.constant 0 : i32
    return %c0_i32, %c0_i32_0 : i32, i32
  }
  func.func @transform_5(%arg0: i32) -> (i32, i32, i32, i32) {
    %c0_i32 = arith.constant 0 : i32
    %c0_i32_0 = arith.constant 0 : i32
    %c0_i32_1 = arith.constant 0 : i32
    %c0_i32_2 = arith.constant 0 : i32
    %c0_i32_3 = arith.constant 0 : i32
    return %c0_i32, %c0_i32_0, %c0_i32_1, %c0_i32_2 : i32, i32, i32, i32
  }
}

</mosaic_0001>

<bundles_post_ra>
// kernel: mlb_forward.6
= control target key start
LH: loop header
LB: loop body
LE: loop exit
PB: predicated region body
PF: predicated region fallthrough
CT: control target
= control target key end

     0   :  { %s1186_s18 = smov 0   ;;  %s1303_s0 = inlined_call_operand.vmem [shape: f32[16,2,4,4,8], index: 0, kind: input, shape index: {}]   ;;  %s1304_s1 = inlined_call_operand.vmem [shape: f32[16,1,8], index: 1, kind: input, shape index: {}]   ;;  %s1305_s2 = inlined_call_operand.vmem [shape: f32[16,1,8], index: 2, kind: input, shape index: {}]   ;;  %s1306_s3 = inlined_call_operand.vmem [shape: f32[16,72,4], index: 3, kind: input, shape index: {}]   ;;  %s1307_s4 = inlined_call_operand.vmem [shape: f32[16,1,4], index: 4, kind: input, shape index: {}]   ;;  %s1308_s5 = inlined_call_operand.vmem [shape: f32[16,2,4,4,4], index: 5, kind: output, shape index: {}]  }
   0x1 LB: > { %s1003_s19 = sadd.s32 4294967295, %s1145_s18   ;;  %p1007_p0 = scmp.ge.s32.totalorder %s1145_s18, 1  ;;  %s1145_s18 = sphi %s1186_s18, %s15_s18  }
   0x2   : > { %p221_p1 = scmp.lt.s32.totalorder %s1145_s18, 17 }
   0x4   : > { %p222_p2 = pnand %p1007_p0, %p221_p1 }
   0x5   : > { %p1194_p3 = scmp.lt.s32.totalorder (!%p222_p2), %s1003_s19, 15  ;;  %s1148_s6 = smov (!%p222_p2), 16  }
   0x6   : > { %225 = sbr.rel (%p222_p2) target bundleno = 479 (0x1df), region = 40  ;;  %s1149_s7 = smov (!%p222_p2), 8  }
   0x7   : > { %s1150_s8 = smov (!%p222_p2), 24   ;;  %s1151_s9 = smov (!%p222_p2), 32  }
   0x8   : > { %s1152_s11 = smov (!%p222_p2), 40   ;;  %s1153_s15 = smov (!%p222_p2), 48  }
   0x9   : > { %s1154_s16 = smov (!%p222_p2), 56   ;;  %s1155_s17 = smov (!%p222_p2), 64  }
   0xb   : > { %vm431_vm0 = vcmask 62464   ;;  %v1147_v0 = vmov 0.0   ;;  %s1311_s19 = smov (!%p1194_p3, %s1003_s19), 15  ;;  %vm311_vm1 = vcmask 64512   ;;  %vm445_vm2 = vcmask 60416  }
   0xc   : > { %438 = vst.msk [vmem:[#allocation2 + $0x30] sm:$0x3f] %vm431_vm0, %v1147_v0  ;;  %439 = vst.msk [vmem:[#allocation2 + $0x38] sm:$0x3f] %vm431_vm0, %v1147_v0  ;;  %s1022_s21 = sshll.u32 %s1311_s19, 5  ;;  %s270_s27 = scalar_lea.vmem %s1304_s1, %s1311_s19  ;;  %vm739_vm3 = vcmask 130048  }
   0xd   : > { %432 = vst.msk [vmem:[#allocation2] sm:$0x3f] %vm431_vm0, %v1147_v0  ;;  %433 = vst.msk [vmem:[#allocation2 + $0x8] sm:$0x3f] %vm431_vm0, %v1147_v0  ;;  %s267_s24 = scalar_lea.vmem %s1303_s0, %s1022_s21  ;;  %s273_s30 = scalar_lea.vmem %s1305_s2, %s1311_s19  ;;  %v1013_v63 = vld [vmem:[%s270_s27] ss:$0 sm:$0xff] }
   0xe   : > { %434 = vst.msk [vmem:[#allocation2 + $0x10] sm:$0x3f] %vm431_vm0, %v1147_v0  ;;  %435 = vst.msk [vmem:[#allocation2 + $0x18] sm:$0x3f] %vm431_vm0, %v1147_v0  ;;  %v287_v1 = vld [vmem:[%s267_s24] sm:$0xf]  ;;  %s281_s23 = scalar_lea.vmem %s1307_s4, %s1311_s19  ;;  %s286_s26 = scalar_lea.vmem %s1308_s5, %s1022_s21 }
   0xf   : > { %436 = vst.msk [vmem:[#allocation2 + $0x20] sm:$0x3f] %vm431_vm0, %v1147_v0  ;;  %437 = vst.msk [vmem:[#allocation2 + $0x28] sm:$0x3f] %vm431_vm0, %v1147_v0  ;;  %v288_v2 = vld [vmem:[%s267_s24 + $0x4] sm:$0xf] }
  0x10   : > { %440 = vst.msk [vmem:[#allocation2 + $0x40] sm:$0x3f] %vm431_vm0, %v1147_v0  ;;  %441 = vst.msk [vmem:[#allocation2 + $0x48] sm:$0x3f] %vm431_vm0, %v1147_v0  ;;  %v289_v3 = vld [vmem:[%s267_s24 + $0x8] sm:$0xf]  ;;  %v303_v7 = vcombine.low %v287_v1, %v288_v2 }
  0x11   : > { %442 = vst.msk [vmem:[#allocation2 + $0x50] sm:$0x3f] %vm431_vm0, %v1147_v0  ;;  %443 = vst.msk [vmem:[#allocation2 + $0x58] sm:$0x3f] %vm431_vm0, %v1147_v0  ;;  %v290_v4 = vld [vmem:[%s267_s24 + $0xc] sm:$0xf] }
  0x12   : > { %v291_v5 = vld [vmem:[%s267_s24 + $0x10] sm:$0xf]  ;;  %v292_v6 = vld [vmem:[%s267_s24 + $0x14] sm:$0xf]  ;;  %v293_v8 = vld [vmem:[%s267_s24 + $0x18] sm:$0xf]  ;;  %v304_v10 = vcombine.low %v289_v3, %v290_v4 }
  0x13   : > { %v294_v9 = vld [vmem:[%s267_s24 + $0x1c] sm:$0xf]  ;;  %v305_v11 = vcombine.low %v291_v5, %v292_v6  ;;  %v312_v13 = vsel %vm311_vm1, %v303_v7, 0.0  ;;  %s1079_s10 = smul.u32 72, %s1311_s19  ;;  %vm744_vm4 = vcmask 195584   ;;  %vm749_vm5 = vcmask 261120  }
  0x14   : > { %v306_v12 = vcombine.low %v293_v8, %v294_v9  ;;  %v313_v14 = vsel %vm311_vm1, %v304_v10, 0.0  ;;  %vm754_vm6 = vcmask 326656   ;;  %vm759_vm7 = vcmask 392192  }
  0x15   : > { %v315_v15 = vsel %vm311_vm1, %v305_v11, 0.0  ;;  %v314_v16 = vadd.f32 %v313_v14, %v312_v13  ;;  %s1236_s14 = scalar_lea.vmem %s1306_s3, %s1079_s10  ;;  %vm764_vm8 = vcmask 457728   ;;  %vm769_vm9 = vcmask 523264  }
  0x16   : > { %v317_v17 = vsel %vm311_vm1, %v306_v12, 0.0  ;;  %vm790_vm10 = vcmask 588800   ;;  %vm900_vm11 = vcmask 27648  }
  0x17   : > { %v316_v18 = vadd.f32 %v315_v15, %v314_v16 }
  0x19   : > { %v318_v19 = vadd.f32 %v317_v17, %v316_v18 }
  0x1b   : > { %v319_v20 = vrot.slane %v318_v19, 4 }
  0x1d   : > { %v320_v21 = vadd.f32 %v319_v20, %v318_v19 }
  0x1f   : > { %v321_v22 = vrot.slane %v320_v21, 2 }
  0x21   : > { %v322_v23 = vadd.f32 %v321_v22, %v320_v21 }
  0x23   : > { %v323_v24 = vrot.slane %v322_v23, 1 }
  0x25   : > { %v324_v25 = vadd.f32 %v323_v24, %v322_v23 }
  0x27   : > { %v326_v26 = vmul.f32 0.03125, %v324_v25 }
  0x29   : > { %v328_v27 = vcombine.high %v326_v26, %v326_v26  ;;  %v330_v28 = vsub.f32 %v287_v1, %v326_v26  ;;  %v332_v29 = vsub.f32 %v289_v3, %v326_v26  ;;  %v334_v30 = vsub.f32 %v291_v5, %v326_v26  ;;  %v1014_v3 = vld [vmem:[%s273_s30] ss:$0 sm:$0xff] }
  0x2a   : > { %v336_v31 = vsub.f32 %v293_v8, %v326_v26  ;;  %v396_v1 = vcombine.high %v1013_v63, %v1013_v63  ;;  %v413_v7 = vcombine.high %v1014_v3, %v1014_v3 }
  0x2b   : > { %v331_v32 = vsub.f32 %v288_v2, %v328_v27  ;;  %v333_v33 = vsub.f32 %v290_v4, %v328_v27  ;;  %v335_v34 = vsub.f32 %v292_v6, %v328_v27  ;;  %v337_v35 = vsub.f32 %v294_v9, %v328_v27 }
  0x2c   : > { %v338_v36 = vmul.f32 %v330_v28, %v330_v28  ;;  %v340_v37 = vmul.f32 %v332_v29, %v332_v29  ;;  %v342_v38 = vmul.f32 %v334_v30, %v334_v30  ;;  %v344_v39 = vmul.f32 %v336_v31, %v336_v31 }
  0x2d   : > { %v339_v40 = vmul.f32 %v331_v32, %v331_v32  ;;  %v341_v41 = vmul.f32 %v333_v33, %v333_v33  ;;  %v343_v42 = vmul.f32 %v335_v34, %v335_v34  ;;  %v345_v43 = vmul.f32 %v337_v35, %v337_v35 }
  0x2f   : > { %v354_v44 = vcombine.low %v338_v36, %v339_v40  ;;  %v355_v45 = vcombine.low %v340_v37, %v341_v41  ;;  %v356_v46 = vcombine.low %v342_v38, %v343_v42  ;;  %v357_v47 = vcombine.low %v344_v39, %v345_v43 }
  0x31   : > { %v362_v48 = vsel %vm311_vm1, %v354_v44, 0.0  ;;  %v363_v49 = vsel %vm311_vm1, %v355_v45, 0.0  ;;  %v365_v50 = vsel %vm311_vm1, %v356_v46, 0.0  ;;  %v367_v52 = vsel %vm311_vm1, %v357_v47, 0.0 }
  0x32   : > { %v364_v51 = vadd.f32 %v363_v49, %v362_v48 }
  0x34   : > { %v366_v53 = vadd.f32 %v365_v50, %v364_v51 }
  0x36   : > { %v368_v54 = vadd.f32 %v367_v52, %v366_v53 }
  0x38   : > { %v369_v55 = vrot.slane %v368_v54, 4 }
  0x3a   : > { %v370_v56 = vadd.f32 %v369_v55, %v368_v54 }
  0x3c   : > { %v371_v57 = vrot.slane %v370_v56, 2 }
  0x3e   : > { %v372_v58 = vadd.f32 %v371_v57, %v370_v56  ;;  %v782_v57 = vld [vmem:[%s1236_s14 + $0x40] sm:$0xff] }
  0x3f   : > { %1037 = vmatprep.subr.mxu0 %v782_v57  ;;  %1061 = vmatprep.subr.mxu1 %v782_v57 }
  0x40   : > { %v373_v59 = vrot.slane %v372_v58, 1  ;;  %1038 = vmatpush3.msra.mxu0 %v782_v57  ;;  %1070 = vmatpush3.msra.mxu1 %v782_v57 }
  0x42   : > { %v374_v60 = vadd.f32 %v373_v59, %v372_v58  ;;  %v781_v58 = vld [vmem:[%s1236_s14 + $0x38] sm:$0xff] }
  0x43   : > { %1039 = vmatprep.subr.mxu0 %v781_v58  ;;  %1062 = vmatprep.subr.mxu1 %v781_v58 }
  0x44   : > { %v375_v61 = vmul.f32 0.03125, %v374_v60  ;;  %v780_v60 = vld [vmem:[%s1236_s14 + $0x30] sm:$0xff]  ;;  %1040 = vmatpush3.msra.mxu0 %v781_v58  ;;  %1071 = vmatpush3.msra.mxu1 %v781_v58 }
  0x45   : > { %1041 = vmatprep.subr.mxu0 %v780_v60  ;;  %1063 = vmatprep.subr.mxu1 %v780_v60 }
  0x46   : > { %v376_v62 = vadd.f32 1e-05, %v375_v61  ;;  %1042 = vmatpush3.msra.mxu0 %v780_v60  ;;  %1072 = vmatpush3.msra.mxu1 %v780_v60 }
  0x48   : > { %1137 = vrsqrt.f32 %v376_v62  ;;  %v779_v62 = vld [vmem:[%s1236_s14 + $0x28] sm:$0xff] }
  0x49   : > { %1043 = vmatprep.subr.mxu0 %v779_v62  ;;  %1064 = vmatprep.subr.mxu1 %v779_v62 }
  0x4a   : > { %1044 = vmatpush3.msra.mxu0 %v779_v62  ;;  %1073 = vmatpush3.msra.mxu1 %v779_v62 }
  0x55   : > { %v1138_v0 = vpop.eup %1137 }
  0x56   : > { %v385_v2 = vmul.f32 %v1138_v0, %v334_v30  ;;  %v381_v4 = vmul.f32 %v1138_v0, %v330_v28  ;;  %v379_v5 = vcombine.high %v1138_v0, %v1138_v0  ;;  %v383_v6 = vmul.f32 %v1138_v0, %v332_v29 }
  0x57   : > { %v387_v8 = vmul.f32 %v1138_v0, %v336_v31 }
  0x58   : > { %v402_v9 = vmul.f32 %v1013_v63, %v385_v2  ;;  %v398_v10 = vmul.f32 %v1013_v63, %v381_v4  ;;  %v382_v11 = vmul.f32 %v379_v5, %v331_v32  ;;  %v400_v12 = vmul.f32 %v1013_v63, %v383_v6 }
  0x59   : > { %v386_v13 = vmul.f32 %v379_v5, %v335_v34  ;;  %v404_v14 = vmul.f32 %v1013_v63, %v387_v8  ;;  %v384_v15 = vmul.f32 %v379_v5, %v333_v33  ;;  %v388_v16 = vmul.f32 %v379_v5, %v337_v35  ;;  %v776_v5 = vld [vmem:[%s1236_s14 + $0x10] sm:$0xff]  ;;  %v775_v8 = vld [vmem:[%s1236_s14 + $0x8] sm:$0xff] }
  0x5a   : > { %v419_v17 = vadd.f32 %v1014_v3, %v402_v9  ;;  %v415_v18 = vadd.f32 %v1014_v3, %v398_v10  ;;  %v399_v19 = vmul.f32 %v396_v1, %v382_v11  ;;  %v417_v20 = vadd.f32 %v1014_v3, %v400_v12  ;;  %v774_v10 = vld [vmem:[%s1236_s14] sm:$0xff] }
  0x5b   : > { %v403_v21 = vmul.f32 %v396_v1, %v386_v13  ;;  %v421_v22 = vadd.f32 %v1014_v3, %v404_v14  ;;  %v401_v23 = vmul.f32 %v396_v1, %v384_v15  ;;  %v405_v24 = vmul.f32 %v396_v1, %v388_v16  ;;  %v778_v1 = vld [vmem:[%s1236_s14 + $0x20] sm:$0xff]  ;;  %v777_v3 = vld [vmem:[%s1236_s14 + $0x18] sm:$0xff] }
  0x5c   : > { %v427_v25 = vmax.f32 %v419_v17, 0.0  ;;  %v423_v26 = vmax.f32 %v415_v18, 0.0  ;;  %v416_v27 = vadd.f32 %v413_v7, %v399_v19  ;;  %v425_v28 = vmax.f32 %v417_v20, 0.0  ;;  %1045 = vmatprep.subr.mxu0 %v778_v1  ;;  %1065 = vmatprep.subr.mxu1 %v778_v1 }
  0x5d   : > { %v420_v29 = vadd.f32 %v413_v7, %v403_v21  ;;  %v429_v30 = vmax.f32 %v421_v22, 0.0  ;;  %v418_v31 = vadd.f32 %v413_v7, %v401_v23  ;;  %v422_v32 = vadd.f32 %v413_v7, %v405_v24  ;;  %1046 = vmatpush3.msra.mxu0 %v778_v1  ;;  %1074 = vmatpush3.msra.mxu1 %v778_v1 }
  0x5e   : > { %450 = vst.msk [vmem:[#allocation2 + $0x39] sm:$0xf] %vm445_vm2, %v427_v25  ;;  %446 = vst.msk [vmem:[#allocation2 + $0x9] sm:$0xf] %vm445_vm2, %v423_v26  ;;  %v424_v33 = vmax.f32 %v416_v27, 0.0  ;;  %1047 = vmatprep.subr.mxu0 %v777_v3  ;;  %1066 = vmatprep.subr.mxu1 %v777_v3 }
  0x5f   : > { %448 = vst.msk [vmem:[#allocation2 + $0x19] sm:$0xf] %vm445_vm2, %v425_v28  ;;  %v428_v34 = vmax.f32 %v420_v29, 0.0  ;;  %452 = vst.msk [vmem:[#allocation2 + $0x49] sm:$0xf] %vm445_vm2, %v429_v30  ;;  %v426_v35 = vmax.f32 %v418_v31, 0.0  ;;  %1048 = vmatpush3.msra.mxu0 %v777_v3  ;;  %1075 = vmatpush3.msra.mxu1 %v777_v3 }
  0x60   : > { %v430_v36 = vmax.f32 %v422_v32, 0.0  ;;  %447 = vst.msk [vmem:[#allocation2 + $0x11] sm:$0xf] %vm445_vm2, %v424_v33  ;;  %1049 = vmatprep.subr.mxu0 %v776_v5  ;;  %1067 = vmatprep.subr.mxu1 %v776_v5 }
  0x61   : > { %451 = vst.msk [vmem:[#allocation2 + $0x41] sm:$0xf] %vm445_vm2, %v428_v34  ;;  %449 = vst.msk [vmem:[#allocation2 + $0x21] sm:$0xf] %vm445_vm2, %v426_v35  ;;  %1050 = vmatpush3.msra.mxu0 %v776_v5  ;;  %1076 = vmatpush3.msra.mxu1 %v776_v5 }
  0x62   : > { %453 = vst.msk [vmem:[#allocation2 + $0x51] sm:$0xf] %vm445_vm2, %v430_v36  ;;  %1051 = vmatprep.subr.mxu0 %v775_v8  ;;  %1068 = vmatprep.subr.mxu1 %v775_v8 }
  0x63   : > { %1052 = vmatpush3.msra.mxu0 %v775_v8  ;;  %1077 = vmatpush3.msra.mxu1 %v775_v8 }
  0x64   : > { %1053 = vmatprep.subr.mxu0 %v774_v10  ;;  %1069 = vmatprep.subr.mxu1 %v774_v10 }
  0x65   : > { %v1101_v37 = vld [vmem:[#allocation2 + $0x32] ss:$8 sps:$4 sm:$0xff]   ;;  %v1102_v38 = vld [vmem:[#allocation2 + $0x1] ss:$8 sps:$4 sm:$0xff]   ;;  %1054 = vmatpush3.msra.mxu0 %v774_v10  ;;  %1078 = vmatpush3.msra.mxu1 %v774_v10 }
  0x66   : > { %583 = vrot.lane.b32.xlu1 %v1101_v37, %s1148_s6  ;;  %555 = vrot.lane.b32.xlu0 %v1102_v38, %s1149_s7  ;;  %v1103_v40 = vld [vmem:[#allocation2 + $0x31] ss:$8 sps:$4 sm:$0xff]   ;;  %v1105_v42 = vld [vmem:[#allocation2 + $0x2] ss:$8 sps:$4 sm:$0xff]  }
  0x67   : > { %v1104_v39 = vld [vmem:[#allocation2 + $0x11] ss:$8 sps:$4 sm:$0xff]  }
  0x68   : > { %v1106_v41 = vld [vmem:[#allocation2 + $0x41] ss:$8 sps:$4 sm:$0xff]   ;;  %v1107_v44 = vld [vmem:[#allocation2 + $0x12] ss:$8 sps:$4 sm:$0xff]  }
  0x69   : > { %v1108_v43 = vld [vmem:[#allocation2 + $0x42] ss:$8 sps:$4 sm:$0xff]   ;;  %v1121_v61 = vld [vmem:[#allocation2 + $0x10] ss:$8 sps:$4 sm:$0xff]  }
  0x6a   : > { %557 = vrot.lane.b32.xlu1 %v1104_v39, %s1149_s7  ;;  %559 = vrot.lane.b32.xlu0 %v1103_v40, %s1149_s7  ;;  %v1110_v45 = vld [vmem:[#allocation2 + $0x38] ss:$8 sps:$4 sm:$0xff]   ;;  %v1109_v46 = vld [vmem:[#allocation2 + $0x8] ss:$8 sps:$4 sm:$0xff]  }
  0x6b   : > { %v1112_v47 = vld [vmem:[#allocation2 + $0x48] ss:$8 sps:$4 sm:$0xff]   ;;  %v1111_v48 = vld [vmem:[#allocation2 + $0x18] ss:$8 sps:$4 sm:$0xff]  }
  0x6c   : > { %v1114_v49 = vld [vmem:[#allocation2 + $0x39] ss:$8 sps:$4 sm:$0xff]   ;;  %v1113_v50 = vld [vmem:[#allocation2 + $0x9] ss:$8 sps:$4 sm:$0xff]  }
  0x6d   : > { %v1116_v51 = vld [vmem:[#allocation2 + $0x49] ss:$8 sps:$4 sm:$0xff]   ;;  %v1115_v52 = vld [vmem:[#allocation2 + $0x19] ss:$8 sps:$4 sm:$0xff]  }
  0x6e   : > { %561 = vrot.lane.b32.xlu1 %v1106_v41, %s1149_s7  ;;  %579 = vrot.lane.b32.xlu0 %v1105_v42, %s1148_s6  ;;  %v1118_v53 = vld [vmem:[#allocation2 + $0x3a] ss:$8 sps:$4 sm:$0xff]   ;;  %v1117_v54 = vld [vmem:[#allocation2 + $0xa] ss:$8 sps:$4 sm:$0xff]  }
  0x6f   : > { %v1120_v55 = vld [vmem:[#allocation2 + $0x4a] ss:$8 sps:$4 sm:$0xff]   ;;  %v1119_v56 = vld [vmem:[#allocation2 + $0x1a] ss:$8 sps:$4 sm:$0xff]  }
  0x70   : > { %v1122_v59 = vld [vmem:[#allocation2 + $0x40] ss:$8 sps:$4 sm:$0xff]   ;;  %v1124_v63 = vld [vmem:[#allocation2 + $0x50] ss:$8 sps:$4 sm:$0xff]  }
  0x71   : > { %v1123_v0 = vld [vmem:[#allocation2 + $0x20] ss:$8 sps:$4 sm:$0xff]   ;;  %v1125_v4 = vld [vmem:[#allocation2 + $0x11] ss:$8 sps:$4 sm:$0xff]  }
  0x72   : > { %585 = vrot.lane.b32.xlu1 %v1108_v43, %s1148_s6  ;;  %581 = vrot.lane.b32.xlu0 %v1107_v44, %s1148_s6  ;;  %v1126_v2 = vld [vmem:[#allocation2 + $0x41] ss:$8 sps:$4 sm:$0xff]   ;;  %v1128_v6 = vld [vmem:[#allocation2 + $0x51] ss:$8 sps:$4 sm:$0xff]  }
  0x73   : > { %v1127_v7 = vld [vmem:[#allocation2 + $0x21] ss:$8 sps:$4 sm:$0xff]   ;;  %v1129_v11 = vld [vmem:[#allocation2 + $0x12] ss:$8 sps:$4 sm:$0xff]  }
  0x74   : > { %v1130_v9 = vld [vmem:[#allocation2 + $0x42] ss:$8 sps:$4 sm:$0xff]   ;;  %v1132_v12 = vld [vmem:[#allocation2 + $0x52] ss:$8 sps:$4 sm:$0xff]  }
  0x75   : > { %v1131_v13 = vld [vmem:[#allocation2 + $0x22] ss:$8 sps:$4 sm:$0xff]   ;;  %v1134_v36 = vld [vmem:[#allocation2 + $0x30] ss:$8 sps:$4 sm:$0xff]  }
  0x76   : > { %607 = vrot.lane.b32.xlu1 %v1110_v45, %s1150_s8  ;;  %603 = vrot.lane.b32.xlu0 %v1109_v46, %s1150_s8  ;;  %v1133_v39 = vld [vmem:[#allocation2] ss:$8 sps:$4 sm:$0xff]   ;;  %v1135_v45 = vld [vmem:[#allocation2 + $0x10] ss:$8 sps:$4 sm:$0xff]  }
  0x77   : > { %v1136_v43 = vld [vmem:[#allocation2 + $0x40] ss:$8 sps:$4 sm:$0xff]  }
  0x7a   : > { %609 = vrot.lane.b32.xlu1 %v1112_v47, %s1150_s8  ;;  %605 = vrot.lane.b32.xlu0 %v1111_v48, %s1150_s8 }
  0x7e   : > { %631 = vrot.lane.b32.xlu1 %v1114_v49, %s1151_s9  ;;  %627 = vrot.lane.b32.xlu0 %v1113_v50, %s1151_s9 }
  0x82   : > { %633 = vrot.lane.b32.xlu1 %v1116_v51, %s1151_s9  ;;  %629 = vrot.lane.b32.xlu0 %v1115_v52, %s1151_s9 }
  0x86   : > { %655 = vrot.lane.b32.xlu1 %v1118_v53, %s1152_s11  ;;  %651 = vrot.lane.b32.xlu0 %v1117_v54, %s1152_s11 }
  0x8a   : > { %657 = vrot.lane.b32.xlu1 %v1120_v55, %s1152_s11  ;;  %653 = vrot.lane.b32.xlu0 %v1119_v56, %s1152_s11 }
  0x8e   : > { %679 = vrot.lane.b32.xlu1 %v1122_v59, %s1153_s15  ;;  %675 = vrot.lane.b32.xlu0 %v1121_v61, %s1153_s15 }
  0x92   : > { %681 = vrot.lane.b32.xlu1 %v1124_v63, %s1153_s15  ;;  %677 = vrot.lane.b32.xlu0 %v1123_v0, %s1153_s15 }
  0x96   : > { %703 = vrot.lane.b32.xlu1 %v1126_v2, %s1154_s16  ;;  %699 = vrot.lane.b32.xlu0 %v1125_v4, %s1154_s16 }
  0x9a   : > { %705 = vrot.lane.b32.xlu1 %v1128_v6, %s1154_s16  ;;  %701 = vrot.lane.b32.xlu0 %v1127_v7, %s1154_s16 }
  0x9e   : > { %727 = vrot.lane.b32.xlu1 %v1130_v9, %s1155_s17  ;;  %723 = vrot.lane.b32.xlu0 %v1129_v11, %s1155_s17 }
  0xa2   : > { %729 = vrot.lane.b32.xlu1 %v1132_v12, %s1155_s17  ;;  %725 = vrot.lane.b32.xlu0 %v1131_v13, %s1155_s17 }
  0xd8   : > { %v584_v14 = vpop.permute.xlu1 %583  ;;  %v556_v15 = vpop.permute.xlu0 %555 }
  0xd9   : > { %v735_v44 = vsel %vm311_vm1, %v1133_v39, %v556_v15 }
  0xdc   : > { %v558_v16 = vpop.permute.xlu1 %557  ;;  %v560_v17 = vpop.permute.xlu0 %559 }
  0xdd   : > { %v737_v40 = vsel %vm311_vm1, %v1134_v36, %v560_v17  ;;  %v736_v56 = vsel %vm311_vm1, %v1135_v45, %v558_v16 }
  0xde   : > { %v742_v46 = vsel %vm739_vm3, %v737_v40, %v584_v14 }
  0xe0   : > { %v562_v18 = vpop.permute.xlu1 %561  ;;  %v580_v19 = vpop.permute.xlu0 %579 }
  0xe1   : > { %v740_v47 = vsel %vm739_vm3, %v735_v44, %v580_v19  ;;  %v738_v53 = vsel %vm311_vm1, %v1136_v43, %v562_v18  ;;  %v1015_v18 = vld [vmem:[%s281_s23] ss:$0 sm:$0xff] }
  0xe4   : > { %v586_v20 = vpop.permute.xlu1 %585  ;;  %v582_v21 = vpop.permute.xlu0 %581 }
  0xe5   : > { %v743_v57 = vsel %vm739_vm3, %v738_v53, %v586_v20  ;;  %v741_v60 = vsel %vm739_vm3, %v736_v56, %v582_v21 }
  0xe8   : > { %v608_v22 = vpop.permute.xlu1 %607  ;;  %v604_v23 = vpop.permute.xlu0 %603 }
  0xe9   : > { %v747_v48 = vsel %vm744_vm4, %v742_v46, %v608_v22  ;;  %v745_v50 = vsel %vm744_vm4, %v740_v47, %v604_v23 }
  0xec   : > { %v610_v24 = vpop.permute.xlu1 %609  ;;  %v606_v25 = vpop.permute.xlu0 %605 }
  0xed   : > { %v748_v61 = vsel %vm744_vm4, %v743_v57, %v610_v24  ;;  %v746_v1 = vsel %vm744_vm4, %v741_v60, %v606_v25 }
  0xf0   : > { %v632_v26 = vpop.permute.xlu1 %631  ;;  %v628_v27 = vpop.permute.xlu0 %627 }
  0xf1   : > { %v752_v51 = vsel %vm749_vm5, %v747_v48, %v632_v26  ;;  %v750_v54 = vsel %vm749_vm5, %v745_v50, %v628_v27 }
  0xf4   : > { %v634_v28 = vpop.permute.xlu1 %633  ;;  %v630_v29 = vpop.permute.xlu0 %629 }
  0xf5   : > { %v753_v2 = vsel %vm749_vm5, %v748_v61, %v634_v28  ;;  %v751_v6 = vsel %vm749_vm5, %v746_v1, %v630_v29 }
  0xf8   : > { %v656_v30 = vpop.permute.xlu1 %655  ;;  %v652_v31 = vpop.permute.xlu0 %651 }
  0xf9   : > { %v757_v55 = vsel %vm754_vm6, %v752_v51, %v656_v30  ;;  %v755_v58 = vsel %vm754_vm6, %v750_v54, %v652_v31 }
  0xfc   : > { %v658_v32 = vpop.permute.xlu1 %657  ;;  %v654_v33 = vpop.permute.xlu0 %653 }
  0xfd   : > { %v758_v7 = vsel %vm754_vm6, %v753_v2, %v658_v32  ;;  %v756_v9 = vsel %vm754_vm6, %v751_v6, %v654_v33 }
 0x100   : > { %v680_v34 = vpop.permute.xlu1 %679  ;;  %v676_v35 = vpop.permute.xlu0 %675 }
 0x101   : > { %v762_v59 = vsel %vm759_vm7, %v757_v55, %v680_v34  ;;  %v760_v62 = vsel %vm759_vm7, %v755_v58, %v676_v35 }
 0x104   : > { %v682_v37 = vpop.permute.xlu1 %681  ;;  %v678_v38 = vpop.permute.xlu0 %677 }
 0x105   : > { %v763_v10 = vsel %vm759_vm7, %v758_v7, %v682_v37  ;;  %v761_v11 = vsel %vm759_vm7, %v756_v9, %v678_v38 }
 0x108   : > { %v704_v41 = vpop.permute.xlu1 %703  ;;  %v700_v42 = vpop.permute.xlu0 %699 }
 0x109   : > { %v767_v63 = vsel %vm764_vm8, %v762_v59, %v704_v41  ;;  %v765_v3 = vsel %vm764_vm8, %v760_v62, %v700_v42 }
 0x10c   : > { %v706_v49 = vpop.permute.xlu1 %705  ;;  %v702_v52 = vpop.permute.xlu0 %701 }
 0x10d   : > { %v768_v12 = vsel %vm764_vm8, %v763_v10, %v706_v49  ;;  %v766_v14 = vsel %vm764_vm8, %v761_v11, %v702_v52 }
 0x110   : > { %v728_v0 = vpop.permute.xlu1 %727  ;;  %v724_v4 = vpop.permute.xlu0 %723 }
 0x111   : > { %v772_v5 = vsel %vm769_vm9, %v767_v63, %v728_v0  ;;  %v770_v8 = vsel %vm769_vm9, %v765_v3, %v724_v4 }
 0x112   : > { %1058 = vmatprep.mubr.msk.f32.mxu1 %vm790_vm10, %v772_v5  ;;  %1055 = vmatprep.mubr.msk.f32.mxu0 %vm790_vm10, %v770_v8 }
 0x114   : > { %v730_v13 = vpop.permute.xlu1 %729  ;;  %v726_v15 = vpop.permute.xlu0 %725 }
 0x115   : > { %v773_v16 = vsel %vm769_vm9, %v768_v12, %v730_v13  ;;  %v771_v17 = vsel %vm769_vm9, %v766_v14, %v726_v15 }
 0x116   : > { %1059 = vmatmul.mubr.msk.f32.vlgmr.msra.gmra.mxu1 %vm790_vm10, %v773_v16  ;;  %1056 = vmatmul.mubr.msk.f32.vlgmr.msra.gmra.mxu0 %vm790_vm10, %v771_v17 }
 0x1d6   : > { %v1060_v19 = vpop.f32.mrf.mxu1  ;;  %v1057_v20 = vpop.f32.mrf.mxu0 }
 0x1d7   : > { %v885_v21 = vadd.f32 %v1060_v19, %v1015_v18  ;;  %v875_v22 = vadd.f32 %v1057_v20, %v1015_v18 }
 0x1d8   : > { %v879_v23 = vpop.f32.mrf.mxu1  ;;  %v869_v25 = vpop.f32.mrf.mxu0 }
 0x1d9   : > { %v895_v24 = vcombine.high %v885_v21, %v885_v21  ;;  %907 = vst.msk [vmem:[%s286_s26 + $0x18] sm:$0xf] %vm900_vm11, %v885_v21  ;;  %v880_v26 = vadd.f32 %v1015_v18, %v879_v23  ;;  %v893_v27 = vcombine.high %v875_v22, %v875_v22  ;;  %903 = vst.msk [vmem:[%s286_s26 + $0x8] sm:$0xf] %vm900_vm11, %v875_v22 }
 0x1da   : > { %v870_v28 = vadd.f32 %v1015_v18, %v869_v25 }
 0x1db   : > { %908 = vst.msk [vmem:[%s286_s26 + $0x1c] sm:$0xf] %vm900_vm11, %v895_v24  ;;  %v894_v29 = vcombine.high %v880_v26, %v880_v26  ;;  %905 = vst.msk [vmem:[%s286_s26 + $0x10] sm:$0xf] %vm900_vm11, %v880_v26 }
 0x1dc   : > { %904 = vst.msk [vmem:[%s286_s26 + $0xc] sm:$0xf] %vm900_vm11, %v893_v27  ;;  %v892_v30 = vcombine.high %v870_v28, %v870_v28  ;;  %901 = vst.msk [vmem:[%s286_s26] sm:$0xf] %vm900_vm11, %v870_v28 }
 0x1dd   : > { %906 = vst.msk [vmem:[%s286_s26 + $0x14] sm:$0xf] %vm900_vm11, %v894_v29 }
 0x1de   : > { %902 = vst.msk [vmem:[%s286_s26 + $0x4] sm:$0xf] %vm900_vm11, %v892_v30 }
 0x1df PF: > { %s15_s18 = sadd.s32 1, %s1145_s18  }
 0x1e0   : > { %p12_p4 = scmp.ge.s32.totalorder %s15_s18, 18  }
 0x1e2   :  { %14 = sbr.rel (!%p12_p4) target bundleno = 1 (0x1), region = 84 }

// kernel: mlb_forward.5
= control target key start
LH: loop header
LB: loop body
LE: loop exit
PB: predicated region body
PF: predicated region fallthrough
CT: control target
= control target key end

     0   :  { %s1849_s18 = smov 0   ;;  %s2725_s0 = inlined_call_operand.vmem [shape: f32[4,2,8,8,8], index: 0, kind: input, shape index: {}]   ;;  %s2726_s1 = inlined_call_operand.vmem [shape: f32[4,1,8], index: 1, kind: input, shape index: {}]   ;;  %s2727_s2 = inlined_call_operand.vmem [shape: f32[4,1,8], index: 2, kind: input, shape index: {}]   ;;  %s2728_s3 = inlined_call_operand.vmem [shape: f32[4,72,4], index: 3, kind: input, shape index: {}]   ;;  %s2729_s4 = inlined_call_operand.vmem [shape: f32[4,1,4], index: 4, kind: input, shape index: {}]   ;;  %s2730_s5 = inlined_call_operand.vmem [shape: f32[4,2,8,8,4], index: 5, kind: output, shape index: {}]  }
   0x1 LB: > { %s1664_s19 = sadd.s32 4294967295, %s1808_s18   ;;  %p1668_p0 = scmp.ge.s32.totalorder %s1808_s18, 1  ;;  %s1808_s18 = sphi %s1849_s18, %s15_s18  }
   0x2   : > { %p221_p1 = scmp.lt.s32.totalorder %s1808_s18, 5 }
   0x4   : > { %p222_p2 = pnand %p1668_p0, %p221_p1 }
   0x5   : > { %p263_p3 = scmp.lt.s32.totalorder (!%p222_p2), %s1664_s19, 3  ;;  %s1811_s24 = smov (!%p222_p2), 8  }
   0x6   : > { %225 = sbr.rel (%p222_p2) target bundleno = 705 (0x2c1), region = 40  ;;  %s1812_s25 = smov (!%p222_p2), 16  }
   0x7   : > { %s1813_s7 = smov (!%p222_p2), 24   ;;  %s1814_s8 = smov (!%p222_p2), 32  }
   0x8   : > { %s1815_s9 = smov (!%p222_p2), 40   ;;  %s1816_s10 = smov (!%p222_p2), 48  }
   0x9   : > { %s1817_s12 = smov (!%p222_p2), 56   ;;  %s1818_s16 = smov (!%p222_p2), 64  }
   0xb   : > { %vm303_vm0 = vcmask 64512   ;;  %vm494_vm1 = vcmask 58368   ;;  %v1810_v0 = vmov 0.0   ;;  %s2732_s19 = smov (!%p263_p3, %s1664_s19), 3  ;;  %vm1224_vm2 = vcmask 130048  }
   0xc   : > { %493 = vst.msk [vmem:[#allocation2] sm:$0xff] %vm303_vm0, %v1810_v0  ;;  %496 = vst.msk [vmem:[#allocation2 + $0x10] sm:$0xff] %vm303_vm0, %v1810_v0  ;;  %s1695_s20 = sshll.u32 %s2732_s19, 7  ;;  %s270_s28 = scalar_lea.vmem %s2726_s1, %s2732_s19  ;;  %vm1241_vm3 = vcmask 195584   ;;  %vm1258_vm4 = vcmask 261120   ;;  %vm1275_vm5 = vcmask 326656  }
   0xd   : > { %495 = vst.msk [vmem:[#allocation2 + $0x8] sm:$0x3] %vm494_vm1, %v1810_v0  ;;  %497 = vst.msk [vmem:[#allocation2 + $0x18] sm:$0x3] %vm494_vm1, %v1810_v0  ;;  %s1909_s23 = scalar_lea.vmem %s2725_s0, %s1695_s20  ;;  %s273_s6 = scalar_lea.vmem %s2727_s2, %s2732_s19  ;;  %vm1292_vm6 = vcmask 392192   ;;  %vm1309_vm7 = vcmask 457728  }
   0xe   : > { %498 = vst.msk [vmem:[#allocation2 + $0x20] sm:$0xff] %vm303_vm0, %v1810_v0  ;;  %500 = vst.msk [vmem:[#allocation2 + $0x30] sm:$0xff] %vm303_vm0, %v1810_v0  ;;  %v1912_v1 = vld [vmem:[%s1909_s23] sm:$0xff]  ;;  %v1915_v2 = vld [vmem:[%s1909_s23 + $0x8] sm:$0xff]  ;;  %s1782_s11 = smul.u32 72, %s2732_s19  ;;  %vm1326_vm8 = vcmask 523264   ;;  %s281_s22 = scalar_lea.vmem %s2729_s4, %s2732_s19 }
   0xf   : > { %499 = vst.msk [vmem:[#allocation2 + $0x28] sm:$0x3] %vm494_vm1, %v1810_v0  ;;  %501 = vst.msk [vmem:[#allocation2 + $0x38] sm:$0x3] %vm494_vm1, %v1810_v0  ;;  %v1918_v3 = vld [vmem:[%s1909_s23 + $0x10] sm:$0xff]  ;;  %v304_v6 = vsel %vm303_vm0, %v1912_v1, 0.0 }
  0x10   : > { %502 = vst.msk [vmem:[#allocation2 + $0x40] sm:$0xff] %vm303_vm0, %v1810_v0  ;;  %504 = vst.msk [vmem:[#allocation2 + $0x50] sm:$0xff] %vm303_vm0, %v1810_v0  ;;  %v305_v7 = vsel %vm303_vm0, %v1915_v2, 0.0  ;;  %v307_v8 = vsel %vm303_vm0, %v1918_v3, 0.0  ;;  %v290_v9 = vld [vmem:[%s1909_s23 + $0x18] sm:$0xff]  ;;  %v291_v10 = vld [vmem:[%s1909_s23 + $0x20] sm:$0xff]  ;;  %s2190_s15 = scalar_lea.vmem %s2728_s3, %s1782_s11 }
  0x11   : > { %503 = vst.msk [vmem:[#allocation2 + $0x48] sm:$0x3] %vm494_vm1, %v1810_v0  ;;  %505 = vst.msk [vmem:[#allocation2 + $0x58] sm:$0x3] %vm494_vm1, %v1810_v0  ;;  %v306_v11 = vadd.f32 %v305_v7, %v304_v6  ;;  %v309_v13 = vsel %vm303_vm0, %v290_v9, 0.0  ;;  %v292_v14 = vld [vmem:[%s1909_s23 + $0x28] sm:$0xff] }
  0x12   : > { %506 = vst.msk [vmem:[#allocation2 + $0x60] sm:$0xff] %vm303_vm0, %v1810_v0  ;;  %508 = vst.msk [vmem:[#allocation2 + $0x70] sm:$0xff] %vm303_vm0, %v1810_v0  ;;  %v311_v16 = vsel %vm303_vm0, %v291_v10, 0.0  ;;  %v293_v17 = vld [vmem:[%s1909_s23 + $0x30] sm:$0xff]  ;;  %v313_v20 = vsel %vm303_vm0, %v292_v14, 0.0  ;;  %v294_v21 = vld [vmem:[%s1909_s23 + $0x38] sm:$0xff] }
  0x13   : > { %507 = vst.msk [vmem:[#allocation2 + $0x68] sm:$0x3] %vm494_vm1, %v1810_v0  ;;  %509 = vst.msk [vmem:[#allocation2 + $0x78] sm:$0x3] %vm494_vm1, %v1810_v0  ;;  %v308_v15 = vadd.f32 %v307_v8, %v306_v11  ;;  %v315_v23 = vsel %vm303_vm0, %v293_v17, 0.0  ;;  %v295_v24 = vld [vmem:[%s1909_s23 + $0x40] sm:$0xff] }
  0x14   : > { %510 = vst.msk [vmem:[#allocation2 + $0x80] sm:$0xff] %vm303_vm0, %v1810_v0  ;;  %512 = vst.msk [vmem:[#allocation2 + $0x90] sm:$0xff] %vm303_vm0, %v1810_v0  ;;  %v567_v4 = vld [vmem:[#allocation2 + $0x1] sm:$0xff]  ;;  %v317_v26 = vsel %vm303_vm0, %v294_v21, 0.0  ;;  %v319_v29 = vsel %vm303_vm0, %v295_v24, 0.0  ;;  %v297_v30 = vld [vmem:[%s1909_s23 + $0x50] sm:$0xff] }
  0x15   : > { %511 = vst.msk [vmem:[#allocation2 + $0x88] sm:$0x3] %vm494_vm1, %v1810_v0  ;;  %513 = vst.msk [vmem:[#allocation2 + $0x98] sm:$0x3] %vm494_vm1, %v1810_v0  ;;  %712 = vrot.lane.b32.xlu0 %v567_v4, %s1811_s24  ;;  %v310_v18 = vadd.f32 %v309_v13, %v308_v15  ;;  %v583_v19 = vld [vmem:[#allocation2 + $0x2] sm:$0xff]  ;;  %v298_v33 = vld [vmem:[%s1909_s23 + $0x58] sm:$0xff] }
  0x16   : > { %514 = vst.msk [vmem:[#allocation2 + $0xa0] sm:$0xff] %vm303_vm0, %v1810_v0  ;;  %516 = vst.msk [vmem:[#allocation2 + $0xb0] sm:$0xff] %vm303_vm0, %v1810_v0  ;;  %v296_v27 = vld [vmem:[%s1909_s23 + $0x48] sm:$0xff]  ;;  %v323_v35 = vsel %vm303_vm0, %v297_v30, 0.0  ;;  %v299_v36 = vld [vmem:[%s1909_s23 + $0x60] sm:$0xff]  ;;  %v325_v38 = vsel %vm303_vm0, %v298_v33, 0.0 }
  0x17   : > { %515 = vst.msk [vmem:[#allocation2 + $0xa8] sm:$0x3] %vm494_vm1, %v1810_v0  ;;  %517 = vst.msk [vmem:[#allocation2 + $0xb8] sm:$0x3] %vm494_vm1, %v1810_v0  ;;  %v312_v22 = vadd.f32 %v311_v16, %v310_v18  ;;  %v321_v32 = vsel %vm303_vm0, %v296_v27, 0.0  ;;  %v300_v39 = vld [vmem:[%s1909_s23 + $0x68] sm:$0xff] }
  0x18   : > { %518 = vst.msk [vmem:[#allocation2 + $0xc0] sm:$0xff] %vm303_vm0, %v1810_v0  ;;  %520 = vst.msk [vmem:[#allocation2 + $0xd0] sm:$0xff] %vm303_vm0, %v1810_v0  ;;  %v327_v41 = vsel %vm303_vm0, %v299_v36, 0.0  ;;  %v301_v42 = vld [vmem:[%s1909_s23 + $0x70] sm:$0xff]  ;;  %v329_v44 = vsel %vm303_vm0, %v300_v39, 0.0  ;;  %v302_v45 = vld [vmem:[%s1909_s23 + $0x78] sm:$0xff] }
  0x19   : > { %519 = vst.msk [vmem:[#allocation2 + $0xc8] sm:$0x3] %vm494_vm1, %v1810_v0  ;;  %521 = vst.msk [vmem:[#allocation2 + $0xd8] sm:$0x3] %vm494_vm1, %v1810_v0  ;;  %v314_v25 = vadd.f32 %v313_v20, %v312_v22  ;;  %v331_v47 = vsel %vm303_vm0, %v301_v42, 0.0  ;;  %v333_v49 = vsel %vm303_vm0, %v302_v45, 0.0 }
  0x1a   : > { %522 = vst.msk [vmem:[#allocation2 + $0xe0] sm:$0xff] %vm303_vm0, %v1810_v0  ;;  %524 = vst.msk [vmem:[#allocation2 + $0xf0] sm:$0xff] %vm303_vm0, %v1810_v0  ;;  %vm1359_vm9 = vcmask 588800   ;;  %vm1553_vm10 = vcmask 31744  }
  0x1b   : > { %523 = vst.msk [vmem:[#allocation2 + $0xe8] sm:$0x3] %vm494_vm1, %v1810_v0  ;;  %525 = vst.msk [vmem:[#allocation2 + $0xf8] sm:$0x3] %vm494_vm1, %v1810_v0  ;;  %v316_v28 = vadd.f32 %v315_v23, %v314_v25 }
  0x1c   : > { %526 = vst.msk [vmem:[#allocation2 + $0x100] sm:$0xff] %vm303_vm0, %v1810_v0  ;;  %528 = vst.msk [vmem:[#allocation2 + $0x110] sm:$0xff] %vm303_vm0, %v1810_v0 }
  0x1d   : > { %527 = vst.msk [vmem:[#allocation2 + $0x108] sm:$0x3] %vm494_vm1, %v1810_v0  ;;  %529 = vst.msk [vmem:[#allocation2 + $0x118] sm:$0x3] %vm494_vm1, %v1810_v0  ;;  %v318_v31 = vadd.f32 %v317_v26, %v316_v28 }
  0x1e   : > { %530 = vst.msk [vmem:[#allocation2 + $0x120] sm:$0xff] %vm303_vm0, %v1810_v0  ;;  %532 = vst.msk [vmem:[#allocation2 + $0x130] sm:$0xff] %vm303_vm0, %v1810_v0  ;;  %v591_v5 = vld [vmem:[#allocation2 + $0xa2] sm:$0xff] }
  0x1f   : > { %531 = vst.msk [vmem:[#allocation2 + $0x128] sm:$0x3] %vm494_vm1, %v1810_v0  ;;  %533 = vst.msk [vmem:[#allocation2 + $0x138] sm:$0x3] %vm494_vm1, %v1810_v0  ;;  %792 = vrot.lane.b32.xlu1 %v591_v5, %s1812_s25  ;;  %v575_v12 = vld [vmem:[#allocation2 + $0xa1] sm:$0xff]  ;;  %v320_v34 = vadd.f32 %v319_v29, %v318_v31 }
  0x20   : > { %728 = vrot.lane.b32.xlu0 %v575_v12, %s1811_s24 }
  0x21   : > { %v322_v37 = vadd.f32 %v321_v32, %v320_v34 }
  0x23   : > { %v324_v40 = vadd.f32 %v323_v35, %v322_v37 }
  0x24   : > { %776 = vrot.lane.b32.xlu0 %v583_v19, %s1812_s25 }
  0x25   : > { %v326_v43 = vadd.f32 %v325_v38, %v324_v40 }
  0x27   : > { %v328_v46 = vadd.f32 %v327_v41, %v326_v43 }
  0x29   : > { %v330_v48 = vadd.f32 %v329_v44, %v328_v46 }
  0x2b   : > { %v332_v50 = vadd.f32 %v331_v47, %v330_v48 }
  0x2d   : > { %v334_v51 = vadd.f32 %v333_v49, %v332_v50 }
  0x2f   : > { %v335_v52 = vrot.slane %v334_v51, 4 }
  0x31   : > { %v336_v53 = vadd.f32 %v335_v52, %v334_v51 }
  0x33   : > { %v337_v54 = vrot.slane %v336_v53, 2 }
  0x35   : > { %v338_v55 = vadd.f32 %v337_v54, %v336_v53 }
  0x37   : > { %v339_v56 = vrot.slane %v338_v55, 1 }
  0x39   : > { %v340_v57 = vadd.f32 %v339_v56, %v338_v55 }
  0x3b   : > { %v342_v58 = vmul.f32 0.0078125, %v340_v57 }
  0x3d   : > { %v1957_v59 = vsub.f32 %v1912_v1, %v342_v58  ;;  %v1960_v60 = vsub.f32 %v1915_v2, %v342_v58  ;;  %v1963_v61 = vsub.f32 %v1918_v3, %v342_v58  ;;  %v1965_v62 = vsub.f32 %v290_v9, %v342_v58 }
  0x3e   : > { %v1967_v63 = vsub.f32 %v291_v10, %v342_v58  ;;  %v1975_v5 = vsub.f32 %v292_v14, %v342_v58  ;;  %v1979_v3 = vsub.f32 %v293_v17, %v342_v58  ;;  %v1986_v11 = vsub.f32 %v294_v21, %v342_v58 }
  0x3f   : > { %v359_v0 = vmul.f32 %v1957_v59, %v1957_v59  ;;  %v360_v4 = vmul.f32 %v1960_v60, %v1960_v60  ;;  %v361_v1 = vmul.f32 %v1963_v61, %v1963_v61  ;;  %v362_v2 = vmul.f32 %v1965_v62, %v1965_v62 }
  0x40   : > { %v363_v6 = vmul.f32 %v1967_v63, %v1967_v63  ;;  %v364_v12 = vmul.f32 %v1975_v5, %v1975_v5  ;;  %v351_v15 = vsub.f32 %v295_v24, %v342_v58  ;;  %v365_v16 = vmul.f32 %v1979_v3, %v1979_v3 }
  0x41   : > { %v375_v7 = vsel %vm303_vm0, %v359_v0, 0.0  ;;  %v376_v8 = vsel %vm303_vm0, %v360_v4, 0.0  ;;  %v378_v9 = vsel %vm303_vm0, %v361_v1, 0.0  ;;  %v380_v13 = vsel %vm303_vm0, %v362_v2, 0.0 }
  0x42   : > { %v377_v10 = vadd.f32 %v376_v8, %v375_v7  ;;  %v382_v17 = vsel %vm303_vm0, %v363_v6, 0.0  ;;  %v352_v19 = vsub.f32 %v296_v27, %v342_v58  ;;  %v366_v20 = vmul.f32 %v1986_v11, %v1986_v11 }
  0x43   : > { %v384_v21 = vsel %vm303_vm0, %v364_v12, 0.0  ;;  %v353_v23 = vsub.f32 %v297_v30, %v342_v58  ;;  %v367_v25 = vmul.f32 %v351_v15, %v351_v15  ;;  %v386_v26 = vsel %vm303_vm0, %v365_v16, 0.0 }
  0x44   : > { %v379_v14 = vadd.f32 %v378_v9, %v377_v10  ;;  %v354_v29 = vsub.f32 %v298_v33, %v342_v58  ;;  %v368_v24 = vmul.f32 %v352_v19, %v352_v19  ;;  %v388_v31 = vsel %vm303_vm0, %v366_v20, 0.0  ;;  %v2033_v10 = vld [vmem:[%s270_s28] ss:$0 sm:$0xff] }
  0x45   : > { %v1999_v34 = vsub.f32 %v299_v36, %v342_v58  ;;  %v369_v35 = vmul.f32 %v353_v23, %v353_v23  ;;  %v390_v27 = vsel %vm303_vm0, %v367_v25, 0.0  ;;  %v2002_v38 = vsub.f32 %v300_v39, %v342_v58 }
  0x46   : > { %v381_v18 = vadd.f32 %v380_v13, %v379_v14  ;;  %v370_v40 = vmul.f32 %v354_v29, %v354_v29  ;;  %v392_v30 = vsel %vm303_vm0, %v368_v24, 0.0  ;;  %v2005_v43 = vsub.f32 %v301_v42, %v342_v58 }
  0x47   : > { %v371_v33 = vmul.f32 %v1999_v34, %v1999_v34  ;;  %v394_v44 = vsel %vm303_vm0, %v369_v35, 0.0  ;;  %v2010_v36 = vsub.f32 %v302_v45, %v342_v58  ;;  %v372_v47 = vmul.f32 %v2002_v38, %v2002_v38 }
  0x48   : > { %v383_v22 = vadd.f32 %v382_v17, %v381_v18  ;;  %v396_v39 = vsel %vm303_vm0, %v370_v40, 0.0  ;;  %v373_v49 = vmul.f32 %v2005_v43, %v2005_v43  ;;  %v2041_v17 = vld [vmem:[%s273_s6] ss:$0 sm:$0xff] }
  0x49   : > { %v398_v42 = vsel %vm303_vm0, %v371_v33, 0.0  ;;  %v374_v51 = vmul.f32 %v2010_v36, %v2010_v36  ;;  %v400_v52 = vsel %vm303_vm0, %v372_v47, 0.0 }
  0x4a   : > { %v385_v28 = vadd.f32 %v384_v21, %v383_v22  ;;  %v402_v53 = vsel %vm303_vm0, %v373_v49, 0.0 }
  0x4b   : > { %v404_v55 = vsel %vm303_vm0, %v374_v51, 0.0 }
  0x4c   : > { %v387_v32 = vadd.f32 %v386_v26, %v385_v28 }
  0x4e   : > { %v389_v37 = vadd.f32 %v388_v31, %v387_v32 }
  0x50   : > { %v391_v41 = vadd.f32 %v390_v27, %v389_v37 }
  0x52   : > { %v393_v46 = vadd.f32 %v392_v30, %v391_v41 }
  0x54   : > { %v395_v48 = vadd.f32 %v394_v44, %v393_v46 }
  0x56   : > { %v397_v50 = vadd.f32 %v396_v39, %v395_v48 }
  0x58   : > { %v399_v45 = vadd.f32 %v398_v42, %v397_v50 }
  0x5a   : > { %v401_v54 = vadd.f32 %v400_v52, %v399_v45 }
  0x5c   : > { %v403_v56 = vadd.f32 %v402_v53, %v401_v54 }
  0x5e   : > { %v405_v57 = vadd.f32 %v404_v55, %v403_v56 }
  0x60   : > { %v406_v58 = vrot.slane %v405_v57, 4 }
  0x62   : > { %v407_v0 = vadd.f32 %v406_v58, %v405_v57 }
  0x64   : > { %v408_v4 = vrot.slane %v407_v0, 2 }
  0x66   : > { %v409_v1 = vadd.f32 %v408_v4, %v407_v0 }
  0x68   : > { %v410_v2 = vrot.slane %v409_v1, 1 }
  0x6a   : > { %v411_v6 = vadd.f32 %v410_v2, %v409_v1 }
  0x6c   : > { %v412_v7 = vmul.f32 0.0078125, %v411_v6 }
  0x6e   : > { %v413_v8 = vadd.f32 1e-05, %v412_v7 }
  0x70   : > { %1800 = vrsqrt.f32 %v413_v8 }
  0x7d   : > { %v2031_v9 = vpop.eup %1800 }
  0x7e   : > { %v415_v12 = vmul.f32 %v2031_v9, %v1957_v59  ;;  %v423_v13 = vmul.f32 %v2031_v9, %v351_v15  ;;  %v416_v14 = vmul.f32 %v2031_v9, %v1960_v60  ;;  %v424_v16 = vmul.f32 %v2031_v9, %v352_v19 }
  0x7f   : > { %v417_v18 = vmul.f32 %v2031_v9, %v1963_v61  ;;  %v425_v20 = vmul.f32 %v2031_v9, %v353_v23  ;;  %v418_v21 = vmul.f32 %v2031_v9, %v1965_v62  ;;  %v426_v22 = vmul.f32 %v2031_v9, %v354_v29 }
  0x80   : > { %v438_v59 = vmul.f32 %v2033_v10, %v415_v12  ;;  %v446_v15 = vmul.f32 %v2033_v10, %v423_v13  ;;  %v439_v60 = vmul.f32 %v2033_v10, %v416_v14  ;;  %v447_v19 = vmul.f32 %v2033_v10, %v424_v16 }
  0x81   : > { %v440_v25 = vmul.f32 %v2033_v10, %v417_v18  ;;  %v448_v26 = vmul.f32 %v2033_v10, %v425_v20  ;;  %v441_v61 = vmul.f32 %v2033_v10, %v418_v21  ;;  %v449_v23 = vmul.f32 %v2033_v10, %v426_v22 }
  0x82   : > { %v461_v62 = vadd.f32 %v2041_v17, %v438_v59  ;;  %v469_v28 = vadd.f32 %v2041_v17, %v446_v15  ;;  %v462_v29 = vadd.f32 %v2041_v17, %v439_v60  ;;  %v470_v24 = vadd.f32 %v2041_v17, %v447_v19 }
  0x83   : > { %v463_v31 = vadd.f32 %v2041_v17, %v440_v25  ;;  %v471_v32 = vadd.f32 %v2041_v17, %v448_v26  ;;  %v464_v35 = vadd.f32 %v2041_v17, %v441_v61  ;;  %v472_v27 = vadd.f32 %v2041_v17, %v449_v23 }
  0x84   : > { %v477_v37 = vmax.f32 %v461_v62, 0.0  ;;  %v485_v40 = vmax.f32 %v469_v28, 0.0  ;;  %v478_v30 = vmax.f32 %v462_v29, 0.0  ;;  %v486_v41 = vmax.f32 %v470_v24, 0.0 }
  0x85   : > { %v479_v33 = vmax.f32 %v463_v31, 0.0  ;;  %v487_v44 = vmax.f32 %v471_v32, 0.0  ;;  %v480_v46 = vmax.f32 %v464_v35, 0.0  ;;  %v488_v47 = vmax.f32 %v472_v27, 0.0  ;;  %v1349_v35 = vld [vmem:[%s2190_s15 + $0x30] sm:$0xff] }
  0x86   : > { %535 = vst.msk [vmem:[#allocation2 + $0x11] sm:$0xff] %vm303_vm0, %v477_v37  ;;  %543 = vst.msk [vmem:[#allocation2 + $0xb1] sm:$0xff] %vm303_vm0, %v485_v40  ;;  %v419_v39 = vmul.f32 %v2031_v9, %v1967_v63  ;;  %v427_v48 = vmul.f32 %v2031_v9, %v1999_v34  ;;  %v420_v49 = vmul.f32 %v2031_v9, %v1975_v5  ;;  %v1347_v37 = vld [vmem:[%s2190_s15 + $0x20] sm:$0xff]  ;;  %v1346_v40 = vld [vmem:[%s2190_s15 + $0x18] sm:$0xff] }
  0x87   : > { %536 = vst.msk [vmem:[#allocation2 + $0x21] sm:$0xff] %vm303_vm0, %v478_v30  ;;  %544 = vst.msk [vmem:[#allocation2 + $0xc1] sm:$0xff] %vm303_vm0, %v486_v41  ;;  %v428_v42 = vmul.f32 %v2031_v9, %v2002_v38  ;;  %v421_v7 = vmul.f32 %v2031_v9, %v1979_v3  ;;  %v429_v3 = vmul.f32 %v2031_v9, %v2005_v43  ;;  %v1345_v30 = vld [vmem:[%s2190_s15 + $0x10] sm:$0xff] }
  0x88   : > { %537 = vst.msk [vmem:[#allocation2 + $0x31] sm:$0xff] %vm303_vm0, %v479_v33  ;;  %545 = vst.msk [vmem:[#allocation2 + $0xd1] sm:$0xff] %vm303_vm0, %v487_v44  ;;  %v442_v50 = vmul.f32 %v2033_v10, %v419_v39  ;;  %v450_v63 = vmul.f32 %v2033_v10, %v427_v48  ;;  %v443_v34 = vmul.f32 %v2033_v10, %v420_v49  ;;  %v1344_v33 = vld [vmem:[%s2190_s15 + $0x8] sm:$0xff]  ;;  %v1343_v44 = vld [vmem:[%s2190_s15] sm:$0xff]  ;;  %v2241_v48 = vpop.permute.xlu0 %712 }
  0x89   : > { %538 = vst.msk [vmem:[#allocation2 + $0x41] sm:$0xff] %vm303_vm0, %v480_v46  ;;  %546 = vst.msk [vmem:[#allocation2 + $0xe1] sm:$0xff] %vm303_vm0, %v488_v47  ;;  %v451_v51 = vmul.f32 %v2033_v10, %v428_v42  ;;  %v444_v13 = vmul.f32 %v2033_v10, %v421_v7  ;;  %v452_v20 = vmul.f32 %v2033_v10, %v429_v3 }
  0x8a   : > { %v465_v52 = vadd.f32 %v2041_v17, %v442_v50  ;;  %v473_v45 = vadd.f32 %v2041_v17, %v450_v63  ;;  %v466_v53 = vadd.f32 %v2041_v17, %v443_v34  ;;  %v422_v25 = vmul.f32 %v2031_v9, %v1986_v11 }
  0x8b   : > { %v474_v54 = vadd.f32 %v2041_v17, %v451_v51  ;;  %v467_v14 = vadd.f32 %v2041_v17, %v444_v13  ;;  %v475_v21 = vadd.f32 %v2041_v17, %v452_v20  ;;  %v430_v29 = vmul.f32 %v2031_v9, %v2010_v36  ;;  %v1351_v36 = vld [vmem:[%s2190_s15 + $0x40] sm:$0xff] }
  0x8c   : > { %v481_v5 = vmax.f32 %v465_v52, 0.0  ;;  %v489_v55 = vmax.f32 %v473_v45, 0.0  ;;  %v482_v57 = vmax.f32 %v466_v53, 0.0  ;;  %v445_v61 = vmul.f32 %v2033_v10, %v422_v25  ;;  %1722 = vmatprep.subr.mxu0 %v1351_v36  ;;  %1764 = vmatprep.subr.mxu1 %v1351_v36 }
  0x8d   : > { %v584_v56 = vld [vmem:[#allocation2 + $0x12] sm:$0xff]  ;;  %v490_v58 = vmax.f32 %v474_v54, 0.0  ;;  %v483_v16 = vmax.f32 %v467_v14, 0.0  ;;  %v491_v59 = vmax.f32 %v475_v21, 0.0  ;;  %v453_v24 = vmul.f32 %v2033_v10, %v430_v29  ;;  %1723 = vmatpush3.msra.mxu0 %v1351_v36  ;;  %1773 = vmatpush3.msra.mxu1 %v1351_v36 }
  0x8e   : > { %v568_v38 = vld [vmem:[#allocation2 + $0x11] sm:$0xff]  ;;  %778 = vrot.lane.b32.xlu0 %v584_v56, %s1812_s25  ;;  %539 = vst.msk [vmem:[#allocation2 + $0x51] sm:$0xff] %vm303_vm0, %v481_v5  ;;  %547 = vst.msk [vmem:[#allocation2 + $0xf1] sm:$0xff] %vm303_vm0, %v489_v55  ;;  %v2100_v1 = vld [vmem:[#allocation2 + $0x20] sm:$0xff]  ;;  %v468_v23 = vadd.f32 %v2041_v17, %v445_v61 }
  0x8f   : > { %714 = vrot.lane.b32.xlu1 %v568_v38, %s1811_s24  ;;  %v2093_v0 = vld [vmem:[#allocation2 + $0x10] sm:$0xff]  ;;  %540 = vst.msk [vmem:[#allocation2 + $0x61] sm:$0xff] %vm303_vm0, %v482_v57  ;;  %548 = vst.msk [vmem:[#allocation2 + $0x101] sm:$0xff] %vm303_vm0, %v490_v58  ;;  %v569_v8 = vld [vmem:[#allocation2 + $0x21] sm:$0xff]  ;;  %v476_v9 = vadd.f32 %v2041_v17, %v453_v24 }
  0x90   : > { %v576_v4 = vld [vmem:[#allocation2 + $0xb1] sm:$0xff]  ;;  %v2112_v12 = vld [vmem:[#allocation2 + $0xc0] sm:$0xff]  ;;  %541 = vst.msk [vmem:[#allocation2 + $0x71] sm:$0xff] %vm303_vm0, %v483_v16  ;;  %549 = vst.msk [vmem:[#allocation2 + $0x111] sm:$0xff] %vm303_vm0, %v491_v59  ;;  %v484_v28 = vmax.f32 %v468_v23, 0.0 }
  0x91   : > { %v592_v2 = vld [vmem:[#allocation2 + $0xb2] sm:$0xff]  ;;  %v2124_v18 = vld [vmem:[#allocation2 + $0xc1] sm:$0xff]  ;;  %v492_v32 = vmax.f32 %v476_v9, 0.0  ;;  %v2252_v34 = vpop.permute.xlu1 %792 }
  0x92   : > { %840 = vrot.lane.b32.xlu0 %v2093_v0, %s1813_s7  ;;  %v2105_v6 = vld [vmem:[#allocation2 + $0xb0] sm:$0xff]  ;;  %v2138_v43 = vld [vmem:[#allocation2 + $0x22] sm:$0xff]  ;;  %542 = vst.msk [vmem:[#allocation2 + $0x81] sm:$0xff] %vm303_vm0, %v484_v28  ;;  %v1350_v10 = vld [vmem:[%s2190_s15 + $0x38] sm:$0xff]  ;;  %v2245_v50 = vpop.permute.xlu0 %728 }
  0x93   : > { %730 = vrot.lane.b32.xlu1 %v576_v4, %s1811_s24  ;;  %v2131_v22 = vld [vmem:[#allocation2 + $0x31] sm:$0xff]  ;;  %v2149_v60 = vld [vmem:[#allocation2 + $0xc2] sm:$0xff]  ;;  %1724 = vmatprep.subr.mxu0 %v1350_v10  ;;  %550 = vst.msk [vmem:[#allocation2 + $0x121] sm:$0xff] %vm303_vm0, %v492_v32 }
  0x94   : > { %v2143_v15 = vld [vmem:[#allocation2 + $0xd1] sm:$0xff]  ;;  %v2192_v31 = vld [vmem:[#allocation2 + $0x40] sm:$0xff]  ;;  %1765 = vmatprep.subr.mxu1 %v1350_v10  ;;  %1725 = vmatpush3.msra.mxu0 %v1350_v10  ;;  %v1348_v17 = vld [vmem:[%s2190_s15 + $0x28] sm:$0xff] }
  0x95   : > { %v2155_v19 = vld [vmem:[#allocation2 + $0x32] sm:$0xff]  ;;  %1774 = vmatpush3.msra.mxu1 %v1350_v10  ;;  %1726 = vmatprep.subr.mxu0 %v1349_v35  ;;  %v2208_v27 = vld [vmem:[#allocation2 + $0xe0] sm:$0xff] }
  0x96   : > { %842 = vrot.lane.b32.xlu0 %v2100_v1, %s1813_s7  ;;  %v2163_v26 = vld [vmem:[#allocation2 + $0x30] sm:$0xff]  ;;  %1766 = vmatprep.subr.mxu1 %v1349_v35  ;;  %v571_v41 = vld [vmem:[#allocation2 + $0x41] sm:$0xff]  ;;  %v2254_v51 = vpop.permute.xlu0 %776 }
  0x97   : > { %794 = vrot.lane.b32.xlu1 %v592_v2, %s1812_s25  ;;  %v2171_v62 = vld [vmem:[#allocation2 + $0xd2] sm:$0xff]  ;;  %1727 = vmatpush3.msra.mxu0 %v1349_v35  ;;  %v579_v46 = vld [vmem:[#allocation2 + $0xe1] sm:$0xff] }
  0x98   : > { %v2178_v11 = vld [vmem:[#allocation2 + $0xd0] sm:$0xff]  ;;  %1775 = vmatpush3.msra.mxu1 %v1349_v35  ;;  %1728 = vmatprep.subr.mxu0 %v1348_v17  ;;  %v587_v39 = vld [vmem:[#allocation2 + $0x42] sm:$0xff] }
  0x99   : > { %1767 = vmatprep.subr.mxu1 %v1348_v17  ;;  %1729 = vmatpush3.msra.mxu0 %v1348_v17  ;;  %v572_v47 = vld [vmem:[#allocation2 + $0x51] sm:$0xff]  ;;  %v595_v42 = vld [vmem:[#allocation2 + $0xe2] sm:$0xff] }
  0x9a   : > { %904 = vrot.lane.b32.xlu0 %v568_v38, %s1814_s8  ;;  %1776 = vmatpush3.msra.mxu1 %v1348_v17  ;;  %v580_v49 = vld [vmem:[#allocation2 + $0xf1] sm:$0xff]  ;;  %v2278_v38 = vld [vmem:[#allocation2 + $0x60] sm:$0xff] }
  0x9b   : > { %856 = vrot.lane.b32.xlu1 %v2105_v6, %s1813_s7  ;;  %1730 = vmatprep.subr.mxu0 %v1347_v37  ;;  %v588_v63 = vld [vmem:[#allocation2 + $0x52] sm:$0xff]  ;;  %v2294_v7 = vld [vmem:[#allocation2 + $0x100] sm:$0xff] }
  0x9c   : > { %1768 = vmatprep.subr.mxu1 %v1347_v37  ;;  %1731 = vmatpush3.msra.mxu0 %v1347_v37  ;;  %v2256_v52 = vld [vmem:[#allocation2 + $0x50] sm:$0xff]  ;;  %v2307_v3 = vld [vmem:[#allocation2 + $0x61] sm:$0xff] }
  0x9d   : > { %1777 = vmatpush3.msra.mxu1 %v1347_v37  ;;  %1732 = vmatprep.subr.mxu0 %v1346_v40  ;;  %v596_v45 = vld [vmem:[#allocation2 + $0xf2] sm:$0xff]  ;;  %v2323_v59 = vld [vmem:[#allocation2 + $0x101] sm:$0xff] }
  0x9e   : > { %716 = vrot.lane.b32.xlu0 %v569_v8, %s1811_s24  ;;  %1769 = vmatprep.subr.mxu1 %v1346_v40  ;;  %v2269_v5 = vld [vmem:[#allocation2 + $0xf0] sm:$0xff]  ;;  %v2359_v10 = vld [vmem:[#allocation2 + $0x102] sm:$0xff] }
  0x9f   : > { %858 = vrot.lane.b32.xlu1 %v2112_v12, %s1813_s7  ;;  %1733 = vmatpush3.msra.mxu0 %v1346_v40  ;;  %v2337_v25 = vld [vmem:[#allocation2 + $0x71] sm:$0xff] }
  0xa0   : > { %1778 = vmatpush3.msra.mxu1 %v1346_v40  ;;  %1734 = vmatprep.subr.mxu0 %v1345_v30  ;;  %v2351_v24 = vld [vmem:[#allocation2 + $0x111] sm:$0xff] }
  0xa1   : > { %1770 = vmatprep.subr.mxu1 %v1345_v30  ;;  %1735 = vmatpush3.msra.mxu0 %v1345_v30  ;;  %v2369_v17 = vld [vmem:[#allocation2 + $0x72] sm:$0xff] }
  0xa2   : > { %906 = vrot.lane.b32.xlu0 %v569_v8, %s1814_s8  ;;  %1779 = vmatpush3.msra.mxu1 %v1345_v30  ;;  %v2375_v30 = vld [vmem:[#allocation2 + $0x70] sm:$0xff] }
  0xa3   : > { %920 = vrot.lane.b32.xlu1 %v576_v4, %s1814_s8  ;;  %1736 = vmatprep.subr.mxu0 %v1344_v33 }
  0xa4   : > { %1771 = vmatprep.subr.mxu1 %v1344_v33  ;;  %1737 = vmatpush3.msra.mxu0 %v1344_v33 }
  0xa5   : > { %1780 = vmatpush3.msra.mxu1 %v1344_v33  ;;  %1738 = vmatprep.subr.mxu0 %v1343_v44 }
  0xa6   : > { %968 = vrot.lane.b32.xlu0 %v584_v56, %s1815_s9  ;;  %1772 = vmatprep.subr.mxu1 %v1343_v44 }
  0xa7   : > { %732 = vrot.lane.b32.xlu1 %v2124_v18, %s1811_s24  ;;  %1739 = vmatpush3.msra.mxu0 %v1343_v44 }
  0xa8   : > { %1781 = vmatpush3.msra.mxu1 %v1343_v44  ;;  %v551_v44 = vld [vmem:[#allocation2] sm:$0xff] }
  0xaa   : > { %718 = vrot.lane.b32.xlu0 %v2131_v22, %s1811_s24 }
  0xab   : > { %922 = vrot.lane.b32.xlu1 %v2124_v18, %s1814_s8 }
  0xae   : > { %780 = vrot.lane.b32.xlu0 %v2138_v43, %s1812_s25 }
  0xaf   : > { %984 = vrot.lane.b32.xlu1 %v592_v2, %s1815_s9 }
  0xb2   : > { %970 = vrot.lane.b32.xlu0 %v2138_v43, %s1815_s9 }
  0xb3   : > { %734 = vrot.lane.b32.xlu1 %v2143_v15, %s1811_s24 }
  0xb6   : > { %1032 = vrot.lane.b32.xlu0 %v2100_v1, %s1816_s10 }
  0xb7   : > { %796 = vrot.lane.b32.xlu1 %v2149_v60, %s1812_s25 }
  0xba   : > { %782 = vrot.lane.b32.xlu0 %v2155_v19, %s1812_s25 }
  0xbb   : > { %986 = vrot.lane.b32.xlu1 %v2149_v60, %s1815_s9 }
  0xbe   : > { %844 = vrot.lane.b32.xlu0 %v2163_v26, %s1813_s7 }
  0xbf   : > { %1048 = vrot.lane.b32.xlu1 %v2112_v12, %s1816_s10 }
  0xc2   : > { %1034 = vrot.lane.b32.xlu0 %v2163_v26, %s1816_s10 }
  0xc3   : > { %798 = vrot.lane.b32.xlu1 %v2171_v62, %s1812_s25 }
  0xc6   : > { %1096 = vrot.lane.b32.xlu0 %v569_v8, %s1817_s12 }
  0xc7   : > { %860 = vrot.lane.b32.xlu1 %v2178_v11, %s1813_s7 }
  0xca   : > { %846 = vrot.lane.b32.xlu0 %v2192_v31, %s1813_s7 }
  0xcb   : > { %1050 = vrot.lane.b32.xlu1 %v2178_v11, %s1816_s10 }
  0xce   : > { %908 = vrot.lane.b32.xlu0 %v2131_v22, %s1814_s8 }
  0xcf   : > { %1112 = vrot.lane.b32.xlu1 %v2124_v18, %s1817_s12 }
  0xd2   : > { %1098 = vrot.lane.b32.xlu0 %v2131_v22, %s1817_s12 }
  0xd3   : > { %862 = vrot.lane.b32.xlu1 %v2208_v27, %s1813_s7 }
  0xd6   : > { %1160 = vrot.lane.b32.xlu0 %v2138_v43, %s1818_s16 }
  0xd7   : > { %924 = vrot.lane.b32.xlu1 %v2143_v15, %s1814_s8 }
  0xda   : > { %720 = vrot.lane.b32.xlu0 %v571_v41, %s1811_s24 }
  0xdb   : > { %1114 = vrot.lane.b32.xlu1 %v2143_v15, %s1817_s12 }
  0xde   : > { %910 = vrot.lane.b32.xlu0 %v571_v41, %s1814_s8 }
  0xdf   : > { %1176 = vrot.lane.b32.xlu1 %v2149_v60, %s1818_s16 }
  0xe2   : > { %972 = vrot.lane.b32.xlu0 %v2155_v19, %s1815_s9 }
  0xe3   : > { %736 = vrot.lane.b32.xlu1 %v579_v46, %s1811_s24 }
  0xe6   : > { %1162 = vrot.lane.b32.xlu0 %v2155_v19, %s1818_s16 }
  0xe7   : > { %926 = vrot.lane.b32.xlu1 %v579_v46, %s1814_s8 }
  0xea   : > { %722 = vrot.lane.b32.xlu0 %v572_v47, %s1811_s24 }
  0xeb   : > { %988 = vrot.lane.b32.xlu1 %v2171_v62, %s1815_s9 }
  0xee   : > { %784 = vrot.lane.b32.xlu0 %v587_v39, %s1812_s25 }
  0xef   : > { %1178 = vrot.lane.b32.xlu1 %v2171_v62, %s1818_s16  ;;  %v2342_v62 = vld [vmem:[#allocation2 + $0x62] sm:$0xff] }
  0xf2   : > { %974 = vrot.lane.b32.xlu0 %v587_v39, %s1815_s9 }
  0xf3   : > { %738 = vrot.lane.b32.xlu1 %v580_v49, %s1811_s24 }
  0xf6   : > { %1036 = vrot.lane.b32.xlu0 %v2192_v31, %s1816_s10 }
  0xf7   : > { %800 = vrot.lane.b32.xlu1 %v595_v42, %s1812_s25 }
  0xfa   : > { %786 = vrot.lane.b32.xlu0 %v588_v63, %s1812_s25 }
  0xfb   : > { %990 = vrot.lane.b32.xlu1 %v595_v42, %s1815_s9 }
  0xfe   : > { %848 = vrot.lane.b32.xlu0 %v2256_v52, %s1813_s7 }
  0xff   : > { %1052 = vrot.lane.b32.xlu1 %v2208_v27, %s1816_s10 }
 0x100   : > { %v2262_v53 = vpop.permute.xlu0 %778 }
 0x101   : > { %v2264_v54 = vpop.permute.xlu1 %714 }
 0x102   : > { %1038 = vrot.lane.b32.xlu0 %v2256_v52, %s1816_s10 }
 0x103   : > { %802 = vrot.lane.b32.xlu1 %v596_v45, %s1812_s25 }
 0x104   : > { %v2271_v55 = vpop.permute.xlu0 %840 }
 0x105   : > { %v2273_v56 = vpop.permute.xlu1 %730 }
 0x106   : > { %1100 = vrot.lane.b32.xlu0 %v571_v41, %s1817_s12 }
 0x107   : > { %864 = vrot.lane.b32.xlu1 %v2269_v5, %s1813_s7 }
 0x108   : > { %v2280_v57 = vpop.permute.xlu0 %842 }
 0x109   : > { %v2282_v58 = vpop.permute.xlu1 %794 }
 0x10a   : > { %850 = vrot.lane.b32.xlu0 %v2278_v38, %s1813_s7 }
 0x10b   : > { %1054 = vrot.lane.b32.xlu1 %v2269_v5, %s1816_s10 }
 0x10c   : > { %v2288_v4 = vpop.permute.xlu0 %904 }
 0x10d   : > { %v2290_v2 = vpop.permute.xlu1 %856 }
 0x10e   : > { %912 = vrot.lane.b32.xlu0 %v572_v47, %s1814_s8 }
 0x10f   : > { %1116 = vrot.lane.b32.xlu1 %v579_v46, %s1817_s12 }
 0x110   : > { %v717_v8 = vpop.permute.xlu0 %716 }
 0x111   : > { %v2296_v13 = vpop.permute.xlu1 %858  ;;  %v1210_v46 = vsel %vm303_vm0, %v2100_v1, %v717_v8 }
 0x112   : > { %1102 = vrot.lane.b32.xlu0 %v572_v47, %s1817_s12 }
 0x113   : > { %866 = vrot.lane.b32.xlu1 %v2294_v7, %s1813_s7 }
 0x114   : > { %v2301_v14 = vpop.permute.xlu0 %906 }
 0x115   : > { %v2303_v16 = vpop.permute.xlu1 %920 }
 0x116   : > { %1164 = vrot.lane.b32.xlu0 %v587_v39, %s1818_s16  ;;  %v2386_v39 = vld [vmem:[#allocation2 + $0x112] sm:$0xff] }
 0x117   : > { %928 = vrot.lane.b32.xlu1 %v580_v49, %s1814_s8 }
 0x118   : > { %v2309_v18 = vpop.permute.xlu0 %968 }
 0x119   : > { %v2311_v20 = vpop.permute.xlu1 %732 }
 0x11a   : > { %724 = vrot.lane.b32.xlu0 %v2307_v3, %s1811_s24 }
 0x11b   : > { %1118 = vrot.lane.b32.xlu1 %v580_v49, %s1817_s12  ;;  %v1208_v49 = vsel %vm303_vm0, %v551_v44, %v2241_v48 }
 0x11c   : > { %v2316_v21 = vpop.permute.xlu0 %718  ;;  %v1225_v8 = vsel %vm1224_vm2, %v1208_v49, %v2254_v51  ;;  %v1218_v51 = vsel %vm303_vm0, %v2112_v12, %v2311_v20 }
 0x11d   : > { %v2318_v22 = vpop.permute.xlu1 %922  ;;  %v1242_v48 = vsel %vm1241_vm3, %v1225_v8, %v2271_v55 }
 0x11e   : > { %914 = vrot.lane.b32.xlu0 %v2307_v3, %s1814_s8 }
 0x11f   : > { %1180 = vrot.lane.b32.xlu1 %v595_v42, %s1818_s16 }
 0x120   : > { %v781_v43 = vpop.permute.xlu0 %780 }
 0x121   : > { %v2325_v15 = vpop.permute.xlu1 %984  ;;  %v1227_v47 = vsel %vm1224_vm2, %v1210_v46, %v781_v43  ;;  %v2400_v43 = vld [vmem:[#allocation2 + $0x110] sm:$0xff]  ;;  %v559_v46 = vld [vmem:[#allocation2 + $0xa0] sm:$0xff] }
 0x122   : > { %976 = vrot.lane.b32.xlu0 %v588_v63, %s1815_s9 }
 0x123   : > { %740 = vrot.lane.b32.xlu1 %v2323_v59, %s1811_s24 }
 0x124   : > { %v2330_v60 = vpop.permute.xlu0 %970 }
 0x125   : > { %v2332_v19 = vpop.permute.xlu1 %734 }
 0x126   : > { %1166 = vrot.lane.b32.xlu0 %v588_v63, %s1818_s16 }
 0x127   : > { %930 = vrot.lane.b32.xlu1 %v2323_v59, %s1814_s8 }
 0x128   : > { %v1033_v61 = vpop.permute.xlu0 %1032 }
 0x129   : > { %v797_v23 = vpop.permute.xlu1 %796 }
 0x12a   : > { %726 = vrot.lane.b32.xlu0 %v2337_v25, %s1811_s24  ;;  %v1235_v49 = vsel %vm1224_vm2, %v1218_v51, %v797_v23  ;;  %v2456_v51 = vld [vmem:[#allocation2 + $0x120] sm:$0xff] }
 0x12b   : > { %992 = vrot.lane.b32.xlu1 %v596_v45, %s1815_s9 }
 0x12c   : > { %v2344_v28 = vpop.permute.xlu0 %782 }
 0x12d   : > { %v2346_v29 = vpop.permute.xlu1 %986 }
 0x12e   : > { %788 = vrot.lane.b32.xlu0 %v2342_v62, %s1812_s25 }
 0x12f   : > { %1182 = vrot.lane.b32.xlu1 %v596_v45, %s1818_s16 }
 0x130   : > { %v845_v36 = vpop.permute.xlu0 %844 }
 0x131   : > { %v2353_v9 = vpop.permute.xlu1 %1048  ;;  %v1244_v42 = vsel %vm1241_vm3, %v1227_v47, %v845_v36  ;;  %v1259_v47 = vsel %vm1258_vm4, %v1242_v48, %v2288_v4  ;;  %v2417_v4 = vld [vmem:[#allocation2 + $0x80] sm:$0xff] }
 0x132   : > { %978 = vrot.lane.b32.xlu0 %v2342_v62, %s1815_s9 }
 0x133   : > { %742 = vrot.lane.b32.xlu1 %v2351_v24, %s1811_s24 }
 0x134   : > { %v2361_v32 = vpop.permute.xlu0 %1034 }
 0x135   : > { %v2363_v35 = vpop.permute.xlu1 %798 }
 0x136   : > { %1040 = vrot.lane.b32.xlu0 %v2278_v38, %s1816_s10 }
 0x137   : > { %804 = vrot.lane.b32.xlu1 %v2359_v10, %s1812_s25 }
 0x138   : > { %v1097_v37 = vpop.permute.xlu0 %1096 }
 0x139   : > { %v861_v40 = vpop.permute.xlu1 %860 }
 0x13a   : > { %790 = vrot.lane.b32.xlu0 %v2369_v17, %s1812_s25  ;;  %v1252_v12 = vsel %vm1241_vm3, %v1235_v49, %v861_v40 }
 0x13b   : > { %994 = vrot.lane.b32.xlu1 %v2359_v10, %s1815_s9 }
 0x13c   : > { %v847_v41 = vpop.permute.xlu0 %846 }
 0x13d   : > { %v2377_v33 = vpop.permute.xlu1 %1050 }
 0x13e   : > { %852 = vrot.lane.b32.xlu0 %v2375_v30, %s1813_s7 }
 0x13f   : > { %1056 = vrot.lane.b32.xlu1 %v2294_v7, %s1816_s10 }
 0x140   : > { %v909_v63 = vpop.permute.xlu0 %908 }
 0x141   : > { %v1113_v45 = vpop.permute.xlu1 %1112  ;;  %v2392_v1 = vsel %vm1258_vm4, %v1244_v42, %v909_v63  ;;  %v1276_v42 = vsel %vm1275_vm5, %v1259_v47, %v2309_v18  ;;  %v1216_v18 = vsel %vm303_vm0, %v559_v46, %v2245_v50  ;;  %v1211_v46 = vsel %vm303_vm0, %v2163_v26, %v2316_v21 }
 0x142   : > { %1042 = vrot.lane.b32.xlu0 %v2375_v30, %s1816_s10  ;;  %v1293_v55 = vsel %vm1292_vm6, %v1276_v42, %v1033_v61  ;;  %v1233_v61 = vsel %vm1224_vm2, %v1216_v18, %v2252_v34  ;;  %v1228_v34 = vsel %vm1224_vm2, %v1211_v46, %v2344_v28 }
 0x143   : > { %806 = vrot.lane.b32.xlu1 %v2386_v39, %s1812_s25  ;;  %v1310_v63 = vsel %vm1309_vm7, %v1293_v55, %v1097_v37  ;;  %v1250_v50 = vsel %vm1241_vm3, %v1233_v61, %v2290_v2  ;;  %v1245_v26 = vsel %vm1241_vm3, %v1228_v34, %v847_v41  ;;  %v1219_v55 = vsel %vm303_vm0, %v2178_v11, %v2332_v19  ;;  %s2688_s25 = scalar_lea.vmem %s2730_s5, %s1695_s20 }
 0x144   : > { %v1099_v36 = vpop.permute.xlu0 %1098  ;;  %v1267_v40 = vsel %vm1258_vm4, %v1250_v50, %v2303_v16  ;;  %v1209_v16 = vsel %vm303_vm0, %v2093_v0, %v2264_v54 }
 0x145   : > { %v863_v44 = vpop.permute.xlu1 %862  ;;  %v1284_v47 = vsel %vm1275_vm5, %v1267_v40, %v2325_v15  ;;  %v1226_v0 = vsel %vm1224_vm2, %v1209_v16, %v2262_v53 }
 0x146   : > { %1104 = vrot.lane.b32.xlu0 %v2307_v3, %s1817_s12  ;;  %v1301_v2 = vsel %vm1292_vm6, %v1284_v47, %v2353_v9  ;;  %v1243_v54 = vsel %vm1241_vm3, %v1226_v0, %v2280_v57  ;;  %v1236_v57 = vsel %vm1224_vm2, %v1219_v55, %v2363_v35  ;;  %v646_v47 = vld [vmem:[#allocation2 + $0x122] sm:$0xff] }
 0x147   : > { %868 = vrot.lane.b32.xlu1 %v2400_v43, %s1813_s7  ;;  %v1318_v21 = vsel %vm1309_vm7, %v1301_v2, %v1113_v45  ;;  %v1260_v45 = vsel %vm1258_vm4, %v1243_v54, %v2301_v14  ;;  %v622_v14 = vld [vmem:[#allocation2 + $0x81] sm:$0xff] }
 0x148   : > { %v1161_v20 = vpop.permute.xlu0 %1160 }
 0x149   : > { %v925_v3 = vpop.permute.xlu1 %924  ;;  %v1327_v48 = vsel %vm1326_vm8, %v1310_v63, %v1161_v20 }
 0x14a   : > { %v2424_v8 = vsel %vm1258_vm4, %v1252_v12, %v925_v3  ;;  %854 = vrot.lane.b32.xlu0 %v2417_v4, %s1813_s7  ;;  %1740 = vmatprep.mubr.msk.f32.mxu0 %vm1359_vm9, %v1327_v48 }
 0x14b   : > { %1058 = vrot.lane.b32.xlu1 %v2400_v43, %s1816_s10 }
 0x14c   : > { %v721_v23 = vpop.permute.xlu0 %720 }
 0x14d   : > { %v1115_v37 = vpop.permute.xlu1 %1114 }
 0x14e   : > { %916 = vrot.lane.b32.xlu0 %v2337_v25, %s1814_s8 }
 0x14f   : > { %1120 = vrot.lane.b32.xlu1 %v2323_v59, %s1817_s12 }
 0x150   : > { %v911_v15 = vpop.permute.xlu0 %910 }
 0x151   : > { %v1177_v42 = vpop.permute.xlu1 %1176  ;;  %v2459_v28 = vsel %vm1258_vm4, %v1245_v26, %v911_v15 }
 0x152   : > { %v1335_v9 = vsel %vm1326_vm8, %v1318_v21, %v1177_v42  ;;  %1106 = vrot.lane.b32.xlu0 %v2337_v25, %s1817_s12  ;;  %v1277_v25 = vsel %vm1275_vm5, %v1260_v45, %v2330_v60  ;;  %v1253_v60 = vsel %vm1241_vm3, %v1236_v57, %v863_v44  ;;  %v663_v21 = vld [vmem:[#allocation2 + $0x130] sm:$0xff] }
 0x153   : > { %1752 = vmatprep.mubr.msk.f32.mxu1 %vm1359_vm9, %v1335_v9  ;;  %870 = vrot.lane.b32.xlu1 %v2456_v51, %s1813_s7  ;;  %v1294_v53 = vsel %vm1292_vm6, %v1277_v25, %v2361_v32 }
 0x154   : > { %v2471_v59 = vpop.permute.xlu0 %972  ;;  %v1311_v49 = vsel %vm1309_vm7, %v1294_v53, %v1099_v36 }
 0x155   : > { %v737_v41 = vpop.permute.xlu1 %736 }
 0x156   : > { %1168 = vrot.lane.b32.xlu0 %v2342_v62, %s1818_s16  ;;  %v1217_v62 = vsel %vm303_vm0, %v2105_v6, %v2273_v56  ;;  %v1220_v48 = vsel %vm303_vm0, %v2208_v27, %v737_v41  ;;  %v679_v41 = vld [vmem:[#allocation2 + $0x131] sm:$0xff] }
 0x157   : > { %932 = vrot.lane.b32.xlu1 %v2351_v24, %s1814_s8  ;;  %v1234_v32 = vsel %vm1224_vm2, %v1217_v62, %v2282_v58  ;;  %v1212_v58 = vsel %vm303_vm0, %v2192_v31, %v721_v23  ;;  %v655_v23 = vld [vmem:[#allocation2 + $0x90] sm:$0xff] }
 0x158   : > { %v1163_v18 = vpop.permute.xlu0 %1162  ;;  %v1251_v35 = vsel %vm1241_vm3, %v1234_v32, %v2296_v13 }
 0x159   : > { %v927_v63 = vpop.permute.xlu1 %926  ;;  %v1328_v11 = vsel %vm1326_vm8, %v1311_v49, %v1163_v18  ;;  %v1268_v12 = vsel %vm1258_vm4, %v1251_v35, %v2318_v22  ;;  %v630_v22 = vld [vmem:[#allocation2 + $0x121] sm:$0xff]  ;;  %v695_v49 = vld [vmem:[#allocation2 + $0x132] sm:$0xff]  ;;  %v1278_v18 = vsel %vm1275_vm5, %v2392_v1, %v2471_v59 }
 0x15a   : > { %v2492_v19 = vsel %vm1258_vm4, %v1253_v60, %v927_v63  ;;  %918 = vrot.lane.b32.xlu0 %v622_v14, %s1814_s8  ;;  %1741 = vmatmul.mubr.msk.f32.vlgmr.msra.gmra.mxu0 %vm1359_vm9, %v1328_v11  ;;  %v1285_v6 = vsel %vm1275_vm5, %v1268_v12, %v2346_v29 }
 0x15b   : > { %1122 = vrot.lane.b32.xlu1 %v2351_v24, %s1817_s12  ;;  %v1302_v56 = vsel %vm1292_vm6, %v1285_v6, %v2377_v33 }
 0x15c   : > { %v723_v36 = vpop.permute.xlu0 %722  ;;  %v1319_v13 = vsel %vm1309_vm7, %v1302_v56, %v1115_v37 }
 0x15d   : > { %v2505_v44 = vpop.permute.xlu1 %988  ;;  %v1213_v37 = vsel %vm303_vm0, %v2256_v52, %v723_v36  ;;  %v671_v52 = vld [vmem:[#allocation2 + $0x91] sm:$0xff] }
 0x15e   : > { %980 = vrot.lane.b32.xlu0 %v2369_v17, %s1815_s9  ;;  %v1286_v1 = vsel %vm1275_vm5, %v2424_v8, %v2505_v44 }
 0x15f   : > { %1184 = vrot.lane.b32.xlu1 %v2359_v10, %s1818_s16  ;;  %v638_v10 = vld [vmem:[#allocation2 + $0x82] sm:$0xff] }
 0x160   : > { %v785_v24 = vpop.permute.xlu0 %784 }
 0x161   : > { %v1179_v20 = vpop.permute.xlu1 %1178  ;;  %v1229_v3 = vsel %vm1224_vm2, %v1212_v58, %v785_v24 }
 0x162   : > { %v1336_v29 = vsel %vm1326_vm8, %v1319_v13, %v1179_v20  ;;  %1170 = vrot.lane.b32.xlu0 %v2369_v17, %s1818_s16 }
 0x163   : > { %1753 = vmatmul.mubr.msk.f32.vlgmr.msra.gmra.mxu1 %vm1359_vm9, %v1336_v29  ;;  %934 = vrot.lane.b32.xlu1 %v630_v22, %s1814_s8 }
 0x164   : > { %v2526_v33 = vpop.permute.xlu0 %974 }
 0x165   : > { %v739_v31 = vpop.permute.xlu1 %738  ;;  %v1279_v29 = vsel %vm1275_vm5, %v2459_v28, %v2526_v33 }
 0x166   : > { %982 = vrot.lane.b32.xlu0 %v638_v10, %s1815_s9 }
 0x167   : > { %996 = vrot.lane.b32.xlu1 %v2386_v39, %s1815_s9 }
 0x168   : > { %v1037_v61 = vpop.permute.xlu0 %1036 }
 0x169   : > { %v801_v50 = vpop.permute.xlu1 %800  ;;  %v1295_v63 = vsel %vm1292_vm6, %v1278_v18, %v1037_v61 }
 0x16a   : > { %v1237_v17 = vsel %vm1224_vm2, %v1220_v48, %v801_v50  ;;  %1044 = vrot.lane.b32.xlu0 %v2417_v4, %s1816_s10 }
 0x16b   : > { %1186 = vrot.lane.b32.xlu1 %v2386_v39, %s1818_s16  ;;  %v1221_v39 = vsel %vm303_vm0, %v2269_v5, %v739_v31 }
 0x16c   : > { %v787_v40 = vpop.permute.xlu0 %786 }
 0x16d   : > { %v2540_v46 = vpop.permute.xlu1 %990  ;;  %v1230_v27 = vsel %vm1224_vm2, %v1213_v37, %v787_v40 }
 0x16e   : > { %1046 = vrot.lane.b32.xlu0 %v655_v23, %s1816_s10  ;;  %v1287_v23 = vsel %vm1275_vm5, %v2492_v19, %v2540_v46 }
 0x16f   : > { %998 = vrot.lane.b32.xlu1 %v646_v47, %s1815_s9 }
 0x170   : > { %v849_v34 = vpop.permute.xlu0 %848 }
 0x171   : > { %v1053_v2 = vpop.permute.xlu1 %1052  ;;  %v1246_v4 = vsel %vm1241_vm3, %v1229_v3, %v849_v34 }
 0x172   : > { %1108 = vrot.lane.b32.xlu0 %v622_v14, %s1817_s12  ;;  %v1303_v59 = vsel %vm1292_vm6, %v1286_v1, %v1053_v2 }
 0x173   : > { %1060 = vrot.lane.b32.xlu1 %v2456_v51, %s1816_s10  ;;  %v687_v51 = vld [vmem:[#allocation2 + $0x92] sm:$0xff] }
 0x174   : > { %v1039_v16 = vpop.permute.xlu0 %1038 }
 0x175   : > { %v803_v26 = vpop.permute.xlu1 %802  ;;  %v1296_v8 = vsel %vm1292_vm6, %v1279_v29, %v1039_v16 }
 0x176   : > { %v1238_v15 = vsel %vm1224_vm2, %v1221_v39, %v803_v26  ;;  %1110 = vrot.lane.b32.xlu0 %v671_v52, %s1817_s12 }
 0x177   : > { %1062 = vrot.lane.b32.xlu1 %v663_v21, %s1816_s10 }
 0x178   : > { %v1101_v42 = vpop.permute.xlu0 %1100 }
 0x179   : > { %v865_v9 = vpop.permute.xlu1 %864  ;;  %v1312_v11 = vsel %vm1309_vm7, %v1295_v63, %v1101_v42 }
 0x17a   : > { %v1254_v0 = vsel %vm1241_vm3, %v1237_v17, %v865_v9  ;;  %1172 = vrot.lane.b32.xlu0 %v638_v10, %s1818_s16 }
 0x17b   : > { %1124 = vrot.lane.b32.xlu1 %v630_v22, %s1817_s12 }
 0x17c   : > { %v851_v54 = vpop.permute.xlu0 %850 }
 0x17d   : > { %v1055_v5 = vpop.permute.xlu1 %1054  ;;  %v1247_v45 = vsel %vm1241_vm3, %v1230_v27, %v851_v54 }
 0x17e   : > { %1174 = vrot.lane.b32.xlu0 %v687_v51, %s1818_s16  ;;  %v1304_v28 = vsel %vm1292_vm6, %v1287_v23, %v1055_v5 }
 0x17f   : > { %1126 = vrot.lane.b32.xlu1 %v679_v41, %s1817_s12 }
 0x180   : > { %v913_v25 = vpop.permute.xlu0 %912 }
 0x181   : > { %v1117_v55 = vpop.permute.xlu1 %1116  ;;  %v2561_v53 = vsel %vm1258_vm4, %v1246_v4, %v913_v25 }
 0x182   : > { %v1320_v56 = vsel %vm1309_vm7, %v1303_v59, %v1117_v55 }
 0x183   : > { %1188 = vrot.lane.b32.xlu1 %v646_v47, %s1818_s16 }
 0x184   : > { %v1103_v57 = vpop.permute.xlu0 %1102 }
 0x185   : > { %v867_v14 = vpop.permute.xlu1 %866  ;;  %v1313_v44 = vsel %vm1309_vm7, %v1296_v8, %v1103_v57 }
 0x186   : > { %v1255_v60 = vsel %vm1241_vm3, %v1238_v15, %v867_v14 }
 0x187   : > { %1190 = vrot.lane.b32.xlu1 %v695_v49, %s1818_s16 }
 0x188   : > { %v1165_v62 = vpop.permute.xlu0 %1164 }
 0x189   : > { %v929_v32 = vpop.permute.xlu1 %928  ;;  %v1329_v35 = vsel %vm1326_vm8, %v1312_v11, %v1165_v62 }
 0x18a   : > { %v2573_v36 = vsel %vm1258_vm4, %v1254_v0, %v929_v32  ;;  %1743 = vmatprep.mubr.msk.f32.mxu0 %vm1359_vm9, %v1329_v35 }
 0x18c   : > { %v725_v12 = vpop.permute.xlu0 %724 }
 0x18d   : > { %v1119_v6 = vpop.permute.xlu1 %1118  ;;  %v1214_v33 = vsel %vm303_vm0, %v2278_v38, %v725_v12 }
 0x18e   : > { %v1321_v37 = vsel %vm1309_vm7, %v1304_v28, %v1119_v6 }
 0x190   : > { %v915_v58 = vpop.permute.xlu0 %914 }
 0x191   : > { %v1181_v13 = vpop.permute.xlu1 %1180  ;;  %v1264_v24 = vsel %vm1258_vm4, %v1247_v45, %v915_v58 }
 0x192   : > { %v1337_v20 = vsel %vm1326_vm8, %v1320_v56, %v1181_v13 }
 0x193   : > { %1755 = vmatprep.mubr.msk.f32.mxu1 %vm1359_vm9, %v1337_v20 }
 0x194   : > { %v977_v22 = vpop.permute.xlu0 %976 }
 0x195   : > { %v741_v3 = vpop.permute.xlu1 %740  ;;  %v1280_v25 = vsel %vm1275_vm5, %v2561_v53, %v977_v22 }
 0x196   : > { %v1222_v19 = vsel %vm303_vm0, %v2294_v7, %v741_v3 }
 0x198   : > { %v1167_v10 = vpop.permute.xlu0 %1166 }
 0x199   : > { %v931_v31 = vpop.permute.xlu1 %930  ;;  %v1330_v48 = vsel %vm1326_vm8, %v1313_v44, %v1167_v10 }
 0x19a   : > { %v1272_v61 = vsel %vm1258_vm4, %v1255_v60, %v931_v31  ;;  %1744 = vmatmul.mubr.msk.f32.gmra.mxu0 %vm1359_vm9, %v1330_v48 }
 0x19c   : > { %v2592_v50 = vpop.permute.xlu0 %726 }
 0x19d   : > { %v993_v17 = vpop.permute.xlu1 %992 }
 0x19e   : > { %v1288_v11 = vsel %vm1275_vm5, %v2573_v36, %v993_v17 }
 0x1a0   : > { %v789_v40 = vpop.permute.xlu0 %788 }
 0x1a1   : > { %v1183_v47 = vpop.permute.xlu1 %1182  ;;  %v1231_v27 = vsel %vm1224_vm2, %v1214_v33, %v789_v40 }
 0x1a2   : > { %v1338_v34 = vsel %vm1326_vm8, %v1321_v37, %v1183_v47  ;;  %v1215_v37 = vsel %vm303_vm0, %v2375_v30, %v2592_v50 }
 0x1a3   : > { %1756 = vmatmul.mubr.msk.f32.gmra.mxu1 %vm1359_vm9, %v1338_v34 }
 0x1a4   : > { %v979_v2 = vpop.permute.xlu0 %978 }
 0x1a5   : > { %v2604_v4 = vpop.permute.xlu1 %742  ;;  %v1281_v12 = vsel %vm1275_vm5, %v1264_v24, %v979_v2 }
 0x1a8   : > { %v1041_v46 = vpop.permute.xlu0 %1040 }
 0x1a9   : > { %v805_v52 = vpop.permute.xlu1 %804  ;;  %v1297_v55 = vsel %vm1292_vm6, %v1280_v25, %v1041_v46 }
 0x1aa   : > { %v2609_v38 = vsel %vm1224_vm2, %v1222_v19, %v805_v52 }
 0x1ac   : > { %v791_v39 = vpop.permute.xlu0 %790 }
 0x1ad   : > { %v995_v16 = vpop.permute.xlu1 %994  ;;  %v1232_v47 = vsel %vm1224_vm2, %v1215_v37, %v791_v39 }
 0x1ae   : > { %v1289_v22 = vsel %vm1275_vm5, %v1272_v61, %v995_v16 }
 0x1b0   : > { %v853_v26 = vpop.permute.xlu0 %852 }
 0x1b1   : > { %v1057_v21 = vpop.permute.xlu1 %1056  ;;  %v1248_v23 = vsel %vm1241_vm3, %v1231_v27, %v853_v26 }
 0x1b2   : > { %v1305_v62 = vsel %vm1292_vm6, %v1288_v11, %v1057_v21 }
 0x1b4   : > { %v1043_v15 = vpop.permute.xlu0 %1042 }
 0x1b5   : > { %v2611_v42 = vpop.permute.xlu1 %806  ;;  %v1298_v1 = vsel %vm1292_vm6, %v1281_v12, %v1043_v15 }
 0x1b8   : > { %v1105_v9 = vpop.permute.xlu0 %1104 }
 0x1b9   : > { %v2613_v0 = vpop.permute.xlu1 %868  ;;  %v1314_v57 = vsel %vm1309_vm7, %v1297_v55, %v1105_v9 }
 0x1ba   : > { %v1256_v21 = vsel %vm1241_vm3, %v2609_v38, %v2613_v0 }
 0x1bc   : > { %v855_v51 = vpop.permute.xlu0 %854 }
 0x1bd   : > { %v1059_v54 = vpop.permute.xlu1 %1058  ;;  %v1249_v2 = vsel %vm1241_vm3, %v1232_v47, %v855_v51 }
 0x1be   : > { %v1306_v24 = vsel %vm1292_vm6, %v1289_v22, %v1059_v54  ;;  %v1223_v54 = vsel %vm303_vm0, %v2400_v43, %v2604_v4 }
 0x1c0   : > { %v917_v5 = vpop.permute.xlu0 %916 }
 0x1c1   : > { %v1121_v41 = vpop.permute.xlu1 %1120  ;;  %v1265_v33 = vsel %vm1258_vm4, %v1248_v23, %v917_v5 }
 0x1c2   : > { %v1322_v53 = vsel %vm1309_vm7, %v1305_v62, %v1121_v41  ;;  %v1240_v41 = vsel %vm1224_vm2, %v1223_v54, %v2611_v42 }
 0x1c4   : > { %v1107_v7 = vpop.permute.xlu0 %1106 }
 0x1c5   : > { %v2615_v45 = vpop.permute.xlu1 %870  ;;  %v1315_v59 = vsel %vm1309_vm7, %v1298_v1, %v1107_v7 }
 0x1c6   : > { %v1257_v0 = vsel %vm1241_vm3, %v1240_v41, %v2615_v45  ;;  %v1676_v45 = vld [vmem:[%s281_s22] ss:$0 sm:$0xff] }
 0x1c8   : > { %v1169_v14 = vpop.permute.xlu0 %1168 }
 0x1c9   : > { %v1331_v49 = vsel %vm1326_vm8, %v1314_v57, %v1169_v14  ;;  %v933_v60 = vpop.permute.xlu1 %932 }
 0x1ca   : > { %1746 = vmatprep.mubr.msk.f32.mxu0 %vm1359_vm9, %v1331_v49  ;;  %v1273_v51 = vsel %vm1258_vm4, %v1256_v21, %v933_v60 }
 0x1cc   : > { %v919_v18 = vpop.permute.xlu0 %918 }
 0x1cd   : > { %v1123_v63 = vpop.permute.xlu1 %1122  ;;  %v1266_v27 = vsel %vm1258_vm4, %v1249_v2, %v919_v18 }
 0x1ce   : > { %v1323_v29 = vsel %vm1309_vm7, %v1306_v24, %v1123_v63 }
 0x1d0   : > { %v981_v32 = vpop.permute.xlu0 %980 }
 0x1d1   : > { %v1185_v35 = vpop.permute.xlu1 %1184  ;;  %v1282_v40 = vsel %vm1275_vm5, %v1265_v33, %v981_v32 }
 0x1d2   : > { %v1339_v6 = vsel %vm1326_vm8, %v1322_v53, %v1185_v35 }
 0x1d3   : > { %1758 = vmatprep.mubr.msk.f32.mxu1 %vm1359_vm9, %v1339_v6 }
 0x1d4   : > { %v1171_v56 = vpop.permute.xlu0 %1170 }
 0x1d5   : > { %v1332_v58 = vsel %vm1326_vm8, %v1315_v59, %v1171_v56  ;;  %v935_v36 = vpop.permute.xlu1 %934 }
 0x1d6   : > { %1747 = vmatmul.mubr.msk.f32.gmra.mxu0 %vm1359_vm9, %v1332_v58  ;;  %v1274_v55 = vsel %vm1258_vm4, %v1257_v0, %v935_v36 }
 0x1d8   : > { %v983_v13 = vpop.permute.xlu0 %982 }
 0x1d9   : > { %v997_v20 = vpop.permute.xlu1 %996  ;;  %v1283_v26 = vsel %vm1275_vm5, %v1266_v27, %v983_v13 }
 0x1da   : > { %v1290_v5 = vsel %vm1275_vm5, %v1273_v51, %v997_v20 }
 0x1dc   : > { %v1045_v3 = vpop.permute.xlu0 %1044 }
 0x1dd   : > { %v1187_v8 = vpop.permute.xlu1 %1186  ;;  %v1299_v34 = vsel %vm1292_vm6, %v1282_v40, %v1045_v3 }
 0x1de   : > { %v1340_v44 = vsel %vm1326_vm8, %v1323_v29, %v1187_v8 }
 0x1df   : > { %1759 = vmatmul.mubr.msk.f32.gmra.mxu1 %vm1359_vm9, %v1340_v44 }
 0x1e0   : > { %v1047_v10 = vpop.permute.xlu0 %1046 }
 0x1e1   : > { %v999_v31 = vpop.permute.xlu1 %998  ;;  %v1300_v30 = vsel %vm1292_vm6, %v1283_v26, %v1047_v10 }
 0x1e2   : > { %v1291_v43 = vsel %vm1275_vm5, %v1274_v55, %v999_v31 }
 0x1e4   : > { %v1109_v48 = vpop.permute.xlu0 %1108 }
 0x1e5   : > { %v1061_v17 = vpop.permute.xlu1 %1060  ;;  %v1316_v19 = vsel %vm1309_vm7, %v1299_v34, %v1109_v48 }
 0x1e6   : > { %v1307_v38 = vsel %vm1292_vm6, %v1290_v5, %v1061_v17 }
 0x1e8   : > { %v1111_v28 = vpop.permute.xlu0 %1110 }
 0x1e9   : > { %v1063_v61 = vpop.permute.xlu1 %1062  ;;  %v1317_v50 = vsel %vm1309_vm7, %v1300_v30, %v1111_v28 }
 0x1ea   : > { %v1308_v4 = vsel %vm1292_vm6, %v1291_v43, %v1063_v61 }
 0x1ec   : > { %v1173_v46 = vpop.permute.xlu0 %1172 }
 0x1ed   : > { %v1333_v52 = vsel %vm1326_vm8, %v1316_v19, %v1173_v46  ;;  %v1125_v16 = vpop.permute.xlu1 %1124 }
 0x1ee   : > { %1749 = vmatprep.mubr.msk.f32.mxu0 %vm1359_vm9, %v1333_v52  ;;  %v1324_v7 = vsel %vm1309_vm7, %v1307_v38, %v1125_v16 }
 0x1f0   : > { %v1175_v39 = vpop.permute.xlu0 %1174 }
 0x1f1   : > { %v1334_v15 = vsel %vm1326_vm8, %v1317_v50, %v1175_v39  ;;  %v1127_v9 = vpop.permute.xlu1 %1126 }
 0x1f2   : > { %1750 = vmatmul.mubr.msk.f32.gmra.mxu0 %vm1359_vm9, %v1334_v15  ;;  %v1325_v42 = vsel %vm1309_vm7, %v1308_v4, %v1127_v9 }
 0x1f5   : > { %v1189_v25 = vpop.permute.xlu1 %1188 }
 0x1f6   : > { %v1341_v57 = vsel %vm1326_vm8, %v1324_v7, %v1189_v25 }
 0x1f7   : > { %1761 = vmatprep.mubr.msk.f32.mxu1 %vm1359_vm9, %v1341_v57 }
 0x1f9   : > { %v1191_v14 = vpop.permute.xlu1 %1190 }
 0x1fa   : > { %v1342_v49 = vsel %vm1326_vm8, %v1325_v42, %v1191_v14 }
 0x1fb   : > { %1762 = vmatmul.mubr.msk.f32.gmra.mxu1 %vm1359_vm9, %v1342_v49 }
 0x21a   : > { %v1742_v60 = vpop.f32.mrf.mxu0 }
 0x21b   : > { %v1480_v18 = vadd.f32 %v1742_v60, %v1676_v45 }
 0x21c   : > { %v1474_v63 = vpop.f32.mrf.mxu0 }
 0x21d   : > { %1555 = vst.msk [vmem:[%s2688_s25 + $0x8] sm:$0xff] %vm1553_vm10, %v1480_v18  ;;  %v1475_v11 = vadd.f32 %v1676_v45, %v1474_v63 }
 0x21f   : > { %1554 = vst.msk [vmem:[%s2688_s25] sm:$0xff] %vm1553_vm10, %v1475_v11 }
 0x223   : > { %v1754_v62 = vpop.f32.mrf.mxu1 }
 0x224   : > { %v1520_v32 = vadd.f32 %v1754_v62, %v1676_v45 }
 0x225   : > { %v1514_v53 = vpop.f32.mrf.mxu1 }
 0x226   : > { %1563 = vst.msk [vmem:[%s2688_s25 + $0x48] sm:$0xff] %vm1553_vm10, %v1520_v32  ;;  %v1515_v35 = vadd.f32 %v1676_v45, %v1514_v53 }
 0x228   : > { %1562 = vst.msk [vmem:[%s2688_s25 + $0x40] sm:$0xff] %vm1553_vm10, %v1515_v35 }
 0x25a   : > { %v1745_v12 = vpop.f32.mrf.mxu0 }
 0x25b   : > { %v1490_v6 = vadd.f32 %v1745_v12, %v1676_v45 }
 0x25c   : > { %v1484_v1 = vpop.f32.mrf.mxu0 }
 0x25d   : > { %1557 = vst.msk [vmem:[%s2688_s25 + $0x18] sm:$0xff] %vm1553_vm10, %v1490_v6  ;;  %v1485_v59 = vadd.f32 %v1676_v45, %v1484_v1 }
 0x25f   : > { %1556 = vst.msk [vmem:[%s2688_s25 + $0x10] sm:$0xff] %vm1553_vm10, %v1485_v59 }
 0x263   : > { %v1757_v56 = vpop.f32.mrf.mxu1 }
 0x264   : > { %v1530_v58 = vadd.f32 %v1757_v56, %v1676_v45 }
 0x265   : > { %v1524_v36 = vpop.f32.mrf.mxu1 }
 0x266   : > { %1565 = vst.msk [vmem:[%s2688_s25 + $0x58] sm:$0xff] %vm1553_vm10, %v1530_v58  ;;  %v1525_v13 = vadd.f32 %v1676_v45, %v1524_v36 }
 0x268   : > { %1564 = vst.msk [vmem:[%s2688_s25 + $0x50] sm:$0xff] %vm1553_vm10, %v1525_v13 }
 0x296   : > { %v1748_v20 = vpop.f32.mrf.mxu0 }
 0x297   : > { %v1500_v22 = vadd.f32 %v1748_v20, %v1676_v45 }
 0x298   : > { %v1494_v24 = vpop.f32.mrf.mxu0 }
 0x299   : > { %1559 = vst.msk [vmem:[%s2688_s25 + $0x28] sm:$0xff] %vm1553_vm10, %v1500_v22  ;;  %v1495_v3 = vadd.f32 %v1676_v45, %v1494_v24 }
 0x29b   : > { %1558 = vst.msk [vmem:[%s2688_s25 + $0x20] sm:$0xff] %vm1553_vm10, %v1495_v3 }
 0x29f   : > { %v1760_v29 = vpop.f32.mrf.mxu1 }
 0x2a0   : > { %v1540_v8 = vadd.f32 %v1760_v29, %v1676_v45 }
 0x2a1   : > { %v1534_v44 = vpop.f32.mrf.mxu1 }
 0x2a2   : > { %1567 = vst.msk [vmem:[%s2688_s25 + $0x68] sm:$0xff] %vm1553_vm10, %v1540_v8  ;;  %v1535_v10 = vadd.f32 %v1676_v45, %v1534_v44 }
 0x2a4   : > { %1566 = vst.msk [vmem:[%s2688_s25 + $0x60] sm:$0xff] %vm1553_vm10, %v1535_v10 }
 0x2b2   : > { %v1751_v31 = vpop.f32.mrf.mxu0 }
 0x2b3   : > { %v1510_v48 = vadd.f32 %v1751_v31, %v1676_v45 }
 0x2b4   : > { %v1504_v17 = vpop.f32.mrf.mxu0 }
 0x2b5   : > { %1561 = vst.msk [vmem:[%s2688_s25 + $0x38] sm:$0xff] %vm1553_vm10, %v1510_v48  ;;  %v1505_v23 = vadd.f32 %v1676_v45, %v1504_v17 }
 0x2b7   : > { %1560 = vst.msk [vmem:[%s2688_s25 + $0x30] sm:$0xff] %vm1553_vm10, %v1505_v23 }
 0x2bb   : > { %v1763_v28 = vpop.f32.mrf.mxu1 }
 0x2bc   : > { %v1550_v33 = vadd.f32 %v1763_v28, %v1676_v45 }
 0x2bd   : > { %v1544_v61 = vpop.f32.mrf.mxu1 }
 0x2be   : > { %1569 = vst.msk [vmem:[%s2688_s25 + $0x78] sm:$0xff] %vm1553_vm10, %v1550_v33  ;;  %v1545_v37 = vadd.f32 %v1676_v45, %v1544_v61 }
 0x2c0   : > { %1568 = vst.msk [vmem:[%s2688_s25 + $0x70] sm:$0xff] %vm1553_vm10, %v1545_v37 }
 0x2c1 PF: > { %s15_s18 = sadd.s32 1, %s1808_s18  }
 0x2c2   : > { %p12_p4 = scmp.ge.s32.totalorder %s15_s18, 6  }
 0x2c4   :  { %14 = sbr.rel (!%p12_p4) target bundleno = 1 (0x1), region = 84 }

// kernel: mlb_forward.7
= control target key start
LH: loop header
LB: loop body
LE: loop exit
PB: predicated region body
PF: predicated region fallthrough
CT: control target
= control target key end

     0   :  { %s1340_s22 = smov 4   ;;  %vm404_vm0 = vcmask 31744   ;;  %vm597_vm1 = vcmask 64512   ;;  %s3857_s2 = inlined_call_operand.vmem [shape: f32[2,16,16,4], index: 2, kind: input, shape index: {}]   ;;  %s3858_s1 = inlined_call_operand.vmem [shape: f32[2,16,16,4], index: 1, kind: input, shape index: {}]   ;;  %s3859_s0 = inlined_call_operand.vmem [shape: f32[2,16,16,8], index: 0, kind: input, shape index: {}]   ;;  %s3860_s3 = inlined_call_operand.vmem [shape: f32[1,8], index: 3, kind: input, shape index: {}]   ;;  %s3861_s4 = inlined_call_operand.vmem [shape: f32[1,8], index: 4, kind: input, shape index: {}]   ;;  %s3862_s5 = inlined_call_operand.vmem [shape: f32[2,16,16,8], index: 5, kind: output, shape index: {}]  }
   0x1   :  { %v84_v0 = vld [vmem:[%s3857_s2] sm:$0xff]  ;;  %v86_v1 = vld [vmem:[%s3857_s2 + $0x10] sm:$0xff]  ;;  %v85_v2 = vld [vmem:[%s3857_s2 + $0x8] sm:$0xff] }
   0x2   :  { %212 = vrot.lane.b32.xlu0 %v84_v0, %s1340_s22  ;;  %216 = vrot.lane.b32.xlu1 %v86_v1, %s1340_s22  ;;  %v87_v3 = vld [vmem:[%s3857_s2 + $0x18] sm:$0xff]  ;;  %v88_v4 = vld [vmem:[%s3857_s2 + $0x20] sm:$0xff] }
   0x3   :  { %v89_v5 = vld [vmem:[%s3857_s2 + $0x28] sm:$0xff]  ;;  %v90_v6 = vld [vmem:[%s3857_s2 + $0x30] sm:$0xff]  ;;  %v91_v7 = vld [vmem:[%s3857_s2 + $0x38] sm:$0xff] }
   0x4   :  { %v92_v8 = vld [vmem:[%s3857_s2 + $0x40] sm:$0xff]  ;;  %v93_v9 = vld [vmem:[%s3857_s2 + $0x48] sm:$0xff]  ;;  %v94_v10 = vld [vmem:[%s3857_s2 + $0x50] sm:$0xff] }
   0x5   :  { %v95_v11 = vld [vmem:[%s3857_s2 + $0x58] sm:$0xff]  ;;  %v96_v12 = vld [vmem:[%s3857_s2 + $0x60] sm:$0xff]  ;;  %v97_v13 = vld [vmem:[%s3857_s2 + $0x68] sm:$0xff] }
   0x6   :  { %214 = vrot.lane.b32.xlu0 %v85_v2, %s1340_s22  ;;  %218 = vrot.lane.b32.xlu1 %v87_v3, %s1340_s22  ;;  %v98_v14 = vld [vmem:[%s3857_s2 + $0x70] sm:$0xff]  ;;  %v99_v15 = vld [vmem:[%s3857_s2 + $0x78] sm:$0xff] }
   0x7   :  { %v100_v16 = vld [vmem:[%s3857_s2 + $0x80] sm:$0xff]  ;;  %v101_v17 = vld [vmem:[%s3857_s2 + $0x88] sm:$0xff]  ;;  %v102_v18 = vld [vmem:[%s3857_s2 + $0x90] sm:$0xff] }
   0x8   :  { %v103_v19 = vld [vmem:[%s3857_s2 + $0x98] sm:$0xff]  ;;  %v104_v20 = vld [vmem:[%s3857_s2 + $0xa0] sm:$0xff]  ;;  %v105_v21 = vld [vmem:[%s3857_s2 + $0xa8] sm:$0xff] }
   0x9   :  { %v106_v22 = vld [vmem:[%s3857_s2 + $0xb0] sm:$0xff]  ;;  %v107_v23 = vld [vmem:[%s3857_s2 + $0xb8] sm:$0xff]  ;;  %v108_v24 = vld [vmem:[%s3857_s2 + $0xc0] sm:$0xff] }
   0xa   :  { %220 = vrot.lane.b32.xlu0 %v88_v4, %s1340_s22  ;;  %222 = vrot.lane.b32.xlu1 %v89_v5, %s1340_s22  ;;  %v109_v25 = vld [vmem:[%s3857_s2 + $0xc8] sm:$0xff]  ;;  %v110_v26 = vld [vmem:[%s3857_s2 + $0xd0] sm:$0xff] }
   0xb   :  { %v111_v27 = vld [vmem:[%s3857_s2 + $0xd8] sm:$0xff]  ;;  %v112_v28 = vld [vmem:[%s3857_s2 + $0xe0] sm:$0xff]  ;;  %v113_v29 = vld [vmem:[%s3857_s2 + $0xe8] sm:$0xff] }
   0xc   :  { %v114_v30 = vld [vmem:[%s3857_s2 + $0xf0] sm:$0xff]  ;;  %v115_v31 = vld [vmem:[%s3857_s2 + $0xf8] sm:$0xff]  ;;  %v116_v32 = vld [vmem:[%s3857_s2 + $0x100] sm:$0xff] }
   0xd   :  { %v117_v33 = vld [vmem:[%s3857_s2 + $0x108] sm:$0xff]  ;;  %v118_v34 = vld [vmem:[%s3857_s2 + $0x110] sm:$0xff]  ;;  %v119_v35 = vld [vmem:[%s3857_s2 + $0x118] sm:$0xff] }
   0xe   :  { %224 = vrot.lane.b32.xlu0 %v90_v6, %s1340_s22  ;;  %226 = vrot.lane.b32.xlu1 %v91_v7, %s1340_s22  ;;  %v120_v36 = vld [vmem:[%s3857_s2 + $0x120] sm:$0xff]  ;;  %v121_v37 = vld [vmem:[%s3857_s2 + $0x128] sm:$0xff] }
   0xf   :  { %v122_v38 = vld [vmem:[%s3857_s2 + $0x130] sm:$0xff]  ;;  %v123_v39 = vld [vmem:[%s3857_s2 + $0x138] sm:$0xff]  ;;  %v124_v40 = vld [vmem:[%s3857_s2 + $0x140] sm:$0xff] }
  0x10   :  { %v125_v41 = vld [vmem:[%s3857_s2 + $0x148] sm:$0xff]  ;;  %v126_v42 = vld [vmem:[%s3857_s2 + $0x150] sm:$0xff]  ;;  %v127_v43 = vld [vmem:[%s3857_s2 + $0x158] sm:$0xff] }
  0x11   :  { %v128_v44 = vld [vmem:[%s3857_s2 + $0x160] sm:$0xff]  ;;  %v129_v45 = vld [vmem:[%s3857_s2 + $0x168] sm:$0xff]  ;;  %v130_v46 = vld [vmem:[%s3857_s2 + $0x170] sm:$0xff] }
  0x12   :  { %228 = vrot.lane.b32.xlu0 %v92_v8, %s1340_s22  ;;  %230 = vrot.lane.b32.xlu1 %v93_v9, %s1340_s22  ;;  %v131_v47 = vld [vmem:[%s3857_s2 + $0x178] sm:$0xff]  ;;  %v132_v48 = vld [vmem:[%s3857_s2 + $0x180] sm:$0xff] }
  0x13   :  { %v133_v49 = vld [vmem:[%s3857_s2 + $0x188] sm:$0xff]  ;;  %v134_v50 = vld [vmem:[%s3857_s2 + $0x190] sm:$0xff]  ;;  %v135_v51 = vld [vmem:[%s3857_s2 + $0x198] sm:$0xff] }
  0x14   :  { %v136_v52 = vld [vmem:[%s3857_s2 + $0x1a0] sm:$0xff]  ;;  %v137_v53 = vld [vmem:[%s3857_s2 + $0x1a8] sm:$0xff]  ;;  %v138_v54 = vld [vmem:[%s3857_s2 + $0x1b0] sm:$0xff] }
  0x15   :  { %v139_v55 = vld [vmem:[%s3857_s2 + $0x1b8] sm:$0xff]  ;;  %v140_v56 = vld [vmem:[%s3857_s2 + $0x1c0] sm:$0xff]  ;;  %v141_v57 = vld [vmem:[%s3857_s2 + $0x1c8] sm:$0xff] }
  0x16   :  { %232 = vrot.lane.b32.xlu0 %v94_v10, %s1340_s22  ;;  %234 = vrot.lane.b32.xlu1 %v95_v11, %s1340_s22  ;;  %v20_v58 = vld [vmem:[%s3858_s1] sm:$0xff]  ;;  %v142_v59 = vld [vmem:[%s3857_s2 + $0x1d0] sm:$0xff] }
  0x17   :  { %v143_v60 = vld [vmem:[%s3857_s2 + $0x1d8] sm:$0xff]  ;;  %v22_v63 = vld [vmem:[%s3858_s1 + $0x10] sm:$0xff]  ;;  %v469_v1 = vld [vmem:[%s3859_s0] sm:$0xff] }
  0x18   :  { %v471_v2 = vld [vmem:[%s3859_s0 + $0x10] sm:$0xff]  ;;  %v21_v3 = vld [vmem:[%s3858_s1 + $0x8] sm:$0xff]  ;;  %v23_v5 = vld [vmem:[%s3858_s1 + $0x18] sm:$0xff] }
  0x19   :  { %v470_v4 = vld [vmem:[%s3859_s0 + $0x8] sm:$0xff]  ;;  %v472_v7 = vld [vmem:[%s3859_s0 + $0x18] sm:$0xff]  ;;  %v144_v8 = vld [vmem:[%s3857_s2 + $0x1e0] sm:$0xff] }
  0x1a   :  { %236 = vrot.lane.b32.xlu0 %v96_v12, %s1340_s22  ;;  %238 = vrot.lane.b32.xlu1 %v97_v13, %s1340_s22  ;;  %v145_v9 = vld [vmem:[%s3857_s2 + $0x1e8] sm:$0xff] }
  0x1e   :  { %240 = vrot.lane.b32.xlu0 %v98_v14, %s1340_s22  ;;  %242 = vrot.lane.b32.xlu1 %v99_v15, %s1340_s22  ;;  %v24_v15 = vld [vmem:[%s3858_s1 + $0x20] sm:$0xff] }
  0x22   :  { %244 = vrot.lane.b32.xlu0 %v100_v16, %s1340_s22  ;;  %246 = vrot.lane.b32.xlu1 %v101_v17, %s1340_s22 }
  0x26   :  { %248 = vrot.lane.b32.xlu0 %v102_v18, %s1340_s22  ;;  %250 = vrot.lane.b32.xlu1 %v103_v19, %s1340_s22  ;;  %v473_v19 = vld [vmem:[%s3859_s0 + $0x20] sm:$0xff] }
  0x2a   :  { %252 = vrot.lane.b32.xlu0 %v104_v20, %s1340_s22  ;;  %254 = vrot.lane.b32.xlu1 %v105_v21, %s1340_s22  ;;  %v25_v20 = vld [vmem:[%s3858_s1 + $0x28] sm:$0xff] }
  0x2b   :  { %v474_v21 = vld [vmem:[%s3859_s0 + $0x28] sm:$0xff] }
  0x2e   :  { %256 = vrot.lane.b32.xlu0 %v106_v22, %s1340_s22  ;;  %258 = vrot.lane.b32.xlu1 %v107_v23, %s1340_s22  ;;  %v146_v22 = vld [vmem:[%s3857_s2 + $0x1f0] sm:$0xff]  ;;  %v147_v23 = vld [vmem:[%s3857_s2 + $0x1f8] sm:$0xff] }
  0x32   :  { %260 = vrot.lane.b32.xlu0 %v108_v24, %s1340_s22  ;;  %262 = vrot.lane.b32.xlu1 %v109_v25, %s1340_s22 }
  0x36   :  { %264 = vrot.lane.b32.xlu0 %v110_v26, %s1340_s22  ;;  %266 = vrot.lane.b32.xlu1 %v111_v27, %s1340_s22 }
  0x3a   :  { %268 = vrot.lane.b32.xlu0 %v112_v28, %s1340_s22  ;;  %270 = vrot.lane.b32.xlu1 %v113_v29, %s1340_s22 }
  0x3e   :  { %272 = vrot.lane.b32.xlu0 %v114_v30, %s1340_s22  ;;  %274 = vrot.lane.b32.xlu1 %v115_v31, %s1340_s22 }
  0x42   :  { %276 = vrot.lane.b32.xlu0 %v116_v32, %s1340_s22  ;;  %278 = vrot.lane.b32.xlu1 %v117_v33, %s1340_s22 }
  0x46   :  { %280 = vrot.lane.b32.xlu0 %v118_v34, %s1340_s22  ;;  %282 = vrot.lane.b32.xlu1 %v119_v35, %s1340_s22  ;;  %v26_v35 = vld [vmem:[%s3858_s1 + $0x30] sm:$0xff] }
  0x4a   :  { %284 = vrot.lane.b32.xlu0 %v120_v36, %s1340_s22  ;;  %286 = vrot.lane.b32.xlu1 %v121_v37, %s1340_s22  ;;  %v27_v36 = vld [vmem:[%s3858_s1 + $0x38] sm:$0xff] }
  0x4e   :  { %288 = vrot.lane.b32.xlu0 %v122_v38, %s1340_s22  ;;  %290 = vrot.lane.b32.xlu1 %v123_v39, %s1340_s22  ;;  %v475_v38 = vld [vmem:[%s3859_s0 + $0x30] sm:$0xff]  ;;  %v476_v39 = vld [vmem:[%s3859_s0 + $0x38] sm:$0xff] }
  0x52   :  { %292 = vrot.lane.b32.xlu0 %v124_v40, %s1340_s22  ;;  %294 = vrot.lane.b32.xlu1 %v125_v41, %s1340_s22 }
  0x56   :  { %296 = vrot.lane.b32.xlu0 %v126_v42, %s1340_s22  ;;  %298 = vrot.lane.b32.xlu1 %v127_v43, %s1340_s22 }
  0x5a   :  { %300 = vrot.lane.b32.xlu0 %v128_v44, %s1340_s22  ;;  %302 = vrot.lane.b32.xlu1 %v129_v45, %s1340_s22 }
  0x5e   :  { %304 = vrot.lane.b32.xlu0 %v130_v46, %s1340_s22  ;;  %306 = vrot.lane.b32.xlu1 %v131_v47, %s1340_s22 }
  0x62   :  { %308 = vrot.lane.b32.xlu0 %v132_v48, %s1340_s22  ;;  %310 = vrot.lane.b32.xlu1 %v133_v49, %s1340_s22  ;;  %v28_v49 = vld [vmem:[%s3858_s1 + $0x40] sm:$0xff] }
  0x66   :  { %312 = vrot.lane.b32.xlu0 %v134_v50, %s1340_s22  ;;  %314 = vrot.lane.b32.xlu1 %v135_v51, %s1340_s22  ;;  %v29_v50 = vld [vmem:[%s3858_s1 + $0x48] sm:$0xff] }
  0x6a   :  { %316 = vrot.lane.b32.xlu0 %v136_v52, %s1340_s22  ;;  %318 = vrot.lane.b32.xlu1 %v137_v53, %s1340_s22  ;;  %v477_v52 = vld [vmem:[%s3859_s0 + $0x40] sm:$0xff]  ;;  %v478_v53 = vld [vmem:[%s3859_s0 + $0x48] sm:$0xff] }
  0x6e   :  { %320 = vrot.lane.b32.xlu0 %v138_v54, %s1340_s22  ;;  %322 = vrot.lane.b32.xlu1 %v139_v55, %s1340_s22 }
  0x72   :  { %324 = vrot.lane.b32.xlu0 %v140_v56, %s1340_s22  ;;  %326 = vrot.lane.b32.xlu1 %v141_v57, %s1340_s22 }
  0x74   :  { %v213_v61 = vpop.permute.xlu0 %212  ;;  %v217_v62 = vpop.permute.xlu1 %216 }
  0x75   :  { %v405_v0 = vsel %vm404_vm0, %v20_v58, %v213_v61  ;;  %v407_v6 = vsel %vm404_vm0, %v22_v63, %v217_v62  ;;  %v30_v63 = vld [vmem:[%s3858_s1 + $0x50] sm:$0xff] }
  0x76   :  { %328 = vrot.lane.b32.xlu0 %v142_v59, %s1340_s22  ;;  %330 = vrot.lane.b32.xlu1 %v143_v60, %s1340_s22  ;;  %v1643_v10 = vadd.f32 %v469_v1, %v405_v0  ;;  %v1650_v16 = vadd.f32 %v471_v2, %v407_v6  ;;  %v31_v0 = vld [vmem:[%s3858_s1 + $0x58] sm:$0xff]  ;;  %v479_v2 = vld [vmem:[%s3859_s0 + $0x50] sm:$0xff] }
  0x78   :  { %v215_v11 = vpop.permute.xlu0 %214  ;;  %v219_v12 = vpop.permute.xlu1 %218  ;;  %v598_v24 = vsel %vm597_vm1, %v1643_v10, 0.0  ;;  %v601_v31 = vsel %vm597_vm1, %v1650_v16, 0.0 }
  0x79   :  { %v406_v13 = vsel %vm404_vm0, %v21_v3, %v215_v11  ;;  %v408_v14 = vsel %vm404_vm0, %v23_v5, %v219_v12  ;;  %v480_v3 = vld [vmem:[%s3859_s0 + $0x58] sm:$0xff] }
  0x7a   :  { %v1652_v17 = vadd.f32 %v470_v4, %v406_v13  ;;  %v1654_v18 = vadd.f32 %v472_v7, %v408_v14  ;;  %332 = vrot.lane.b32.xlu0 %v144_v8, %s1340_s22  ;;  %334 = vrot.lane.b32.xlu1 %v145_v9, %s1340_s22  ;;  %v32_v14 = vld [vmem:[%s3858_s1 + $0x60] sm:$0xff] }
  0x7c   :  { %v599_v25 = vsel %vm597_vm1, %v1652_v17, 0.0  ;;  %v221_v26 = vpop.permute.xlu0 %220  ;;  %v223_v27 = vpop.permute.xlu1 %222  ;;  %v603_v32 = vsel %vm597_vm1, %v1654_v18, 0.0 }
  0x7d   :  { %v600_v28 = vadd.f32 %v599_v25, %v598_v24  ;;  %v409_v29 = vsel %vm404_vm0, %v24_v15, %v221_v26  ;;  %v410_v30 = vsel %vm404_vm0, %v25_v20, %v223_v27  ;;  %v33_v15 = vld [vmem:[%s3858_s1 + $0x68] sm:$0xff]  ;;  %v481_v20 = vld [vmem:[%s3859_s0 + $0x60] sm:$0xff] }
  0x7e   :  { %v1683_v33 = vadd.f32 %v473_v19, %v409_v29  ;;  %v1685_v34 = vadd.f32 %v474_v21, %v410_v30  ;;  %336 = vrot.lane.b32.xlu0 %v146_v22, %s1340_s22  ;;  %338 = vrot.lane.b32.xlu1 %v147_v23, %s1340_s22  ;;  %v482_v21 = vld [vmem:[%s3859_s0 + $0x68] sm:$0xff] }
  0x7f   :  { %v602_v37 = vadd.f32 %v601_v31, %v600_v28  ;;  %v34_v31 = vld [vmem:[%s3858_s1 + $0x70] sm:$0xff] }
  0x80   :  { %v605_v40 = vsel %vm597_vm1, %v1683_v33, 0.0  ;;  %v225_v41 = vpop.permute.xlu0 %224  ;;  %v227_v42 = vpop.permute.xlu1 %226  ;;  %v607_v46 = vsel %vm597_vm1, %v1685_v34, 0.0 }
  0x81   :  { %v604_v43 = vadd.f32 %v603_v32, %v602_v37  ;;  %v411_v44 = vsel %vm404_vm0, %v26_v35, %v225_v41  ;;  %v412_v45 = vsel %vm404_vm0, %v27_v36, %v227_v42  ;;  %v35_v32 = vld [vmem:[%s3858_s1 + $0x78] sm:$0xff]  ;;  %v483_v36 = vld [vmem:[%s3859_s0 + $0x70] sm:$0xff] }
  0x82   :  { %v1707_v47 = vadd.f32 %v475_v38, %v411_v44  ;;  %v1709_v48 = vadd.f32 %v476_v39, %v412_v45  ;;  %v484_v37 = vld [vmem:[%s3859_s0 + $0x78] sm:$0xff] }
  0x83   :  { %v606_v51 = vadd.f32 %v605_v40, %v604_v43 }
  0x84   :  { %v609_v54 = vsel %vm597_vm1, %v1707_v47, 0.0  ;;  %v229_v55 = vpop.permute.xlu0 %228  ;;  %v231_v56 = vpop.permute.xlu1 %230  ;;  %v611_v60 = vsel %vm597_vm1, %v1709_v48, 0.0 }
  0x85   :  { %v608_v57 = vadd.f32 %v607_v46, %v606_v51  ;;  %v413_v58 = vsel %vm404_vm0, %v28_v49, %v229_v55  ;;  %v414_v59 = vsel %vm404_vm0, %v29_v50, %v231_v56  ;;  %v36_v49 = vld [vmem:[%s3858_s1 + $0x80] sm:$0xff]  ;;  %v37_v50 = vld [vmem:[%s3858_s1 + $0x88] sm:$0xff] }
  0x86   :  { %v1729_v61 = vadd.f32 %v477_v52, %v413_v58  ;;  %v1731_v62 = vadd.f32 %v478_v53, %v414_v59  ;;  %v485_v52 = vld [vmem:[%s3859_s0 + $0x80] sm:$0xff]  ;;  %v486_v53 = vld [vmem:[%s3859_s0 + $0x88] sm:$0xff] }
  0x87   :  { %v610_v1 = vadd.f32 %v609_v54, %v608_v57 }
  0x88   :  { %v613_v4 = vsel %vm597_vm1, %v1729_v61, 0.0  ;;  %v233_v5 = vpop.permute.xlu0 %232  ;;  %v235_v6 = vpop.permute.xlu1 %234  ;;  %v615_v11 = vsel %vm597_vm1, %v1731_v62, 0.0 }
  0x89   :  { %v612_v7 = vadd.f32 %v611_v60, %v610_v1  ;;  %v415_v8 = vsel %vm404_vm0, %v30_v63, %v233_v5  ;;  %v416_v9 = vsel %vm404_vm0, %v31_v0, %v235_v6  ;;  %v38_v1 = vld [vmem:[%s3858_s1 + $0x90] sm:$0xff]  ;;  %v488_v5 = vld [vmem:[%s3859_s0 + $0x98] sm:$0xff] }
  0x8a   :  { %v1751_v12 = vadd.f32 %v479_v2, %v415_v8  ;;  %v1753_v13 = vadd.f32 %v480_v3, %v416_v9  ;;  %v39_v2 = vld [vmem:[%s3858_s1 + $0x98] sm:$0xff] }
  0x8b   :  { %v614_v19 = vadd.f32 %v613_v4, %v612_v7  ;;  %v487_v4 = vld [vmem:[%s3859_s0 + $0x90] sm:$0xff] }
  0x8c   :  { %v617_v22 = vsel %vm597_vm1, %v1751_v12, 0.0  ;;  %v237_v23 = vpop.permute.xlu0 %236  ;;  %v239_v24 = vpop.permute.xlu1 %238  ;;  %v619_v28 = vsel %vm597_vm1, %v1753_v13, 0.0 }
  0x8d   :  { %v616_v25 = vadd.f32 %v615_v11, %v614_v19  ;;  %v417_v26 = vsel %vm404_vm0, %v32_v14, %v237_v23  ;;  %v418_v27 = vsel %vm404_vm0, %v33_v15, %v239_v24  ;;  %v489_v24 = vld [vmem:[%s3859_s0 + $0xa0] sm:$0xff] }
  0x8e   :  { %v1773_v29 = vadd.f32 %v481_v20, %v417_v26  ;;  %v1775_v30 = vadd.f32 %v482_v21, %v418_v27  ;;  %v40_v21 = vld [vmem:[%s3858_s1 + $0xa0] sm:$0xff] }
  0x8f   :  { %v618_v35 = vadd.f32 %v617_v22, %v616_v25  ;;  %v41_v22 = vld [vmem:[%s3858_s1 + $0xa8] sm:$0xff] }
  0x90   :  { %v621_v38 = vsel %vm597_vm1, %v1773_v29, 0.0  ;;  %v241_v39 = vpop.permute.xlu0 %240  ;;  %v243_v40 = vpop.permute.xlu1 %242  ;;  %v623_v44 = vsel %vm597_vm1, %v1775_v30, 0.0  ;;  %v490_v25 = vld [vmem:[%s3859_s0 + $0xa8] sm:$0xff] }
  0x91   :  { %v620_v41 = vadd.f32 %v619_v28, %v618_v35  ;;  %v419_v42 = vsel %vm404_vm0, %v34_v31, %v241_v39  ;;  %v420_v43 = vsel %vm404_vm0, %v35_v32, %v243_v40  ;;  %v42_v39 = vld [vmem:[%s3858_s1 + $0xb0] sm:$0xff]  ;;  %v43_v40 = vld [vmem:[%s3858_s1 + $0xb8] sm:$0xff] }
  0x92   :  { %v1795_v45 = vadd.f32 %v483_v36, %v419_v42  ;;  %v1797_v46 = vadd.f32 %v484_v37, %v420_v43  ;;  %v491_v42 = vld [vmem:[%s3859_s0 + $0xb0] sm:$0xff]  ;;  %v492_v43 = vld [vmem:[%s3859_s0 + $0xb8] sm:$0xff] }
  0x93   :  { %v622_v51 = vadd.f32 %v621_v38, %v620_v41 }
  0x94   :  { %v625_v54 = vsel %vm597_vm1, %v1795_v45, 0.0  ;;  %v245_v55 = vpop.permute.xlu0 %244  ;;  %v247_v56 = vpop.permute.xlu1 %246  ;;  %v627_v60 = vsel %vm597_vm1, %v1797_v46, 0.0 }
  0x95   :  { %v624_v57 = vadd.f32 %v623_v44, %v622_v51  ;;  %v421_v58 = vsel %vm404_vm0, %v36_v49, %v245_v55  ;;  %v422_v59 = vsel %vm404_vm0, %v37_v50, %v247_v56 }
  0x96   :  { %v1817_v63 = vadd.f32 %v485_v52, %v421_v58  ;;  %v1819_v0 = vadd.f32 %v486_v53, %v422_v59  ;;  %v45_v58 = vld [vmem:[%s3858_s1 + $0xc8] sm:$0xff] }
  0x97   :  { %v626_v3 = vadd.f32 %v625_v54, %v624_v57  ;;  %v44_v57 = vld [vmem:[%s3858_s1 + $0xc0] sm:$0xff] }
  0x98   :  { %v629_v6 = vsel %vm597_vm1, %v1817_v63, 0.0  ;;  %v249_v7 = vpop.permute.xlu0 %248  ;;  %v251_v8 = vpop.permute.xlu1 %250  ;;  %v631_v15 = vsel %vm597_vm1, %v1819_v0, 0.0 }
  0x99   :  { %v628_v9 = vadd.f32 %v627_v60, %v626_v3  ;;  %v423_v11 = vsel %vm404_vm0, %v38_v1, %v249_v7  ;;  %v424_v14 = vsel %vm404_vm0, %v39_v2, %v251_v8  ;;  %v493_v60 = vld [vmem:[%s3859_s0 + $0xc0] sm:$0xff]  ;;  %v494_v1 = vld [vmem:[%s3859_s0 + $0xc8] sm:$0xff] }
  0x9a   :  { %v1839_v19 = vadd.f32 %v487_v4, %v423_v11  ;;  %v1841_v20 = vadd.f32 %v488_v5, %v424_v14  ;;  %v46_v14 = vld [vmem:[%s3858_s1 + $0xd0] sm:$0xff] }
  0x9b   :  { %v630_v23 = vadd.f32 %v629_v6, %v628_v9 }
  0x9c   :  { %v633_v26 = vsel %vm597_vm1, %v1839_v19, 0.0  ;;  %v253_v27 = vpop.permute.xlu0 %252  ;;  %v255_v28 = vpop.permute.xlu1 %254  ;;  %v635_v36 = vsel %vm597_vm1, %v1841_v20, 0.0 }
  0x9d   :  { %v632_v31 = vadd.f32 %v631_v15, %v630_v23  ;;  %v425_v32 = vsel %vm404_vm0, %v40_v21, %v253_v27  ;;  %v426_v35 = vsel %vm404_vm0, %v41_v22, %v255_v28  ;;  %v47_v15 = vld [vmem:[%s3858_s1 + $0xd8] sm:$0xff]  ;;  %v495_v22 = vld [vmem:[%s3859_s0 + $0xd0] sm:$0xff] }
  0x9e   :  { %v1861_v37 = vadd.f32 %v489_v24, %v425_v32  ;;  %v1863_v38 = vadd.f32 %v490_v25, %v426_v35  ;;  %v496_v23 = vld [vmem:[%s3859_s0 + $0xd8] sm:$0xff] }
  0x9f   :  { %v634_v41 = vadd.f32 %v633_v26, %v632_v31 }
  0xa0   :  { %v637_v44 = vsel %vm597_vm1, %v1861_v37, 0.0  ;;  %v257_v49 = vpop.permute.xlu0 %256  ;;  %v259_v50 = vpop.permute.xlu1 %258  ;;  %v639_v54 = vsel %vm597_vm1, %v1863_v38, 0.0 }
  0xa1   :  { %v636_v51 = vadd.f32 %v635_v36, %v634_v41  ;;  %v427_v52 = vsel %vm404_vm0, %v42_v39, %v257_v49  ;;  %v428_v53 = vsel %vm404_vm0, %v43_v40, %v259_v50  ;;  %v48_v39 = vld [vmem:[%s3858_s1 + $0xe0] sm:$0xff]  ;;  %v49_v40 = vld [vmem:[%s3858_s1 + $0xe8] sm:$0xff] }
  0xa2   :  { %v1883_v55 = vadd.f32 %v491_v42, %v427_v52  ;;  %v1885_v56 = vadd.f32 %v492_v43, %v428_v53  ;;  %v497_v42 = vld [vmem:[%s3859_s0 + $0xe0] sm:$0xff]  ;;  %v498_v43 = vld [vmem:[%s3859_s0 + $0xe8] sm:$0xff] }
  0xa3   :  { %v638_v59 = vadd.f32 %v637_v44, %v636_v51 }
  0xa4   :  { %v641_v2 = vsel %vm597_vm1, %v1883_v55, 0.0  ;;  %v261_v3 = vpop.permute.xlu0 %260  ;;  %v263_v4 = vpop.permute.xlu1 %262  ;;  %v643_v8 = vsel %vm597_vm1, %v1885_v56, 0.0 }
  0xa5   :  { %v640_v5 = vadd.f32 %v639_v54, %v638_v59  ;;  %v429_v6 = vsel %vm404_vm0, %v44_v57, %v261_v3  ;;  %v430_v7 = vsel %vm404_vm0, %v45_v58, %v263_v4  ;;  %v50_v59 = vld [vmem:[%s3858_s1 + $0xf0] sm:$0xff]  ;;  %v500_v3 = vld [vmem:[%s3859_s0 + $0xf8] sm:$0xff] }
  0xa6   :  { %v1905_v9 = vadd.f32 %v493_v60, %v429_v6  ;;  %v1907_v11 = vadd.f32 %v494_v1, %v430_v7  ;;  %v51_v60 = vld [vmem:[%s3858_s1 + $0xf8] sm:$0xff] }
  0xa7   :  { %v642_v21 = vadd.f32 %v641_v2, %v640_v5  ;;  %v499_v2 = vld [vmem:[%s3859_s0 + $0xf0] sm:$0xff] }
  0xa8   :  { %3904 = vst [vmem:[#allocation2_spill] sm:$0xff] %v1905_v9  ;;  %3905 = vst [vmem:[#allocation3_spill] sm:$0xff] %v1907_v11  ;;  %v645_v24 = vsel %vm597_vm1, %v1905_v9, 0.0  ;;  %v265_v25 = vpop.permute.xlu0 %264  ;;  %v267_v26 = vpop.permute.xlu1 %266  ;;  %v647_v32 = vsel %vm597_vm1, %v1907_v11, 0.0 }
  0xa9   :  { %v644_v27 = vadd.f32 %v643_v8, %v642_v21  ;;  %v431_v28 = vsel %vm404_vm0, %v46_v14, %v265_v25  ;;  %v432_v31 = vsel %vm404_vm0, %v47_v15, %v267_v26  ;;  %v501_v26 = vld [vmem:[%s3859_s0 + $0x100] sm:$0xff] }
  0xaa   :  { %v1927_v35 = vadd.f32 %v495_v22, %v431_v28  ;;  %v1929_v36 = vadd.f32 %v496_v23, %v432_v31  ;;  %v52_v23 = vld [vmem:[%s3858_s1 + $0x100] sm:$0xff] }
  0xab   :  { %v646_v41 = vadd.f32 %v645_v24, %v644_v27  ;;  %v53_v24 = vld [vmem:[%s3858_s1 + $0x108] sm:$0xff] }
  0xac   :  { %3906 = vst [vmem:[#allocation4_spill] sm:$0xff] %v1927_v35  ;;  %3907 = vst [vmem:[#allocation5_spill] sm:$0xff] %v1929_v36  ;;  %v649_v44 = vsel %vm597_vm1, %v1927_v35, 0.0  ;;  %v269_v49 = vpop.permute.xlu0 %268  ;;  %v271_v50 = vpop.permute.xlu1 %270  ;;  %v651_v54 = vsel %vm597_vm1, %v1929_v36, 0.0  ;;  %v502_v27 = vld [vmem:[%s3859_s0 + $0x108] sm:$0xff] }
  0xad   :  { %v648_v51 = vadd.f32 %v647_v32, %v646_v41  ;;  %v433_v52 = vsel %vm404_vm0, %v48_v39, %v269_v49  ;;  %v434_v53 = vsel %vm404_vm0, %v49_v40, %v271_v50  ;;  %v54_v49 = vld [vmem:[%s3858_s1 + $0x110] sm:$0xff]  ;;  %v55_v50 = vld [vmem:[%s3858_s1 + $0x118] sm:$0xff] }
  0xae   :  { %v1949_v57 = vadd.f32 %v497_v42, %v433_v52  ;;  %v1951_v58 = vadd.f32 %v498_v43, %v434_v53  ;;  %v503_v52 = vld [vmem:[%s3859_s0 + $0x110] sm:$0xff]  ;;  %v504_v53 = vld [vmem:[%s3859_s0 + $0x118] sm:$0xff] }
  0xaf   :  { %v650_v1 = vadd.f32 %v649_v44, %v648_v51 }
  0xb0   :  { %3908 = vst [vmem:[#allocation6_spill] sm:$0xff] %v1949_v57  ;;  %3909 = vst [vmem:[#allocation7_spill] sm:$0xff] %v1951_v58  ;;  %v653_v4 = vsel %vm597_vm1, %v1949_v57, 0.0  ;;  %v273_v5 = vpop.permute.xlu0 %272  ;;  %v275_v6 = vpop.permute.xlu1 %274  ;;  %v655_v15 = vsel %vm597_vm1, %v1951_v58, 0.0 }
  0xb1   :  { %v652_v7 = vadd.f32 %v651_v54, %v650_v1  ;;  %v435_v8 = vsel %vm404_vm0, %v50_v59, %v273_v5  ;;  %v436_v14 = vsel %vm404_vm0, %v51_v60, %v275_v6 }
  0xb2   :  { %v1971_v21 = vadd.f32 %v499_v2, %v435_v8  ;;  %v1973_v22 = vadd.f32 %v500_v3, %v436_v14  ;;  %v57_v8 = vld [vmem:[%s3858_s1 + $0x128] sm:$0xff] }
  0xb3   :  { %v654_v25 = vadd.f32 %v653_v4, %v652_v7  ;;  %v56_v7 = vld [vmem:[%s3858_s1 + $0x120] sm:$0xff] }
  0xb4   :  { %3910 = vst [vmem:[#allocation8_spill] sm:$0xff] %v1971_v21  ;;  %3911 = vst [vmem:[#allocation9_spill] sm:$0xff] %v1973_v22  ;;  %v657_v28 = vsel %vm597_vm1, %v1971_v21, 0.0  ;;  %v277_v31 = vpop.permute.xlu0 %276  ;;  %v279_v32 = vpop.permute.xlu1 %278  ;;  %v659_v42 = vsel %vm597_vm1, %v1973_v22, 0.0 }
  0xb5   :  { %v656_v39 = vadd.f32 %v655_v15, %v654_v25  ;;  %v437_v40 = vsel %vm404_vm0, %v52_v23, %v277_v31  ;;  %v438_v41 = vsel %vm404_vm0, %v53_v24, %v279_v32  ;;  %v505_v15 = vld [vmem:[%s3859_s0 + $0x120] sm:$0xff]  ;;  %v506_v23 = vld [vmem:[%s3859_s0 + $0x128] sm:$0xff] }
  0xb6   :  { %v1993_v43 = vadd.f32 %v501_v26, %v437_v40  ;;  %v1995_v44 = vadd.f32 %v502_v27, %v438_v41  ;;  %v58_v41 = vld [vmem:[%s3858_s1 + $0x130] sm:$0xff] }
  0xb7   :  { %v658_v51 = vadd.f32 %v657_v28, %v656_v39 }
  0xb8   :  { %3912 = vst [vmem:[#allocation10_spill] sm:$0xff] %v1993_v43  ;;  %3913 = vst [vmem:[#allocation11_spill] sm:$0xff] %v1995_v44  ;;  %v661_v54 = vsel %vm597_vm1, %v1993_v43, 0.0  ;;  %v281_v59 = vpop.permute.xlu0 %280  ;;  %v283_v60 = vpop.permute.xlu1 %282  ;;  %v663_v4 = vsel %vm597_vm1, %v1995_v44, 0.0  ;;  %v83_v44 = vld [vmem:[%s3858_s1 + $0x1f8] sm:$0xff] }
  0xb9   :  { %v660_v1 = vadd.f32 %v659_v42, %v658_v51  ;;  %v439_v2 = vsel %vm404_vm0, %v54_v49, %v281_v59  ;;  %v440_v3 = vsel %vm404_vm0, %v55_v50, %v283_v60  ;;  %v59_v42 = vld [vmem:[%s3858_s1 + $0x138] sm:$0xff]  ;;  %v507_v50 = vld [vmem:[%s3859_s0 + $0x130] sm:$0xff] }
  0xba   :  { %v2015_v5 = vadd.f32 %v503_v52, %v439_v2  ;;  %v2017_v6 = vadd.f32 %v504_v53, %v440_v3  ;;  %v508_v51 = vld [vmem:[%s3859_s0 + $0x138] sm:$0xff] }
  0xbb   :  { %v662_v14 = vadd.f32 %v661_v54, %v660_v1 }
  0xbc   :  { %3914 = vst [vmem:[#allocation12_spill] sm:$0xff] %v2015_v5  ;;  %3915 = vst [vmem:[#allocation13_spill] sm:$0xff] %v2017_v6  ;;  %v665_v24 = vsel %vm597_vm1, %v2015_v5, 0.0  ;;  %v285_v25 = vpop.permute.xlu0 %284  ;;  %v287_v26 = vpop.permute.xlu1 %286  ;;  %v667_v32 = vsel %vm597_vm1, %v2017_v6, 0.0  ;;  %v81_v6 = vld [vmem:[%s3858_s1 + $0x1e8] sm:$0xff] }
  0xbd   :  { %v664_v27 = vadd.f32 %v663_v4, %v662_v14  ;;  %v441_v28 = vsel %vm404_vm0, %v56_v7, %v285_v25  ;;  %v442_v31 = vsel %vm404_vm0, %v57_v8, %v287_v26  ;;  %v60_v7 = vld [vmem:[%s3858_s1 + $0x140] sm:$0xff]  ;;  %v61_v8 = vld [vmem:[%s3858_s1 + $0x148] sm:$0xff] }
  0xbe   :  { %v2037_v39 = vadd.f32 %v505_v15, %v441_v28  ;;  %v2039_v40 = vadd.f32 %v506_v23, %v442_v31  ;;  %v509_v15 = vld [vmem:[%s3859_s0 + $0x140] sm:$0xff]  ;;  %v510_v23 = vld [vmem:[%s3859_s0 + $0x148] sm:$0xff] }
  0xbf   :  { %v666_v49 = vadd.f32 %v665_v24, %v664_v27 }
  0xc0   :  { %3916 = vst [vmem:[#allocation14_spill] sm:$0xff] %v2037_v39  ;;  %3917 = vst [vmem:[#allocation15_spill] sm:$0xff] %v2039_v40  ;;  %v669_v52 = vsel %vm597_vm1, %v2037_v39, 0.0  ;;  %v289_v53 = vpop.permute.xlu0 %288  ;;  %v291_v54 = vpop.permute.xlu1 %290  ;;  %v671_v2 = vsel %vm597_vm1, %v2039_v40, 0.0  ;;  %v79_v40 = vld [vmem:[%s3858_s1 + $0x1d8] sm:$0xff]  ;;  %v80_v39 = vld [vmem:[%s3858_s1 + $0x1e0] sm:$0xff] }
  0xc1   :  { %v668_v59 = vadd.f32 %v667_v32, %v666_v49  ;;  %v443_v60 = vsel %vm404_vm0, %v58_v41, %v289_v53  ;;  %v444_v1 = vsel %vm404_vm0, %v59_v42, %v291_v54  ;;  %v62_v49 = vld [vmem:[%s3858_s1 + $0x150] sm:$0xff]  ;;  %v512_v53 = vld [vmem:[%s3859_s0 + $0x158] sm:$0xff] }
  0xc2   :  { %v2059_v3 = vadd.f32 %v507_v50, %v443_v60  ;;  %v2061_v4 = vadd.f32 %v508_v51, %v444_v1  ;;  %v63_v50 = vld [vmem:[%s3858_s1 + $0x158] sm:$0xff] }
  0xc3   :  { %v670_v14 = vadd.f32 %v669_v52, %v668_v59  ;;  %v511_v52 = vld [vmem:[%s3859_s0 + $0x150] sm:$0xff] }
  0xc4   :  { %3918 = vst [vmem:[#allocation16_spill] sm:$0xff] %v2059_v3  ;;  %3919 = vst [vmem:[#allocation17_spill] sm:$0xff] %v2061_v4  ;;  %v673_v24 = vsel %vm597_vm1, %v2059_v3, 0.0  ;;  %v293_v25 = vpop.permute.xlu0 %292  ;;  %v295_v26 = vpop.permute.xlu1 %294  ;;  %v675_v32 = vsel %vm597_vm1, %v2061_v4, 0.0  ;;  %v77_v4 = vld [vmem:[%s3858_s1 + $0x1c8] sm:$0xff]  ;;  %v78_v3 = vld [vmem:[%s3858_s1 + $0x1d0] sm:$0xff] }
  0xc5   :  { %v672_v27 = vadd.f32 %v671_v2, %v670_v14  ;;  %v445_v28 = vsel %vm404_vm0, %v60_v7, %v293_v25  ;;  %v446_v31 = vsel %vm404_vm0, %v61_v8, %v295_v26  ;;  %v513_v26 = vld [vmem:[%s3859_s0 + $0x160] sm:$0xff] }
  0xc6   :  { %v2081_v41 = vadd.f32 %v509_v15, %v445_v28  ;;  %v2083_v42 = vadd.f32 %v510_v23, %v446_v31  ;;  %v64_v23 = vld [vmem:[%s3858_s1 + $0x160] sm:$0xff] }
  0xc7   :  { %v674_v51 = vadd.f32 %v673_v24, %v672_v27  ;;  %v65_v24 = vld [vmem:[%s3858_s1 + $0x168] sm:$0xff] }
  0xc8   :  { %3920 = vst [vmem:[#allocation18_spill] sm:$0xff] %v2081_v41  ;;  %3921 = vst [vmem:[#allocation19_spill] sm:$0xff] %v2083_v42  ;;  %v677_v54 = vsel %vm597_vm1, %v2081_v41, 0.0  ;;  %v297_v59 = vpop.permute.xlu0 %296  ;;  %v299_v60 = vpop.permute.xlu1 %298  ;;  %v679_v8 = vsel %vm597_vm1, %v2083_v42, 0.0  ;;  %v514_v27 = vld [vmem:[%s3859_s0 + $0x168] sm:$0xff]  ;;  %v75_v42 = vld [vmem:[%s3858_s1 + $0x1b8] sm:$0xff] }
  0xc9   :  { %v676_v1 = vadd.f32 %v675_v32, %v674_v51  ;;  %v447_v2 = vsel %vm404_vm0, %v62_v49, %v297_v59  ;;  %v448_v7 = vsel %vm404_vm0, %v63_v50, %v299_v60  ;;  %v66_v59 = vld [vmem:[%s3858_s1 + $0x170] sm:$0xff]  ;;  %v67_v60 = vld [vmem:[%s3858_s1 + $0x178] sm:$0xff]  ;;  %v76_v41 = vld [vmem:[%s3858_s1 + $0x1c0] sm:$0xff] }
  0xca   :  { %v2103_v14 = vadd.f32 %v511_v52, %v447_v2  ;;  %v2105_v15 = vadd.f32 %v512_v53, %v448_v7  ;;  %v515_v2 = vld [vmem:[%s3859_s0 + $0x170] sm:$0xff]  ;;  %v516_v7 = vld [vmem:[%s3859_s0 + $0x178] sm:$0xff] }
  0xcb   :  { %v678_v25 = vadd.f32 %v677_v54, %v676_v1 }
  0xcc   :  { %3922 = vst [vmem:[#allocation20_spill] sm:$0xff] %v2103_v14  ;;  %3923 = vst [vmem:[#allocation21_spill] sm:$0xff] %v2105_v15  ;;  %v681_v28 = vsel %vm597_vm1, %v2103_v14, 0.0  ;;  %v301_v31 = vpop.permute.xlu0 %300  ;;  %v303_v32 = vpop.permute.xlu1 %302  ;;  %v683_v52 = vsel %vm597_vm1, %v2105_v15, 0.0  ;;  %v73_v15 = vld [vmem:[%s3858_s1 + $0x1a8] sm:$0xff]  ;;  %v74_v14 = vld [vmem:[%s3858_s1 + $0x1b0] sm:$0xff] }
  0xcd   :  { %v680_v49 = vadd.f32 %v679_v8, %v678_v25  ;;  %v449_v50 = vsel %vm404_vm0, %v64_v23, %v301_v31  ;;  %v450_v51 = vsel %vm404_vm0, %v65_v24, %v303_v32 }
  0xce   :  { %v2125_v53 = vadd.f32 %v513_v26, %v449_v50  ;;  %v2127_v54 = vadd.f32 %v514_v27, %v450_v51  ;;  %v69_v50 = vld [vmem:[%s3858_s1 + $0x188] sm:$0xff] }
  0xcf   :  { %v682_v1 = vadd.f32 %v681_v28, %v680_v49  ;;  %v68_v49 = vld [vmem:[%s3858_s1 + $0x180] sm:$0xff] }
  0xd0   :  { %3924 = vst [vmem:[#allocation22_spill] sm:$0xff] %v2125_v53  ;;  %3925 = vst [vmem:[#allocation23_spill] sm:$0xff] %v2127_v54  ;;  %v685_v8 = vsel %vm597_vm1, %v2125_v53, 0.0  ;;  %v305_v23 = vpop.permute.xlu0 %304  ;;  %v307_v24 = vpop.permute.xlu1 %306  ;;  %v687_v28 = vsel %vm597_vm1, %v2127_v54, 0.0  ;;  %v71_v54 = vld [vmem:[%s3858_s1 + $0x198] sm:$0xff]  ;;  %v72_v53 = vld [vmem:[%s3858_s1 + $0x1a0] sm:$0xff] }
  0xd1   :  { %v684_v25 = vadd.f32 %v683_v52, %v682_v1  ;;  %v451_v26 = vsel %vm404_vm0, %v66_v59, %v305_v23  ;;  %v452_v27 = vsel %vm404_vm0, %v67_v60, %v307_v24  ;;  %v517_v52 = vld [vmem:[%s3859_s0 + $0x180] sm:$0xff]  ;;  %v518_v59 = vld [vmem:[%s3859_s0 + $0x188] sm:$0xff] }
  0xd2   :  { %v2147_v31 = vadd.f32 %v515_v2, %v451_v26  ;;  %v2149_v32 = vadd.f32 %v516_v7, %v452_v27  ;;  %v70_v27 = vld [vmem:[%s3858_s1 + $0x190] sm:$0xff] }
  0xd3   :  { %v686_v51 = vadd.f32 %v685_v8, %v684_v25 }
  0xd4   :  { %v689_v60 = vsel %vm597_vm1, %v2147_v31, 0.0  ;;  %v309_v1 = vpop.permute.xlu0 %308  ;;  %v311_v2 = vpop.permute.xlu1 %310  ;;  %v691_v8 = vsel %vm597_vm1, %v2149_v32, 0.0 }
  0xd5   :  { %v688_v7 = vadd.f32 %v687_v28, %v686_v51  ;;  %v453_v23 = vsel %vm404_vm0, %v68_v49, %v309_v1  ;;  %v454_v24 = vsel %vm404_vm0, %v69_v50, %v311_v2  ;;  %v519_v49 = vld [vmem:[%s3859_s0 + $0x190] sm:$0xff]  ;;  %v520_v50 = vld [vmem:[%s3859_s0 + $0x198] sm:$0xff] }
  0xd6   :  { %v2169_v25 = vadd.f32 %v517_v52, %v453_v23  ;;  %v2171_v26 = vadd.f32 %v518_v59, %v454_v24 }
  0xd7   :  { %v690_v28 = vadd.f32 %v689_v60, %v688_v7 }
  0xd8   :  { %v693_v51 = vsel %vm597_vm1, %v2169_v25, 0.0  ;;  %v313_v52 = vpop.permute.xlu0 %312  ;;  %v315_v59 = vpop.permute.xlu1 %314  ;;  %v695_v60 = vsel %vm597_vm1, %v2171_v26, 0.0 }
  0xd9   :  { %v692_v1 = vadd.f32 %v691_v8, %v690_v28  ;;  %v455_v2 = vsel %vm404_vm0, %v70_v27, %v313_v52  ;;  %v456_v23 = vsel %vm404_vm0, %v71_v54, %v315_v59  ;;  %v521_v54 = vld [vmem:[%s3859_s0 + $0x1a0] sm:$0xff]  ;;  %v522_v27 = vld [vmem:[%s3859_s0 + $0x1a8] sm:$0xff] }
  0xda   :  { %v2191_v7 = vadd.f32 %v519_v49, %v455_v2  ;;  %v2193_v24 = vadd.f32 %v520_v50, %v456_v23 }
  0xdb   :  { %v694_v8 = vadd.f32 %v693_v51, %v692_v1 }
  0xdc   :  { %v697_v28 = vsel %vm597_vm1, %v2191_v7, 0.0  ;;  %v317_v49 = vpop.permute.xlu0 %316  ;;  %v319_v50 = vpop.permute.xlu1 %318  ;;  %v699_v51 = vsel %vm597_vm1, %v2193_v24, 0.0 }
  0xdd   :  { %v696_v52 = vadd.f32 %v695_v60, %v694_v8  ;;  %v457_v59 = vsel %vm404_vm0, %v72_v53, %v317_v49  ;;  %v458_v2 = vsel %vm404_vm0, %v73_v15, %v319_v50  ;;  %v523_v15 = vld [vmem:[%s3859_s0 + $0x1b0] sm:$0xff]  ;;  %v524_v53 = vld [vmem:[%s3859_s0 + $0x1b8] sm:$0xff] }
  0xde   :  { %v2213_v1 = vadd.f32 %v521_v54, %v457_v59  ;;  %v2215_v23 = vadd.f32 %v522_v27, %v458_v2 }
  0xdf   :  { %v698_v60 = vadd.f32 %v697_v28, %v696_v52 }
  0xe0   :  { %v701_v8 = vsel %vm597_vm1, %v2213_v1, 0.0  ;;  %v321_v54 = vpop.permute.xlu0 %320  ;;  %v323_v27 = vpop.permute.xlu1 %322  ;;  %v703_v28 = vsel %vm597_vm1, %v2215_v23, 0.0 }
  0xe1   :  { %v700_v49 = vadd.f32 %v699_v51, %v698_v60  ;;  %v459_v50 = vsel %vm404_vm0, %v74_v14, %v321_v54  ;;  %v460_v59 = vsel %vm404_vm0, %v75_v42, %v323_v27  ;;  %v525_v42 = vld [vmem:[%s3859_s0 + $0x1c0] sm:$0xff]  ;;  %v526_v14 = vld [vmem:[%s3859_s0 + $0x1c8] sm:$0xff] }
  0xe2   :  { %v2235_v52 = vadd.f32 %v523_v15, %v459_v50  ;;  %v2237_v2 = vadd.f32 %v524_v53, %v460_v59 }
  0xe3   :  { %v702_v51 = vadd.f32 %v701_v8, %v700_v49 }
  0xe4   :  { %v705_v60 = vsel %vm597_vm1, %v2235_v52, 0.0  ;;  %v325_v15 = vpop.permute.xlu0 %324  ;;  %v327_v53 = vpop.permute.xlu1 %326  ;;  %v707_v8 = vsel %vm597_vm1, %v2237_v2, 0.0 }
  0xe5   :  { %v704_v54 = vadd.f32 %v703_v28, %v702_v51  ;;  %v461_v27 = vsel %vm404_vm0, %v76_v41, %v325_v15  ;;  %v462_v50 = vsel %vm404_vm0, %v77_v4, %v327_v53  ;;  %v527_v4 = vld [vmem:[%s3859_s0 + $0x1d0] sm:$0xff]  ;;  %v528_v41 = vld [vmem:[%s3859_s0 + $0x1d8] sm:$0xff] }
  0xe6   :  { %v2257_v49 = vadd.f32 %v525_v42, %v461_v27  ;;  %v2259_v59 = vadd.f32 %v526_v14, %v462_v50 }
  0xe7   :  { %v706_v28 = vadd.f32 %v705_v60, %v704_v54 }
  0xe8   :  { %v709_v51 = vsel %vm597_vm1, %v2257_v49, 0.0  ;;  %v329_v42 = vpop.permute.xlu0 %328  ;;  %v331_v14 = vpop.permute.xlu1 %330  ;;  %v711_v60 = vsel %vm597_vm1, %v2259_v59, 0.0 }
  0xe9   :  { %v708_v15 = vadd.f32 %v707_v8, %v706_v28  ;;  %v463_v53 = vsel %vm404_vm0, %v78_v3, %v329_v42  ;;  %v464_v27 = vsel %vm404_vm0, %v79_v40, %v331_v14  ;;  %v529_v3 = vld [vmem:[%s3859_s0 + $0x1e0] sm:$0xff]  ;;  %v530_v40 = vld [vmem:[%s3859_s0 + $0x1e8] sm:$0xff] }
  0xea   :  { %v591_v54 = vadd.f32 %v527_v4, %v463_v53  ;;  %v592_v50 = vadd.f32 %v528_v41, %v464_v27  ;;  %v82_v27 = vld [vmem:[%s3858_s1 + $0x1f0] sm:$0xff] }
  0xeb   :  { %v710_v5 = vadd.f32 %v709_v51, %v708_v15 }
  0xec   :  { %v713_v8 = vsel %vm597_vm1, %v591_v54, 0.0  ;;  %v333_v28 = vpop.permute.xlu0 %332  ;;  %v335_v4 = vpop.permute.xlu1 %334  ;;  %v715_v53 = vsel %vm597_vm1, %v592_v50, 0.0 }
  0xed   :  { %v712_v41 = vadd.f32 %v711_v60, %v710_v5  ;;  %v465_v42 = vsel %vm404_vm0, %v80_v39, %v333_v28  ;;  %v466_v14 = vsel %vm404_vm0, %v81_v6, %v335_v4  ;;  %v531_v5 = vld [vmem:[%s3859_s0 + $0x1f0] sm:$0xff]  ;;  %v532_v6 = vld [vmem:[%s3859_s0 + $0x1f8] sm:$0xff] }
  0xee   :  { %v593_v51 = vadd.f32 %v529_v3, %v465_v42  ;;  %v594_v15 = vadd.f32 %v530_v40, %v466_v14 }
  0xef   :  { %v714_v43 = vadd.f32 %v713_v8, %v712_v41 }
  0xf0   :  { %v717_v39 = vsel %vm597_vm1, %v593_v51, 0.0  ;;  %v337_v60 = vpop.permute.xlu0 %336  ;;  %v339_v3 = vpop.permute.xlu1 %338  ;;  %v719_v42 = vsel %vm597_vm1, %v594_v15, 0.0 }
  0xf1   :  { %v716_v40 = vadd.f32 %v715_v53, %v714_v43  ;;  %v467_v28 = vsel %vm404_vm0, %v82_v27, %v337_v60  ;;  %v468_v4 = vsel %vm404_vm0, %v83_v44, %v339_v3 }
  0xf2   :  { %v595_v8 = vadd.f32 %v531_v5, %v467_v28  ;;  %v596_v41 = vadd.f32 %v532_v6, %v468_v4 }
  0xf3   :  { %v718_v14 = vadd.f32 %v717_v39, %v716_v40 }
  0xf4   :  { %v721_v22 = vsel %vm597_vm1, %v595_v8, 0.0  ;;  %v723_v58 = vsel %vm597_vm1, %v596_v41, 0.0 }
  0xf5   :  { %v720_v21 = vadd.f32 %v719_v42, %v718_v14 }
  0xf7   :  { %v722_v57 = vadd.f32 %v721_v22, %v720_v21 }
  0xf9   :  { %v724_v36 = vadd.f32 %v723_v58, %v722_v57 }
  0xfb   :  { %v725_v35 = vrot.slane %v724_v36, 4 }
  0xfd   :  { %v726_v11 = vadd.f32 %v725_v35, %v724_v36 }
  0xff   :  { %v727_v9 = vrot.slane %v726_v11, 2 }
 0x101   :  { %v728_v43 = vadd.f32 %v727_v9, %v726_v11 }
 0x103   :  { %v729_v53 = vrot.slane %v728_v43, 1 }
 0x105   :  { %v730_v27 = vadd.f32 %v729_v53, %v728_v43 }
 0x107   :  { %v2313_v60 = vmul.f32 0.001953125, %v730_v27 }
 0x109   :  { %v2317_v44 = vsub.f32 %v2147_v31, %v2313_v60  ;;  %v2321_v5 = vsub.f32 %v2149_v32, %v2313_v60  ;;  %v2325_v21 = vsub.f32 %v2169_v25, %v2313_v60  ;;  %v2329_v35 = vsub.f32 %v2171_v26, %v2313_v60 }
 0x10a   :  { %v2333_v9 = vsub.f32 %v2191_v7, %v2313_v60  ;;  %v2337_v11 = vsub.f32 %v2193_v24, %v2313_v60  ;;  %v2341_v36 = vsub.f32 %v2213_v1, %v2313_v60  ;;  %v2345_v57 = vsub.f32 %v2215_v23, %v2313_v60 }
 0x10b   :  { %v2349_v58 = vsub.f32 %v2235_v52, %v2313_v60  ;;  %v2353_v22 = vsub.f32 %v2237_v2, %v2313_v60  ;;  %v2357_v31 = vsub.f32 %v2257_v49, %v2313_v60  ;;  %v2361_v32 = vsub.f32 %v2259_v59, %v2313_v60 }
 0x10c   :  { %v2364_v25 = vsub.f32 %v591_v54, %v2313_v60  ;;  %v2367_v26 = vsub.f32 %v592_v50, %v2313_v60  ;;  %v2370_v7 = vsub.f32 %v593_v51, %v2313_v60  ;;  %v2373_v24 = vsub.f32 %v594_v15, %v2313_v60 }
 0x10d   :  { %v2376_v1 = vsub.f32 %v595_v8, %v2313_v60  ;;  %v2379_v23 = vsub.f32 %v596_v41, %v2313_v60  ;;  %v2383_v52 = vsub.f32 %v1643_v10, %v2313_v60  ;;  %v2387_v2 = vsub.f32 %v1652_v17, %v2313_v60 }
 0x10e   :  { %3926 = vst [vmem:[#allocation24_spill] sm:$0xff] %v2367_v26  ;;  %3927 = vst [vmem:[#allocation25_spill] sm:$0xff] %v2370_v7  ;;  %v2391_v49 = vsub.f32 %v1650_v16, %v2313_v60  ;;  %v2395_v59 = vsub.f32 %v1654_v18, %v2313_v60  ;;  %v2403_v10 = vsub.f32 %v1683_v33, %v2313_v60 }
 0x10f   :  { %3928 = vst [vmem:[#allocation26_spill] sm:$0xff] %v2373_v24  ;;  %3929 = vst [vmem:[#allocation27_spill] sm:$0xff] %v2376_v1  ;;  %v797_v54 = vmul.f32 %v2383_v52, %v2383_v52  ;;  %v798_v50 = vmul.f32 %v2387_v2, %v2387_v2  ;;  %v2409_v16 = vsub.f32 %v1685_v34, %v2313_v60 }
 0x110   :  { %v799_v17 = vmul.f32 %v2391_v49, %v2391_v49  ;;  %v800_v18 = vmul.f32 %v2395_v59, %v2395_v59  ;;  %v2417_v39 = vsub.f32 %v1707_v47, %v2313_v60  ;;  %v801_v33 = vmul.f32 %v2403_v10, %v2403_v10 }
 0x111   :  { %v861_v51 = vsel %vm597_vm1, %v797_v54, 0.0  ;;  %v862_v15 = vsel %vm597_vm1, %v798_v50, 0.0  ;;  %v2424_v34 = vsub.f32 %v1709_v48, %v2313_v60  ;;  %v802_v28 = vmul.f32 %v2409_v16, %v2409_v16 }
 0x112   :  { %v863_v6 = vadd.f32 %v862_v15, %v861_v51  ;;  %v864_v3 = vsel %vm597_vm1, %v799_v17, 0.0  ;;  %v866_v4 = vsel %vm597_vm1, %v800_v18, 0.0  ;;  %v2431_v47 = vsub.f32 %v1729_v61, %v2313_v60 }
 0x113   :  { %v803_v8 = vmul.f32 %v2417_v39, %v2417_v39  ;;  %v868_v41 = vsel %vm597_vm1, %v801_v33, 0.0  ;;  %v2438_v48 = vsub.f32 %v1731_v62, %v2313_v60  ;;  %v804_v43 = vmul.f32 %v2424_v34, %v2424_v34 }
 0x114   :  { %v865_v40 = vadd.f32 %v864_v3, %v863_v6  ;;  %v870_v53 = vsel %vm597_vm1, %v802_v28, 0.0  ;;  %v2445_v61 = vsub.f32 %v1751_v12, %v2313_v60  ;;  %v805_v54 = vmul.f32 %v2431_v47, %v2431_v47 }
 0x115   :  { %v872_v50 = vsel %vm597_vm1, %v803_v8, 0.0  ;;  %v2452_v62 = vsub.f32 %v1753_v13, %v2313_v60  ;;  %v806_v18 = vmul.f32 %v2438_v48, %v2438_v48  ;;  %v874_v51 = vsel %vm597_vm1, %v804_v43, 0.0 }
 0x116   :  { %v867_v42 = vadd.f32 %v866_v4, %v865_v40  ;;  %v2459_v12 = vsub.f32 %v1773_v29, %v2313_v60  ;;  %v807_v6 = vmul.f32 %v2445_v61, %v2445_v61  ;;  %v876_v33 = vsel %vm597_vm1, %v805_v54, 0.0 }
 0x117   :  { %v2466_v13 = vsub.f32 %v1775_v30, %v2313_v60  ;;  %v808_v40 = vmul.f32 %v2452_v62, %v2452_v62  ;;  %v878_v28 = vsel %vm597_vm1, %v806_v18, 0.0  ;;  %v2473_v29 = vsub.f32 %v1795_v45, %v2313_v60 }
 0x118   :  { %v869_v14 = vadd.f32 %v868_v41, %v867_v42  ;;  %v809_v42 = vmul.f32 %v2459_v12, %v2459_v12  ;;  %v880_v8 = vsel %vm597_vm1, %v807_v6, 0.0  ;;  %v2480_v30 = vsub.f32 %v1797_v46, %v2313_v60 }
 0x119   :  { %v882_v43 = vsel %vm597_vm1, %v808_v40, 0.0  ;;  %v2487_v45 = vsub.f32 %v1817_v63, %v2313_v60  ;;  %v2494_v46 = vsub.f32 %v1819_v0, %v2313_v60  ;;  %v2501_v63 = vsub.f32 %v1839_v19, %v2313_v60 }
 0x11a   :  { %v871_v27 = vadd.f32 %v870_v53, %v869_v14  ;;  %v810_v14 = vmul.f32 %v2466_v13, %v2466_v13  ;;  %v884_v54 = vsel %vm597_vm1, %v809_v42, 0.0  ;;  %v2508_v0 = vsub.f32 %v1841_v20, %v2313_v60 }
 0x11b   :  { %v2515_v19 = vsub.f32 %v1861_v37, %v2313_v60  ;;  %v2522_v20 = vsub.f32 %v1863_v38, %v2313_v60  ;;  %v2529_v37 = vsub.f32 %v1883_v55, %v2313_v60  ;;  %v2536_v38 = vsub.f32 %v1885_v56, %v2313_v60 }
 0x11c   :  { %v873_v17 = vadd.f32 %v872_v50, %v871_v27  ;;  %v811_v27 = vmul.f32 %v2473_v29, %v2473_v29  ;;  %v886_v18 = vsel %vm597_vm1, %v810_v14, 0.0 }
 0x11e   :  { %v875_v15 = vadd.f32 %v874_v51, %v873_v17  ;;  %v812_v17 = vmul.f32 %v2480_v30, %v2480_v30  ;;  %v888_v6 = vsel %vm597_vm1, %v811_v27, 0.0 }
 0x120   :  { %v877_v3 = vadd.f32 %v876_v33, %v875_v15  ;;  %v813_v15 = vmul.f32 %v2487_v45, %v2487_v45  ;;  %v890_v40 = vsel %vm597_vm1, %v812_v17, 0.0 }
 0x122   :  { %v879_v4 = vadd.f32 %v878_v28, %v877_v3  ;;  %v814_v3 = vmul.f32 %v2494_v46, %v2494_v46  ;;  %v892_v42 = vsel %vm597_vm1, %v813_v15, 0.0  ;;  %v819_v15 = vmul.f32 %v2529_v37, %v2529_v37 }
 0x124   :  { %v881_v41 = vadd.f32 %v880_v8, %v879_v4  ;;  %v815_v4 = vmul.f32 %v2501_v63, %v2501_v63  ;;  %v894_v14 = vsel %vm597_vm1, %v814_v3, 0.0  ;;  %v3931_v3 = vld [vmem:[#allocation3_spill] sm:$0xff] }
 0x125   :  { %v2550_v56 = vsub.f32 %v3931_v3, %v2313_v60  ;;  %v3936_v3 = vld [vmem:[#allocation7_spill] sm:$0xff] }
 0x126   :  { %v883_v53 = vadd.f32 %v882_v43, %v881_v41  ;;  %v816_v41 = vmul.f32 %v2508_v0, %v2508_v0  ;;  %v896_v27 = vsel %vm597_vm1, %v815_v4, 0.0 }
 0x128   :  { %v885_v50 = vadd.f32 %v884_v54, %v883_v53  ;;  %v817_v53 = vmul.f32 %v2515_v19, %v2515_v19  ;;  %v898_v17 = vsel %vm597_vm1, %v816_v41, 0.0 }
 0x12a   :  { %v887_v51 = vadd.f32 %v886_v18, %v885_v50  ;;  %v818_v50 = vmul.f32 %v2522_v20, %v2522_v20 }
 0x12c   :  { %v889_v33 = vadd.f32 %v888_v6, %v887_v51  ;;  %v3930_v51 = vld [vmem:[#allocation2_spill] sm:$0xff]  ;;  %v900_v6 = vsel %vm597_vm1, %v817_v53, 0.0  ;;  %v3933_v53 = vld [vmem:[#allocation5_spill] sm:$0xff] }
 0x12d   :  { %v2543_v55 = vsub.f32 %v3930_v51, %v2313_v60 }
 0x12e   :  { %v891_v28 = vadd.f32 %v890_v40, %v889_v33  ;;  %v820_v40 = vmul.f32 %v2536_v38, %v2536_v38 }
 0x12f   :  { %v821_v41 = vmul.f32 %v2543_v55, %v2543_v55 }
 0x130   :  { %v893_v8 = vadd.f32 %v892_v42, %v891_v28  ;;  %v902_v28 = vsel %vm597_vm1, %v818_v50, 0.0  ;;  %v3932_v42 = vld [vmem:[#allocation4_spill] sm:$0xff]  ;;  %v906_v50 = vsel %vm597_vm1, %v820_v40, 0.0 }
 0x132   :  { %v895_v43 = vadd.f32 %v894_v14, %v893_v8  ;;  %v2557_v8 = vsub.f32 %v3932_v42, %v2313_v60  ;;  %v904_v14 = vsel %vm597_vm1, %v819_v15, 0.0  ;;  %v908_v15 = vsel %vm597_vm1, %v821_v41, 0.0 }
 0x134   :  { %v897_v54 = vadd.f32 %v896_v27, %v895_v43  ;;  %v2564_v27 = vsub.f32 %v3933_v53, %v2313_v60 }
 0x136   :  { %v899_v18 = vadd.f32 %v898_v17, %v897_v54  ;;  %v822_v54 = vmul.f32 %v2550_v56, %v2550_v56 }
 0x138   :  { %v901_v33 = vadd.f32 %v900_v6, %v899_v18  ;;  %v3934_v18 = vld [vmem:[#allocation6_spill] sm:$0xff]  ;;  %v823_v6 = vmul.f32 %v2557_v8, %v2557_v8  ;;  %v910_v40 = vsel %vm597_vm1, %v822_v54, 0.0 }
 0x139   :  { %v2571_v51 = vsub.f32 %v3934_v18, %v2313_v60 }
 0x13a   :  { %v903_v4 = vadd.f32 %v902_v28, %v901_v33  ;;  %v2578_v28 = vsub.f32 %v3936_v3, %v2313_v60  ;;  %v912_v41 = vsel %vm597_vm1, %v823_v6, 0.0  ;;  %v3942_v3 = vld [vmem:[#allocation10_spill] sm:$0xff] }
 0x13b   :  { %3935 = vst [vmem:[#allocation2_spill] sm:$0xff] %v2571_v51  ;;  %v825_v53 = vmul.f32 %v2571_v51, %v2571_v51 }
 0x13c   :  { %v905_v43 = vadd.f32 %v904_v14, %v903_v4  ;;  %3937 = vst [vmem:[#allocation3_spill] sm:$0xff] %v2578_v28  ;;  %v824_v4 = vmul.f32 %v2564_v27, %v2564_v27  ;;  %v3938_v14 = vld [vmem:[#allocation8_spill] sm:$0xff] }
 0x13d   :  { %v916_v6 = vsel %vm597_vm1, %v825_v53, 0.0 }
 0x13e   :  { %v907_v17 = vadd.f32 %v906_v50, %v905_v43  ;;  %v2585_v43 = vsub.f32 %v3938_v14, %v2313_v60  ;;  %v914_v54 = vsel %vm597_vm1, %v824_v4, 0.0 }
 0x140   :  { %v909_v33 = vadd.f32 %v908_v15, %v907_v17  ;;  %3939 = vst [vmem:[#allocation4_spill] sm:$0xff] %v2585_v43  ;;  %v3940_v17 = vld [vmem:[#allocation9_spill] sm:$0xff]  ;;  %v826_v15 = vmul.f32 %v2578_v28, %v2578_v28  ;;  %v827_v14 = vmul.f32 %v2585_v43, %v2585_v43 }
 0x141   :  { %v2592_v18 = vsub.f32 %v3940_v17, %v2313_v60 }
 0x142   :  { %v911_v42 = vadd.f32 %v910_v40, %v909_v33  ;;  %v2599_v40 = vsub.f32 %v3942_v3, %v2313_v60  ;;  %v918_v4 = vsel %vm597_vm1, %v826_v15, 0.0  ;;  %v920_v53 = vsel %vm597_vm1, %v827_v14, 0.0 }
 0x143   :  { %3941 = vst [vmem:[#allocation5_spill] sm:$0xff] %v2592_v18  ;;  %v828_v28 = vmul.f32 %v2592_v18, %v2592_v18 }
 0x144   :  { %v913_v50 = vadd.f32 %v912_v41, %v911_v42  ;;  %3943 = vst [vmem:[#allocation6_spill] sm:$0xff] %v2599_v40  ;;  %v3944_v41 = vld [vmem:[#allocation11_spill] sm:$0xff]  ;;  %v829_v43 = vmul.f32 %v2599_v40, %v2599_v40 }
 0x145   :  { %v2606_v17 = vsub.f32 %v3944_v41, %v2313_v60  ;;  %v922_v15 = vsel %vm597_vm1, %v828_v28, 0.0 }
 0x146   :  { %v915_v33 = vadd.f32 %v914_v54, %v913_v50  ;;  %v3946_v54 = vld [vmem:[#allocation12_spill] sm:$0xff]  ;;  %v924_v14 = vsel %vm597_vm1, %v829_v43, 0.0 }
 0x147   :  { %3945 = vst [vmem:[#allocation7_spill] sm:$0xff] %v2606_v17  ;;  %v2613_v3 = vsub.f32 %v3946_v54, %v2313_v60  ;;  %v830_v18 = vmul.f32 %v2606_v17, %v2606_v17 }
 0x148   :  { %v917_v42 = vadd.f32 %v916_v6, %v915_v33  ;;  %v3948_v6 = vld [vmem:[#allocation13_spill] sm:$0xff] }
 0x149   :  { %3947 = vst [vmem:[#allocation8_spill] sm:$0xff] %v2613_v3  ;;  %v2620_v41 = vsub.f32 %v3948_v6, %v2313_v60  ;;  %v831_v40 = vmul.f32 %v2613_v3, %v2613_v3  ;;  %v926_v28 = vsel %vm597_vm1, %v830_v18, 0.0 }
 0x14a   :  { %v919_v50 = vadd.f32 %v918_v4, %v917_v42  ;;  %v3950_v4 = vld [vmem:[#allocation14_spill] sm:$0xff] }
 0x14b   :  { %3949 = vst [vmem:[#allocation9_spill] sm:$0xff] %v2620_v41  ;;  %v2627_v54 = vsub.f32 %v3950_v4, %v2313_v60  ;;  %v832_v17 = vmul.f32 %v2620_v41, %v2620_v41  ;;  %v928_v43 = vsel %vm597_vm1, %v831_v40, 0.0 }
 0x14c   :  { %v921_v33 = vadd.f32 %v920_v53, %v919_v50  ;;  %v3952_v53 = vld [vmem:[#allocation15_spill] sm:$0xff] }
 0x14d   :  { %3951 = vst [vmem:[#allocation10_spill] sm:$0xff] %v2627_v54  ;;  %v2634_v6 = vsub.f32 %v3952_v53, %v2313_v60  ;;  %v833_v3 = vmul.f32 %v2627_v54, %v2627_v54  ;;  %v930_v18 = vsel %vm597_vm1, %v832_v17, 0.0 }
 0x14e   :  { %v923_v42 = vadd.f32 %v922_v15, %v921_v33  ;;  %v3954_v15 = vld [vmem:[#allocation16_spill] sm:$0xff] }
 0x14f   :  { %3953 = vst [vmem:[#allocation11_spill] sm:$0xff] %v2634_v6  ;;  %v2641_v4 = vsub.f32 %v3954_v15, %v2313_v60  ;;  %v834_v41 = vmul.f32 %v2634_v6, %v2634_v6  ;;  %v932_v40 = vsel %vm597_vm1, %v833_v3, 0.0 }
 0x150   :  { %v925_v50 = vadd.f32 %v924_v14, %v923_v42  ;;  %v3956_v14 = vld [vmem:[#allocation17_spill] sm:$0xff] }
 0x151   :  { %3955 = vst [vmem:[#allocation12_spill] sm:$0xff] %v2641_v4  ;;  %v2648_v53 = vsub.f32 %v3956_v14, %v2313_v60  ;;  %v835_v54 = vmul.f32 %v2641_v4, %v2641_v4  ;;  %v934_v17 = vsel %vm597_vm1, %v834_v41, 0.0 }
 0x152   :  { %v927_v33 = vadd.f32 %v926_v28, %v925_v50  ;;  %v3958_v28 = vld [vmem:[#allocation18_spill] sm:$0xff] }
 0x153   :  { %3957 = vst [vmem:[#allocation13_spill] sm:$0xff] %v2648_v53  ;;  %v2655_v15 = vsub.f32 %v3958_v28, %v2313_v60  ;;  %v836_v6 = vmul.f32 %v2648_v53, %v2648_v53  ;;  %v936_v3 = vsel %vm597_vm1, %v835_v54, 0.0 }
 0x154   :  { %v929_v42 = vadd.f32 %v928_v43, %v927_v33  ;;  %v3960_v43 = vld [vmem:[#allocation19_spill] sm:$0xff] }
 0x155   :  { %3959 = vst [vmem:[#allocation14_spill] sm:$0xff] %v2655_v15  ;;  %v2662_v14 = vsub.f32 %v3960_v43, %v2313_v60  ;;  %v837_v4 = vmul.f32 %v2655_v15, %v2655_v15  ;;  %v938_v41 = vsel %vm597_vm1, %v836_v6, 0.0 }
 0x156   :  { %v931_v50 = vadd.f32 %v930_v18, %v929_v42  ;;  %v3962_v18 = vld [vmem:[#allocation20_spill] sm:$0xff] }
 0x157   :  { %3961 = vst [vmem:[#allocation15_spill] sm:$0xff] %v2662_v14  ;;  %v2669_v28 = vsub.f32 %v3962_v18, %v2313_v60  ;;  %v838_v53 = vmul.f32 %v2662_v14, %v2662_v14  ;;  %v940_v54 = vsel %vm597_vm1, %v837_v4, 0.0 }
 0x158   :  { %v933_v33 = vadd.f32 %v932_v40, %v931_v50  ;;  %v3963_v40 = vld [vmem:[#allocation21_spill] sm:$0xff] }
 0x159   :  { %v2676_v43 = vsub.f32 %v3963_v40, %v2313_v60  ;;  %v839_v15 = vmul.f32 %v2669_v28, %v2669_v28  ;;  %v942_v6 = vsel %vm597_vm1, %v838_v53, 0.0  ;;  %v844_v53 = vmul.f32 %v2321_v5, %v2321_v5 }
 0x15a   :  { %v935_v42 = vadd.f32 %v934_v17, %v933_v33  ;;  %v3965_v17 = vld [vmem:[#allocation22_spill] sm:$0xff] }
 0x15b   :  { %3964 = vst [vmem:[#allocation16_spill] sm:$0xff] %v2676_v43  ;;  %v2683_v18 = vsub.f32 %v3965_v17, %v2313_v60  ;;  %v840_v14 = vmul.f32 %v2676_v43, %v2676_v43  ;;  %v944_v17 = vsel %vm597_vm1, %v839_v15, 0.0  ;;  %v845_v15 = vmul.f32 %v2325_v21, %v2325_v21 }
 0x15c   :  { %v937_v50 = vadd.f32 %v936_v3, %v935_v42  ;;  %v3966_v3 = vld [vmem:[#allocation23_spill] sm:$0xff] }
 0x15d   :  { %v2690_v40 = vsub.f32 %v3966_v3, %v2313_v60  ;;  %v843_v60 = vmul.f32 %v2317_v44, %v2317_v44 }
 0x15e   :  { %v939_v33 = vadd.f32 %v938_v41, %v937_v50  ;;  %v841_v41 = vmul.f32 %v2683_v18, %v2683_v18 }
 0x15f   :  { %v842_v4 = vmul.f32 %v2690_v40, %v2690_v40 }
 0x160   :  { %v941_v42 = vadd.f32 %v940_v54, %v939_v33  ;;  %v946_v33 = vsel %vm597_vm1, %v840_v14, 0.0  ;;  %v948_v3 = vsel %vm597_vm1, %v841_v41, 0.0  ;;  %v954_v14 = vsel %vm597_vm1, %v844_v53, 0.0 }
 0x161   :  { %v847_v41 = vmul.f32 %v2333_v9, %v2333_v9  ;;  %v850_v53 = vmul.f32 %v2345_v57, %v2345_v57 }
 0x162   :  { %v943_v50 = vadd.f32 %v942_v6, %v941_v42  ;;  %v950_v42 = vsel %vm597_vm1, %v842_v4, 0.0 }
 0x164   :  { %v945_v51 = vadd.f32 %v944_v17, %v943_v50  ;;  %v952_v50 = vsel %vm597_vm1, %v843_v60, 0.0  ;;  %v849_v60 = vmul.f32 %v2341_v36, %v2341_v36 }
 0x166   :  { %v947_v54 = vadd.f32 %v946_v33, %v945_v51  ;;  %v846_v51 = vmul.f32 %v2329_v35, %v2329_v35 }
 0x168   :  { %v949_v43 = vadd.f32 %v948_v3, %v947_v54  ;;  %v956_v54 = vsel %vm597_vm1, %v845_v15, 0.0  ;;  %v958_v4 = vsel %vm597_vm1, %v846_v51, 0.0  ;;  %v851_v15 = vmul.f32 %v2349_v58, %v2349_v58 }
 0x169   :  { %v852_v51 = vmul.f32 %v2353_v22, %v2353_v22 }
 0x16a   :  { %v951_v6 = vadd.f32 %v950_v42, %v949_v43  ;;  %v848_v43 = vmul.f32 %v2337_v11, %v2337_v11 }
 0x16c   :  { %v953_v17 = vadd.f32 %v952_v50, %v951_v6  ;;  %v960_v6 = vsel %vm597_vm1, %v847_v41, 0.0  ;;  %v853_v41 = vmul.f32 %v2357_v31, %v2357_v31 }
 0x16e   :  { %v955_v33 = vadd.f32 %v954_v14, %v953_v17  ;;  %v962_v17 = vsel %vm597_vm1, %v848_v43, 0.0  ;;  %v854_v43 = vmul.f32 %v2361_v32, %v2361_v32 }
 0x170   :  { %v957_v3 = vadd.f32 %v956_v54, %v955_v33  ;;  %v964_v33 = vsel %vm597_vm1, %v849_v60, 0.0  ;;  %v855_v60 = vmul.f32 %v2364_v25, %v2364_v25 }
 0x172   :  { %v959_v42 = vadd.f32 %v958_v4, %v957_v3  ;;  %v966_v3 = vsel %vm597_vm1, %v850_v53, 0.0  ;;  %v856_v53 = vmul.f32 %v2367_v26, %v2367_v26 }
 0x174   :  { %v961_v50 = vadd.f32 %v960_v6, %v959_v42  ;;  %v968_v42 = vsel %vm597_vm1, %v851_v15, 0.0  ;;  %v857_v15 = vmul.f32 %v2370_v7, %v2370_v7 }
 0x176   :  { %v963_v14 = vadd.f32 %v962_v17, %v961_v50  ;;  %v970_v50 = vsel %vm597_vm1, %v852_v51, 0.0  ;;  %v858_v51 = vmul.f32 %v2373_v24, %v2373_v24 }
 0x178   :  { %v965_v54 = vadd.f32 %v964_v33, %v963_v14  ;;  %v972_v14 = vsel %vm597_vm1, %v853_v41, 0.0  ;;  %v859_v41 = vmul.f32 %v2376_v1, %v2376_v1 }
 0x17a   :  { %v967_v4 = vadd.f32 %v966_v3, %v965_v54  ;;  %v974_v54 = vsel %vm597_vm1, %v854_v43, 0.0  ;;  %v860_v43 = vmul.f32 %v2379_v23, %v2379_v23 }
 0x17c   :  { %v969_v6 = vadd.f32 %v968_v42, %v967_v4  ;;  %v976_v4 = vsel %vm597_vm1, %v855_v60, 0.0  ;;  %v984_v60 = vsel %vm597_vm1, %v859_v41, 0.0 }
 0x17e   :  { %v971_v17 = vadd.f32 %v970_v50, %v969_v6  ;;  %v978_v6 = vsel %vm597_vm1, %v856_v53, 0.0 }
 0x180   :  { %v973_v33 = vadd.f32 %v972_v14, %v971_v17  ;;  %v980_v17 = vsel %vm597_vm1, %v857_v15, 0.0 }
 0x182   :  { %v975_v3 = vadd.f32 %v974_v54, %v973_v33  ;;  %v982_v33 = vsel %vm597_vm1, %v858_v51, 0.0 }
 0x184   :  { %v977_v42 = vadd.f32 %v976_v4, %v975_v3  ;;  %v986_v4 = vsel %vm597_vm1, %v860_v43, 0.0  ;;  %v3969_v43 = vld [vmem:[#allocation4_spill] sm:$0xff] }
 0x186   :  { %v979_v50 = vadd.f32 %v978_v6, %v977_v42 }
 0x188   :  { %v981_v14 = vadd.f32 %v980_v17, %v979_v50 }
 0x18a   :  { %v983_v54 = vadd.f32 %v982_v33, %v981_v14  ;;  %v3968_v14 = vld [vmem:[#allocation3_spill] sm:$0xff]  ;;  %v3970_v33 = vld [vmem:[#allocation5_spill] sm:$0xff] }
 0x18c   :  { %v985_v3 = vadd.f32 %v984_v60, %v983_v54  ;;  %v3971_v54 = vld [vmem:[#allocation6_spill] sm:$0xff]  ;;  %v3972_v60 = vld [vmem:[#allocation7_spill] sm:$0xff] }
 0x18e   :  { %v987_v24 = vadd.f32 %v986_v4, %v985_v3  ;;  %v3973_v4 = vld [vmem:[#allocation8_spill] sm:$0xff] }
 0x190   :  { %v988_v53 = vrot.slane %v987_v24, 4 }
 0x192   :  { %v989_v42 = vadd.f32 %v988_v53, %v987_v24 }
 0x194   :  { %v990_v6 = vrot.slane %v989_v42, 2 }
 0x196   :  { %v991_v7 = vadd.f32 %v990_v6, %v989_v42  ;;  %v3974_v42 = vld [vmem:[#allocation9_spill] sm:$0xff] }
 0x198   :  { %v992_v1 = vrot.slane %v991_v7, 1 }
 0x19a   :  { %v993_v26 = vadd.f32 %v992_v1, %v991_v7 }
 0x19c   :  { %v994_v15 = vmul.f32 0.001953125, %v993_v26 }
 0x19e   :  { %v995_v50 = vadd.f32 1e-05, %v994_v15  ;;  %v3976_v15 = vld [vmem:[#allocation10_spill] sm:$0xff] }
 0x1a0   :  { %1338 = vrsqrt.f32 %v995_v50 }
 0x1ad   :  { %v2757_v17 = vpop.eup %1338 }
 0x1ae   :  { %v2761_v51 = vmul.f32 %v2757_v17, %v2383_v52  ;;  %v2765_v41 = vmul.f32 %v2757_v17, %v2387_v2  ;;  %v2769_v24 = vmul.f32 %v2757_v17, %v2391_v49  ;;  %v2773_v7 = vmul.f32 %v2757_v17, %v2395_v59 }
 0x1af   :  { %v2777_v26 = vmul.f32 %v2757_v17, %v2403_v10  ;;  %v2781_v1 = vmul.f32 %v2757_v17, %v2409_v16  ;;  %v2785_v52 = vmul.f32 %v2757_v17, %v2417_v39  ;;  %v2789_v2 = vmul.f32 %v2757_v17, %v2424_v34 }
 0x1b0   :  { %v2793_v49 = vmul.f32 %v2757_v17, %v2431_v47  ;;  %v2797_v59 = vmul.f32 %v2757_v17, %v2438_v48  ;;  %v2801_v10 = vmul.f32 %v2757_v17, %v2445_v61  ;;  %v2805_v16 = vmul.f32 %v2757_v17, %v2452_v62 }
 0x1b1   :  { %v2809_v39 = vmul.f32 %v2757_v17, %v2459_v12  ;;  %v2813_v34 = vmul.f32 %v2757_v17, %v2466_v13  ;;  %v2817_v47 = vmul.f32 %v2757_v17, %v2473_v29  ;;  %v2821_v48 = vmul.f32 %v2757_v17, %v2480_v30 }
 0x1b2   :  { %v2825_v61 = vmul.f32 %v2757_v17, %v2487_v45  ;;  %v2829_v62 = vmul.f32 %v2757_v17, %v2494_v46  ;;  %v2833_v12 = vmul.f32 %v2757_v17, %v2501_v63  ;;  %v2837_v13 = vmul.f32 %v2757_v17, %v2508_v0 }
 0x1b3   :  { %v2841_v29 = vmul.f32 %v2757_v17, %v2515_v19  ;;  %v2845_v30 = vmul.f32 %v2757_v17, %v2522_v20  ;;  %v2849_v45 = vmul.f32 %v2757_v17, %v2529_v37  ;;  %v2853_v46 = vmul.f32 %v2757_v17, %v2536_v38  ;;  %v3967_v37 = vld [vmem:[#allocation2_spill] sm:$0xff] }
 0x1b4   :  { %v2857_v63 = vmul.f32 %v2757_v17, %v2543_v55  ;;  %v2861_v0 = vmul.f32 %v2757_v17, %v2550_v56  ;;  %v2865_v19 = vmul.f32 %v2757_v17, %v2557_v8  ;;  %v2869_v20 = vmul.f32 %v2757_v17, %v2564_v27 }
 0x1b5   :  { %v2873_v38 = vmul.f32 %v2757_v17, %v3967_v37  ;;  %v2877_v55 = vmul.f32 %v2757_v17, %v3968_v14  ;;  %v2881_v56 = vmul.f32 %v2757_v17, %v3969_v43  ;;  %v2885_v8 = vmul.f32 %v2757_v17, %v3970_v33  ;;  %v3977_v37 = vld [vmem:[#allocation11_spill] sm:$0xff]  ;;  %v3979_v43 = vld [vmem:[#allocation12_spill] sm:$0xff] }
 0x1b6   :  { %v2889_v27 = vmul.f32 %v2757_v17, %v3971_v54  ;;  %v2893_v3 = vmul.f32 %v2757_v17, %v3972_v60  ;;  %v2897_v53 = vmul.f32 %v2757_v17, %v3973_v4  ;;  %v2901_v6 = vmul.f32 %v2757_v17, %v3974_v42  ;;  %v3980_v54 = vld [vmem:[#allocation13_spill] sm:$0xff]  ;;  %v3981_v4 = vld [vmem:[#allocation14_spill] sm:$0xff] }
 0x1b7   :  { %v2905_v50 = vmul.f32 %v2757_v17, %v3976_v15  ;;  %v2909_v14 = vmul.f32 %v2757_v17, %v3977_v37  ;;  %v2913_v33 = vmul.f32 %v2757_v17, %v3979_v43  ;;  %v2917_v60 = vmul.f32 %v2757_v17, %v3980_v54 }
 0x1b8   :  { %3975 = vst [vmem:[#allocation17_spill] sm:$0xff] %v2901_v6  ;;  %v2921_v42 = vmul.f32 %v2757_v17, %v3981_v4  ;;  %v3982_v6 = vld [vmem:[#allocation15_spill] sm:$0xff]  ;;  %v2929_v37 = vmul.f32 %v2757_v17, %v2669_v28  ;;  %v2937_v54 = vmul.f32 %v2757_v17, %v2683_v18  ;;  %v2941_v4 = vmul.f32 %v2757_v17, %v2690_v40 }
 0x1b9   :  { %3978 = vst [vmem:[#allocation18_spill] sm:$0xff] %v2909_v14  ;;  %v2925_v15 = vmul.f32 %v2757_v17, %v3982_v6  ;;  %v3983_v14 = vld [vmem:[#allocation16_spill] sm:$0xff]  ;;  %v2945_v6 = vmul.f32 %v2757_v17, %v2317_v44  ;;  %v2949_v28 = vmul.f32 %v2757_v17, %v2321_v5  ;;  %v2957_v18 = vmul.f32 %v2757_v17, %v2329_v35  ;;  %v2970_v5 = vld [vmem:[%s3860_s3] ss:$0 sm:$0xff] }
 0x1ba   :  { %v2933_v43 = vmul.f32 %v2757_v17, %v3983_v14  ;;  %v2953_v14 = vmul.f32 %v2757_v17, %v2325_v21  ;;  %v2961_v40 = vmul.f32 %v2757_v17, %v2333_v9  ;;  %v2965_v44 = vmul.f32 %v2757_v17, %v2337_v11 }
 0x1bb   :  { %v2974_v21 = vmul.f32 %v2757_v17, %v2341_v36  ;;  %v2978_v35 = vmul.f32 %v2757_v17, %v2345_v57  ;;  %v2982_v9 = vmul.f32 %v2757_v17, %v2349_v58  ;;  %v2986_v11 = vmul.f32 %v2757_v17, %v2353_v22 }
 0x1bc   :  { %3984 = vst [vmem:[#allocation19_spill] sm:$0xff] %v2965_v44  ;;  %v2990_v44 = vmul.f32 %v2757_v17, %v2357_v31  ;;  %v2994_v36 = vmul.f32 %v2757_v17, %v2361_v32  ;;  %v2998_v57 = vmul.f32 %v2757_v17, %v2364_v25  ;;  %v3018_v25 = vmul.f32 %v2757_v17, %v2379_v23 }
 0x1bd   :  { %3985 = vst [vmem:[#allocation20_spill] sm:$0xff] %v2978_v35  ;;  %3986 = vst [vmem:[#allocation21_spill] sm:$0xff] %v2982_v9  ;;  %v3989_v35 = vld [vmem:[#allocation24_spill] sm:$0xff]  ;;  %v3990_v9 = vld [vmem:[#allocation25_spill] sm:$0xff]  ;;  %v3038_v23 = vmul.f32 %v2970_v5, %v2777_v26  ;;  %v3062_v26 = vmul.f32 %v2970_v5, %v2801_v10  ;;  %v3086_v10 = vmul.f32 %v2970_v5, %v2825_v61 }
 0x1be   :  { %3987 = vst [vmem:[#allocation22_spill] sm:$0xff] %v2986_v11  ;;  %3988 = vst [vmem:[#allocation23_spill] sm:$0xff] %v2990_v44  ;;  %v3002_v58 = vmul.f32 %v2757_v17, %v3989_v35  ;;  %v3006_v22 = vmul.f32 %v2757_v17, %v3990_v9  ;;  %v3991_v11 = vld [vmem:[#allocation26_spill] sm:$0xff]  ;;  %v3992_v44 = vld [vmem:[#allocation27_spill] sm:$0xff]  ;;  %v3022_v35 = vmul.f32 %v2970_v5, %v2761_v51 }
 0x1bf   :  { %v3010_v31 = vmul.f32 %v2757_v17, %v3991_v11  ;;  %v3014_v32 = vmul.f32 %v2757_v17, %v3992_v44  ;;  %v3026_v9 = vmul.f32 %v2970_v5, %v2765_v41  ;;  %v3030_v11 = vmul.f32 %v2970_v5, %v2769_v24 }
 0x1c0   :  { %v3034_v44 = vmul.f32 %v2970_v5, %v2773_v7  ;;  %v3042_v17 = vmul.f32 %v2970_v5, %v2781_v1  ;;  %v3046_v51 = vmul.f32 %v2970_v5, %v2785_v52  ;;  %v3050_v41 = vmul.f32 %v2970_v5, %v2789_v2 }
 0x1c1   :  { %v3054_v24 = vmul.f32 %v2970_v5, %v2793_v49  ;;  %v3058_v7 = vmul.f32 %v2970_v5, %v2797_v59  ;;  %v3066_v1 = vmul.f32 %v2970_v5, %v2805_v16  ;;  %v3070_v52 = vmul.f32 %v2970_v5, %v2809_v39 }
 0x1c2   :  { %v3074_v2 = vmul.f32 %v2970_v5, %v2813_v34  ;;  %v3078_v49 = vmul.f32 %v2970_v5, %v2817_v47  ;;  %v3082_v59 = vmul.f32 %v2970_v5, %v2821_v48  ;;  %v3090_v16 = vmul.f32 %v2970_v5, %v2829_v62 }
 0x1c3   :  { %v3094_v39 = vmul.f32 %v2970_v5, %v2833_v12  ;;  %v3098_v34 = vmul.f32 %v2970_v5, %v2837_v13  ;;  %v3102_v47 = vmul.f32 %v2970_v5, %v2841_v29  ;;  %v3106_v48 = vmul.f32 %v2970_v5, %v2845_v30 }
 0x1c4   :  { %v3110_v61 = vmul.f32 %v2970_v5, %v2849_v45  ;;  %v3114_v62 = vmul.f32 %v2970_v5, %v2853_v46  ;;  %v3118_v12 = vmul.f32 %v2970_v5, %v2857_v63  ;;  %v3122_v13 = vmul.f32 %v2970_v5, %v2861_v0 }
 0x1c5   :  { %v3126_v29 = vmul.f32 %v2970_v5, %v2865_v19  ;;  %v3130_v30 = vmul.f32 %v2970_v5, %v2869_v20  ;;  %v3134_v45 = vmul.f32 %v2970_v5, %v2873_v38  ;;  %v3138_v46 = vmul.f32 %v2970_v5, %v2877_v55  ;;  %v3994_v55 = vld [vmem:[#allocation17_spill] sm:$0xff] }
 0x1c6   :  { %v3142_v63 = vmul.f32 %v2970_v5, %v2881_v56  ;;  %v3146_v0 = vmul.f32 %v2970_v5, %v2885_v8  ;;  %v3150_v19 = vmul.f32 %v2970_v5, %v2889_v27  ;;  %v3154_v20 = vmul.f32 %v2970_v5, %v2893_v3 }
 0x1c7   :  { %v3158_v38 = vmul.f32 %v2970_v5, %v2897_v53  ;;  %v3162_v56 = vmul.f32 %v2970_v5, %v3994_v55  ;;  %v3166_v8 = vmul.f32 %v2970_v5, %v2905_v50  ;;  %v3174_v3 = vmul.f32 %v2970_v5, %v2913_v33 }
 0x1c8   :  { %3993 = vst [vmem:[#allocation2_spill] sm:$0xff] %v3146_v0  ;;  %v3995_v0 = vld [vmem:[#allocation18_spill] sm:$0xff]  ;;  %v3178_v53 = vmul.f32 %v2970_v5, %v2917_v60  ;;  %v3182_v55 = vmul.f32 %v2970_v5, %v2921_v42  ;;  %v3186_v50 = vmul.f32 %v2970_v5, %v2925_v15  ;;  %v3194_v33 = vmul.f32 %v2970_v5, %v2933_v43 }
 0x1c9   :  { %v3170_v27 = vmul.f32 %v2970_v5, %v3995_v0  ;;  %v3190_v0 = vmul.f32 %v2970_v5, %v2929_v37  ;;  %v3198_v60 = vmul.f32 %v2970_v5, %v2937_v54  ;;  %v3202_v42 = vmul.f32 %v2970_v5, %v2941_v4 }
 0x1ca   :  { %v3206_v15 = vmul.f32 %v2970_v5, %v2945_v6  ;;  %v3210_v37 = vmul.f32 %v2970_v5, %v2949_v28  ;;  %v3214_v43 = vmul.f32 %v2970_v5, %v2953_v14  ;;  %v3218_v54 = vmul.f32 %v2970_v5, %v2957_v18  ;;  %v3231_v28 = vld [vmem:[%s3861_s4] ss:$0 sm:$0xff] }
 0x1cb   :  { %3996 = vst [vmem:[#allocation3_spill] sm:$0xff] %v3202_v42  ;;  %v3222_v4 = vmul.f32 %v2970_v5, %v2961_v40  ;;  %v4001_v42 = vld [vmem:[#allocation19_spill] sm:$0xff]  ;;  %v3235_v14 = vmul.f32 %v2970_v5, %v2974_v21  ;;  %v3255_v21 = vmul.f32 %v2970_v5, %v2994_v36  ;;  %v3275_v36 = vmul.f32 %v2970_v5, %v3014_v32 }
 0x1cc   :  { %3997 = vst [vmem:[#allocation4_spill] sm:$0xff] %v3210_v37  ;;  %3998 = vst [vmem:[#allocation5_spill] sm:$0xff] %v3214_v43  ;;  %v3226_v6 = vmul.f32 %v2970_v5, %v4001_v42  ;;  %v4003_v43 = vld [vmem:[#allocation20_spill] sm:$0xff]  ;;  %v3295_v32 = vadd.f32 %v3231_v28, %v3034_v44  ;;  %v3319_v44 = vadd.f32 %v3231_v28, %v3058_v7 }
 0x1cd   :  { %3999 = vst [vmem:[#allocation6_spill] sm:$0xff] %v3218_v54  ;;  %4000 = vst [vmem:[#allocation7_spill] sm:$0xff] %v3222_v4  ;;  %v3239_v18 = vmul.f32 %v2970_v5, %v4003_v43  ;;  %v4004_v54 = vld [vmem:[#allocation21_spill] sm:$0xff]  ;;  %v4005_v4 = vld [vmem:[#allocation22_spill] sm:$0xff]  ;;  %v3259_v43 = vmul.f32 %v2970_v5, %v2998_v57  ;;  %v3279_v57 = vmul.f32 %v2970_v5, %v3018_v25 }
 0x1ce   :  { %4002 = vst [vmem:[#allocation8_spill] sm:$0xff] %v3226_v6  ;;  %v3243_v40 = vmul.f32 %v2970_v5, %v4004_v54  ;;  %v3247_v42 = vmul.f32 %v2970_v5, %v4005_v4  ;;  %v4006_v6 = vld [vmem:[#allocation23_spill] sm:$0xff]  ;;  %v3263_v54 = vmul.f32 %v2970_v5, %v3002_v58  ;;  %v3267_v4 = vmul.f32 %v2970_v5, %v3006_v22 }
 0x1cf   :  { %v3251_v37 = vmul.f32 %v2970_v5, %v4006_v6  ;;  %v3271_v6 = vmul.f32 %v2970_v5, %v3010_v31  ;;  %v3283_v58 = vadd.f32 %v3231_v28, %v3022_v35  ;;  %v3287_v22 = vadd.f32 %v3231_v28, %v3026_v9 }
 0x1d0   :  { %v3291_v31 = vadd.f32 %v3231_v28, %v3030_v11  ;;  %v3299_v5 = vadd.f32 %v3231_v28, %v3038_v23  ;;  %v3303_v25 = vadd.f32 %v3231_v28, %v3042_v17  ;;  %v3307_v35 = vadd.f32 %v3231_v28, %v3046_v51 }
 0x1d1   :  { %v3311_v9 = vadd.f32 %v3231_v28, %v3050_v41  ;;  %v3315_v11 = vadd.f32 %v3231_v28, %v3054_v24  ;;  %v3323_v23 = vadd.f32 %v3231_v28, %v3062_v26  ;;  %v3327_v17 = vadd.f32 %v3231_v28, %v3066_v1 }
 0x1d2   :  { %v3331_v51 = vadd.f32 %v3231_v28, %v3070_v52  ;;  %v3335_v41 = vadd.f32 %v3231_v28, %v3074_v2  ;;  %v3339_v24 = vadd.f32 %v3231_v28, %v3078_v49  ;;  %v3343_v7 = vadd.f32 %v3231_v28, %v3082_v59 }
 0x1d3   :  { %v3347_v26 = vadd.f32 %v3231_v28, %v3086_v10  ;;  %v3351_v1 = vadd.f32 %v3231_v28, %v3090_v16  ;;  %v3355_v52 = vadd.f32 %v3231_v28, %v3094_v39  ;;  %v3359_v2 = vadd.f32 %v3231_v28, %v3098_v34 }
 0x1d4   :  { %v3363_v49 = vadd.f32 %v3231_v28, %v3102_v47  ;;  %v3367_v59 = vadd.f32 %v3231_v28, %v3106_v48  ;;  %v3371_v10 = vadd.f32 %v3231_v28, %v3110_v61  ;;  %v3375_v16 = vadd.f32 %v3231_v28, %v3114_v62 }
 0x1d5   :  { %v3379_v39 = vadd.f32 %v3231_v28, %v3118_v12  ;;  %v3383_v34 = vadd.f32 %v3231_v28, %v3122_v13  ;;  %v3387_v47 = vadd.f32 %v3231_v28, %v3126_v29  ;;  %v3391_v48 = vadd.f32 %v3231_v28, %v3130_v30  ;;  %v4007_v13 = vld [vmem:[#allocation2_spill] sm:$0xff] }
 0x1d6   :  { %v3395_v61 = vadd.f32 %v3231_v28, %v3134_v45  ;;  %v3399_v62 = vadd.f32 %v3231_v28, %v3138_v46  ;;  %v3403_v12 = vadd.f32 %v3231_v28, %v3142_v63  ;;  %v3407_v29 = vadd.f32 %v3231_v28, %v4007_v13 }
 0x1d7   :  { %v3411_v30 = vadd.f32 %v3231_v28, %v3150_v19  ;;  %v3415_v45 = vadd.f32 %v3231_v28, %v3154_v20  ;;  %v3419_v46 = vadd.f32 %v3231_v28, %v3158_v38  ;;  %v3423_v63 = vadd.f32 %v3231_v28, %v3162_v56 }
 0x1d8   :  { %v3427_v13 = vadd.f32 %v3231_v28, %v3166_v8  ;;  %v3431_v19 = vadd.f32 %v3231_v28, %v3170_v27  ;;  %v3435_v20 = vadd.f32 %v3231_v28, %v3174_v3  ;;  %v3439_v38 = vadd.f32 %v3231_v28, %v3178_v53 }
 0x1d9   :  { %v3443_v56 = vadd.f32 %v3231_v28, %v3182_v55  ;;  %v3447_v8 = vadd.f32 %v3231_v28, %v3186_v50  ;;  %v3451_v27 = vadd.f32 %v3231_v28, %v3190_v0  ;;  %v3455_v3 = vadd.f32 %v3231_v28, %v3194_v33 }
 0x1da   :  { %4008 = vst [vmem:[#allocation9_spill] sm:$0xff] %v3439_v38  ;;  %v3459_v53 = vadd.f32 %v3231_v28, %v3198_v60  ;;  %v4013_v38 = vld [vmem:[#allocation3_spill] sm:$0xff]  ;;  %v3467_v50 = vadd.f32 %v3231_v28, %v3206_v15 }
 0x1db   :  { %4009 = vst [vmem:[#allocation10_spill] sm:$0xff] %v3447_v8  ;;  %4010 = vst [vmem:[#allocation11_spill] sm:$0xff] %v3451_v27  ;;  %v3463_v55 = vadd.f32 %v3231_v28, %v4013_v38  ;;  %v4015_v8 = vld [vmem:[#allocation4_spill] sm:$0xff]  ;;  %v4016_v27 = vld [vmem:[#allocation5_spill] sm:$0xff] }
 0x1dc   :  { %4011 = vst [vmem:[#allocation12_spill] sm:$0xff] %v3455_v3  ;;  %4012 = vst [vmem:[#allocation13_spill] sm:$0xff] %v3459_v53  ;;  %v3471_v0 = vadd.f32 %v3231_v28, %v4015_v8  ;;  %v3475_v33 = vadd.f32 %v3231_v28, %v4016_v27  ;;  %v4017_v3 = vld [vmem:[#allocation6_spill] sm:$0xff]  ;;  %v4018_v53 = vld [vmem:[#allocation7_spill] sm:$0xff]  ;;  %v3491_v8 = vadd.f32 %v3231_v28, %v3235_v14 }
 0x1dd   :  { %4014 = vst [vmem:[#allocation14_spill] sm:$0xff] %v3463_v55  ;;  %v3479_v60 = vadd.f32 %v3231_v28, %v4017_v3  ;;  %v3483_v38 = vadd.f32 %v3231_v28, %v4018_v53  ;;  %v4019_v55 = vld [vmem:[#allocation8_spill] sm:$0xff]  ;;  %v3495_v27 = vadd.f32 %v3231_v28, %v3239_v18  ;;  %v3499_v3 = vadd.f32 %v3231_v28, %v3243_v40 }
 0x1de   :  { %v3487_v15 = vadd.f32 %v3231_v28, %v4019_v55  ;;  %v3503_v53 = vadd.f32 %v3231_v28, %v3247_v42  ;;  %v3507_v55 = vadd.f32 %v3231_v28, %v3251_v37  ;;  %v3511_v14 = vadd.f32 %v3231_v28, %v3255_v21 }
 0x1df   :  { %v3515_v18 = vadd.f32 %v3231_v28, %v3259_v43  ;;  %v3519_v40 = vadd.f32 %v3231_v28, %v3263_v54  ;;  %v3523_v42 = vadd.f32 %v3231_v28, %v3267_v4  ;;  %v3527_v37 = vadd.f32 %v3231_v28, %v3271_v6 }
 0x1e0   :  { %v3531_v21 = vadd.f32 %v3231_v28, %v3275_v36  ;;  %v3535_v43 = vadd.f32 %v3231_v28, %v3279_v57  ;;  %v1204_v54 = vmax.f32 %v3287_v22, 0.0  ;;  %v1206_v4 = vmax.f32 %v3295_v32, 0.0 }
 0x1e1   :  { %4020 = vst [vmem:[#allocation15_spill] sm:$0xff] %v3515_v18  ;;  %4021 = vst [vmem:[#allocation16_spill] sm:$0xff] %v3519_v40  ;;  %v1203_v18 = vmax.f32 %v3283_v58, 0.0  ;;  %v1205_v40 = vmax.f32 %v3291_v31, 0.0  ;;  %v1208_v6 = vmax.f32 %v3303_v25, 0.0  ;;  %v1210_v36 = vmax.f32 %v3311_v9, 0.0 }
 0x1e2   :  { %4022 = vst [vmem:[#allocation24_spill] sm:$0xff] %v3523_v42  ;;  %4023 = vst [vmem:[#allocation25_spill] sm:$0xff] %v3527_v37  ;;  %v1207_v42 = vmax.f32 %v3299_v5, 0.0  ;;  %v1209_v37 = vmax.f32 %v3307_v35, 0.0  ;;  %v1212_v28 = vmax.f32 %v3319_v44, 0.0  ;;  %v1213_v57 = vmax.f32 %v3323_v23, 0.0 }
 0x1e3   :  { %4024 = vst [vmem:[#allocation26_spill] sm:$0xff] %v3531_v21  ;;  %v1211_v21 = vmax.f32 %v3315_v11, 0.0  ;;  %v1214_v58 = vmax.f32 %v3327_v17, 0.0  ;;  %1267 = vst.msk [vmem:[%s3862_s5] sm:$0xff] %vm597_vm1, %v1203_v18  ;;  %v1215_v22 = vmax.f32 %v3331_v51, 0.0  ;;  %v1216_v31 = vmax.f32 %v3335_v41, 0.0 }
 0x1e4   :  { %1268 = vst.msk [vmem:[%s3862_s5 + $0x8] sm:$0xff] %vm597_vm1, %v1204_v54  ;;  %1269 = vst.msk [vmem:[%s3862_s5 + $0x10] sm:$0xff] %vm597_vm1, %v1205_v40  ;;  %v1217_v32 = vmax.f32 %v3339_v24, 0.0  ;;  %v1218_v5 = vmax.f32 %v3343_v7, 0.0  ;;  %v1219_v25 = vmax.f32 %v3347_v26, 0.0  ;;  %v1220_v35 = vmax.f32 %v3351_v1, 0.0 }
 0x1e5   :  { %1270 = vst.msk [vmem:[%s3862_s5 + $0x18] sm:$0xff] %vm597_vm1, %v1206_v4  ;;  %1271 = vst.msk [vmem:[%s3862_s5 + $0x20] sm:$0xff] %vm597_vm1, %v1207_v42  ;;  %v1221_v9 = vmax.f32 %v3355_v52, 0.0  ;;  %v1222_v11 = vmax.f32 %v3359_v2, 0.0  ;;  %v1223_v44 = vmax.f32 %v3363_v49, 0.0  ;;  %v1224_v23 = vmax.f32 %v3367_v59, 0.0 }
 0x1e6   :  { %1272 = vst.msk [vmem:[%s3862_s5 + $0x28] sm:$0xff] %vm597_vm1, %v1208_v6  ;;  %1273 = vst.msk [vmem:[%s3862_s5 + $0x30] sm:$0xff] %vm597_vm1, %v1209_v37  ;;  %v1225_v17 = vmax.f32 %v3371_v10, 0.0  ;;  %v1226_v51 = vmax.f32 %v3375_v16, 0.0  ;;  %v1227_v41 = vmax.f32 %v3379_v39, 0.0  ;;  %v1228_v24 = vmax.f32 %v3383_v34, 0.0 }
 0x1e7   :  { %1274 = vst.msk [vmem:[%s3862_s5 + $0x38] sm:$0xff] %vm597_vm1, %v1210_v36  ;;  %1275 = vst.msk [vmem:[%s3862_s5 + $0x40] sm:$0xff] %vm597_vm1, %v1211_v21  ;;  %v1229_v7 = vmax.f32 %v3387_v47, 0.0  ;;  %v1230_v26 = vmax.f32 %v3391_v48, 0.0  ;;  %v1231_v1 = vmax.f32 %v3395_v61, 0.0  ;;  %v1232_v52 = vmax.f32 %v3399_v62, 0.0 }
 0x1e8   :  { %1276 = vst.msk [vmem:[%s3862_s5 + $0x48] sm:$0xff] %vm597_vm1, %v1212_v28  ;;  %1277 = vst.msk [vmem:[%s3862_s5 + $0x50] sm:$0xff] %vm597_vm1, %v1213_v57  ;;  %v1233_v2 = vmax.f32 %v3403_v12, 0.0  ;;  %v1234_v49 = vmax.f32 %v3407_v29, 0.0  ;;  %v1235_v59 = vmax.f32 %v3411_v30, 0.0  ;;  %v1236_v10 = vmax.f32 %v3415_v45, 0.0 }
 0x1e9   :  { %1278 = vst.msk [vmem:[%s3862_s5 + $0x58] sm:$0xff] %vm597_vm1, %v1214_v58  ;;  %1279 = vst.msk [vmem:[%s3862_s5 + $0x60] sm:$0xff] %vm597_vm1, %v1215_v22  ;;  %v1237_v16 = vmax.f32 %v3419_v46, 0.0  ;;  %v1238_v39 = vmax.f32 %v3423_v63, 0.0  ;;  %v1239_v34 = vmax.f32 %v3427_v13, 0.0  ;;  %v1240_v47 = vmax.f32 %v3431_v19, 0.0 }
 0x1ea   :  { %1280 = vst.msk [vmem:[%s3862_s5 + $0x68] sm:$0xff] %vm597_vm1, %v1216_v31  ;;  %1281 = vst.msk [vmem:[%s3862_s5 + $0x70] sm:$0xff] %vm597_vm1, %v1217_v32  ;;  %v1241_v48 = vmax.f32 %v3435_v20, 0.0  ;;  %v4025_v61 = vld [vmem:[#allocation9_spill] sm:$0xff]  ;;  %v1243_v12 = vmax.f32 %v3443_v56, 0.0  ;;  %v4026_v29 = vld [vmem:[#allocation10_spill] sm:$0xff] }
 0x1eb   :  { %1282 = vst.msk [vmem:[%s3862_s5 + $0x78] sm:$0xff] %vm597_vm1, %v1218_v5  ;;  %1283 = vst.msk [vmem:[%s3862_s5 + $0x80] sm:$0xff] %vm597_vm1, %v1219_v25  ;;  %v1242_v62 = vmax.f32 %v4025_v61, 0.0  ;;  %v1244_v30 = vmax.f32 %v4026_v29, 0.0  ;;  %v4027_v45 = vld [vmem:[#allocation11_spill] sm:$0xff]  ;;  %v4028_v63 = vld [vmem:[#allocation12_spill] sm:$0xff] }
 0x1ec   :  { %1284 = vst.msk [vmem:[%s3862_s5 + $0x88] sm:$0xff] %vm597_vm1, %v1220_v35  ;;  %1285 = vst.msk [vmem:[%s3862_s5 + $0x90] sm:$0xff] %vm597_vm1, %v1221_v9  ;;  %v1245_v46 = vmax.f32 %v4027_v45, 0.0  ;;  %v1246_v13 = vmax.f32 %v4028_v63, 0.0  ;;  %v4029_v19 = vld [vmem:[#allocation13_spill] sm:$0xff]  ;;  %v4030_v56 = vld [vmem:[#allocation14_spill] sm:$0xff] }
 0x1ed   :  { %1286 = vst.msk [vmem:[%s3862_s5 + $0x98] sm:$0xff] %vm597_vm1, %v1222_v11  ;;  %1287 = vst.msk [vmem:[%s3862_s5 + $0xa0] sm:$0xff] %vm597_vm1, %v1223_v44  ;;  %v1247_v20 = vmax.f32 %v4029_v19, 0.0  ;;  %v1248_v18 = vmax.f32 %v4030_v56, 0.0  ;;  %v1249_v40 = vmax.f32 %v3467_v50, 0.0  ;;  %v1250_v42 = vmax.f32 %v3471_v0, 0.0 }
 0x1ee   :  { %1288 = vst.msk [vmem:[%s3862_s5 + $0xa8] sm:$0xff] %vm597_vm1, %v1224_v23  ;;  %1289 = vst.msk [vmem:[%s3862_s5 + $0xb0] sm:$0xff] %vm597_vm1, %v1225_v17  ;;  %v1251_v50 = vmax.f32 %v3475_v33, 0.0  ;;  %v1252_v0 = vmax.f32 %v3479_v60, 0.0  ;;  %v1253_v37 = vmax.f32 %v3483_v38, 0.0  ;;  %v1254_v21 = vmax.f32 %v3487_v15, 0.0 }
 0x1ef   :  { %1290 = vst.msk [vmem:[%s3862_s5 + $0xb8] sm:$0xff] %vm597_vm1, %v1226_v51  ;;  %1291 = vst.msk [vmem:[%s3862_s5 + $0xc0] sm:$0xff] %vm597_vm1, %v1227_v41  ;;  %v1255_v33 = vmax.f32 %v3491_v8, 0.0  ;;  %v1256_v60 = vmax.f32 %v3495_v27, 0.0  ;;  %v1257_v38 = vmax.f32 %v3499_v3, 0.0  ;;  %v1258_v15 = vmax.f32 %v3503_v53, 0.0 }
 0x1f0   :  { %1292 = vst.msk [vmem:[%s3862_s5 + $0xc8] sm:$0xff] %vm597_vm1, %v1228_v24  ;;  %1293 = vst.msk [vmem:[%s3862_s5 + $0xd0] sm:$0xff] %vm597_vm1, %v1229_v7  ;;  %v1259_v8 = vmax.f32 %v3507_v55, 0.0  ;;  %v1260_v27 = vmax.f32 %v3511_v14, 0.0  ;;  %v4031_v3 = vld [vmem:[#allocation15_spill] sm:$0xff]  ;;  %v4032_v54 = vld [vmem:[#allocation16_spill] sm:$0xff] }
 0x1f1   :  { %1294 = vst.msk [vmem:[%s3862_s5 + $0xd8] sm:$0xff] %vm597_vm1, %v1230_v26  ;;  %1295 = vst.msk [vmem:[%s3862_s5 + $0xe0] sm:$0xff] %vm597_vm1, %v1231_v1  ;;  %v1261_v53 = vmax.f32 %v4031_v3, 0.0  ;;  %v1262_v4 = vmax.f32 %v4032_v54, 0.0  ;;  %v4033_v55 = vld [vmem:[#allocation24_spill] sm:$0xff]  ;;  %v4034_v6 = vld [vmem:[#allocation25_spill] sm:$0xff] }
 0x1f2   :  { %1296 = vst.msk [vmem:[%s3862_s5 + $0xe8] sm:$0xff] %vm597_vm1, %v1232_v52  ;;  %1297 = vst.msk [vmem:[%s3862_s5 + $0xf0] sm:$0xff] %vm597_vm1, %v1233_v2  ;;  %v1263_v14 = vmax.f32 %v4033_v55, 0.0  ;;  %v1264_v36 = vmax.f32 %v4034_v6, 0.0  ;;  %v4035_v28 = vld [vmem:[#allocation26_spill] sm:$0xff]  ;;  %v1266_v58 = vmax.f32 %v3535_v43, 0.0 }
 0x1f3   :  { %1298 = vst.msk [vmem:[%s3862_s5 + $0xf8] sm:$0xff] %vm597_vm1, %v1234_v49  ;;  %1299 = vst.msk [vmem:[%s3862_s5 + $0x100] sm:$0xff] %vm597_vm1, %v1235_v59  ;;  %v1265_v57 = vmax.f32 %v4035_v28, 0.0 }
 0x1f4   :  { %1300 = vst.msk [vmem:[%s3862_s5 + $0x108] sm:$0xff] %vm597_vm1, %v1236_v10  ;;  %1301 = vst.msk [vmem:[%s3862_s5 + $0x110] sm:$0xff] %vm597_vm1, %v1237_v16 }
 0x1f5   :  { %1302 = vst.msk [vmem:[%s3862_s5 + $0x118] sm:$0xff] %vm597_vm1, %v1238_v39  ;;  %1303 = vst.msk [vmem:[%s3862_s5 + $0x120] sm:$0xff] %vm597_vm1, %v1239_v34 }
 0x1f6   :  { %1304 = vst.msk [vmem:[%s3862_s5 + $0x128] sm:$0xff] %vm597_vm1, %v1240_v47  ;;  %1305 = vst.msk [vmem:[%s3862_s5 + $0x130] sm:$0xff] %vm597_vm1, %v1241_v48 }
 0x1f7   :  { %1306 = vst.msk [vmem:[%s3862_s5 + $0x138] sm:$0xff] %vm597_vm1, %v1242_v62  ;;  %1307 = vst.msk [vmem:[%s3862_s5 + $0x140] sm:$0xff] %vm597_vm1, %v1243_v12 }
 0x1f8   :  { %1308 = vst.msk [vmem:[%s3862_s5 + $0x148] sm:$0xff] %vm597_vm1, %v1244_v30  ;;  %1309 = vst.msk [vmem:[%s3862_s5 + $0x150] sm:$0xff] %vm597_vm1, %v1245_v46 }
 0x1f9   :  { %1310 = vst.msk [vmem:[%s3862_s5 + $0x158] sm:$0xff] %vm597_vm1, %v1246_v13  ;;  %1311 = vst.msk [vmem:[%s3862_s5 + $0x160] sm:$0xff] %vm597_vm1, %v1247_v20 }
 0x1fa   :  { %1312 = vst.msk [vmem:[%s3862_s5 + $0x168] sm:$0xff] %vm597_vm1, %v1248_v18  ;;  %1313 = vst.msk [vmem:[%s3862_s5 + $0x170] sm:$0xff] %vm597_vm1, %v1249_v40 }
 0x1fb   :  { %1314 = vst.msk [vmem:[%s3862_s5 + $0x178] sm:$0xff] %vm597_vm1, %v1250_v42  ;;  %1315 = vst.msk [vmem:[%s3862_s5 + $0x180] sm:$0xff] %vm597_vm1, %v1251_v50 }
 0x1fc   :  { %1316 = vst.msk [vmem:[%s3862_s5 + $0x188] sm:$0xff] %vm597_vm1, %v1252_v0  ;;  %1317 = vst.msk [vmem:[%s3862_s5 + $0x190] sm:$0xff] %vm597_vm1, %v1253_v37 }
 0x1fd   :  { %1318 = vst.msk [vmem:[%s3862_s5 + $0x198] sm:$0xff] %vm597_vm1, %v1254_v21  ;;  %1319 = vst.msk [vmem:[%s3862_s5 + $0x1a0] sm:$0xff] %vm597_vm1, %v1255_v33 }
 0x1fe   :  { %1320 = vst.msk [vmem:[%s3862_s5 + $0x1a8] sm:$0xff] %vm597_vm1, %v1256_v60  ;;  %1321 = vst.msk [vmem:[%s3862_s5 + $0x1b0] sm:$0xff] %vm597_vm1, %v1257_v38 }
 0x1ff   :  { %1322 = vst.msk [vmem:[%s3862_s5 + $0x1b8] sm:$0xff] %vm597_vm1, %v1258_v15  ;;  %1323 = vst.msk [vmem:[%s3862_s5 + $0x1c0] sm:$0xff] %vm597_vm1, %v1259_v8 }
 0x200   :  { %1324 = vst.msk [vmem:[%s3862_s5 + $0x1c8] sm:$0xff] %vm597_vm1, %v1260_v27  ;;  %1325 = vst.msk [vmem:[%s3862_s5 + $0x1d0] sm:$0xff] %vm597_vm1, %v1261_v53 }
 0x201   :  { %1326 = vst.msk [vmem:[%s3862_s5 + $0x1d8] sm:$0xff] %vm597_vm1, %v1262_v4  ;;  %1327 = vst.msk [vmem:[%s3862_s5 + $0x1e0] sm:$0xff] %vm597_vm1, %v1263_v14 }
 0x202   :  { %1328 = vst.msk [vmem:[%s3862_s5 + $0x1e8] sm:$0xff] %vm597_vm1, %v1264_v36  ;;  %1329 = vst.msk [vmem:[%s3862_s5 + $0x1f0] sm:$0xff] %vm597_vm1, %v1265_v57 }
 0x203   :  { %1330 = vst.msk [vmem:[%s3862_s5 + $0x1f8] sm:$0xff] %vm597_vm1, %v1266_v58 }

// kernel: mlb_forward.4
= control target key start
LH: loop header
LB: loop body
LE: loop exit
PB: predicated region body
PF: predicated region fallthrough
CT: control target
= control target key end

     0   :  { %vm14_vm0 = vcmask 31744   ;;  %vm17_vm1 = vcmask 25600   ;;  %v4379_v0 = vmov 0.0   ;;  %s4380_s29 = smov 4   ;;  %s4381_s27 = smov 8   ;;  %vm3602_vm2 = vcmask 1043456   ;;  %s7455_s0 = inlined_call_operand.vmem [shape: f32[2,16,16,4], index: 0, kind: input, shape index: {}]   ;;  %s7456_s1 = inlined_call_operand.vmem [shape: f32[36,8], index: 1, kind: input, shape index: {}]   ;;  %s7457_s2 = inlined_call_operand.vmem [shape: f32[1,8], index: 2, kind: input, shape index: {}]   ;;  %s7458_s3 = inlined_call_operand.vmem [shape: f32[2,16,16,8], index: 3, kind: output, shape index: {}]  }
   0x1   :  { %15 = vst.msk [vmem:[#allocation2] sm:$0xff] %vm14_vm0, %v4379_v0  ;;  %16 = vst.msk [vmem:[#allocation2 + $0x8] sm:$0xff] %vm14_vm0, %v4379_v0  ;;  %v124_v1 = vld [vmem:[%s7455_s0] sm:$0xff]  ;;  %v125_v2 = vld [vmem:[%s7455_s0 + $0x8] sm:$0xff]  ;;  %s4383_s9 = smov 16   ;;  %s4384_s10 = smov 20  }
   0x2   :  { %19 = vst.msk [vmem:[#allocation2 + $0x18] sm:$0xff] %vm14_vm0, %v4379_v0  ;;  %20 = vst.msk [vmem:[#allocation2 + $0x20] sm:$0xff] %vm14_vm0, %v4379_v0  ;;  %v126_v3 = vld [vmem:[%s7455_s0 + $0x10] sm:$0xff]  ;;  %v127_v4 = vld [vmem:[%s7455_s0 + $0x18] sm:$0xff]  ;;  %s4385_s11 = smov 24   ;;  %s4386_s22 = smov 28  }
   0x3   :  { %22 = vst.msk [vmem:[#allocation2 + $0x30] sm:$0xff] %vm14_vm0, %v4379_v0  ;;  %23 = vst.msk [vmem:[#allocation2 + $0x38] sm:$0xff] %vm14_vm0, %v4379_v0  ;;  %v128_v5 = vld [vmem:[%s7455_s0 + $0x20] sm:$0xff]  ;;  %v129_v6 = vld [vmem:[%s7455_s0 + $0x28] sm:$0xff]  ;;  %vm2942_vm3 = vcmask 64512   ;;  %vm3007_vm4 = vcmask 97280  }
   0x4   :  { %25 = vst.msk [vmem:[#allocation2 + $0x48] sm:$0xff] %vm14_vm0, %v4379_v0  ;;  %26 = vst.msk [vmem:[#allocation2 + $0x50] sm:$0xff] %vm14_vm0, %v4379_v0  ;;  %v130_v7 = vld [vmem:[%s7455_s0 + $0x30] sm:$0xff]  ;;  %v131_v8 = vld [vmem:[%s7455_s0 + $0x38] sm:$0xff]  ;;  %vm3072_vm5 = vcmask 130048   ;;  %vm3137_vm6 = vcmask 162816  }
   0x5   :  { %28 = vst.msk [vmem:[#allocation2 + $0x60] sm:$0xff] %vm14_vm0, %v4379_v0  ;;  %29 = vst.msk [vmem:[#allocation2 + $0x68] sm:$0xff] %vm14_vm0, %v4379_v0  ;;  %v132_v9 = vld [vmem:[%s7455_s0 + $0x40] sm:$0xff]  ;;  %v133_v10 = vld [vmem:[%s7455_s0 + $0x48] sm:$0xff]  ;;  %vm3202_vm7 = vcmask 195584   ;;  %vm3267_vm8 = vcmask 228352  }
   0x6   :  { %31 = vst.msk [vmem:[#allocation2 + $0x78] sm:$0xff] %vm14_vm0, %v4379_v0  ;;  %32 = vst.msk [vmem:[#allocation2 + $0x80] sm:$0xff] %vm14_vm0, %v4379_v0  ;;  %v134_v11 = vld [vmem:[%s7455_s0 + $0x50] sm:$0xff]  ;;  %v135_v12 = vld [vmem:[%s7455_s0 + $0x58] sm:$0xff]  ;;  %vm3332_vm9 = vcmask 261120   ;;  %vm3409_vm10 = vcmask 293888  }
   0x7   :  { %34 = vst.msk [vmem:[#allocation2 + $0x90] sm:$0xff] %vm14_vm0, %v4379_v0  ;;  %35 = vst.msk [vmem:[#allocation2 + $0x98] sm:$0xff] %vm14_vm0, %v4379_v0  ;;  %v136_v13 = vld [vmem:[%s7455_s0 + $0x60] sm:$0xff]  ;;  %v137_v14 = vld [vmem:[%s7455_s0 + $0x68] sm:$0xff] }
   0x8   :  { %37 = vst.msk [vmem:[#allocation2 + $0xa8] sm:$0xff] %vm14_vm0, %v4379_v0  ;;  %38 = vst.msk [vmem:[#allocation2 + $0xb0] sm:$0xff] %vm14_vm0, %v4379_v0  ;;  %v138_v15 = vld [vmem:[%s7455_s0 + $0x70] sm:$0xff]  ;;  %v139_v16 = vld [vmem:[%s7455_s0 + $0x78] sm:$0xff] }
   0x9   :  { %40 = vst.msk [vmem:[#allocation2 + $0xc0] sm:$0xff] %vm14_vm0, %v4379_v0  ;;  %41 = vst.msk [vmem:[#allocation2 + $0xc8] sm:$0xff] %vm14_vm0, %v4379_v0  ;;  %v140_v17 = vld [vmem:[%s7455_s0 + $0x80] sm:$0xff]  ;;  %v141_v18 = vld [vmem:[%s7455_s0 + $0x88] sm:$0xff] }
   0xa   :  { %43 = vst.msk [vmem:[#allocation2 + $0xd8] sm:$0xff] %vm14_vm0, %v4379_v0  ;;  %44 = vst.msk [vmem:[#allocation2 + $0xe0] sm:$0xff] %vm14_vm0, %v4379_v0  ;;  %v142_v19 = vld [vmem:[%s7455_s0 + $0x90] sm:$0xff]  ;;  %v143_v20 = vld [vmem:[%s7455_s0 + $0x98] sm:$0xff] }
   0xb   :  { %46 = vst.msk [vmem:[#allocation2 + $0xf0] sm:$0xff] %vm14_vm0, %v4379_v0  ;;  %47 = vst.msk [vmem:[#allocation2 + $0xf8] sm:$0xff] %vm14_vm0, %v4379_v0  ;;  %v144_v21 = vld [vmem:[%s7455_s0 + $0xa0] sm:$0xff]  ;;  %v145_v23 = vld [vmem:[%s7455_s0 + $0xa8] sm:$0xff] }
   0xc   :  { %49 = vst.msk [vmem:[#allocation2 + $0x108] sm:$0xff] %vm14_vm0, %v4379_v0  ;;  %50 = vst.msk [vmem:[#allocation2 + $0x110] sm:$0xff] %vm14_vm0, %v4379_v0  ;;  %v317_v22 = vld [vmem:[#allocation2 + $0x1] sm:$0xff]  ;;  %v146_v30 = vld [vmem:[%s7455_s0 + $0xb0] sm:$0xff] }
   0xd   :  { %52 = vst.msk [vmem:[#allocation2 + $0x120] sm:$0xff] %vm14_vm0, %v4379_v0  ;;  %53 = vst.msk [vmem:[#allocation2 + $0x128] sm:$0xff] %vm14_vm0, %v4379_v0  ;;  %894 = vrot.lane.b32.xlu0 %v317_v22, %s4380_s29  ;;  %v147_v31 = vld [vmem:[%s7455_s0 + $0xb8] sm:$0xff]  ;;  %v148_v32 = vld [vmem:[%s7455_s0 + $0xc0] sm:$0xff] }
   0xe   :  { %55 = vst.msk [vmem:[#allocation2 + $0x138] sm:$0xff] %vm14_vm0, %v4379_v0  ;;  %56 = vst.msk [vmem:[#allocation2 + $0x140] sm:$0xff] %vm14_vm0, %v4379_v0  ;;  %v149_v33 = vld [vmem:[%s7455_s0 + $0xc8] sm:$0xff]  ;;  %v150_v34 = vld [vmem:[%s7455_s0 + $0xd0] sm:$0xff] }
   0xf   :  { %58 = vst.msk [vmem:[#allocation2 + $0x150] sm:$0xff] %vm14_vm0, %v4379_v0  ;;  %59 = vst.msk [vmem:[#allocation2 + $0x158] sm:$0xff] %vm14_vm0, %v4379_v0  ;;  %v151_v35 = vld [vmem:[%s7455_s0 + $0xd8] sm:$0xff]  ;;  %v152_v36 = vld [vmem:[%s7455_s0 + $0xe0] sm:$0xff] }
  0x10   :  { %61 = vst.msk [vmem:[#allocation2 + $0x168] sm:$0xff] %vm14_vm0, %v4379_v0  ;;  %62 = vst.msk [vmem:[#allocation2 + $0x170] sm:$0xff] %vm14_vm0, %v4379_v0  ;;  %v153_v37 = vld [vmem:[%s7455_s0 + $0xe8] sm:$0xff]  ;;  %v156_v39 = vld [vmem:[%s7455_s0 + $0x100] sm:$0xff] }
  0x11   :  { %64 = vst.msk [vmem:[#allocation2 + $0x180] sm:$0xff] %vm14_vm0, %v4379_v0  ;;  %65 = vst.msk [vmem:[#allocation2 + $0x188] sm:$0xff] %vm14_vm0, %v4379_v0  ;;  %v157_v41 = vld [vmem:[%s7455_s0 + $0x108] sm:$0xff]  ;;  %v158_v42 = vld [vmem:[%s7455_s0 + $0x110] sm:$0xff] }
  0x12   :  { %67 = vst.msk [vmem:[#allocation2 + $0x198] sm:$0xff] %vm14_vm0, %v4379_v0  ;;  %68 = vst.msk [vmem:[#allocation2 + $0x1a0] sm:$0xff] %vm14_vm0, %v4379_v0  ;;  %v159_v43 = vld [vmem:[%s7455_s0 + $0x118] sm:$0xff]  ;;  %v160_v45 = vld [vmem:[%s7455_s0 + $0x120] sm:$0xff] }
  0x13   :  { %70 = vst.msk [vmem:[#allocation2 + $0x1b0] sm:$0xff] %vm14_vm0, %v4379_v0  ;;  %71 = vst.msk [vmem:[#allocation2 + $0x1b8] sm:$0xff] %vm14_vm0, %v4379_v0  ;;  %v161_v46 = vld [vmem:[%s7455_s0 + $0x128] sm:$0xff]  ;;  %v162_v47 = vld [vmem:[%s7455_s0 + $0x130] sm:$0xff] }
  0x14   :  { %73 = vst.msk [vmem:[#allocation2 + $0x1c8] sm:$0xff] %vm14_vm0, %v4379_v0  ;;  %74 = vst.msk [vmem:[#allocation2 + $0x1d0] sm:$0xff] %vm14_vm0, %v4379_v0  ;;  %v163_v48 = vld [vmem:[%s7455_s0 + $0x138] sm:$0xff]  ;;  %v164_v49 = vld [vmem:[%s7455_s0 + $0x140] sm:$0xff] }
  0x15   :  { %76 = vst.msk [vmem:[#allocation2 + $0x1e0] sm:$0xff] %vm14_vm0, %v4379_v0  ;;  %77 = vst.msk [vmem:[#allocation2 + $0x1e8] sm:$0xff] %vm14_vm0, %v4379_v0  ;;  %v165_v50 = vld [vmem:[%s7455_s0 + $0x148] sm:$0xff]  ;;  %v166_v51 = vld [vmem:[%s7455_s0 + $0x150] sm:$0xff] }
  0x16   :  { %79 = vst.msk [vmem:[#allocation2 + $0x1f8] sm:$0xff] %vm14_vm0, %v4379_v0  ;;  %80 = vst.msk [vmem:[#allocation2 + $0x200] sm:$0xff] %vm14_vm0, %v4379_v0  ;;  %v167_v52 = vld [vmem:[%s7455_s0 + $0x158] sm:$0xff]  ;;  %v168_v53 = vld [vmem:[%s7455_s0 + $0x160] sm:$0xff] }
  0x17   :  { %82 = vst.msk [vmem:[#allocation2 + $0x210] sm:$0xff] %vm14_vm0, %v4379_v0  ;;  %83 = vst.msk [vmem:[#allocation2 + $0x218] sm:$0xff] %vm14_vm0, %v4379_v0  ;;  %v169_v54 = vld [vmem:[%s7455_s0 + $0x168] sm:$0xff]  ;;  %v170_v57 = vld [vmem:[%s7455_s0 + $0x170] sm:$0xff] }
  0x18   :  { %85 = vst.msk [vmem:[#allocation2 + $0x228] sm:$0xff] %vm14_vm0, %v4379_v0  ;;  %86 = vst.msk [vmem:[#allocation2 + $0x230] sm:$0xff] %vm14_vm0, %v4379_v0  ;;  %v171_v58 = vld [vmem:[%s7455_s0 + $0x178] sm:$0xff]  ;;  %v172_v62 = vld [vmem:[%s7455_s0 + $0x180] sm:$0xff] }
  0x19   :  { %88 = vst.msk [vmem:[#allocation2 + $0x240] sm:$0xff] %vm14_vm0, %v4379_v0  ;;  %89 = vst.msk [vmem:[#allocation2 + $0x248] sm:$0xff] %vm14_vm0, %v4379_v0  ;;  %v173_v63 = vld [vmem:[%s7455_s0 + $0x188] sm:$0xff] }
  0x1a   :  { %91 = vst.msk [vmem:[#allocation2 + $0x258] sm:$0xff] %vm14_vm0, %v4379_v0  ;;  %92 = vst.msk [vmem:[#allocation2 + $0x260] sm:$0xff] %vm14_vm0, %v4379_v0 }
  0x1b   :  { %94 = vst.msk [vmem:[#allocation2 + $0x270] sm:$0xff] %vm14_vm0, %v4379_v0  ;;  %95 = vst.msk [vmem:[#allocation2 + $0x278] sm:$0xff] %vm14_vm0, %v4379_v0 }
  0x1c   :  { %97 = vst.msk [vmem:[#allocation2 + $0x288] sm:$0xff] %vm14_vm0, %v4379_v0  ;;  %98 = vst.msk [vmem:[#allocation2 + $0x290] sm:$0xff] %vm14_vm0, %v4379_v0 }
  0x1d   :  { %100 = vst.msk [vmem:[#allocation2 + $0x2a0] sm:$0xff] %vm14_vm0, %v4379_v0  ;;  %101 = vst.msk [vmem:[#allocation2 + $0x2a8] sm:$0xff] %vm14_vm0, %v4379_v0 }
  0x1e   :  { %103 = vst.msk [vmem:[#allocation2 + $0x2b8] sm:$0xff] %vm14_vm0, %v4379_v0  ;;  %104 = vst.msk [vmem:[#allocation2 + $0x2c0] sm:$0xff] %vm14_vm0, %v4379_v0 }
  0x1f   :  { %106 = vst.msk [vmem:[#allocation2 + $0x2d0] sm:$0xff] %vm14_vm0, %v4379_v0  ;;  %107 = vst.msk [vmem:[#allocation2 + $0x2d8] sm:$0xff] %vm14_vm0, %v4379_v0 }
  0x20   :  { %109 = vst.msk [vmem:[#allocation2 + $0x2e8] sm:$0xff] %vm14_vm0, %v4379_v0  ;;  %110 = vst.msk [vmem:[#allocation2 + $0x2f0] sm:$0xff] %vm14_vm0, %v4379_v0 }
  0x21   :  { %112 = vst.msk [vmem:[#allocation2 + $0x300] sm:$0xff] %vm14_vm0, %v4379_v0  ;;  %113 = vst.msk [vmem:[#allocation2 + $0x308] sm:$0xff] %vm14_vm0, %v4379_v0 }
  0x22   :  { %115 = vst.msk [vmem:[#allocation2 + $0x318] sm:$0xff] %vm14_vm0, %v4379_v0  ;;  %116 = vst.msk [vmem:[#allocation2 + $0x320] sm:$0xff] %vm14_vm0, %v4379_v0 }
  0x23   :  { %118 = vst.msk [vmem:[#allocation2 + $0x330] sm:$0xff] %vm14_vm0, %v4379_v0  ;;  %119 = vst.msk [vmem:[#allocation2 + $0x338] sm:$0xff] %vm14_vm0, %v4379_v0 }
  0x24   :  { %121 = vst.msk [vmem:[#allocation2 + $0x348] sm:$0xff] %vm14_vm0, %v4379_v0  ;;  %122 = vst.msk [vmem:[#allocation2 + $0x350] sm:$0xff] %vm14_vm0, %v4379_v0 }
  0x25   :  { %18 = vst.msk [vmem:[#allocation2 + $0x10] sm:$0x3] %vm17_vm1, %v4379_v0  ;;  %21 = vst.msk [vmem:[#allocation2 + $0x28] sm:$0x3] %vm17_vm1, %v4379_v0 }
  0x26   :  { %24 = vst.msk [vmem:[#allocation2 + $0x40] sm:$0x3] %vm17_vm1, %v4379_v0  ;;  %27 = vst.msk [vmem:[#allocation2 + $0x58] sm:$0x3] %vm17_vm1, %v4379_v0 }
  0x27   :  { %30 = vst.msk [vmem:[#allocation2 + $0x70] sm:$0x3] %vm17_vm1, %v4379_v0  ;;  %33 = vst.msk [vmem:[#allocation2 + $0x88] sm:$0x3] %vm17_vm1, %v4379_v0 }
  0x28   :  { %36 = vst.msk [vmem:[#allocation2 + $0xa0] sm:$0x3] %vm17_vm1, %v4379_v0  ;;  %39 = vst.msk [vmem:[#allocation2 + $0xb8] sm:$0x3] %vm17_vm1, %v4379_v0 }
  0x29   :  { %42 = vst.msk [vmem:[#allocation2 + $0xd0] sm:$0x3] %vm17_vm1, %v4379_v0  ;;  %45 = vst.msk [vmem:[#allocation2 + $0xe8] sm:$0x3] %vm17_vm1, %v4379_v0 }
  0x2a   :  { %48 = vst.msk [vmem:[#allocation2 + $0x100] sm:$0x3] %vm17_vm1, %v4379_v0  ;;  %51 = vst.msk [vmem:[#allocation2 + $0x118] sm:$0x3] %vm17_vm1, %v4379_v0 }
  0x2b   :  { %54 = vst.msk [vmem:[#allocation2 + $0x130] sm:$0x3] %vm17_vm1, %v4379_v0  ;;  %57 = vst.msk [vmem:[#allocation2 + $0x148] sm:$0x3] %vm17_vm1, %v4379_v0 }
  0x2c   :  { %60 = vst.msk [vmem:[#allocation2 + $0x160] sm:$0x3] %vm17_vm1, %v4379_v0  ;;  %63 = vst.msk [vmem:[#allocation2 + $0x178] sm:$0x3] %vm17_vm1, %v4379_v0  ;;  %v318_v25 = vld [vmem:[#allocation2 + $0x9] sm:$0xff] }
  0x2d   :  { %66 = vst.msk [vmem:[#allocation2 + $0x190] sm:$0x3] %vm17_vm1, %v4379_v0  ;;  %69 = vst.msk [vmem:[#allocation2 + $0x1a8] sm:$0x3] %vm17_vm1, %v4379_v0  ;;  %896 = vrot.lane.b32.xlu0 %v318_v25, %s4380_s29 }
  0x2e   :  { %72 = vst.msk [vmem:[#allocation2 + $0x1c0] sm:$0x3] %vm17_vm1, %v4379_v0  ;;  %75 = vst.msk [vmem:[#allocation2 + $0x1d8] sm:$0x3] %vm17_vm1, %v4379_v0 }
  0x2f   :  { %78 = vst.msk [vmem:[#allocation2 + $0x1f0] sm:$0x3] %vm17_vm1, %v4379_v0  ;;  %81 = vst.msk [vmem:[#allocation2 + $0x208] sm:$0x3] %vm17_vm1, %v4379_v0 }
  0x30   :  { %84 = vst.msk [vmem:[#allocation2 + $0x220] sm:$0x3] %vm17_vm1, %v4379_v0  ;;  %87 = vst.msk [vmem:[#allocation2 + $0x238] sm:$0x3] %vm17_vm1, %v4379_v0 }
  0x31   :  { %90 = vst.msk [vmem:[#allocation2 + $0x250] sm:$0x3] %vm17_vm1, %v4379_v0  ;;  %93 = vst.msk [vmem:[#allocation2 + $0x268] sm:$0x3] %vm17_vm1, %v4379_v0 }
  0x32   :  { %96 = vst.msk [vmem:[#allocation2 + $0x280] sm:$0x3] %vm17_vm1, %v4379_v0  ;;  %99 = vst.msk [vmem:[#allocation2 + $0x298] sm:$0x3] %vm17_vm1, %v4379_v0 }
  0x33   :  { %102 = vst.msk [vmem:[#allocation2 + $0x2b0] sm:$0x3] %vm17_vm1, %v4379_v0  ;;  %105 = vst.msk [vmem:[#allocation2 + $0x2c8] sm:$0x3] %vm17_vm1, %v4379_v0 }
  0x34   :  { %108 = vst.msk [vmem:[#allocation2 + $0x2e0] sm:$0x3] %vm17_vm1, %v4379_v0  ;;  %111 = vst.msk [vmem:[#allocation2 + $0x2f8] sm:$0x3] %vm17_vm1, %v4379_v0 }
  0x35   :  { %114 = vst.msk [vmem:[#allocation2 + $0x310] sm:$0x3] %vm17_vm1, %v4379_v0  ;;  %117 = vst.msk [vmem:[#allocation2 + $0x328] sm:$0x3] %vm17_vm1, %v4379_v0 }
  0x36   :  { %120 = vst.msk [vmem:[#allocation2 + $0x340] sm:$0x3] %vm17_vm1, %v4379_v0  ;;  %123 = vst.msk [vmem:[#allocation2 + $0x358] sm:$0x3] %vm17_vm1, %v4379_v0  ;;  %v174_v0 = vld [vmem:[%s7455_s0 + $0x190] sm:$0xff] }
  0x37   :  { %189 = vst.msk [vmem:[#allocation2 + $0x19] sm:$0xff] %vm14_vm0, %v124_v1  ;;  %190 = vst.msk [vmem:[#allocation2 + $0x21] sm:$0xff] %vm14_vm0, %v125_v2  ;;  %v175_v1 = vld [vmem:[%s7455_s0 + $0x198] sm:$0xff]  ;;  %v176_v2 = vld [vmem:[%s7455_s0 + $0x1a0] sm:$0xff] }
  0x38   :  { %191 = vst.msk [vmem:[#allocation2 + $0x31] sm:$0xff] %vm14_vm0, %v126_v3  ;;  %192 = vst.msk [vmem:[#allocation2 + $0x39] sm:$0xff] %vm14_vm0, %v127_v4  ;;  %v177_v3 = vld [vmem:[%s7455_s0 + $0x1a8] sm:$0xff]  ;;  %v178_v4 = vld [vmem:[%s7455_s0 + $0x1b0] sm:$0xff] }
  0x39   :  { %193 = vst.msk [vmem:[#allocation2 + $0x49] sm:$0xff] %vm14_vm0, %v128_v5  ;;  %194 = vst.msk [vmem:[#allocation2 + $0x51] sm:$0xff] %vm14_vm0, %v129_v6  ;;  %v179_v5 = vld [vmem:[%s7455_s0 + $0x1b8] sm:$0xff] }
  0x3a   :  { %195 = vst.msk [vmem:[#allocation2 + $0x61] sm:$0xff] %vm14_vm0, %v130_v7  ;;  %196 = vst.msk [vmem:[#allocation2 + $0x69] sm:$0xff] %vm14_vm0, %v131_v8  ;;  %v180_v7 = vld [vmem:[%s7455_s0 + $0x1c0] sm:$0xff]  ;;  %v181_v8 = vld [vmem:[%s7455_s0 + $0x1c8] sm:$0xff] }
  0x3b   :  { %197 = vst.msk [vmem:[#allocation2 + $0x79] sm:$0xff] %vm14_vm0, %v132_v9  ;;  %198 = vst.msk [vmem:[#allocation2 + $0x81] sm:$0xff] %vm14_vm0, %v133_v10  ;;  %v182_v9 = vld [vmem:[%s7455_s0 + $0x1d0] sm:$0xff] }
  0x3c   :  { %199 = vst.msk [vmem:[#allocation2 + $0x91] sm:$0xff] %vm14_vm0, %v134_v11  ;;  %200 = vst.msk [vmem:[#allocation2 + $0x99] sm:$0xff] %vm14_vm0, %v135_v12  ;;  %v183_v11 = vld [vmem:[%s7455_s0 + $0x1d8] sm:$0xff] }
  0x3d   :  { %201 = vst.msk [vmem:[#allocation2 + $0xa9] sm:$0xff] %vm14_vm0, %v136_v13  ;;  %202 = vst.msk [vmem:[#allocation2 + $0xb1] sm:$0xff] %vm14_vm0, %v137_v14  ;;  %v184_v13 = vld [vmem:[%s7455_s0 + $0x1e0] sm:$0xff]  ;;  %v185_v14 = vld [vmem:[%s7455_s0 + $0x1e8] sm:$0xff] }
  0x3e   :  { %203 = vst.msk [vmem:[#allocation2 + $0xc1] sm:$0xff] %vm14_vm0, %v138_v15  ;;  %204 = vst.msk [vmem:[#allocation2 + $0xc9] sm:$0xff] %vm14_vm0, %v139_v16  ;;  %v319_v24 = vld [vmem:[#allocation2 + $0x19] sm:$0xff]  ;;  %v320_v26 = vld [vmem:[#allocation2 + $0x21] sm:$0xff] }
  0x3f   :  { %205 = vst.msk [vmem:[#allocation2 + $0xd9] sm:$0xff] %vm14_vm0, %v140_v17  ;;  %206 = vst.msk [vmem:[#allocation2 + $0xe1] sm:$0xff] %vm14_vm0, %v141_v18  ;;  %898 = vrot.lane.b32.xlu1 %v319_v24, %s4380_s29  ;;  %v321_v27 = vld [vmem:[#allocation2 + $0x31] sm:$0xff]  ;;  %v322_v28 = vld [vmem:[#allocation2 + $0x39] sm:$0xff] }
  0x40   :  { %207 = vst.msk [vmem:[#allocation2 + $0xf1] sm:$0xff] %vm14_vm0, %v142_v19  ;;  %208 = vst.msk [vmem:[#allocation2 + $0xf9] sm:$0xff] %vm14_vm0, %v143_v20  ;;  %v323_v29 = vld [vmem:[#allocation2 + $0x49] sm:$0xff]  ;;  %902 = vrot.lane.b32.xlu0 %v321_v27, %s4380_s29  ;;  %v324_v38 = vld [vmem:[#allocation2 + $0x51] sm:$0xff] }
  0x41   :  { %209 = vst.msk [vmem:[#allocation2 + $0x109] sm:$0xff] %vm14_vm0, %v144_v21  ;;  %210 = vst.msk [vmem:[#allocation2 + $0x111] sm:$0xff] %vm14_vm0, %v145_v23  ;;  %v325_v40 = vld [vmem:[#allocation2 + $0x61] sm:$0xff]  ;;  %v326_v44 = vld [vmem:[#allocation2 + $0x69] sm:$0xff] }
  0x42   :  { %211 = vst.msk [vmem:[#allocation2 + $0x121] sm:$0xff] %vm14_vm0, %v146_v30  ;;  %212 = vst.msk [vmem:[#allocation2 + $0x129] sm:$0xff] %vm14_vm0, %v147_v31  ;;  %v327_v55 = vld [vmem:[#allocation2 + $0x79] sm:$0xff]  ;;  %v328_v56 = vld [vmem:[#allocation2 + $0x81] sm:$0xff] }
  0x43   :  { %900 = vrot.lane.b32.xlu1 %v320_v26, %s4380_s29  ;;  %213 = vst.msk [vmem:[#allocation2 + $0x139] sm:$0xff] %vm14_vm0, %v148_v32  ;;  %214 = vst.msk [vmem:[#allocation2 + $0x141] sm:$0xff] %vm14_vm0, %v149_v33  ;;  %v329_v59 = vld [vmem:[#allocation2 + $0x91] sm:$0xff]  ;;  %v330_v60 = vld [vmem:[#allocation2 + $0x99] sm:$0xff] }
  0x44   :  { %215 = vst.msk [vmem:[#allocation2 + $0x151] sm:$0xff] %vm14_vm0, %v150_v34  ;;  %216 = vst.msk [vmem:[#allocation2 + $0x159] sm:$0xff] %vm14_vm0, %v151_v35  ;;  %906 = vrot.lane.b32.xlu0 %v323_v29, %s4380_s29  ;;  %v331_v61 = vld [vmem:[#allocation2 + $0xa9] sm:$0xff]  ;;  %v332_v6 = vld [vmem:[#allocation2 + $0xb1] sm:$0xff] }
  0x45   :  { %217 = vst.msk [vmem:[#allocation2 + $0x169] sm:$0xff] %vm14_vm0, %v152_v36  ;;  %218 = vst.msk [vmem:[#allocation2 + $0x171] sm:$0xff] %vm14_vm0, %v153_v37  ;;  %v333_v10 = vld [vmem:[#allocation2 + $0xc1] sm:$0xff]  ;;  %v334_v12 = vld [vmem:[#allocation2 + $0xc9] sm:$0xff] }
  0x46   :  { %221 = vst.msk [vmem:[#allocation2 + $0x1c9] sm:$0xff] %vm14_vm0, %v156_v39  ;;  %222 = vst.msk [vmem:[#allocation2 + $0x1d1] sm:$0xff] %vm14_vm0, %v157_v41  ;;  %v335_v15 = vld [vmem:[#allocation2 + $0xd9] sm:$0xff]  ;;  %v336_v16 = vld [vmem:[#allocation2 + $0xe1] sm:$0xff] }
  0x47   :  { %904 = vrot.lane.b32.xlu1 %v322_v28, %s4380_s29  ;;  %223 = vst.msk [vmem:[#allocation2 + $0x1e1] sm:$0xff] %vm14_vm0, %v158_v42  ;;  %224 = vst.msk [vmem:[#allocation2 + $0x1e9] sm:$0xff] %vm14_vm0, %v159_v43  ;;  %v337_v17 = vld [vmem:[#allocation2 + $0xf1] sm:$0xff]  ;;  %v338_v18 = vld [vmem:[#allocation2 + $0xf9] sm:$0xff] }
  0x48   :  { %225 = vst.msk [vmem:[#allocation2 + $0x1f9] sm:$0xff] %vm14_vm0, %v160_v45  ;;  %226 = vst.msk [vmem:[#allocation2 + $0x201] sm:$0xff] %vm14_vm0, %v161_v46  ;;  %910 = vrot.lane.b32.xlu0 %v325_v40, %s4380_s29  ;;  %v339_v19 = vld [vmem:[#allocation2 + $0x109] sm:$0xff]  ;;  %v340_v20 = vld [vmem:[#allocation2 + $0x111] sm:$0xff] }
  0x49   :  { %227 = vst.msk [vmem:[#allocation2 + $0x211] sm:$0xff] %vm14_vm0, %v162_v47  ;;  %228 = vst.msk [vmem:[#allocation2 + $0x219] sm:$0xff] %vm14_vm0, %v163_v48  ;;  %v341_v21 = vld [vmem:[#allocation2 + $0x121] sm:$0xff]  ;;  %v342_v22 = vld [vmem:[#allocation2 + $0x129] sm:$0xff] }
  0x4a   :  { %229 = vst.msk [vmem:[#allocation2 + $0x229] sm:$0xff] %vm14_vm0, %v164_v49  ;;  %230 = vst.msk [vmem:[#allocation2 + $0x231] sm:$0xff] %vm14_vm0, %v165_v50  ;;  %v343_v23 = vld [vmem:[#allocation2 + $0x139] sm:$0xff]  ;;  %v344_v24 = vld [vmem:[#allocation2 + $0x141] sm:$0xff] }
  0x4b   :  { %908 = vrot.lane.b32.xlu1 %v324_v38, %s4380_s29  ;;  %231 = vst.msk [vmem:[#allocation2 + $0x241] sm:$0xff] %vm14_vm0, %v166_v51  ;;  %232 = vst.msk [vmem:[#allocation2 + $0x249] sm:$0xff] %vm14_vm0, %v167_v52  ;;  %v345_v25 = vld [vmem:[#allocation2 + $0x151] sm:$0xff]  ;;  %v346_v26 = vld [vmem:[#allocation2 + $0x159] sm:$0xff] }
  0x4c   :  { %233 = vst.msk [vmem:[#allocation2 + $0x259] sm:$0xff] %vm14_vm0, %v168_v53  ;;  %234 = vst.msk [vmem:[#allocation2 + $0x261] sm:$0xff] %vm14_vm0, %v169_v54  ;;  %914 = vrot.lane.b32.xlu0 %v327_v55, %s4380_s29  ;;  %v347_v27 = vld [vmem:[#allocation2 + $0x169] sm:$0xff]  ;;  %v348_v28 = vld [vmem:[#allocation2 + $0x171] sm:$0xff] }
  0x4d   :  { %235 = vst.msk [vmem:[#allocation2 + $0x271] sm:$0xff] %vm14_vm0, %v170_v57  ;;  %236 = vst.msk [vmem:[#allocation2 + $0x279] sm:$0xff] %vm14_vm0, %v171_v58  ;;  %v349_v29 = vld [vmem:[#allocation2 + $0x1b1] sm:$0xff]  ;;  %v350_v30 = vld [vmem:[#allocation2 + $0x1b9] sm:$0xff] }
  0x4e   :  { %237 = vst.msk [vmem:[#allocation2 + $0x289] sm:$0xff] %vm14_vm0, %v172_v62  ;;  %238 = vst.msk [vmem:[#allocation2 + $0x291] sm:$0xff] %vm14_vm0, %v173_v63  ;;  %v351_v31 = vld [vmem:[#allocation2 + $0x1c9] sm:$0xff]  ;;  %v352_v32 = vld [vmem:[#allocation2 + $0x1d1] sm:$0xff] }
  0x4f   :  { %912 = vrot.lane.b32.xlu1 %v326_v44, %s4380_s29  ;;  %239 = vst.msk [vmem:[#allocation2 + $0x2a1] sm:$0xff] %vm14_vm0, %v174_v0  ;;  %240 = vst.msk [vmem:[#allocation2 + $0x2a9] sm:$0xff] %vm14_vm0, %v175_v1  ;;  %v353_v33 = vld [vmem:[#allocation2 + $0x1e1] sm:$0xff]  ;;  %v354_v34 = vld [vmem:[#allocation2 + $0x1e9] sm:$0xff] }
  0x50   :  { %918 = vrot.lane.b32.xlu0 %v329_v59, %s4380_s29  ;;  %241 = vst.msk [vmem:[#allocation2 + $0x2b9] sm:$0xff] %vm14_vm0, %v176_v2  ;;  %242 = vst.msk [vmem:[#allocation2 + $0x2c1] sm:$0xff] %vm14_vm0, %v177_v3  ;;  %v355_v35 = vld [vmem:[#allocation2 + $0x1f9] sm:$0xff]  ;;  %v356_v36 = vld [vmem:[#allocation2 + $0x201] sm:$0xff] }
  0x51   :  { %243 = vst.msk [vmem:[#allocation2 + $0x2d1] sm:$0xff] %vm14_vm0, %v178_v4  ;;  %244 = vst.msk [vmem:[#allocation2 + $0x2d9] sm:$0xff] %vm14_vm0, %v179_v5  ;;  %v357_v37 = vld [vmem:[#allocation2 + $0x211] sm:$0xff]  ;;  %v358_v38 = vld [vmem:[#allocation2 + $0x219] sm:$0xff] }
  0x52   :  { %245 = vst.msk [vmem:[#allocation2 + $0x2e9] sm:$0xff] %vm14_vm0, %v180_v7  ;;  %246 = vst.msk [vmem:[#allocation2 + $0x2f1] sm:$0xff] %vm14_vm0, %v181_v8  ;;  %v359_v39 = vld [vmem:[#allocation2 + $0x229] sm:$0xff]  ;;  %v360_v40 = vld [vmem:[#allocation2 + $0x231] sm:$0xff] }
  0x53   :  { %916 = vrot.lane.b32.xlu1 %v328_v56, %s4380_s29  ;;  %247 = vst.msk [vmem:[#allocation2 + $0x301] sm:$0xff] %vm14_vm0, %v182_v9  ;;  %248 = vst.msk [vmem:[#allocation2 + $0x309] sm:$0xff] %vm14_vm0, %v183_v11  ;;  %v361_v41 = vld [vmem:[#allocation2 + $0x241] sm:$0xff]  ;;  %v362_v42 = vld [vmem:[#allocation2 + $0x249] sm:$0xff] }
  0x54   :  { %922 = vrot.lane.b32.xlu0 %v331_v61, %s4380_s29  ;;  %249 = vst.msk [vmem:[#allocation2 + $0x319] sm:$0xff] %vm14_vm0, %v184_v13  ;;  %250 = vst.msk [vmem:[#allocation2 + $0x321] sm:$0xff] %vm14_vm0, %v185_v14  ;;  %v363_v43 = vld [vmem:[#allocation2 + $0x259] sm:$0xff]  ;;  %v364_v44 = vld [vmem:[#allocation2 + $0x261] sm:$0xff] }
  0x55   :  { %v365_v45 = vld [vmem:[#allocation2 + $0x271] sm:$0xff]  ;;  %v366_v46 = vld [vmem:[#allocation2 + $0x279] sm:$0xff]  ;;  %v367_v47 = vld [vmem:[#allocation2 + $0x289] sm:$0xff] }
  0x56   :  { %v368_v48 = vld [vmem:[#allocation2 + $0x291] sm:$0xff]  ;;  %v369_v49 = vld [vmem:[#allocation2 + $0x2a1] sm:$0xff]  ;;  %v370_v50 = vld [vmem:[#allocation2 + $0x2a9] sm:$0xff] }
  0x57   :  { %920 = vrot.lane.b32.xlu1 %v330_v60, %s4380_s29  ;;  %v371_v51 = vld [vmem:[#allocation2 + $0x2b9] sm:$0xff]  ;;  %v372_v52 = vld [vmem:[#allocation2 + $0x2c1] sm:$0xff]  ;;  %v382_v5 = vld [vmem:[#allocation2 + $0xa] sm:$0xff] }
  0x58   :  { %926 = vrot.lane.b32.xlu0 %v333_v10, %s4380_s29  ;;  %v373_v53 = vld [vmem:[#allocation2 + $0x2d1] sm:$0xff]  ;;  %v374_v54 = vld [vmem:[#allocation2 + $0x2d9] sm:$0xff]  ;;  %v381_v3 = vld [vmem:[#allocation2 + $0x2] sm:$0xff] }
  0x59   :  { %v375_v55 = vld [vmem:[#allocation2 + $0x2e9] sm:$0xff]  ;;  %v376_v57 = vld [vmem:[#allocation2 + $0x2f1] sm:$0xff]  ;;  %v383_v7 = vld [vmem:[#allocation2 + $0x1a] sm:$0xff] }
  0x5a   :  { %v377_v59 = vld [vmem:[#allocation2 + $0x301] sm:$0xff]  ;;  %v378_v61 = vld [vmem:[#allocation2 + $0x309] sm:$0xff]  ;;  %v385_v11 = vld [vmem:[#allocation2 + $0x32] sm:$0xff] }
  0x5b   :  { %924 = vrot.lane.b32.xlu1 %v332_v6, %s4380_s29  ;;  %v379_v63 = vld [vmem:[#allocation2 + $0x319] sm:$0xff]  ;;  %v380_v1 = vld [vmem:[#allocation2 + $0x321] sm:$0xff] }
  0x5c   :  { %930 = vrot.lane.b32.xlu0 %v335_v15, %s4380_s29  ;;  %v384_v9 = vld [vmem:[#allocation2 + $0x22] sm:$0xff]  ;;  %v386_v13 = vld [vmem:[#allocation2 + $0x3a] sm:$0xff]  ;;  %v387_v15 = vld [vmem:[#allocation2 + $0x4a] sm:$0xff] }
  0x5f   :  { %928 = vrot.lane.b32.xlu1 %v334_v12, %s4380_s29 }
  0x60   :  { %934 = vrot.lane.b32.xlu0 %v337_v17, %s4380_s29  ;;  %v388_v17 = vld [vmem:[#allocation2 + $0x52] sm:$0xff] }
  0x63   :  { %932 = vrot.lane.b32.xlu1 %v336_v16, %s4380_s29 }
  0x64   :  { %938 = vrot.lane.b32.xlu0 %v339_v19, %s4380_s29  ;;  %v389_v19 = vld [vmem:[#allocation2 + $0x62] sm:$0xff] }
  0x67   :  { %936 = vrot.lane.b32.xlu1 %v338_v18, %s4380_s29 }
  0x68   :  { %942 = vrot.lane.b32.xlu0 %v341_v21, %s4380_s29  ;;  %v390_v21 = vld [vmem:[#allocation2 + $0x6a] sm:$0xff] }
  0x6b   :  { %940 = vrot.lane.b32.xlu1 %v340_v20, %s4380_s29 }
  0x6c   :  { %946 = vrot.lane.b32.xlu0 %v343_v23, %s4380_s29  ;;  %v391_v23 = vld [vmem:[#allocation2 + $0x7a] sm:$0xff] }
  0x6f   :  { %944 = vrot.lane.b32.xlu1 %v342_v22, %s4380_s29 }
  0x70   :  { %950 = vrot.lane.b32.xlu0 %v345_v25, %s4380_s29  ;;  %v392_v25 = vld [vmem:[#allocation2 + $0x82] sm:$0xff] }
  0x73   :  { %948 = vrot.lane.b32.xlu1 %v344_v24, %s4380_s29 }
  0x74   :  { %954 = vrot.lane.b32.xlu0 %v347_v27, %s4380_s29  ;;  %v393_v27 = vld [vmem:[#allocation2 + $0x92] sm:$0xff] }
  0x77   :  { %952 = vrot.lane.b32.xlu1 %v346_v26, %s4380_s29 }
  0x78   :  { %958 = vrot.lane.b32.xlu0 %v349_v29, %s4380_s29  ;;  %v394_v29 = vld [vmem:[#allocation2 + $0x9a] sm:$0xff] }
  0x7b   :  { %956 = vrot.lane.b32.xlu1 %v348_v28, %s4380_s29 }
  0x7c   :  { %962 = vrot.lane.b32.xlu0 %v351_v31, %s4380_s29  ;;  %v395_v31 = vld [vmem:[#allocation2 + $0xaa] sm:$0xff] }
  0x7f   :  { %960 = vrot.lane.b32.xlu1 %v350_v30, %s4380_s29  ;;  %v4922_v56 = vpop.permute.xlu0 %894 }
  0x80   :  { %966 = vrot.lane.b32.xlu0 %v353_v33, %s4380_s29  ;;  %v396_v33 = vld [vmem:[#allocation2 + $0xb2] sm:$0xff] }
  0x83   :  { %964 = vrot.lane.b32.xlu1 %v352_v32, %s4380_s29 }
  0x84   :  { %970 = vrot.lane.b32.xlu0 %v355_v35, %s4380_s29  ;;  %v397_v35 = vld [vmem:[#allocation2 + $0xc2] sm:$0xff] }
  0x87   :  { %968 = vrot.lane.b32.xlu1 %v354_v34, %s4380_s29 }
  0x88   :  { %974 = vrot.lane.b32.xlu0 %v357_v37, %s4380_s29  ;;  %v398_v37 = vld [vmem:[#allocation2 + $0xca] sm:$0xff] }
  0x8b   :  { %972 = vrot.lane.b32.xlu1 %v356_v36, %s4380_s29 }
  0x8c   :  { %978 = vrot.lane.b32.xlu0 %v359_v39, %s4380_s29  ;;  %v399_v39 = vld [vmem:[#allocation2 + $0xda] sm:$0xff] }
  0x8f   :  { %976 = vrot.lane.b32.xlu1 %v358_v38, %s4380_s29 }
  0x90   :  { %982 = vrot.lane.b32.xlu0 %v361_v41, %s4380_s29  ;;  %v400_v41 = vld [vmem:[#allocation2 + $0xe2] sm:$0xff] }
  0x93   :  { %980 = vrot.lane.b32.xlu1 %v360_v40, %s4380_s29 }
  0x94   :  { %986 = vrot.lane.b32.xlu0 %v363_v43, %s4380_s29  ;;  %v401_v43 = vld [vmem:[#allocation2 + $0xf2] sm:$0xff] }
  0x97   :  { %984 = vrot.lane.b32.xlu1 %v362_v42, %s4380_s29 }
  0x98   :  { %990 = vrot.lane.b32.xlu0 %v365_v45, %s4380_s29  ;;  %v402_v45 = vld [vmem:[#allocation2 + $0xfa] sm:$0xff] }
  0x9b   :  { %988 = vrot.lane.b32.xlu1 %v364_v44, %s4380_s29 }
  0x9c   :  { %994 = vrot.lane.b32.xlu0 %v367_v47, %s4380_s29  ;;  %v403_v47 = vld [vmem:[#allocation2 + $0x10a] sm:$0xff] }
  0x9f   :  { %992 = vrot.lane.b32.xlu1 %v366_v46, %s4380_s29  ;;  %v4928_v60 = vpop.permute.xlu0 %896 }
  0xa0   :  { %998 = vrot.lane.b32.xlu0 %v369_v49, %s4380_s29  ;;  %v404_v49 = vld [vmem:[#allocation2 + $0x112] sm:$0xff] }
  0xa3   :  { %996 = vrot.lane.b32.xlu1 %v368_v48, %s4380_s29 }
  0xa4   :  { %1002 = vrot.lane.b32.xlu0 %v371_v51, %s4380_s29  ;;  %v405_v51 = vld [vmem:[#allocation2 + $0x122] sm:$0xff] }
  0xa7   :  { %1000 = vrot.lane.b32.xlu1 %v370_v50, %s4380_s29 }
  0xa8   :  { %1006 = vrot.lane.b32.xlu0 %v373_v53, %s4380_s29  ;;  %v406_v53 = vld [vmem:[#allocation2 + $0x12a] sm:$0xff] }
  0xab   :  { %1004 = vrot.lane.b32.xlu1 %v372_v52, %s4380_s29 }
  0xac   :  { %1010 = vrot.lane.b32.xlu0 %v375_v55, %s4380_s29  ;;  %v407_v55 = vld [vmem:[#allocation2 + $0x13a] sm:$0xff] }
  0xaf   :  { %1008 = vrot.lane.b32.xlu1 %v374_v54, %s4380_s29 }
  0xb0   :  { %1014 = vrot.lane.b32.xlu0 %v377_v59, %s4380_s29  ;;  %v408_v59 = vld [vmem:[#allocation2 + $0x142] sm:$0xff] }
  0xb1   :  { %v4924_v58 = vpop.permute.xlu1 %898 }
  0xb2   :  { %v4934_v0 = vpop.permute.xlu0 %902 }
  0xb3   :  { %1012 = vrot.lane.b32.xlu1 %v376_v57, %s4380_s29  ;;  %7459 = vst [vmem:[#allocation3_spill] sm:$0xff] %v4934_v0 }
  0xb4   :  { %1018 = vrot.lane.b32.xlu0 %v379_v63, %s4380_s29  ;;  %v154_v63 = vld [vmem:[%s7455_s0 + $0xf0] sm:$0xff] }
  0xb5   :  { %v4930_v62 = vpop.permute.xlu1 %900  ;;  %219 = vst.msk [vmem:[#allocation2 + $0x181] sm:$0xff] %vm14_vm0, %v154_v63  ;;  %v423_v63 = vld [vmem:[#allocation2 + $0x22a] sm:$0xff] }
  0xb6   :  { %v4940_v4 = vpop.permute.xlu0 %906 }
  0xb7   :  { %1016 = vrot.lane.b32.xlu1 %v378_v61, %s4380_s29  ;;  %7461 = vst [vmem:[#allocation5_spill] sm:$0xff] %v4940_v4 }
  0xb8   :  { %1150 = vrot.lane.b32.xlu0 %v381_v3, %s4381_s27  ;;  %v409_v3 = vld [vmem:[#allocation2 + $0x152] sm:$0xff] }
  0xb9   :  { %v4936_v2 = vpop.permute.xlu1 %904 }
  0xba   :  { %7460 = vst [vmem:[#allocation4_spill] sm:$0xff] %v4936_v2  ;;  %v4946_v8 = vpop.permute.xlu0 %910  ;;  %v5734_v2 = vld [vmem:[#allocation2 + $0x27a] sm:$0xff] }
  0xbb   :  { %1020 = vrot.lane.b32.xlu1 %v380_v1, %s4380_s29  ;;  %7463 = vst [vmem:[#allocation7_spill] sm:$0xff] %v4946_v8  ;;  %v155_v1 = vld [vmem:[%s7455_s0 + $0xf8] sm:$0xff] }
  0xbc   :  { %1154 = vrot.lane.b32.xlu0 %v383_v7, %s4381_s27  ;;  %220 = vst.msk [vmem:[#allocation2 + $0x189] sm:$0xff] %vm14_vm0, %v155_v1  ;;  %v410_v7 = vld [vmem:[#allocation2 + $0x15a] sm:$0xff] }
  0xbd   :  { %v4942_v6 = vpop.permute.xlu1 %908 }
  0xbe   :  { %7462 = vst [vmem:[#allocation6_spill] sm:$0xff] %v4942_v6  ;;  %v4952_v12 = vpop.permute.xlu0 %914 }
  0xbf   :  { %1152 = vrot.lane.b32.xlu1 %v382_v5, %s4381_s27  ;;  %7465 = vst [vmem:[#allocation9_spill] sm:$0xff] %v4952_v12 }
  0xc0   :  { %1158 = vrot.lane.b32.xlu0 %v385_v11, %s4381_s27  ;;  %v411_v11 = vld [vmem:[#allocation2 + $0x16a] sm:$0xff] }
  0xc1   :  { %v4948_v10 = vpop.permute.xlu1 %912 }
  0xc2   :  { %7464 = vst [vmem:[#allocation8_spill] sm:$0xff] %v4948_v10  ;;  %v4958_v16 = vpop.permute.xlu0 %918  ;;  %v548_v10 = vld [vmem:[#allocation2 + $0x219] sm:$0xff] }
  0xc3   :  { %1156 = vrot.lane.b32.xlu1 %v384_v9, %s4381_s27  ;;  %7467 = vst [vmem:[#allocation11_spill] sm:$0xff] %v4958_v16 }
  0xc4   :  { %1162 = vrot.lane.b32.xlu0 %v387_v15, %s4381_s27  ;;  %v412_v15 = vld [vmem:[#allocation2 + $0x172] sm:$0xff] }
  0xc5   :  { %v4954_v14 = vpop.permute.xlu1 %916 }
  0xc6   :  { %7466 = vst [vmem:[#allocation10_spill] sm:$0xff] %v4954_v14  ;;  %v4964_v20 = vpop.permute.xlu0 %922 }
  0xc7   :  { %1160 = vrot.lane.b32.xlu1 %v386_v13, %s4381_s27  ;;  %7469 = vst [vmem:[#allocation13_spill] sm:$0xff] %v4964_v20  ;;  %v296_v20 = vld [vmem:[#allocation2 + $0x230] sm:$0xff] }
  0xc8   :  { %1166 = vrot.lane.b32.xlu0 %v389_v19, %s4381_s27  ;;  %v413_v19 = vld [vmem:[#allocation2 + $0x1b2] sm:$0xff] }
  0xc9   :  { %v4960_v18 = vpop.permute.xlu1 %920 }
  0xca   :  { %7468 = vst [vmem:[#allocation12_spill] sm:$0xff] %v4960_v18  ;;  %v4970_v24 = vpop.permute.xlu0 %926 }
  0xcb   :  { %1164 = vrot.lane.b32.xlu1 %v388_v17, %s4381_s27  ;;  %7471 = vst [vmem:[#allocation15_spill] sm:$0xff] %v4970_v24  ;;  %v290_v24 = vld [vmem:[#allocation2 + $0x1e8] sm:$0xff] }
  0xcc   :  { %1170 = vrot.lane.b32.xlu0 %v391_v23, %s4381_s27  ;;  %v414_v23 = vld [vmem:[#allocation2 + $0x1ba] sm:$0xff] }
  0xcd   :  { %v4966_v22 = vpop.permute.xlu1 %924 }
  0xce   :  { %7470 = vst [vmem:[#allocation14_spill] sm:$0xff] %v4966_v22  ;;  %v4976_v28 = vpop.permute.xlu0 %930 }
  0xcf   :  { %1168 = vrot.lane.b32.xlu1 %v390_v21, %s4381_s27  ;;  %7473 = vst [vmem:[#allocation17_spill] sm:$0xff] %v4976_v28  ;;  %v270_v28 = vld [vmem:[#allocation2 + $0xc8] sm:$0xff] }
  0xd0   :  { %1174 = vrot.lane.b32.xlu0 %v393_v27, %s4381_s27  ;;  %v415_v27 = vld [vmem:[#allocation2 + $0x1ca] sm:$0xff] }
  0xd1   :  { %v4972_v26 = vpop.permute.xlu1 %928 }
  0xd2   :  { %7472 = vst [vmem:[#allocation16_spill] sm:$0xff] %v4972_v26  ;;  %v4982_v32 = vpop.permute.xlu0 %934 }
  0xd3   :  { %1172 = vrot.lane.b32.xlu1 %v392_v25, %s4381_s27  ;;  %7475 = vst [vmem:[#allocation19_spill] sm:$0xff] %v4982_v32  ;;  %v266_v32 = vld [vmem:[#allocation2 + $0x98] sm:$0xff] }
  0xd4   :  { %1178 = vrot.lane.b32.xlu0 %v395_v31, %s4381_s27  ;;  %v416_v31 = vld [vmem:[#allocation2 + $0x1d2] sm:$0xff] }
  0xd5   :  { %v4978_v30 = vpop.permute.xlu1 %932 }
  0xd6   :  { %7474 = vst [vmem:[#allocation18_spill] sm:$0xff] %v4978_v30  ;;  %v4988_v36 = vpop.permute.xlu0 %938  ;;  %v268_v30 = vld [vmem:[#allocation2 + $0xb0] sm:$0xff] }
  0xd7   :  { %1176 = vrot.lane.b32.xlu1 %v394_v29, %s4381_s27  ;;  %7477 = vst [vmem:[#allocation21_spill] sm:$0xff] %v4988_v36  ;;  %v262_v36 = vld [vmem:[#allocation2 + $0x68] sm:$0xff] }
  0xd8   :  { %1182 = vrot.lane.b32.xlu0 %v397_v35, %s4381_s27  ;;  %v417_v35 = vld [vmem:[#allocation2 + $0x1e2] sm:$0xff] }
  0xd9   :  { %v4984_v34 = vpop.permute.xlu1 %936 }
  0xda   :  { %7476 = vst [vmem:[#allocation20_spill] sm:$0xff] %v4984_v34  ;;  %v4994_v40 = vpop.permute.xlu0 %942  ;;  %v264_v34 = vld [vmem:[#allocation2 + $0x80] sm:$0xff] }
  0xdb   :  { %1180 = vrot.lane.b32.xlu1 %v396_v33, %s4381_s27  ;;  %7479 = vst [vmem:[#allocation23_spill] sm:$0xff] %v4994_v40  ;;  %v258_v40 = vld [vmem:[#allocation2 + $0x38] sm:$0xff] }
  0xdc   :  { %1186 = vrot.lane.b32.xlu0 %v399_v39, %s4381_s27  ;;  %v418_v39 = vld [vmem:[#allocation2 + $0x1ea] sm:$0xff] }
  0xdd   :  { %v4990_v38 = vpop.permute.xlu1 %940 }
  0xde   :  { %7478 = vst [vmem:[#allocation22_spill] sm:$0xff] %v4990_v38  ;;  %v5000_v44 = vpop.permute.xlu0 %946  ;;  %v260_v38 = vld [vmem:[#allocation2 + $0x50] sm:$0xff] }
  0xdf   :  { %1184 = vrot.lane.b32.xlu1 %v398_v37, %s4381_s27  ;;  %7481 = vst [vmem:[#allocation25_spill] sm:$0xff] %v5000_v44 }
  0xe0   :  { %1190 = vrot.lane.b32.xlu0 %v401_v43, %s4381_s27  ;;  %v419_v43 = vld [vmem:[#allocation2 + $0x1fa] sm:$0xff] }
  0xe1   :  { %v4996_v42 = vpop.permute.xlu1 %944 }
  0xe2   :  { %7480 = vst [vmem:[#allocation24_spill] sm:$0xff] %v4996_v42  ;;  %v5006_v48 = vpop.permute.xlu0 %950  ;;  %v256_v42 = vld [vmem:[#allocation2 + $0x20] sm:$0xff] }
  0xe3   :  { %1188 = vrot.lane.b32.xlu1 %v400_v41, %s4381_s27  ;;  %7483 = vst [vmem:[#allocation27_spill] sm:$0xff] %v5006_v48 }
  0xe4   :  { %1194 = vrot.lane.b32.xlu0 %v403_v47, %s4381_s27  ;;  %v420_v47 = vld [vmem:[#allocation2 + $0x202] sm:$0xff] }
  0xe5   :  { %v5002_v46 = vpop.permute.xlu1 %948 }
  0xe6   :  { %7482 = vst [vmem:[#allocation26_spill] sm:$0xff] %v5002_v46  ;;  %v5012_v52 = vpop.permute.xlu0 %954  ;;  %v438_v46 = vld [vmem:[#allocation2 + $0x2da] sm:$0xff] }
  0xe7   :  { %1192 = vrot.lane.b32.xlu1 %v402_v45, %s4381_s27  ;;  %7485 = vst [vmem:[#allocation29_spill] sm:$0xff] %v5012_v52 }
  0xe8   :  { %1198 = vrot.lane.b32.xlu0 %v405_v51, %s4381_s27  ;;  %v421_v51 = vld [vmem:[#allocation2 + $0x212] sm:$0xff] }
  0xe9   :  { %v5008_v50 = vpop.permute.xlu1 %952 }
  0xea   :  { %7484 = vst [vmem:[#allocation28_spill] sm:$0xff] %v5008_v50  ;;  %v5018_v57 = vpop.permute.xlu0 %958  ;;  %v436_v50 = vld [vmem:[#allocation2 + $0x2c2] sm:$0xff] }
  0xeb   :  { %1196 = vrot.lane.b32.xlu1 %v404_v49, %s4381_s27 }
  0xec   :  { %1202 = vrot.lane.b32.xlu0 %v407_v55, %s4381_s27  ;;  %v422_v55 = vld [vmem:[#allocation2 + $0x21a] sm:$0xff] }
  0xed   :  { %v5014_v54 = vpop.permute.xlu1 %956 }
  0xee   :  { %7486 = vst [vmem:[#allocation30_spill] sm:$0xff] %v5014_v54  ;;  %v5032_v5 = vpop.permute.xlu0 %962  ;;  %v434_v54 = vld [vmem:[#allocation2 + $0x2aa] sm:$0xff] }
  0xef   :  { %1200 = vrot.lane.b32.xlu1 %v406_v53, %s4381_s27 }
  0xf0   :  { %1206 = vrot.lane.b32.xlu0 %v409_v3, %s4381_s27  ;;  %v424_v3 = vld [vmem:[#allocation2 + $0x232] sm:$0xff] }
  0xf1   :  { %v5020_v61 = vpop.permute.xlu1 %960 }
  0xf2   :  { %v5038_v13 = vpop.permute.xlu0 %966 }
  0xf3   :  { %1204 = vrot.lane.b32.xlu1 %v408_v59, %s4381_s27  ;;  %7487 = vst [vmem:[#allocation31_spill] sm:$0xff] %v5038_v13  ;;  %v625_v13 = vld [vmem:[#allocation2 + $0x2ba] sm:$0xff] }
  0xf4   :  { %1210 = vrot.lane.b32.xlu0 %v411_v11, %s4381_s27  ;;  %v425_v11 = vld [vmem:[#allocation2 + $0x242] sm:$0xff] }
  0xf5   :  { %v5034_v9 = vpop.permute.xlu1 %964 }
  0xf6   :  { %v5044_v21 = vpop.permute.xlu0 %970 }
  0xf7   :  { %1208 = vrot.lane.b32.xlu1 %v410_v7, %s4381_s27  ;;  %7489 = vst [vmem:[#allocation33_spill] sm:$0xff] %v5044_v21  ;;  %v606_v21 = vld [vmem:[#allocation2 + $0x1d2] sm:$0xff] }
  0xf8   :  { %1214 = vrot.lane.b32.xlu0 %v413_v19, %s4381_s27  ;;  %v426_v19 = vld [vmem:[#allocation2 + $0x24a] sm:$0xff] }
  0xf9   :  { %v5040_v17 = vpop.permute.xlu1 %968 }
  0xfa   :  { %7488 = vst [vmem:[#allocation32_spill] sm:$0xff] %v5040_v17  ;;  %v5050_v29 = vpop.permute.xlu0 %974  ;;  %v5722_v17 = vld [vmem:[#allocation2 + $0x262] sm:$0xff] }
  0xfb   :  { %1212 = vrot.lane.b32.xlu1 %v412_v15, %s4381_s27  ;;  %7491 = vst [vmem:[#allocation35_spill] sm:$0xff] %v5050_v29  ;;  %v5542_v29 = vld [vmem:[#allocation2 + $0x3a] sm:$0xff] }
  0xfc   :  { %1218 = vrot.lane.b32.xlu0 %v415_v27, %s4381_s27  ;;  %v427_v27 = vld [vmem:[#allocation2 + $0x25a] sm:$0xff] }
  0xfd   :  { %v5046_v25 = vpop.permute.xlu1 %972 }
  0xfe   :  { %7490 = vst [vmem:[#allocation34_spill] sm:$0xff] %v5046_v25  ;;  %v5056_v37 = vpop.permute.xlu0 %978 }
  0xff   :  { %1216 = vrot.lane.b32.xlu1 %v414_v23, %s4381_s27  ;;  %7493 = vst [vmem:[#allocation37_spill] sm:$0xff] %v5056_v37  ;;  %v542_v37 = vld [vmem:[#allocation2 + $0x1d1] sm:$0xff] }
 0x100   :  { %1222 = vrot.lane.b32.xlu0 %v417_v35, %s4381_s27  ;;  %v428_v35 = vld [vmem:[#allocation2 + $0x262] sm:$0xff] }
 0x101   :  { %v5052_v33 = vpop.permute.xlu1 %976 }
 0x102   :  { %7492 = vst [vmem:[#allocation36_spill] sm:$0xff] %v5052_v33  ;;  %v5062_v45 = vpop.permute.xlu0 %982 }
 0x103   :  { %1220 = vrot.lane.b32.xlu1 %v416_v31, %s4381_s27  ;;  %7495 = vst [vmem:[#allocation39_spill] sm:$0xff] %v5062_v45  ;;  %v512_v45 = vld [vmem:[#allocation2 + $0x39] sm:$0xff] }
 0x104   :  { %1226 = vrot.lane.b32.xlu0 %v419_v43, %s4381_s27  ;;  %v429_v43 = vld [vmem:[#allocation2 + $0x272] sm:$0xff] }
 0x105   :  { %v5058_v41 = vpop.permute.xlu1 %980 }
 0x106   :  { %7494 = vst [vmem:[#allocation38_spill] sm:$0xff] %v5058_v41  ;;  %v5068_v53 = vpop.permute.xlu0 %986  ;;  %v516_v41 = vld [vmem:[#allocation2 + $0x69] sm:$0xff] }
 0x107   :  { %1224 = vrot.lane.b32.xlu1 %v418_v39, %s4381_s27  ;;  %7497 = vst [vmem:[#allocation41_spill] sm:$0xff] %v5068_v53 }
 0x108   :  { %1230 = vrot.lane.b32.xlu0 %v421_v51, %s4381_s27  ;;  %v430_v51 = vld [vmem:[#allocation2 + $0x27a] sm:$0xff] }
 0x109   :  { %v5064_v49 = vpop.permute.xlu1 %984 }
 0x10a   :  { %7496 = vst [vmem:[#allocation40_spill] sm:$0xff] %v5064_v49  ;;  %v5074_v1 = vpop.permute.xlu0 %990 }
 0x10b   :  { %1228 = vrot.lane.b32.xlu1 %v420_v47, %s4381_s27  ;;  %7499 = vst [vmem:[#allocation43_spill] sm:$0xff] %v5074_v1 }
 0x10c   :  { %1234 = vrot.lane.b32.xlu0 %v423_v63, %s4381_s27  ;;  %v431_v63 = vld [vmem:[#allocation2 + $0x28a] sm:$0xff] }
 0x10d   :  { %v5070_v59 = vpop.permute.xlu1 %988 }
 0x10e   :  { %7498 = vst [vmem:[#allocation42_spill] sm:$0xff] %v5070_v59  ;;  %v5080_v15 = vpop.permute.xlu0 %994  ;;  %v292_v59 = vld [vmem:[#allocation2 + $0x200] sm:$0xff] }
 0x10f   :  { %1232 = vrot.lane.b32.xlu1 %v422_v55, %s4381_s27  ;;  %7501 = vst [vmem:[#allocation45_spill] sm:$0xff] %v5080_v15 }
 0x110   :  { %1238 = vrot.lane.b32.xlu0 %v425_v11, %s4381_s27  ;;  %v432_v11 = vld [vmem:[#allocation2 + $0x292] sm:$0xff] }
 0x111   :  { %v5076_v7 = vpop.permute.xlu1 %992 }
 0x112   :  { %7500 = vst [vmem:[#allocation44_spill] sm:$0xff] %v5076_v7  ;;  %v5086_v31 = vpop.permute.xlu0 %998 }
 0x113   :  { %1236 = vrot.lane.b32.xlu1 %v424_v3, %s4381_s27  ;;  %7503 = vst [vmem:[#allocation47_spill] sm:$0xff] %v5086_v31 }
 0x114   :  { %1242 = vrot.lane.b32.xlu0 %v427_v27, %s4381_s27  ;;  %v433_v27 = vld [vmem:[#allocation2 + $0x2a2] sm:$0xff] }
 0x115   :  { %v5082_v23 = vpop.permute.xlu1 %996 }
 0x116   :  { %7502 = vst [vmem:[#allocation46_spill] sm:$0xff] %v5082_v23  ;;  %v5092_v47 = vpop.permute.xlu0 %1002 }
 0x117   :  { %1240 = vrot.lane.b32.xlu1 %v426_v19, %s4381_s27  ;;  %7505 = vst [vmem:[#allocation49_spill] sm:$0xff] %v5092_v47 }
 0x118   :  { %1246 = vrot.lane.b32.xlu0 %v429_v43, %s4381_s27  ;;  %v435_v43 = vld [vmem:[#allocation2 + $0x2ba] sm:$0xff] }
 0x119   :  { %v5088_v39 = vpop.permute.xlu1 %1000 }
 0x11a   :  { %7504 = vst [vmem:[#allocation48_spill] sm:$0xff] %v5088_v39  ;;  %v5098_v3 = vpop.permute.xlu0 %1006 }
 0x11b   :  { %1244 = vrot.lane.b32.xlu1 %v428_v35, %s4381_s27  ;;  %7507 = vst [vmem:[#allocation51_spill] sm:$0xff] %v5098_v3 }
 0x11c   :  { %1250 = vrot.lane.b32.xlu0 %v431_v63, %s4381_s27  ;;  %v437_v63 = vld [vmem:[#allocation2 + $0x2d2] sm:$0xff] }
 0x11d   :  { %v5094_v55 = vpop.permute.xlu1 %1004 }
 0x11e   :  { %7506 = vst [vmem:[#allocation50_spill] sm:$0xff] %v5094_v55  ;;  %v5104_v35 = vpop.permute.xlu0 %1010 }
 0x11f   :  { %1248 = vrot.lane.b32.xlu1 %v430_v51, %s4381_s27  ;;  %7509 = vst [vmem:[#allocation53_spill] sm:$0xff] %v5104_v35 }
 0x120   :  { %1254 = vrot.lane.b32.xlu0 %v433_v27, %s4381_s27 }
 0x121   :  { %v5100_v19 = vpop.permute.xlu1 %1008 }
 0x122   :  { %7508 = vst [vmem:[#allocation52_spill] sm:$0xff] %v5100_v19  ;;  %v5110_v51 = vpop.permute.xlu0 %1014 }
 0x123   :  { %1252 = vrot.lane.b32.xlu1 %v432_v11, %s4381_s27  ;;  %7511 = vst [vmem:[#allocation55_spill] sm:$0xff] %v5110_v51  ;;  %v440_v51 = vld [vmem:[#allocation2 + $0x2f2] sm:$0xff] }
 0x124   :  { %1258 = vrot.lane.b32.xlu0 %v435_v43, %s4381_s27  ;;  %v187_v43 = vld [vmem:[%s7455_s0 + $0x1f8] sm:$0xff] }
 0x125   :  { %v5106_v52 = vpop.permute.xlu1 %1012  ;;  %252 = vst.msk [vmem:[#allocation2 + $0x339] sm:$0xff] %vm14_vm0, %v187_v43  ;;  %v255_v43 = vld [vmem:[#allocation2 + $0x18] sm:$0xff] }
 0x126   :  { %7510 = vst [vmem:[#allocation54_spill] sm:$0xff] %v5106_v52  ;;  %v5116_v11 = vpop.permute.xlu0 %1018 }
 0x127   :  { %1256 = vrot.lane.b32.xlu1 %v434_v54, %s4381_s27  ;;  %7513 = vst [vmem:[#allocation57_spill] sm:$0xff] %v5116_v11  ;;  %v439_v54 = vld [vmem:[#allocation2 + $0x2ea] sm:$0xff] }
 0x128   :  { %1262 = vrot.lane.b32.xlu0 %v437_v63, %s4381_s27 }
 0x129   :  { %v5112_v48 = vpop.permute.xlu1 %1016 }
 0x12a   :  { %7512 = vst [vmem:[#allocation56_spill] sm:$0xff] %v5112_v48  ;;  %v5122_v27 = vpop.permute.xlu0 %1150  ;;  %v444_v48 = vld [vmem:[#allocation2 + $0x322] sm:$0xff] }
 0x12b   :  { %1260 = vrot.lane.b32.xlu1 %v436_v50, %s4381_s27  ;;  %v186_v50 = vld [vmem:[%s7455_s0 + $0x1f0] sm:$0xff]  ;;  %s4382_s0 = smov 12  }
 0x12c   :  { %1266 = vrot.lane.b32.xlu0 %v439_v54, %s4381_s27  ;;  %251 = vst.msk [vmem:[#allocation2 + $0x331] sm:$0xff] %vm14_vm0, %v186_v50  ;;  %v443_v54 = vld [vmem:[#allocation2 + $0x31a] sm:$0xff] }
 0x12d   :  { %v5118_v35 = vpop.permute.xlu1 %1020 }
 0x12e   :  { %7514 = vst [vmem:[#allocation58_spill] sm:$0xff] %v5118_v35  ;;  %v5136_v63 = vpop.permute.xlu0 %1154  ;;  %v442_v35 = vld [vmem:[#allocation2 + $0x30a] sm:$0xff] }
 0x12f   :  { %1264 = vrot.lane.b32.xlu1 %v438_v46, %s4381_s27  ;;  %v441_v46 = vld [vmem:[#allocation2 + $0x302] sm:$0xff] }
 0x130   :  { %1270 = vrot.lane.b32.xlu0 %v441_v46, %s4381_s27  ;;  %v257_v46 = vld [vmem:[#allocation2 + $0x30] sm:$0xff] }
 0x131   :  { %v5124_v52 = vpop.permute.xlu1 %1152 }
 0x132   :  { %v5142_v50 = vpop.permute.xlu0 %1158 }
 0x133   :  { %1268 = vrot.lane.b32.xlu1 %v440_v51, %s4381_s27  ;;  %7515 = vst [vmem:[#allocation59_spill] sm:$0xff] %v5142_v50  ;;  %v508_v49 = vld [vmem:[#allocation2 + $0x338] sm:$0xff] }
 0x134   :  { %1274 = vrot.lane.b32.xlu0 %v443_v54, %s4381_s27  ;;  %v259_v54 = vld [vmem:[#allocation2 + $0x48] sm:$0xff] }
 0x135   :  { %v5138_v11 = vpop.permute.xlu1 %1156 }
 0x136   :  { %v5148_v51 = vpop.permute.xlu0 %1162 }
 0x137   :  { %1272 = vrot.lane.b32.xlu1 %v442_v35, %s4381_s27  ;;  %7517 = vst [vmem:[#allocation61_spill] sm:$0xff] %v5148_v51 }
 0x138   :  { %1406 = vrot.lane.b32.xlu0 %v255_v43, %s4382_s0  ;;  %v261_v43 = vld [vmem:[#allocation2 + $0x60] sm:$0xff] }
 0x139   :  { %v5144_v44 = vpop.permute.xlu1 %1160 }
 0x13a   :  { %7516 = vst [vmem:[#allocation60_spill] sm:$0xff] %v5144_v44  ;;  %v5154_v35 = vpop.permute.xlu0 %1166 }
 0x13b   :  { %1276 = vrot.lane.b32.xlu1 %v444_v48, %s4381_s27  ;;  %7519 = vst [vmem:[#allocation63_spill] sm:$0xff] %v5154_v35 }
 0x13c   :  { %1410 = vrot.lane.b32.xlu0 %v257_v46, %s4382_s0  ;;  %v263_v46 = vld [vmem:[#allocation2 + $0x78] sm:$0xff] }
 0x13d   :  { %v5150_v19 = vpop.permute.xlu1 %1164 }
 0x13e   :  { %7518 = vst [vmem:[#allocation62_spill] sm:$0xff] %v5150_v19  ;;  %v5160_v48 = vpop.permute.xlu0 %1170  ;;  %v584_v19 = vld [vmem:[#allocation2 + $0x9a] sm:$0xff] }
 0x13f   :  { %1408 = vrot.lane.b32.xlu1 %v256_v42, %s4382_s0  ;;  %7521 = vst [vmem:[#allocation65_spill] sm:$0xff] %v5160_v48 }
 0x140   :  { %1414 = vrot.lane.b32.xlu0 %v259_v54, %s4382_s0  ;;  %v265_v54 = vld [vmem:[#allocation2 + $0x90] sm:$0xff] }
 0x141   :  { %v5156_v3 = vpop.permute.xlu1 %1168 }
 0x142   :  { %7520 = vst [vmem:[#allocation64_spill] sm:$0xff] %v5156_v3  ;;  %v5166_v42 = vpop.permute.xlu0 %1174  ;;  %v546_v3 = vld [vmem:[#allocation2 + $0x201] sm:$0xff] }
 0x143   :  { %1412 = vrot.lane.b32.xlu1 %v258_v40, %s4382_s0  ;;  %7523 = vst [vmem:[#allocation67_spill] sm:$0xff] %v5166_v42 }
 0x144   :  { %1418 = vrot.lane.b32.xlu0 %v261_v43, %s4382_s0  ;;  %v267_v43 = vld [vmem:[#allocation2 + $0xa8] sm:$0xff] }
 0x145   :  { %v5162_v55 = vpop.permute.xlu1 %1172 }
 0x146   :  { %7522 = vst [vmem:[#allocation66_spill] sm:$0xff] %v5162_v55  ;;  %v5172_v40 = vpop.permute.xlu0 %1178 }
 0x147   :  { %1416 = vrot.lane.b32.xlu1 %v260_v38, %s4382_s0  ;;  %7525 = vst [vmem:[#allocation69_spill] sm:$0xff] %v5172_v40  ;;  %v294_v40 = vld [vmem:[#allocation2 + $0x218] sm:$0xff] }
 0x148   :  { %1422 = vrot.lane.b32.xlu0 %v263_v46, %s4382_s0  ;;  %v269_v46 = vld [vmem:[#allocation2 + $0xc0] sm:$0xff] }
 0x149   :  { %v5168_v47 = vpop.permute.xlu1 %1176 }
 0x14a   :  { %7524 = vst [vmem:[#allocation68_spill] sm:$0xff] %v5168_v47  ;;  %v5178_v38 = vpop.permute.xlu0 %1182 }
 0x14b   :  { %1420 = vrot.lane.b32.xlu1 %v262_v36, %s4382_s0  ;;  %7527 = vst [vmem:[#allocation71_spill] sm:$0xff] %v5178_v38  ;;  %v288_v38 = vld [vmem:[#allocation2 + $0x1d0] sm:$0xff] }
 0x14c   :  { %1426 = vrot.lane.b32.xlu0 %v265_v54, %s4382_s0  ;;  %v271_v54 = vld [vmem:[#allocation2 + $0xd8] sm:$0xff] }
 0x14d   :  { %v5174_v39 = vpop.permute.xlu1 %1180 }
 0x14e   :  { %7526 = vst [vmem:[#allocation70_spill] sm:$0xff] %v5174_v39  ;;  %v5184_v36 = vpop.permute.xlu0 %1186 }
 0x14f   :  { %1424 = vrot.lane.b32.xlu1 %v264_v34, %s4382_s0  ;;  %7529 = vst [vmem:[#allocation73_spill] sm:$0xff] %v5184_v36 }
 0x150   :  { %1430 = vrot.lane.b32.xlu0 %v267_v43, %s4382_s0  ;;  %v273_v43 = vld [vmem:[#allocation2 + $0xf0] sm:$0xff] }
 0x151   :  { %v5180_v31 = vpop.permute.xlu1 %1184 }
 0x152   :  { %7528 = vst [vmem:[#allocation72_spill] sm:$0xff] %v5180_v31  ;;  %v5190_v34 = vpop.permute.xlu0 %1190  ;;  %v476_v31 = vld [vmem:[#allocation2 + $0x188] sm:$0xff] }
 0x153   :  { %1428 = vrot.lane.b32.xlu1 %v266_v32, %s4382_s0  ;;  %7531 = vst [vmem:[#allocation75_spill] sm:$0xff] %v5190_v34 }
 0x154   :  { %1434 = vrot.lane.b32.xlu0 %v269_v46, %s4382_s0  ;;  %v275_v46 = vld [vmem:[#allocation2 + $0x108] sm:$0xff] }
 0x155   :  { %v5186_v23 = vpop.permute.xlu1 %1188 }
 0x156   :  { %7530 = vst [vmem:[#allocation74_spill] sm:$0xff] %v5186_v23  ;;  %v5196_v32 = vpop.permute.xlu0 %1194  ;;  %v272_v23 = vld [vmem:[#allocation2 + $0xe0] sm:$0xff] }
 0x157   :  { %1432 = vrot.lane.b32.xlu1 %v268_v30, %s4382_s0  ;;  %7533 = vst [vmem:[#allocation77_spill] sm:$0xff] %v5196_v32 }
 0x158   :  { %1438 = vrot.lane.b32.xlu0 %v271_v54, %s4382_s0  ;;  %v277_v54 = vld [vmem:[#allocation2 + $0x120] sm:$0xff] }
 0x159   :  { %v5192_v15 = vpop.permute.xlu1 %1192 }
 0x15a   :  { %7532 = vst [vmem:[#allocation76_spill] sm:$0xff] %v5192_v15  ;;  %v5202_v30 = vpop.permute.xlu0 %1198  ;;  %v274_v15 = vld [vmem:[#allocation2 + $0xf8] sm:$0xff] }
 0x15b   :  { %1436 = vrot.lane.b32.xlu1 %v270_v28, %s4382_s0  ;;  %7535 = vst [vmem:[#allocation79_spill] sm:$0xff] %v5202_v30 }
 0x15c   :  { %1442 = vrot.lane.b32.xlu0 %v273_v43, %s4382_s0  ;;  %v279_v43 = vld [vmem:[#allocation2 + $0x138] sm:$0xff] }
 0x15d   :  { %v5198_v36 = vpop.permute.xlu1 %1196 }
 0x15e   :  { %7534 = vst [vmem:[#allocation78_spill] sm:$0xff] %v5198_v36  ;;  %v5208_v28 = vpop.permute.xlu0 %1202  ;;  %v276_v36 = vld [vmem:[#allocation2 + $0x110] sm:$0xff] }
 0x15f   :  { %1440 = vrot.lane.b32.xlu1 %v272_v23, %s4382_s0  ;;  %7537 = vst [vmem:[#allocation81_spill] sm:$0xff] %v5208_v28 }
 0x160   :  { %1446 = vrot.lane.b32.xlu0 %v275_v46, %s4382_s0  ;;  %v281_v46 = vld [vmem:[#allocation2 + $0x150] sm:$0xff] }
 0x161   :  { %v5204_v34 = vpop.permute.xlu1 %1200 }
 0x162   :  { %7536 = vst [vmem:[#allocation80_spill] sm:$0xff] %v5204_v34  ;;  %v5214_v23 = vpop.permute.xlu0 %1206  ;;  %v278_v34 = vld [vmem:[#allocation2 + $0x128] sm:$0xff] }
 0x163   :  { %1444 = vrot.lane.b32.xlu1 %v274_v15, %s4382_s0  ;;  %7539 = vst [vmem:[#allocation83_spill] sm:$0xff] %v5214_v23 }
 0x164   :  { %1450 = vrot.lane.b32.xlu0 %v277_v54, %s4382_s0  ;;  %v283_v54 = vld [vmem:[#allocation2 + $0x168] sm:$0xff] }
 0x165   :  { %v5210_v32 = vpop.permute.xlu1 %1204 }
 0x166   :  { %7538 = vst [vmem:[#allocation82_spill] sm:$0xff] %v5210_v32  ;;  %v5220_v15 = vpop.permute.xlu0 %1210  ;;  %v280_v32 = vld [vmem:[#allocation2 + $0x140] sm:$0xff] }
 0x167   :  { %1448 = vrot.lane.b32.xlu1 %v276_v36, %s4382_s0  ;;  %7541 = vst [vmem:[#allocation85_spill] sm:$0xff] %v5220_v15 }
 0x168   :  { %1454 = vrot.lane.b32.xlu0 %v279_v43, %s4382_s0 }
 0x169   :  { %v5216_v30 = vpop.permute.xlu1 %1208 }
 0x16a   :  { %7540 = vst [vmem:[#allocation84_spill] sm:$0xff] %v5216_v30  ;;  %v5226_v36 = vpop.permute.xlu0 %1214  ;;  %v282_v30 = vld [vmem:[#allocation2 + $0x158] sm:$0xff] }
 0x16b   :  { %1452 = vrot.lane.b32.xlu1 %v278_v34, %s4382_s0 }
 0x16c   :  { %1458 = vrot.lane.b32.xlu0 %v281_v46, %s4382_s0  ;;  %v287_v46 = vld [vmem:[#allocation2 + $0x1c8] sm:$0xff] }
 0x16d   :  { %v5222_v28 = vpop.permute.xlu1 %1212 }
 0x16e   :  { %7542 = vst [vmem:[#allocation86_spill] sm:$0xff] %v5222_v28  ;;  %v5232_v34 = vpop.permute.xlu0 %1218  ;;  %v284_v28 = vld [vmem:[#allocation2 + $0x170] sm:$0xff] }
 0x16f   :  { %1456 = vrot.lane.b32.xlu1 %v280_v32, %s4382_s0  ;;  %v475_v32 = vld [vmem:[#allocation2 + $0x180] sm:$0xff] }
 0x170   :  { %1462 = vrot.lane.b32.xlu0 %v283_v54, %s4382_s0  ;;  %v289_v54 = vld [vmem:[#allocation2 + $0x1e0] sm:$0xff] }
 0x171   :  { %v5228_v23 = vpop.permute.xlu1 %1216 }
 0x172   :  { %v5238_v43 = vpop.permute.xlu0 %1222 }
 0x173   :  { %1460 = vrot.lane.b32.xlu1 %v282_v30, %s4382_s0  ;;  %7544 = vst [vmem:[#allocation88_spill] sm:$0xff] %v5238_v43 }
 0x174   :  { %1466 = vrot.lane.b32.xlu0 %v475_v32, %s4382_s0  ;;  %v291_v32 = vld [vmem:[#allocation2 + $0x1f8] sm:$0xff] }
 0x175   :  { %v5234_v15 = vpop.permute.xlu1 %1220 }
 0x176   :  { %7543 = vst [vmem:[#allocation87_spill] sm:$0xff] %v5234_v15  ;;  %v5244_v30 = vpop.permute.xlu0 %1226 }
 0x177   :  { %1464 = vrot.lane.b32.xlu1 %v284_v28, %s4382_s0  ;;  %7546 = vst [vmem:[#allocation90_spill] sm:$0xff] %v5244_v30 }
 0x178   :  { %1470 = vrot.lane.b32.xlu0 %v287_v46, %s4382_s0  ;;  %v293_v46 = vld [vmem:[#allocation2 + $0x210] sm:$0xff] }
 0x179   :  { %v5240_v7 = vpop.permute.xlu1 %1224 }
 0x17a   :  { %7545 = vst [vmem:[#allocation89_spill] sm:$0xff] %v5240_v7  ;;  %v5250_v28 = vpop.permute.xlu0 %1230  ;;  %v5710_v7 = vld [vmem:[#allocation2 + $0x24a] sm:$0xff] }
 0x17b   :  { %1468 = vrot.lane.b32.xlu1 %v476_v31, %s4382_s0  ;;  %7548 = vst [vmem:[#allocation92_spill] sm:$0xff] %v5250_v28  ;;  %v574_v28 = vld [vmem:[#allocation2 + $0x22] sm:$0xff] }
 0x17c   :  { %1474 = vrot.lane.b32.xlu0 %v289_v54, %s4382_s0  ;;  %v295_v54 = vld [vmem:[#allocation2 + $0x228] sm:$0xff] }
 0x17d   :  { %v5246_v26 = vpop.permute.xlu1 %1228 }
 0x17e   :  { %7547 = vst [vmem:[#allocation91_spill] sm:$0xff] %v5246_v26  ;;  %v5256_v31 = vpop.permute.xlu0 %1234 }
 0x17f   :  { %1472 = vrot.lane.b32.xlu1 %v288_v38, %s4382_s0  ;;  %7550 = vst [vmem:[#allocation94_spill] sm:$0xff] %v5256_v31 }
 0x180   :  { %1478 = vrot.lane.b32.xlu0 %v291_v32, %s4382_s0  ;;  %v297_v32 = vld [vmem:[#allocation2 + $0x240] sm:$0xff] }
 0x181   :  { %v5252_v1 = vpop.permute.xlu1 %1232 }
 0x182   :  { %7549 = vst [vmem:[#allocation93_spill] sm:$0xff] %v5252_v1  ;;  %v5262_v38 = vpop.permute.xlu0 %1238 }
 0x183   :  { %1476 = vrot.lane.b32.xlu1 %v290_v24, %s4382_s0  ;;  %7552 = vst [vmem:[#allocation96_spill] sm:$0xff] %v5262_v38  ;;  %v510_v38 = vld [vmem:[#allocation2 + $0x21] sm:$0xff] }
 0x184   :  { %1482 = vrot.lane.b32.xlu0 %v293_v46, %s4382_s0  ;;  %v299_v46 = vld [vmem:[#allocation2 + $0x258] sm:$0xff] }
 0x185   :  { %v5258_v39 = vpop.permute.xlu1 %1236 }
 0x186   :  { %7551 = vst [vmem:[#allocation95_spill] sm:$0xff] %v5258_v39  ;;  %v5268_v24 = vpop.permute.xlu0 %1242  ;;  %v514_v39 = vld [vmem:[#allocation2 + $0x51] sm:$0xff] }
 0x187   :  { %1480 = vrot.lane.b32.xlu1 %v292_v59, %s4382_s0  ;;  %7554 = vst [vmem:[#allocation98_spill] sm:$0xff] %v5268_v24 }
 0x188   :  { %1486 = vrot.lane.b32.xlu0 %v295_v54, %s4382_s0  ;;  %v301_v54 = vld [vmem:[#allocation2 + $0x270] sm:$0xff] }
 0x189   :  { %v5264_v22 = vpop.permute.xlu1 %1240 }
 0x18a   :  { %7553 = vst [vmem:[#allocation97_spill] sm:$0xff] %v5264_v22  ;;  %v5274_v59 = vpop.permute.xlu0 %1246  ;;  %v298_v22 = vld [vmem:[#allocation2 + $0x248] sm:$0xff] }
 0x18b   :  { %1484 = vrot.lane.b32.xlu1 %v294_v40, %s4382_s0  ;;  %7556 = vst [vmem:[#allocation100_spill] sm:$0xff] %v5274_v59 }
 0x18c   :  { %1490 = vrot.lane.b32.xlu0 %v297_v32, %s4382_s0  ;;  %v303_v32 = vld [vmem:[#allocation2 + $0x288] sm:$0xff] }
 0x18d   :  { %v5270_v53 = vpop.permute.xlu1 %1244 }
 0x18e   :  { %7555 = vst [vmem:[#allocation99_spill] sm:$0xff] %v5270_v53  ;;  %v5280_v40 = vpop.permute.xlu0 %1250  ;;  %v300_v53 = vld [vmem:[#allocation2 + $0x260] sm:$0xff] }
 0x18f   :  { %1488 = vrot.lane.b32.xlu1 %v296_v20, %s4382_s0  ;;  %7558 = vst [vmem:[#allocation102_spill] sm:$0xff] %v5280_v40 }
 0x190   :  { %1494 = vrot.lane.b32.xlu0 %v299_v46, %s4382_s0  ;;  %v305_v46 = vld [vmem:[#allocation2 + $0x2a0] sm:$0xff] }
 0x191   :  { %v5276_v47 = vpop.permute.xlu1 %1248 }
 0x192   :  { %7557 = vst [vmem:[#allocation101_spill] sm:$0xff] %v5276_v47  ;;  %v5286_v20 = vpop.permute.xlu0 %1254  ;;  %v302_v47 = vld [vmem:[#allocation2 + $0x278] sm:$0xff] }
 0x193   :  { %1492 = vrot.lane.b32.xlu1 %v298_v22, %s4382_s0  ;;  %7560 = vst [vmem:[#allocation104_spill] sm:$0xff] %v5286_v20 }
 0x194   :  { %1498 = vrot.lane.b32.xlu0 %v301_v54, %s4382_s0  ;;  %v307_v54 = vld [vmem:[#allocation2 + $0x2b8] sm:$0xff] }
 0x195   :  { %v5282_v24 = vpop.permute.xlu1 %1252 }
 0x196   :  { %7559 = vst [vmem:[#allocation103_spill] sm:$0xff] %v5282_v24  ;;  %v5292_v22 = vpop.permute.xlu0 %1258  ;;  %v304_v24 = vld [vmem:[#allocation2 + $0x290] sm:$0xff] }
 0x197   :  { %1496 = vrot.lane.b32.xlu1 %v300_v53, %s4382_s0  ;;  %7562 = vst [vmem:[#allocation106_spill] sm:$0xff] %v5292_v22 }
 0x198   :  { %1502 = vrot.lane.b32.xlu0 %v303_v32, %s4382_s0  ;;  %v309_v32 = vld [vmem:[#allocation2 + $0x2d0] sm:$0xff] }
 0x199   :  { %v5288_v59 = vpop.permute.xlu1 %1256 }
 0x19a   :  { %7561 = vst [vmem:[#allocation105_spill] sm:$0xff] %v5288_v59  ;;  %v5298_v53 = vpop.permute.xlu0 %1262  ;;  %v306_v59 = vld [vmem:[#allocation2 + $0x2a8] sm:$0xff] }
 0x19b   :  { %1500 = vrot.lane.b32.xlu1 %v302_v47, %s4382_s0  ;;  %7564 = vst [vmem:[#allocation108_spill] sm:$0xff] %v5298_v53 }
 0x19c   :  { %1506 = vrot.lane.b32.xlu0 %v305_v46, %s4382_s0  ;;  %v311_v46 = vld [vmem:[#allocation2 + $0x2e8] sm:$0xff] }
 0x19d   :  { %v5294_v40 = vpop.permute.xlu1 %1260 }
 0x19e   :  { %7563 = vst [vmem:[#allocation107_spill] sm:$0xff] %v5294_v40  ;;  %v5304_v47 = vpop.permute.xlu0 %1266  ;;  %v308_v40 = vld [vmem:[#allocation2 + $0x2c0] sm:$0xff] }
 0x19f   :  { %1504 = vrot.lane.b32.xlu1 %v304_v24, %s4382_s0  ;;  %7566 = vst [vmem:[#allocation110_spill] sm:$0xff] %v5304_v47 }
 0x1a0   :  { %1510 = vrot.lane.b32.xlu0 %v307_v54, %s4382_s0  ;;  %v313_v54 = vld [vmem:[#allocation2 + $0x300] sm:$0xff] }
 0x1a1   :  { %v5300_v20 = vpop.permute.xlu1 %1264 }
 0x1a2   :  { %7565 = vst [vmem:[#allocation109_spill] sm:$0xff] %v5300_v20  ;;  %v5310_v24 = vpop.permute.xlu0 %1270  ;;  %v310_v20 = vld [vmem:[#allocation2 + $0x2d8] sm:$0xff] }
 0x1a3   :  { %1508 = vrot.lane.b32.xlu1 %v306_v59, %s4382_s0  ;;  %7568 = vst [vmem:[#allocation112_spill] sm:$0xff] %v5310_v24 }
 0x1a4   :  { %1514 = vrot.lane.b32.xlu0 %v309_v32, %s4382_s0  ;;  %v315_v32 = vld [vmem:[#allocation2 + $0x318] sm:$0xff] }
 0x1a5   :  { %v5306_v22 = vpop.permute.xlu1 %1268 }
 0x1a6   :  { %7567 = vst [vmem:[#allocation111_spill] sm:$0xff] %v5306_v22  ;;  %v5316_v59 = vpop.permute.xlu0 %1274  ;;  %v312_v22 = vld [vmem:[#allocation2 + $0x2f0] sm:$0xff] }
 0x1a7   :  { %1512 = vrot.lane.b32.xlu1 %v308_v40, %s4382_s0  ;;  %7570 = vst [vmem:[#allocation114_spill] sm:$0xff] %v5316_v59 }
 0x1a8   :  { %1518 = vrot.lane.b32.xlu0 %v311_v46, %s4382_s0 }
 0x1a9   :  { %v5312_v53 = vpop.permute.xlu1 %1272 }
 0x1aa   :  { %7569 = vst [vmem:[#allocation113_spill] sm:$0xff] %v5312_v53  ;;  %v5322_v40 = vpop.permute.xlu0 %1406  ;;  %v314_v53 = vld [vmem:[#allocation2 + $0x308] sm:$0xff] }
 0x1ab   :  { %1516 = vrot.lane.b32.xlu1 %v310_v20, %s4382_s0 }
 0x1ac   :  { %1522 = vrot.lane.b32.xlu0 %v313_v54, %s4382_s0 }
 0x1ad   :  { %v5318_v47 = vpop.permute.xlu1 %1276 }
 0x1ae   :  { %7571 = vst [vmem:[#allocation115_spill] sm:$0xff] %v5318_v47  ;;  %v5328_v20 = vpop.permute.xlu0 %1410  ;;  %v316_v47 = vld [vmem:[#allocation2 + $0x320] sm:$0xff] }
 0x1af   :  { %1520 = vrot.lane.b32.xlu1 %v312_v22, %s4382_s0  ;;  %v507_v22 = vld [vmem:[#allocation2 + $0x330] sm:$0xff] }
 0x1b0   :  { %1526 = vrot.lane.b32.xlu0 %v315_v32, %s4382_s0 }
 0x1b1   :  { %v5324_v24 = vpop.permute.xlu1 %1408 }
 0x1b2   :  { %v5334_v46 = vpop.permute.xlu0 %1414 }
 0x1b3   :  { %1524 = vrot.lane.b32.xlu1 %v314_v53, %s4382_s0  ;;  %7573 = vst [vmem:[#allocation117_spill] sm:$0xff] %v5334_v46  ;;  %v509_v53 = vld [vmem:[#allocation2 + $0x19] sm:$0xff] }
 0x1b4   :  { %1530 = vrot.lane.b32.xlu0 %v507_v22, %s4382_s0 }
 0x1b5   :  { %v5330_v59 = vpop.permute.xlu1 %1412 }
 0x1b6   :  { %7572 = vst [vmem:[#allocation116_spill] sm:$0xff] %v5330_v59  ;;  %v5340_v54 = vpop.permute.xlu0 %1418 }
 0x1b7   :  { %1528 = vrot.lane.b32.xlu1 %v316_v47, %s4382_s0  ;;  %7575 = vst [vmem:[#allocation119_spill] sm:$0xff] %v5340_v54  ;;  %v511_v47 = vld [vmem:[#allocation2 + $0x31] sm:$0xff] }
 0x1b8   :  { %1662 = vrot.lane.b32.xlu0 %v509_v53, %s4383_s9 }
 0x1b9   :  { %v5336_v18 = vpop.permute.xlu1 %1416 }
 0x1ba   :  { %7574 = vst [vmem:[#allocation118_spill] sm:$0xff] %v5336_v18  ;;  %v5346_v32 = vpop.permute.xlu0 %1422 }
 0x1bb   :  { %1532 = vrot.lane.b32.xlu1 %v508_v49, %s4382_s0  ;;  %7577 = vst [vmem:[#allocation121_spill] sm:$0xff] %v5346_v32  ;;  %v513_v49 = vld [vmem:[#allocation2 + $0x49] sm:$0xff] }
 0x1bc   :  { %1666 = vrot.lane.b32.xlu0 %v511_v47, %s4383_s9 }
 0x1bd   :  { %v5342_v42 = vpop.permute.xlu1 %1420 }
 0x1be   :  { %7576 = vst [vmem:[#allocation120_spill] sm:$0xff] %v5342_v42  ;;  %v5352_v22 = vpop.permute.xlu0 %1426  ;;  %v5578_v42 = vld [vmem:[#allocation2 + $0x82] sm:$0xff] }
 0x1bf   :  { %1664 = vrot.lane.b32.xlu1 %v510_v38, %s4383_s9  ;;  %7579 = vst [vmem:[#allocation123_spill] sm:$0xff] %v5352_v22  ;;  %v515_v38 = vld [vmem:[#allocation2 + $0x61] sm:$0xff] }
 0x1c0   :  { %1670 = vrot.lane.b32.xlu0 %v513_v49, %s4383_s9  ;;  %v518_v22 = vld [vmem:[#allocation2 + $0x81] sm:$0xff] }
 0x1c1   :  { %v5348_v16 = vpop.permute.xlu1 %1424 }
 0x1c2   :  { %7578 = vst [vmem:[#allocation122_spill] sm:$0xff] %v5348_v16  ;;  %v5358_v53 = vpop.permute.xlu0 %1430  ;;  %v544_v16 = vld [vmem:[#allocation2 + $0x1e9] sm:$0xff] }
 0x1c3   :  { %1668 = vrot.lane.b32.xlu1 %v512_v45, %s4383_s9  ;;  %7581 = vst [vmem:[#allocation125_spill] sm:$0xff] %v5358_v53  ;;  %v517_v45 = vld [vmem:[#allocation2 + $0x79] sm:$0xff] }
 0x1c4   :  { %1674 = vrot.lane.b32.xlu0 %v515_v38, %s4383_s9  ;;  %v520_v53 = vld [vmem:[#allocation2 + $0x99] sm:$0xff] }
 0x1c5   :  { %v5354_v55 = vpop.permute.xlu1 %1428 }
 0x1c6   :  { %7580 = vst [vmem:[#allocation124_spill] sm:$0xff] %v5354_v55  ;;  %v5364_v47 = vpop.permute.xlu0 %1434 }
 0x1c7   :  { %1672 = vrot.lane.b32.xlu1 %v514_v39, %s4383_s9  ;;  %7583 = vst [vmem:[#allocation127_spill] sm:$0xff] %v5364_v47  ;;  %v519_v39 = vld [vmem:[#allocation2 + $0x91] sm:$0xff] }
 0x1c8   :  { %1678 = vrot.lane.b32.xlu0 %v517_v45, %s4383_s9  ;;  %v522_v47 = vld [vmem:[#allocation2 + $0xb1] sm:$0xff] }
 0x1c9   :  { %v5360_v14 = vpop.permute.xlu1 %1432 }
 0x1ca   :  { %7582 = vst [vmem:[#allocation126_spill] sm:$0xff] %v5360_v14  ;;  %v5370_v49 = vpop.permute.xlu0 %1438 }
 0x1cb   :  { %1676 = vrot.lane.b32.xlu1 %v516_v41, %s4383_s9  ;;  %7585 = vst [vmem:[#allocation129_spill] sm:$0xff] %v5370_v49  ;;  %v521_v41 = vld [vmem:[#allocation2 + $0xa9] sm:$0xff] }
 0x1cc   :  { %1682 = vrot.lane.b32.xlu0 %v519_v39, %s4383_s9  ;;  %v524_v49 = vld [vmem:[#allocation2 + $0xc9] sm:$0xff] }
 0x1cd   :  { %v5366_v31 = vpop.permute.xlu1 %1436 }
 0x1ce   :  { %7584 = vst [vmem:[#allocation128_spill] sm:$0xff] %v5366_v31  ;;  %v5376_v38 = vpop.permute.xlu0 %1442 }
 0x1cf   :  { %1680 = vrot.lane.b32.xlu1 %v518_v22, %s4383_s9  ;;  %7587 = vst [vmem:[#allocation131_spill] sm:$0xff] %v5376_v38  ;;  %v523_v22 = vld [vmem:[#allocation2 + $0xc1] sm:$0xff] }
 0x1d0   :  { %1686 = vrot.lane.b32.xlu0 %v521_v41, %s4383_s9  ;;  %v526_v38 = vld [vmem:[#allocation2 + $0xe1] sm:$0xff] }
 0x1d1   :  { %v5372_v55 = vpop.permute.xlu1 %1440 }
 0x1d2   :  { %7586 = vst [vmem:[#allocation130_spill] sm:$0xff] %v5372_v55  ;;  %v5382_v45 = vpop.permute.xlu0 %1446 }
 0x1d3   :  { %1684 = vrot.lane.b32.xlu1 %v520_v53, %s4383_s9  ;;  %7589 = vst [vmem:[#allocation133_spill] sm:$0xff] %v5382_v45  ;;  %v525_v53 = vld [vmem:[#allocation2 + $0xd9] sm:$0xff] }
 0x1d4   :  { %1690 = vrot.lane.b32.xlu0 %v523_v22, %s4383_s9  ;;  %v528_v45 = vld [vmem:[#allocation2 + $0xf9] sm:$0xff] }
 0x1d5   :  { %v5378_v14 = vpop.permute.xlu1 %1444 }
 0x1d6   :  { %7588 = vst [vmem:[#allocation132_spill] sm:$0xff] %v5378_v14  ;;  %v5388_v39 = vpop.permute.xlu0 %1450 }
 0x1d7   :  { %1688 = vrot.lane.b32.xlu1 %v522_v47, %s4383_s9  ;;  %7591 = vst [vmem:[#allocation135_spill] sm:$0xff] %v5388_v39  ;;  %v527_v47 = vld [vmem:[#allocation2 + $0xf1] sm:$0xff] }
 0x1d8   :  { %1694 = vrot.lane.b32.xlu0 %v525_v53, %s4383_s9  ;;  %v530_v39 = vld [vmem:[#allocation2 + $0x111] sm:$0xff] }
 0x1d9   :  { %v5384_v31 = vpop.permute.xlu1 %1448 }
 0x1da   :  { %7590 = vst [vmem:[#allocation134_spill] sm:$0xff] %v5384_v31  ;;  %v5394_v41 = vpop.permute.xlu0 %1454 }
 0x1db   :  { %1692 = vrot.lane.b32.xlu1 %v524_v49, %s4383_s9  ;;  %7593 = vst [vmem:[#allocation137_spill] sm:$0xff] %v5394_v41  ;;  %v529_v49 = vld [vmem:[#allocation2 + $0x109] sm:$0xff] }
 0x1dc   :  { %1698 = vrot.lane.b32.xlu0 %v527_v47, %s4383_s9  ;;  %v532_v41 = vld [vmem:[#allocation2 + $0x129] sm:$0xff] }
 0x1dd   :  { %v5390_v55 = vpop.permute.xlu1 %1452 }
 0x1de   :  { %7592 = vst [vmem:[#allocation136_spill] sm:$0xff] %v5390_v55  ;;  %v5400_v22 = vpop.permute.xlu0 %1458 }
 0x1df   :  { %1696 = vrot.lane.b32.xlu1 %v526_v38, %s4383_s9  ;;  %7595 = vst [vmem:[#allocation139_spill] sm:$0xff] %v5400_v22  ;;  %v531_v38 = vld [vmem:[#allocation2 + $0x121] sm:$0xff] }
 0x1e0   :  { %1702 = vrot.lane.b32.xlu0 %v529_v49, %s4383_s9  ;;  %v534_v22 = vld [vmem:[#allocation2 + $0x141] sm:$0xff] }
 0x1e1   :  { %v5396_v14 = vpop.permute.xlu1 %1456 }
 0x1e2   :  { %7594 = vst [vmem:[#allocation138_spill] sm:$0xff] %v5396_v14  ;;  %v5406_v53 = vpop.permute.xlu0 %1462 }
 0x1e3   :  { %1700 = vrot.lane.b32.xlu1 %v528_v45, %s4383_s9  ;;  %7597 = vst [vmem:[#allocation141_spill] sm:$0xff] %v5406_v53  ;;  %v533_v45 = vld [vmem:[#allocation2 + $0x139] sm:$0xff] }
 0x1e4   :  { %1706 = vrot.lane.b32.xlu0 %v531_v38, %s4383_s9  ;;  %v536_v53 = vld [vmem:[#allocation2 + $0x159] sm:$0xff] }
 0x1e5   :  { %v5402_v31 = vpop.permute.xlu1 %1460 }
 0x1e6   :  { %7596 = vst [vmem:[#allocation140_spill] sm:$0xff] %v5402_v31  ;;  %v5412_v47 = vpop.permute.xlu0 %1466 }
 0x1e7   :  { %1704 = vrot.lane.b32.xlu1 %v530_v39, %s4383_s9  ;;  %7599 = vst [vmem:[#allocation143_spill] sm:$0xff] %v5412_v47  ;;  %v535_v39 = vld [vmem:[#allocation2 + $0x151] sm:$0xff] }
 0x1e8   :  { %1710 = vrot.lane.b32.xlu0 %v533_v45, %s4383_s9  ;;  %v538_v47 = vld [vmem:[#allocation2 + $0x171] sm:$0xff] }
 0x1e9   :  { %v5408_v55 = vpop.permute.xlu1 %1464 }
 0x1ea   :  { %7598 = vst [vmem:[#allocation142_spill] sm:$0xff] %v5408_v55  ;;  %v5418_v49 = vpop.permute.xlu0 %1470 }
 0x1eb   :  { %1708 = vrot.lane.b32.xlu1 %v532_v41, %s4383_s9  ;;  %v537_v41 = vld [vmem:[#allocation2 + $0x169] sm:$0xff] }
 0x1ec   :  { %1714 = vrot.lane.b32.xlu0 %v535_v39, %s4383_s9 }
 0x1ed   :  { %v5414_v14 = vpop.permute.xlu1 %1468 }
 0x1ee   :  { %7600 = vst [vmem:[#allocation144_spill] sm:$0xff] %v5414_v14  ;;  %v5424_v38 = vpop.permute.xlu0 %1474  ;;  %v540_v14 = vld [vmem:[#allocation2 + $0x189] sm:$0xff] }
 0x1ef   :  { %1712 = vrot.lane.b32.xlu1 %v534_v22, %s4383_s9  ;;  %v539_v22 = vld [vmem:[#allocation2 + $0x181] sm:$0xff] }
 0x1f0   :  { %1718 = vrot.lane.b32.xlu0 %v537_v41, %s4383_s9 }
 0x1f1   :  { %v5420_v31 = vpop.permute.xlu1 %1472 }
 0x1f2   :  { %v5430_v45 = vpop.permute.xlu0 %1478 }
 0x1f3   :  { %1716 = vrot.lane.b32.xlu1 %v536_v53, %s4383_s9  ;;  %7602 = vst [vmem:[#allocation146_spill] sm:$0xff] %v5430_v45  ;;  %v541_v53 = vld [vmem:[#allocation2 + $0x1c9] sm:$0xff]  ;;  %v622_v45 = vld [vmem:[#allocation2 + $0x292] sm:$0xff] }
 0x1f4   :  { %1722 = vrot.lane.b32.xlu0 %v539_v22, %s4383_s9 }
 0x1f5   :  { %v5426_v55 = vpop.permute.xlu1 %1476 }
 0x1f6   :  { %7601 = vst [vmem:[#allocation145_spill] sm:$0xff] %v5426_v55  ;;  %v5436_v39 = vpop.permute.xlu0 %1482  ;;  %v639_v55 = vld [vmem:[#allocation2 + $0x38] sm:$0xff] }
 0x1f7   :  { %1720 = vrot.lane.b32.xlu1 %v538_v47, %s4383_s9  ;;  %7604 = vst [vmem:[#allocation148_spill] sm:$0xff] %v5436_v39  ;;  %v543_v47 = vld [vmem:[#allocation2 + $0x1e1] sm:$0xff] }
 0x1f8   :  { %1726 = vrot.lane.b32.xlu0 %v541_v53, %s4383_s9  ;;  %v587_v39 = vld [vmem:[#allocation2 + $0xc2] sm:$0xff] }
 0x1f9   :  { %v5432_v48 = vpop.permute.xlu1 %1480 }
 0x1fa   :  { %7603 = vst [vmem:[#allocation147_spill] sm:$0xff] %v5432_v48  ;;  %v5442_v41 = vpop.permute.xlu0 %1486  ;;  %v5698_v48 = vld [vmem:[#allocation2 + $0x232] sm:$0xff] }
 0x1fb   :  { %1724 = vrot.lane.b32.xlu1 %v540_v14, %s4383_s9  ;;  %7606 = vst [vmem:[#allocation150_spill] sm:$0xff] %v5442_v41  ;;  %v545_v14 = vld [vmem:[#allocation2 + $0x1f9] sm:$0xff] }
 0x1fc   :  { %1730 = vrot.lane.b32.xlu0 %v543_v47, %s4383_s9 }
 0x1fd   :  { %v5438_v12 = vpop.permute.xlu1 %1484 }
 0x1fe   :  { %7605 = vst [vmem:[#allocation149_spill] sm:$0xff] %v5438_v12  ;;  %v5448_v22 = vpop.permute.xlu0 %1490 }
 0x1ff   :  { %1728 = vrot.lane.b32.xlu1 %v542_v37, %s4383_s9  ;;  %7608 = vst [vmem:[#allocation152_spill] sm:$0xff] %v5448_v22  ;;  %v547_v37 = vld [vmem:[#allocation2 + $0x211] sm:$0xff] }
 0x200   :  { %1734 = vrot.lane.b32.xlu0 %v545_v14, %s4383_s9  ;;  %v550_v22 = vld [vmem:[#allocation2 + $0x231] sm:$0xff] }
 0x201   :  { %v5444_v1 = vpop.permute.xlu1 %1488 }
 0x202   :  { %7607 = vst [vmem:[#allocation151_spill] sm:$0xff] %v5444_v1  ;;  %v5454_v53 = vpop.permute.xlu0 %1494 }
 0x203   :  { %1732 = vrot.lane.b32.xlu1 %v544_v16, %s4383_s9  ;;  %7610 = vst [vmem:[#allocation154_spill] sm:$0xff] %v5454_v53  ;;  %v549_v16 = vld [vmem:[#allocation2 + $0x229] sm:$0xff] }
 0x204   :  { %1738 = vrot.lane.b32.xlu0 %v547_v37, %s4383_s9  ;;  %v552_v53 = vld [vmem:[#allocation2 + $0x249] sm:$0xff] }
 0x205   :  { %v5450_v33 = vpop.permute.xlu1 %1492 }
 0x206   :  { %7609 = vst [vmem:[#allocation153_spill] sm:$0xff] %v5450_v33  ;;  %v5460_v47 = vpop.permute.xlu0 %1498 }
 0x207   :  { %1736 = vrot.lane.b32.xlu1 %v546_v3, %s4383_s9  ;;  %7612 = vst [vmem:[#allocation156_spill] sm:$0xff] %v5460_v47  ;;  %v551_v3 = vld [vmem:[#allocation2 + $0x241] sm:$0xff] }
 0x208   :  { %1742 = vrot.lane.b32.xlu0 %v549_v16, %s4383_s9  ;;  %v554_v47 = vld [vmem:[#allocation2 + $0x261] sm:$0xff] }
 0x209   :  { %v5456_v41 = vpop.permute.xlu1 %1496 }
 0x20a   :  { %7611 = vst [vmem:[#allocation155_spill] sm:$0xff] %v5456_v41  ;;  %v5466_v14 = vpop.permute.xlu0 %1502 }
 0x20b   :  { %1740 = vrot.lane.b32.xlu1 %v548_v10, %s4383_s9  ;;  %7614 = vst [vmem:[#allocation158_spill] sm:$0xff] %v5466_v14  ;;  %v553_v10 = vld [vmem:[#allocation2 + $0x259] sm:$0xff] }
 0x20c   :  { %1746 = vrot.lane.b32.xlu0 %v551_v3, %s4383_s9  ;;  %v556_v14 = vld [vmem:[#allocation2 + $0x279] sm:$0xff] }
 0x20d   :  { %v5462_v1 = vpop.permute.xlu1 %1500 }
 0x20e   :  { %7613 = vst [vmem:[#allocation157_spill] sm:$0xff] %v5462_v1  ;;  %v5472_v37 = vpop.permute.xlu0 %1506 }
 0x20f   :  { %1744 = vrot.lane.b32.xlu1 %v550_v22, %s4383_s9  ;;  %7616 = vst [vmem:[#allocation160_spill] sm:$0xff] %v5472_v37  ;;  %v555_v22 = vld [vmem:[#allocation2 + $0x271] sm:$0xff] }
 0x210   :  { %1750 = vrot.lane.b32.xlu0 %v553_v10, %s4383_s9  ;;  %v558_v37 = vld [vmem:[#allocation2 + $0x291] sm:$0xff] }
 0x211   :  { %v5468_v33 = vpop.permute.xlu1 %1504 }
 0x212   :  { %7615 = vst [vmem:[#allocation159_spill] sm:$0xff] %v5468_v33  ;;  %v5478_v16 = vpop.permute.xlu0 %1510 }
 0x213   :  { %1748 = vrot.lane.b32.xlu1 %v552_v53, %s4383_s9  ;;  %7618 = vst [vmem:[#allocation162_spill] sm:$0xff] %v5478_v16  ;;  %v557_v53 = vld [vmem:[#allocation2 + $0x289] sm:$0xff] }
 0x214   :  { %1754 = vrot.lane.b32.xlu0 %v555_v22, %s4383_s9  ;;  %v560_v16 = vld [vmem:[#allocation2 + $0x2a9] sm:$0xff] }
 0x215   :  { %v5474_v41 = vpop.permute.xlu1 %1508 }
 0x216   :  { %7617 = vst [vmem:[#allocation161_spill] sm:$0xff] %v5474_v41  ;;  %v5484_v3 = vpop.permute.xlu0 %1514 }
 0x217   :  { %1752 = vrot.lane.b32.xlu1 %v554_v47, %s4383_s9  ;;  %7620 = vst [vmem:[#allocation164_spill] sm:$0xff] %v5484_v3  ;;  %v559_v47 = vld [vmem:[#allocation2 + $0x2a1] sm:$0xff] }
 0x218   :  { %1758 = vrot.lane.b32.xlu0 %v557_v53, %s4383_s9  ;;  %v562_v3 = vld [vmem:[#allocation2 + $0x2c1] sm:$0xff] }
 0x219   :  { %v5480_v1 = vpop.permute.xlu1 %1512 }
 0x21a   :  { %7619 = vst [vmem:[#allocation163_spill] sm:$0xff] %v5480_v1  ;;  %v5490_v10 = vpop.permute.xlu0 %1518 }
 0x21b   :  { %1756 = vrot.lane.b32.xlu1 %v556_v14, %s4383_s9  ;;  %7622 = vst [vmem:[#allocation166_spill] sm:$0xff] %v5490_v10  ;;  %v561_v14 = vld [vmem:[#allocation2 + $0x2b9] sm:$0xff] }
 0x21c   :  { %1762 = vrot.lane.b32.xlu0 %v559_v47, %s4383_s9  ;;  %v564_v10 = vld [vmem:[#allocation2 + $0x2d9] sm:$0xff] }
 0x21d   :  { %v5486_v33 = vpop.permute.xlu1 %1516 }
 0x21e   :  { %7621 = vst [vmem:[#allocation165_spill] sm:$0xff] %v5486_v33  ;;  %v5496_v22 = vpop.permute.xlu0 %1522 }
 0x21f   :  { %1760 = vrot.lane.b32.xlu1 %v558_v37, %s4383_s9  ;;  %7624 = vst [vmem:[#allocation168_spill] sm:$0xff] %v5496_v22  ;;  %v563_v37 = vld [vmem:[#allocation2 + $0x2d1] sm:$0xff] }
 0x220   :  { %1766 = vrot.lane.b32.xlu0 %v561_v14, %s4383_s9  ;;  %v566_v22 = vld [vmem:[#allocation2 + $0x2f1] sm:$0xff] }
 0x221   :  { %v5492_v41 = vpop.permute.xlu1 %1520 }
 0x222   :  { %7623 = vst [vmem:[#allocation167_spill] sm:$0xff] %v5492_v41  ;;  %v5502_v53 = vpop.permute.xlu0 %1526 }
 0x223   :  { %1764 = vrot.lane.b32.xlu1 %v560_v16, %s4383_s9  ;;  %7626 = vst [vmem:[#allocation170_spill] sm:$0xff] %v5502_v53  ;;  %v565_v16 = vld [vmem:[#allocation2 + $0x2e9] sm:$0xff] }
 0x224   :  { %1770 = vrot.lane.b32.xlu0 %v563_v37, %s4383_s9  ;;  %v568_v53 = vld [vmem:[#allocation2 + $0x309] sm:$0xff] }
 0x225   :  { %v5498_v1 = vpop.permute.xlu1 %1524 }
 0x226   :  { %7625 = vst [vmem:[#allocation169_spill] sm:$0xff] %v5498_v1  ;;  %v5508_v47 = vpop.permute.xlu0 %1530 }
 0x227   :  { %1768 = vrot.lane.b32.xlu1 %v562_v3, %s4383_s9  ;;  %7628 = vst [vmem:[#allocation172_spill] sm:$0xff] %v5508_v47  ;;  %v567_v3 = vld [vmem:[#allocation2 + $0x301] sm:$0xff] }
 0x228   :  { %1774 = vrot.lane.b32.xlu0 %v565_v16, %s4383_s9  ;;  %v570_v47 = vld [vmem:[#allocation2 + $0x321] sm:$0xff] }
 0x229   :  { %v5504_v33 = vpop.permute.xlu1 %1528 }
 0x22a   :  { %7627 = vst [vmem:[#allocation171_spill] sm:$0xff] %v5504_v33  ;;  %v5514_v14 = vpop.permute.xlu0 %1662 }
 0x22b   :  { %1772 = vrot.lane.b32.xlu1 %v564_v10, %s4383_s9  ;;  %v569_v10 = vld [vmem:[#allocation2 + $0x319] sm:$0xff] }
 0x22c   :  { %1778 = vrot.lane.b32.xlu0 %v567_v3, %s4383_s9 }
 0x22d   :  { %v5510_v41 = vpop.permute.xlu1 %1532 }
 0x22e   :  { %7629 = vst [vmem:[#allocation173_spill] sm:$0xff] %v5510_v41  ;;  %v5520_v37 = vpop.permute.xlu0 %1666  ;;  %v572_v41 = vld [vmem:[#allocation2 + $0x339] sm:$0xff] }
 0x22f   :  { %1776 = vrot.lane.b32.xlu1 %v566_v22, %s4383_s9  ;;  %v571_v22 = vld [vmem:[#allocation2 + $0x331] sm:$0xff] }
 0x230   :  { %1782 = vrot.lane.b32.xlu0 %v569_v10, %s4383_s9 }
 0x231   :  { %v5516_v1 = vpop.permute.xlu1 %1664 }
 0x232   :  { %v5526_v16 = vpop.permute.xlu0 %1670 }
 0x233   :  { %1780 = vrot.lane.b32.xlu1 %v568_v53, %s4383_s9  ;;  %7631 = vst [vmem:[#allocation175_spill] sm:$0xff] %v5526_v16  ;;  %v573_v53 = vld [vmem:[#allocation2 + $0x1a] sm:$0xff] }
 0x234   :  { %1786 = vrot.lane.b32.xlu0 %v571_v22, %s4383_s9 }
 0x235   :  { %v5522_v33 = vpop.permute.xlu1 %1668 }
 0x236   :  { %7630 = vst [vmem:[#allocation174_spill] sm:$0xff] %v5522_v33  ;;  %v5532_v3 = vpop.permute.xlu0 %1674 }
 0x237   :  { %1784 = vrot.lane.b32.xlu1 %v570_v47, %s4383_s9  ;;  %7633 = vst [vmem:[#allocation177_spill] sm:$0xff] %v5532_v3  ;;  %v5538_v47 = vld [vmem:[#allocation2 + $0x32] sm:$0xff] }
 0x238   :  { %1918 = vrot.lane.b32.xlu0 %v573_v53, %s4384_s10  ;;  %v5554_v53 = vld [vmem:[#allocation2 + $0x52] sm:$0xff] }
 0x239   :  { %v5528_v32 = vpop.permute.xlu1 %1672 }
 0x23a   :  { %7632 = vst [vmem:[#allocation176_spill] sm:$0xff] %v5528_v32  ;;  %v5540_v10 = vpop.permute.xlu0 %1678  ;;  %v5662_v32 = vld [vmem:[#allocation2 + $0x1ea] sm:$0xff] }
 0x23b   :  { %1788 = vrot.lane.b32.xlu1 %v572_v41, %s4383_s9  ;;  %7635 = vst [vmem:[#allocation179_spill] sm:$0xff] %v5540_v10  ;;  %v5550_v41 = vld [vmem:[#allocation2 + $0x4a] sm:$0xff] }
 0x23c   :  { %1922 = vrot.lane.b32.xlu0 %v5538_v47, %s4384_s10 }
 0x23d   :  { %v5534_v35 = vpop.permute.xlu1 %1676 }
 0x23e   :  { %7634 = vst [vmem:[#allocation178_spill] sm:$0xff] %v5534_v35  ;;  %v5552_v8 = vpop.permute.xlu0 %1682  ;;  %v5566_v35 = vld [vmem:[#allocation2 + $0x6a] sm:$0xff] }
 0x23f   :  { %1920 = vrot.lane.b32.xlu1 %v574_v28, %s4384_s10  ;;  %7637 = vst [vmem:[#allocation181_spill] sm:$0xff] %v5552_v8 }
 0x240   :  { %1926 = vrot.lane.b32.xlu0 %v5550_v41, %s4384_s10 }
 0x241   :  { %v5544_v22 = vpop.permute.xlu1 %1680 }
 0x242   :  { %7636 = vst [vmem:[#allocation180_spill] sm:$0xff] %v5544_v22  ;;  %v5562_v22 = vld [vmem:[#allocation2 + $0x62] sm:$0xff]  ;;  %v5564_v10 = vpop.permute.xlu0 %1686 }
 0x243   :  { %1924 = vrot.lane.b32.xlu1 %v5542_v29, %s4384_s10  ;;  %7639 = vst [vmem:[#allocation183_spill] sm:$0xff] %v5564_v10 }
 0x244   :  { %1930 = vrot.lane.b32.xlu0 %v5562_v22, %s4384_s10 }
 0x245   :  { %v5556_v28 = vpop.permute.xlu1 %1684 }
 0x246   :  { %7638 = vst [vmem:[#allocation182_spill] sm:$0xff] %v5556_v28  ;;  %v5574_v28 = vld [vmem:[#allocation2 + $0x7a] sm:$0xff]  ;;  %v5576_v8 = vpop.permute.xlu0 %1690 }
 0x247   :  { %1928 = vrot.lane.b32.xlu1 %v5554_v53, %s4384_s10  ;;  %7641 = vst [vmem:[#allocation185_spill] sm:$0xff] %v5576_v8  ;;  %v585_v8 = vld [vmem:[#allocation2 + $0xaa] sm:$0xff] }
 0x248   :  { %1934 = vrot.lane.b32.xlu0 %v5574_v28, %s4384_s10 }
 0x249   :  { %v5568_v12 = vpop.permute.xlu1 %1688 }
 0x24a   :  { %7640 = vst [vmem:[#allocation184_spill] sm:$0xff] %v5568_v12  ;;  %v583_v12 = vld [vmem:[#allocation2 + $0x92] sm:$0xff]  ;;  %v5586_v10 = vpop.permute.xlu0 %1694 }
 0x24b   :  { %1932 = vrot.lane.b32.xlu1 %v5566_v35, %s4384_s10  ;;  %7643 = vst [vmem:[#allocation187_spill] sm:$0xff] %v5586_v10  ;;  %v588_v10 = vld [vmem:[#allocation2 + $0xca] sm:$0xff] }
 0x24c   :  { %1938 = vrot.lane.b32.xlu0 %v583_v12, %s4384_s10  ;;  %v589_v12 = vld [vmem:[#allocation2 + $0xda] sm:$0xff] }
 0x24d   :  { %v5580_v26 = vpop.permute.xlu1 %1692 }
 0x24e   :  { %7642 = vst [vmem:[#allocation186_spill] sm:$0xff] %v5580_v26  ;;  %v5592_v6 = vpop.permute.xlu0 %1698  ;;  %v586_v26 = vld [vmem:[#allocation2 + $0xb2] sm:$0xff] }
 0x24f   :  { %1936 = vrot.lane.b32.xlu1 %v5578_v42, %s4384_s10  ;;  %7645 = vst [vmem:[#allocation189_spill] sm:$0xff] %v5592_v6  ;;  %v590_v6 = vld [vmem:[#allocation2 + $0xe2] sm:$0xff] }
 0x250   :  { %1942 = vrot.lane.b32.xlu0 %v585_v8, %s4384_s10  ;;  %v591_v8 = vld [vmem:[#allocation2 + $0xf2] sm:$0xff] }
 0x251   :  { %v5588_v25 = vpop.permute.xlu1 %1696 }
 0x252   :  { %7644 = vst [vmem:[#allocation188_spill] sm:$0xff] %v5588_v25  ;;  %v5598_v54 = vpop.permute.xlu0 %1702 }
 0x253   :  { %1940 = vrot.lane.b32.xlu1 %v584_v19, %s4384_s10  ;;  %7647 = vst [vmem:[#allocation191_spill] sm:$0xff] %v5598_v54  ;;  %v592_v54 = vld [vmem:[#allocation2 + $0xfa] sm:$0xff] }
 0x254   :  { %1946 = vrot.lane.b32.xlu0 %v587_v39, %s4384_s10  ;;  %v593_v39 = vld [vmem:[#allocation2 + $0x10a] sm:$0xff] }
 0x255   :  { %v5594_v3 = vpop.permute.xlu1 %1700 }
 0x256   :  { %7646 = vst [vmem:[#allocation190_spill] sm:$0xff] %v5594_v3  ;;  %v5604_v19 = vpop.permute.xlu0 %1706 }
 0x257   :  { %1944 = vrot.lane.b32.xlu1 %v586_v26, %s4384_s10  ;;  %7649 = vst [vmem:[#allocation193_spill] sm:$0xff] %v5604_v19  ;;  %v594_v19 = vld [vmem:[#allocation2 + $0x112] sm:$0xff] }
 0x258   :  { %1950 = vrot.lane.b32.xlu0 %v589_v12, %s4384_s10 }
 0x259   :  { %v5600_v30 = vpop.permute.xlu1 %1704 }
 0x25a   :  { %7648 = vst [vmem:[#allocation192_spill] sm:$0xff] %v5600_v30  ;;  %v5610_v26 = vpop.permute.xlu0 %1710 }
 0x25b   :  { %1948 = vrot.lane.b32.xlu1 %v588_v10, %s4384_s10  ;;  %7651 = vst [vmem:[#allocation195_spill] sm:$0xff] %v5610_v26  ;;  %v596_v26 = vld [vmem:[#allocation2 + $0x12a] sm:$0xff] }
 0x25c   :  { %1954 = vrot.lane.b32.xlu0 %v591_v8, %s4384_s10 }
 0x25d   :  { %v5606_v25 = vpop.permute.xlu1 %1708 }
 0x25e   :  { %7650 = vst [vmem:[#allocation194_spill] sm:$0xff] %v5606_v25  ;;  %v5616_v10 = vpop.permute.xlu0 %1714 }
 0x25f   :  { %1952 = vrot.lane.b32.xlu1 %v590_v6, %s4384_s10  ;;  %7653 = vst [vmem:[#allocation197_spill] sm:$0xff] %v5616_v10  ;;  %v595_v6 = vld [vmem:[#allocation2 + $0x122] sm:$0xff] }
 0x260   :  { %1958 = vrot.lane.b32.xlu0 %v593_v39, %s4384_s10  ;;  %v598_v10 = vld [vmem:[#allocation2 + $0x142] sm:$0xff] }
 0x261   :  { %v5612_v3 = vpop.permute.xlu1 %1712 }
 0x262   :  { %7652 = vst [vmem:[#allocation196_spill] sm:$0xff] %v5612_v3  ;;  %v5622_v12 = vpop.permute.xlu0 %1718 }
 0x263   :  { %1956 = vrot.lane.b32.xlu1 %v592_v54, %s4384_s10  ;;  %7655 = vst [vmem:[#allocation199_spill] sm:$0xff] %v5622_v12  ;;  %v597_v54 = vld [vmem:[#allocation2 + $0x13a] sm:$0xff] }
 0x264   :  { %1962 = vrot.lane.b32.xlu0 %v595_v6, %s4384_s10  ;;  %v600_v12 = vld [vmem:[#allocation2 + $0x15a] sm:$0xff] }
 0x265   :  { %v5618_v30 = vpop.permute.xlu1 %1716 }
 0x266   :  { %7654 = vst [vmem:[#allocation198_spill] sm:$0xff] %v5618_v30  ;;  %v5628_v8 = vpop.permute.xlu0 %1722 }
 0x267   :  { %1960 = vrot.lane.b32.xlu1 %v594_v19, %s4384_s10  ;;  %7657 = vst [vmem:[#allocation201_spill] sm:$0xff] %v5628_v8  ;;  %v599_v19 = vld [vmem:[#allocation2 + $0x152] sm:$0xff] }
 0x268   :  { %1966 = vrot.lane.b32.xlu0 %v597_v54, %s4384_s10  ;;  %v602_v8 = vld [vmem:[#allocation2 + $0x172] sm:$0xff] }
 0x269   :  { %v5624_v25 = vpop.permute.xlu1 %1720 }
 0x26a   :  { %7656 = vst [vmem:[#allocation200_spill] sm:$0xff] %v5624_v25  ;;  %v5634_v39 = vpop.permute.xlu0 %1726 }
 0x26b   :  { %1964 = vrot.lane.b32.xlu1 %v596_v26, %s4384_s10  ;;  %v601_v26 = vld [vmem:[#allocation2 + $0x16a] sm:$0xff] }
 0x26c   :  { %1970 = vrot.lane.b32.xlu0 %v599_v19, %s4384_s10 }
 0x26d   :  { %v5630_v3 = vpop.permute.xlu1 %1724 }
 0x26e   :  { %7658 = vst [vmem:[#allocation202_spill] sm:$0xff] %v5630_v3  ;;  %v5640_v6 = vpop.permute.xlu0 %1730  ;;  %v604_v3 = vld [vmem:[#allocation2 + $0x18a] sm:$0xff] }
 0x26f   :  { %1968 = vrot.lane.b32.xlu1 %v598_v10, %s4384_s10  ;;  %v603_v10 = vld [vmem:[#allocation2 + $0x182] sm:$0xff] }
 0x270   :  { %1974 = vrot.lane.b32.xlu0 %v601_v26, %s4384_s10 }
 0x271   :  { %v5636_v30 = vpop.permute.xlu1 %1728 }
 0x272   :  { %v5646_v54 = vpop.permute.xlu0 %1734 }
 0x273   :  { %1972 = vrot.lane.b32.xlu1 %v600_v12, %s4384_s10  ;;  %7660 = vst [vmem:[#allocation204_spill] sm:$0xff] %v5646_v54  ;;  %v605_v12 = vld [vmem:[#allocation2 + $0x1ca] sm:$0xff] }
 0x274   :  { %1978 = vrot.lane.b32.xlu0 %v603_v10, %s4384_s10 }
 0x275   :  { %v5642_v25 = vpop.permute.xlu1 %1732 }
 0x276   :  { %7659 = vst [vmem:[#allocation203_spill] sm:$0xff] %v5642_v25  ;;  %v5652_v19 = vpop.permute.xlu0 %1738 }
 0x277   :  { %1976 = vrot.lane.b32.xlu1 %v602_v8, %s4384_s10  ;;  %7662 = vst [vmem:[#allocation206_spill] sm:$0xff] %v5652_v19  ;;  %v5658_v8 = vld [vmem:[#allocation2 + $0x1e2] sm:$0xff] }
 0x278   :  { %1982 = vrot.lane.b32.xlu0 %v605_v12, %s4384_s10  ;;  %v5674_v12 = vld [vmem:[#allocation2 + $0x202] sm:$0xff] }
 0x279   :  { %v5648_v51 = vpop.permute.xlu1 %1736 }
 0x27a   :  { %7661 = vst [vmem:[#allocation205_spill] sm:$0xff] %v5648_v51  ;;  %v5660_v26 = vpop.permute.xlu0 %1742 }
 0x27b   :  { %1980 = vrot.lane.b32.xlu1 %v604_v3, %s4384_s10  ;;  %7664 = vst [vmem:[#allocation208_spill] sm:$0xff] %v5660_v26  ;;  %v5670_v3 = vld [vmem:[#allocation2 + $0x1fa] sm:$0xff] }
 0x27c   :  { %1986 = vrot.lane.b32.xlu0 %v5658_v8, %s4384_s10 }
 0x27d   :  { %v5654_v4 = vpop.permute.xlu1 %1740 }
 0x27e   :  { %7663 = vst [vmem:[#allocation207_spill] sm:$0xff] %v5654_v4  ;;  %v5672_v10 = vpop.permute.xlu0 %1746  ;;  %v5686_v4 = vld [vmem:[#allocation2 + $0x21a] sm:$0xff] }
 0x27f   :  { %1984 = vrot.lane.b32.xlu1 %v606_v21, %s4384_s10  ;;  %7666 = vst [vmem:[#allocation210_spill] sm:$0xff] %v5672_v10 }
 0x280   :  { %1990 = vrot.lane.b32.xlu0 %v5670_v3, %s4384_s10 }
 0x281   :  { %v5664_v51 = vpop.permute.xlu1 %1744 }
 0x282   :  { %7665 = vst [vmem:[#allocation209_spill] sm:$0xff] %v5664_v51  ;;  %v5682_v51 = vld [vmem:[#allocation2 + $0x212] sm:$0xff]  ;;  %v5684_v26 = vpop.permute.xlu0 %1750 }
 0x283   :  { %1988 = vrot.lane.b32.xlu1 %v5662_v32, %s4384_s10  ;;  %7668 = vst [vmem:[#allocation212_spill] sm:$0xff] %v5684_v26 }
 0x284   :  { %1994 = vrot.lane.b32.xlu0 %v5682_v51, %s4384_s10 }
 0x285   :  { %v5676_v21 = vpop.permute.xlu1 %1748 }
 0x286   :  { %7667 = vst [vmem:[#allocation211_spill] sm:$0xff] %v5676_v21  ;;  %v5694_v21 = vld [vmem:[#allocation2 + $0x22a] sm:$0xff]  ;;  %v5696_v10 = vpop.permute.xlu0 %1754 }
 0x287   :  { %1992 = vrot.lane.b32.xlu1 %v5674_v12, %s4384_s10  ;;  %7670 = vst [vmem:[#allocation214_spill] sm:$0xff] %v5696_v10 }
 0x288   :  { %1998 = vrot.lane.b32.xlu0 %v5694_v21, %s4384_s10 }
 0x289   :  { %v5688_v19 = vpop.permute.xlu1 %1752 }
 0x28a   :  { %7669 = vst [vmem:[#allocation213_spill] sm:$0xff] %v5688_v19  ;;  %v5706_v19 = vld [vmem:[#allocation2 + $0x242] sm:$0xff]  ;;  %v5708_v26 = vpop.permute.xlu0 %1758 }
 0x28b   :  { %1996 = vrot.lane.b32.xlu1 %v5686_v4, %s4384_s10  ;;  %7672 = vst [vmem:[#allocation216_spill] sm:$0xff] %v5708_v26 }
 0x28c   :  { %2002 = vrot.lane.b32.xlu0 %v5706_v19, %s4384_s10 }
 0x28d   :  { %v5700_v18 = vpop.permute.xlu1 %1756 }
 0x28e   :  { %7671 = vst [vmem:[#allocation215_spill] sm:$0xff] %v5700_v18  ;;  %v5718_v18 = vld [vmem:[#allocation2 + $0x25a] sm:$0xff]  ;;  %v5720_v10 = vpop.permute.xlu0 %1762 }
 0x28f   :  { %2000 = vrot.lane.b32.xlu1 %v5698_v48, %s4384_s10  ;;  %7674 = vst [vmem:[#allocation218_spill] sm:$0xff] %v5720_v10 }
 0x290   :  { %2006 = vrot.lane.b32.xlu0 %v5718_v18, %s4384_s10 }
 0x291   :  { %v5712_v44 = vpop.permute.xlu1 %1760 }
 0x292   :  { %7673 = vst [vmem:[#allocation217_spill] sm:$0xff] %v5712_v44  ;;  %v5730_v44 = vld [vmem:[#allocation2 + $0x272] sm:$0xff]  ;;  %v5732_v26 = vpop.permute.xlu0 %1766 }
 0x293   :  { %2004 = vrot.lane.b32.xlu1 %v5710_v7, %s4384_s10  ;;  %7676 = vst [vmem:[#allocation220_spill] sm:$0xff] %v5732_v26  ;;  %v623_v26 = vld [vmem:[#allocation2 + $0x2a2] sm:$0xff] }
 0x294   :  { %2010 = vrot.lane.b32.xlu0 %v5730_v44, %s4384_s10 }
 0x295   :  { %v5724_v54 = vpop.permute.xlu1 %1764 }
 0x296   :  { %7675 = vst [vmem:[#allocation219_spill] sm:$0xff] %v5724_v54  ;;  %v621_v54 = vld [vmem:[#allocation2 + $0x28a] sm:$0xff]  ;;  %v5742_v10 = vpop.permute.xlu0 %1770 }
 0x297   :  { %2008 = vrot.lane.b32.xlu1 %v5722_v17, %s4384_s10  ;;  %7678 = vst [vmem:[#allocation222_spill] sm:$0xff] %v5742_v10  ;;  %v626_v10 = vld [vmem:[#allocation2 + $0x2c2] sm:$0xff] }
 0x298   :  { %2014 = vrot.lane.b32.xlu0 %v621_v54, %s4384_s10 }
 0x299   :  { %v5736_v16 = vpop.permute.xlu1 %1768 }
 0x29a   :  { %7677 = vst [vmem:[#allocation221_spill] sm:$0xff] %v5736_v16  ;;  %v5748_v43 = vpop.permute.xlu0 %1774  ;;  %v624_v16 = vld [vmem:[#allocation2 + $0x2aa] sm:$0xff] }
 0x29b   :  { %2012 = vrot.lane.b32.xlu1 %v5734_v2, %s4384_s10  ;;  %7680 = vst [vmem:[#allocation224_spill] sm:$0xff] %v5748_v43  ;;  %v628_v43 = vld [vmem:[#allocation2 + $0x2da] sm:$0xff] }
 0x29c   :  { %2018 = vrot.lane.b32.xlu0 %v623_v26, %s4384_s10 }
 0x29d   :  { %v5744_v46 = vpop.permute.xlu1 %1772 }
 0x29e   :  { %7679 = vst [vmem:[#allocation223_spill] sm:$0xff] %v5744_v46  ;;  %v5754_v0 = vpop.permute.xlu0 %1778 }
 0x29f   :  { %2016 = vrot.lane.b32.xlu1 %v622_v45, %s4384_s10  ;;  %7682 = vst [vmem:[#allocation226_spill] sm:$0xff] %v5754_v0  ;;  %v627_v45 = vld [vmem:[#allocation2 + $0x2d2] sm:$0xff] }
 0x2a0   :  { %2022 = vrot.lane.b32.xlu0 %v625_v13, %s4384_s10  ;;  %v630_v0 = vld [vmem:[#allocation2 + $0x2f2] sm:$0xff]  ;;  %v631_v13 = vld [vmem:[#allocation2 + $0x302] sm:$0xff] }
 0x2a1   :  { %v5750_v50 = vpop.permute.xlu1 %1776 }
 0x2a2   :  { %7681 = vst [vmem:[#allocation225_spill] sm:$0xff] %v5750_v50  ;;  %v5760_v54 = vpop.permute.xlu0 %1782 }
 0x2a3   :  { %2020 = vrot.lane.b32.xlu1 %v624_v16, %s4384_s10  ;;  %7684 = vst [vmem:[#allocation228_spill] sm:$0xff] %v5760_v54  ;;  %v629_v16 = vld [vmem:[#allocation2 + $0x2ea] sm:$0xff] }
 0x2a4   :  { %2026 = vrot.lane.b32.xlu0 %v627_v45, %s4384_s10  ;;  %v632_v54 = vld [vmem:[#allocation2 + $0x30a] sm:$0xff] }
 0x2a5   :  { %v5756_v25 = vpop.permute.xlu1 %1780 }
 0x2a6   :  { %7683 = vst [vmem:[#allocation227_spill] sm:$0xff] %v5756_v25  ;;  %v5766_v26 = vpop.permute.xlu0 %1786 }
 0x2a7   :  { %2024 = vrot.lane.b32.xlu1 %v626_v10, %s4384_s10  ;;  %7686 = vst [vmem:[#allocation230_spill] sm:$0xff] %v5766_v26  ;;  %v634_v26 = vld [vmem:[#allocation2 + $0x322] sm:$0xff] }
 0x2a8   :  { %2030 = vrot.lane.b32.xlu0 %v629_v16, %s4384_s10 }
 0x2a9   :  { %v5762_v46 = vpop.permute.xlu1 %1784 }
 0x2aa   :  { %7685 = vst [vmem:[#allocation229_spill] sm:$0xff] %v5762_v46  ;;  %v5772_v10 = vpop.permute.xlu0 %1918 }
 0x2ab   :  { %2028 = vrot.lane.b32.xlu1 %v628_v43, %s4384_s10  ;;  %v633_v43 = vld [vmem:[#allocation2 + $0x31a] sm:$0xff] }
 0x2ac   :  { %2034 = vrot.lane.b32.xlu0 %v631_v13, %s4384_s10 }
 0x2ad   :  { %v5768_v50 = vpop.permute.xlu1 %1788 }
 0x2ae   :  { %7687 = vst [vmem:[#allocation231_spill] sm:$0xff] %v5768_v50  ;;  %v5778_v45 = vpop.permute.xlu0 %1922  ;;  %v636_v50 = vld [vmem:[#allocation2 + $0x33a] sm:$0xff] }
 0x2af   :  { %2032 = vrot.lane.b32.xlu1 %v630_v0, %s4384_s10  ;;  %v635_v0 = vld [vmem:[#allocation2 + $0x332] sm:$0xff] }
 0x2b0   :  { %2038 = vrot.lane.b32.xlu0 %v633_v43, %s4384_s10 }
 0x2b1   :  { %v5774_v25 = vpop.permute.xlu1 %1920 }
 0x2b2   :  { %v5784_v16 = vpop.permute.xlu0 %1926 }
 0x2b3   :  { %2036 = vrot.lane.b32.xlu1 %v632_v54, %s4384_s10  ;;  %7689 = vst [vmem:[#allocation233_spill] sm:$0xff] %v5784_v16  ;;  %v638_v54 = vld [vmem:[#allocation2 + $0x30] sm:$0xff] }
 0x2b4   :  { %2042 = vrot.lane.b32.xlu0 %v635_v0, %s4384_s10  ;;  %v641_v16 = vld [vmem:[#allocation2 + $0x50] sm:$0xff] }
 0x2b5   :  { %v5780_v46 = vpop.permute.xlu1 %1924 }
 0x2b6   :  { %7688 = vst [vmem:[#allocation232_spill] sm:$0xff] %v5780_v46  ;;  %v5790_v13 = vpop.permute.xlu0 %1930 }
 0x2b7   :  { %2040 = vrot.lane.b32.xlu1 %v634_v26, %s4384_s10  ;;  %7691 = vst [vmem:[#allocation235_spill] sm:$0xff] %v5790_v13  ;;  %v640_v26 = vld [vmem:[#allocation2 + $0x48] sm:$0xff] }
 0x2b8   :  { %2174 = vrot.lane.b32.xlu0 %v638_v54, %s4385_s11  ;;  %v643_v13 = vld [vmem:[#allocation2 + $0x68] sm:$0xff] }
 0x2b9   :  { %v5786_v33 = vpop.permute.xlu1 %1928 }
 0x2ba   :  { %7690 = vst [vmem:[#allocation234_spill] sm:$0xff] %v5786_v33  ;;  %v5796_v43 = vpop.permute.xlu0 %1934 }
 0x2bb   :  { %2044 = vrot.lane.b32.xlu1 %v636_v50, %s4384_s10  ;;  %7693 = vst [vmem:[#allocation237_spill] sm:$0xff] %v5796_v43  ;;  %v642_v50 = vld [vmem:[#allocation2 + $0x60] sm:$0xff] }
 0x2bc   :  { %2178 = vrot.lane.b32.xlu0 %v640_v26, %s4385_s11  ;;  %v645_v43 = vld [vmem:[#allocation2 + $0x80] sm:$0xff] }
 0x2bd   :  { %v5792_v59 = vpop.permute.xlu1 %1932 }
 0x2be   :  { %7692 = vst [vmem:[#allocation236_spill] sm:$0xff] %v5792_v59  ;;  %v5802_v0 = vpop.permute.xlu0 %1938 }
 0x2bf   :  { %2176 = vrot.lane.b32.xlu1 %v639_v55, %s4385_s11  ;;  %7695 = vst [vmem:[#allocation239_spill] sm:$0xff] %v5802_v0  ;;  %v644_v55 = vld [vmem:[#allocation2 + $0x78] sm:$0xff] }
 0x2c0   :  { %2182 = vrot.lane.b32.xlu0 %v642_v50, %s4385_s11  ;;  %v647_v0 = vld [vmem:[#allocation2 + $0x98] sm:$0xff] }
 0x2c1   :  { %v5798_v33 = vpop.permute.xlu1 %1936 }
 0x2c2   :  { %7694 = vst [vmem:[#allocation238_spill] sm:$0xff] %v5798_v33  ;;  %v5808_v54 = vpop.permute.xlu0 %1942 }
 0x2c3   :  { %2180 = vrot.lane.b32.xlu1 %v641_v16, %s4385_s11  ;;  %7697 = vst [vmem:[#allocation241_spill] sm:$0xff] %v5808_v54  ;;  %v646_v16 = vld [vmem:[#allocation2 + $0x90] sm:$0xff] }
 0x2c4   :  { %2186 = vrot.lane.b32.xlu0 %v644_v55, %s4385_s11  ;;  %v649_v54 = vld [vmem:[#allocation2 + $0xb0] sm:$0xff] }
 0x2c5   :  { %v5804_v59 = vpop.permute.xlu1 %1940 }
 0x2c6   :  { %7696 = vst [vmem:[#allocation240_spill] sm:$0xff] %v5804_v59  ;;  %v5814_v26 = vpop.permute.xlu0 %1946 }
 0x2c7   :  { %2184 = vrot.lane.b32.xlu1 %v643_v13, %s4385_s11  ;;  %7699 = vst [vmem:[#allocation243_spill] sm:$0xff] %v5814_v26  ;;  %v648_v13 = vld [vmem:[#allocation2 + $0xa8] sm:$0xff] }
 0x2c8   :  { %2190 = vrot.lane.b32.xlu0 %v646_v16, %s4385_s11  ;;  %v651_v26 = vld [vmem:[#allocation2 + $0xc8] sm:$0xff] }
 0x2c9   :  { %v5810_v46 = vpop.permute.xlu1 %1944 }
 0x2ca   :  { %7698 = vst [vmem:[#allocation242_spill] sm:$0xff] %v5810_v46  ;;  %v5820_v50 = vpop.permute.xlu0 %1950 }
 0x2cb   :  { %2188 = vrot.lane.b32.xlu1 %v645_v43, %s4385_s11  ;;  %7701 = vst [vmem:[#allocation245_spill] sm:$0xff] %v5820_v50  ;;  %v650_v43 = vld [vmem:[#allocation2 + $0xc0] sm:$0xff] }
 0x2cc   :  { %2194 = vrot.lane.b32.xlu0 %v648_v13, %s4385_s11  ;;  %v653_v50 = vld [vmem:[#allocation2 + $0xe0] sm:$0xff] }
 0x2cd   :  { %v5816_v33 = vpop.permute.xlu1 %1948 }
 0x2ce   :  { %7700 = vst [vmem:[#allocation244_spill] sm:$0xff] %v5816_v33  ;;  %v5826_v55 = vpop.permute.xlu0 %1954 }
 0x2cf   :  { %2192 = vrot.lane.b32.xlu1 %v647_v0, %s4385_s11  ;;  %7703 = vst [vmem:[#allocation247_spill] sm:$0xff] %v5826_v55  ;;  %v652_v0 = vld [vmem:[#allocation2 + $0xd8] sm:$0xff] }
 0x2d0   :  { %2198 = vrot.lane.b32.xlu0 %v650_v43, %s4385_s11  ;;  %v655_v55 = vld [vmem:[#allocation2 + $0xf8] sm:$0xff] }
 0x2d1   :  { %v5822_v59 = vpop.permute.xlu1 %1952 }
 0x2d2   :  { %7702 = vst [vmem:[#allocation246_spill] sm:$0xff] %v5822_v59  ;;  %v5832_v16 = vpop.permute.xlu0 %1958 }
 0x2d3   :  { %2196 = vrot.lane.b32.xlu1 %v649_v54, %s4385_s11  ;;  %7705 = vst [vmem:[#allocation249_spill] sm:$0xff] %v5832_v16  ;;  %v654_v54 = vld [vmem:[#allocation2 + $0xf0] sm:$0xff] }
 0x2d4   :  { %2202 = vrot.lane.b32.xlu0 %v652_v0, %s4385_s11  ;;  %v657_v16 = vld [vmem:[#allocation2 + $0x110] sm:$0xff] }
 0x2d5   :  { %v5828_v46 = vpop.permute.xlu1 %1956 }
 0x2d6   :  { %7704 = vst [vmem:[#allocation248_spill] sm:$0xff] %v5828_v46  ;;  %v5838_v13 = vpop.permute.xlu0 %1962 }
 0x2d7   :  { %2200 = vrot.lane.b32.xlu1 %v651_v26, %s4385_s11  ;;  %7707 = vst [vmem:[#allocation251_spill] sm:$0xff] %v5838_v13  ;;  %v656_v26 = vld [vmem:[#allocation2 + $0x108] sm:$0xff] }
 0x2d8   :  { %2206 = vrot.lane.b32.xlu0 %v654_v54, %s4385_s11  ;;  %v659_v13 = vld [vmem:[#allocation2 + $0x128] sm:$0xff] }
 0x2d9   :  { %v5834_v33 = vpop.permute.xlu1 %1960 }
 0x2da   :  { %7706 = vst [vmem:[#allocation250_spill] sm:$0xff] %v5834_v33  ;;  %v5844_v43 = vpop.permute.xlu0 %1966 }
 0x2db   :  { %2204 = vrot.lane.b32.xlu1 %v653_v50, %s4385_s11  ;;  %7709 = vst [vmem:[#allocation253_spill] sm:$0xff] %v5844_v43  ;;  %v658_v50 = vld [vmem:[#allocation2 + $0x120] sm:$0xff] }
 0x2dc   :  { %2210 = vrot.lane.b32.xlu0 %v656_v26, %s4385_s11  ;;  %v661_v43 = vld [vmem:[#allocation2 + $0x140] sm:$0xff] }
 0x2dd   :  { %v5840_v59 = vpop.permute.xlu1 %1964 }
 0x2de   :  { %7708 = vst [vmem:[#allocation252_spill] sm:$0xff] %v5840_v59  ;;  %v5850_v0 = vpop.permute.xlu0 %1970 }
 0x2df   :  { %2208 = vrot.lane.b32.xlu1 %v655_v55, %s4385_s11  ;;  %7711 = vst [vmem:[#allocation255_spill] sm:$0xff] %v5850_v0  ;;  %v660_v55 = vld [vmem:[#allocation2 + $0x138] sm:$0xff] }
 0x2e0   :  { %2214 = vrot.lane.b32.xlu0 %v658_v50, %s4385_s11  ;;  %v663_v0 = vld [vmem:[#allocation2 + $0x158] sm:$0xff] }
 0x2e1   :  { %v5846_v46 = vpop.permute.xlu1 %1968 }
 0x2e2   :  { %7710 = vst [vmem:[#allocation254_spill] sm:$0xff] %v5846_v46  ;;  %v5856_v54 = vpop.permute.xlu0 %1974 }
 0x2e3   :  { %2212 = vrot.lane.b32.xlu1 %v657_v16, %s4385_s11  ;;  %7713 = vst [vmem:[#allocation257_spill] sm:$0xff] %v5856_v54  ;;  %v662_v16 = vld [vmem:[#allocation2 + $0x150] sm:$0xff] }
 0x2e4   :  { %2218 = vrot.lane.b32.xlu0 %v660_v55, %s4385_s11  ;;  %v665_v54 = vld [vmem:[#allocation2 + $0x170] sm:$0xff] }
 0x2e5   :  { %v5852_v33 = vpop.permute.xlu1 %1972 }
 0x2e6   :  { %7712 = vst [vmem:[#allocation256_spill] sm:$0xff] %v5852_v33  ;;  %v5862_v26 = vpop.permute.xlu0 %1978 }
 0x2e7   :  { %2216 = vrot.lane.b32.xlu1 %v659_v13, %s4385_s11  ;;  %7715 = vst [vmem:[#allocation259_spill] sm:$0xff] %v5862_v26  ;;  %v664_v13 = vld [vmem:[#allocation2 + $0x168] sm:$0xff] }
 0x2e8   :  { %2222 = vrot.lane.b32.xlu0 %v662_v16, %s4385_s11  ;;  %v667_v26 = vld [vmem:[#allocation2 + $0x188] sm:$0xff]  ;;  %v3401_v16 = vld [vmem:[%s7456_s1 + $0x20] sm:$0xf] }
 0x2e9   :  { %v5858_v59 = vpop.permute.xlu1 %1976  ;;  %4194 = vmatprep.subr.msk.mxu0 %vm3602_vm2, %v3401_v16  ;;  %4300 = vmatprep.subr.msk.mxu1 %vm3602_vm2, %v3401_v16 }
 0x2ea   :  { %7714 = vst [vmem:[#allocation258_spill] sm:$0xff] %v5858_v59  ;;  %v5868_v50 = vpop.permute.xlu0 %1982  ;;  %4195 = vmatpush3.msk.msra.mxu0 %vm3602_vm2, %v3401_v16  ;;  %4305 = vmatpush3.msk.msra.mxu1 %vm3602_vm2, %v3401_v16 }
 0x2eb   :  { %2220 = vrot.lane.b32.xlu1 %v661_v43, %s4385_s11  ;;  %v666_v43 = vld [vmem:[#allocation2 + $0x180] sm:$0xff] }
 0x2ec   :  { %2226 = vrot.lane.b32.xlu0 %v664_v13, %s4385_s11  ;;  %v669_v13 = vld [vmem:[#allocation2 + $0x1a0] sm:$0xff] }
 0x2ed   :  { %v5864_v46 = vpop.permute.xlu1 %1980 }
 0x2ee   :  { %7716 = vst [vmem:[#allocation260_spill] sm:$0xff] %v5864_v46  ;;  %v5874_v55 = vpop.permute.xlu0 %1986 }
 0x2ef   :  { %2224 = vrot.lane.b32.xlu1 %v663_v0, %s4385_s11  ;;  %v668_v0 = vld [vmem:[#allocation2 + $0x198] sm:$0xff] }
 0x2f0   :  { %2230 = vrot.lane.b32.xlu0 %v666_v43, %s4385_s11  ;;  %v3400_v43 = vld [vmem:[%s7456_s1 + $0x18] sm:$0xff] }
 0x2f1   :  { %v5870_v33 = vpop.permute.xlu1 %1984  ;;  %4196 = vmatprep.subr.mxu0 %v3400_v43  ;;  %4301 = vmatprep.subr.mxu1 %v3400_v43 }
 0x2f2   :  { %v5883_v46 = vpop.permute.xlu0 %1990  ;;  %4197 = vmatpush3.msra.mxu0 %v3400_v43  ;;  %4306 = vmatpush3.msra.mxu1 %v3400_v43 }
 0x2f3   :  { %2228 = vrot.lane.b32.xlu1 %v665_v54, %s4385_s11  ;;  %7718 = vst [vmem:[#allocation262_spill] sm:$0xff] %v5883_v46  ;;  %v3399_v46 = vld [vmem:[%s7456_s1 + $0x10] sm:$0xff] }
 0x2f4   :  { %2234 = vrot.lane.b32.xlu0 %v668_v0, %s4385_s11  ;;  %4198 = vmatprep.subr.mxu0 %v3399_v46  ;;  %v3398_v0 = vld [vmem:[%s7456_s1 + $0x8] sm:$0xff] }
 0x2f5   :  { %v5876_v59 = vpop.permute.xlu1 %1988  ;;  %4302 = vmatprep.subr.mxu1 %v3399_v46  ;;  %4199 = vmatpush3.msra.mxu0 %v3399_v46 }
 0x2f6   :  { %7717 = vst [vmem:[#allocation261_spill] sm:$0xff] %v5876_v59  ;;  %v5895_v59 = vpop.permute.xlu0 %1994  ;;  %4307 = vmatpush3.msra.mxu1 %v3399_v46  ;;  %4200 = vmatprep.subr.mxu0 %v3398_v0  ;;  %v703_v46 = vld [vmem:[#allocation2 + $0x39] sm:$0xff] }
 0x2f7   :  { %2232 = vrot.lane.b32.xlu1 %v667_v26, %s4385_s11  ;;  %v670_v26 = vld [vmem:[#allocation2 + $0x1e0] sm:$0xff]  ;;  %7720 = vst [vmem:[#allocation264_spill] sm:$0xff] %v5895_v59  ;;  %4303 = vmatprep.subr.mxu1 %v3398_v0 }
 0x2f8   :  { %2238 = vrot.lane.b32.xlu0 %v670_v26, %s4385_s11  ;;  %v3397_v59 = vld [vmem:[%s7456_s1] sm:$0xff]  ;;  %4201 = vmatpush3.msra.mxu0 %v3398_v0  ;;  %v735_v26 = vld [vmem:[#allocation2 + $0x1e9] sm:$0xff]  ;;  %s4387_s1 = smov 32  }
 0x2f9   :  { %v5885_v54 = vpop.permute.xlu1 %1992  ;;  %4308 = vmatpush3.msra.mxu1 %v3398_v0  ;;  %4202 = vmatprep.subr.mxu0 %v3397_v59 }
 0x2fa   :  { %7719 = vst [vmem:[#allocation263_spill] sm:$0xff] %v5885_v54  ;;  %v671_v54 = vld [vmem:[#allocation2 + $0x1e8] sm:$0xff]  ;;  %v5907_v43 = vpop.permute.xlu0 %1998  ;;  %4304 = vmatprep.subr.mxu1 %v3397_v59  ;;  %4203 = vmatpush3.msra.mxu0 %v3397_v59 }
 0x2fb   :  { %2236 = vrot.lane.b32.xlu1 %v669_v13, %s4385_s11  ;;  %v702_v13 = vld [vmem:[#allocation2 + $0x31] sm:$0xff]  ;;  %7722 = vst [vmem:[#allocation266_spill] sm:$0xff] %v5907_v43  ;;  %4309 = vmatpush3.msra.mxu1 %v3397_v59 }
 0x2fc   :  { %2430 = vrot.lane.b32.xlu0 %v702_v13, %s4386_s22  ;;  %v672_v13 = vld [vmem:[#allocation2 + $0x1f8] sm:$0xff] }
 0x2fd   :  { %v5897_v16 = vpop.permute.xlu1 %1996 }
 0x2fe   :  { %7721 = vst [vmem:[#allocation265_spill] sm:$0xff] %v5897_v16  ;;  %v734_v16 = vld [vmem:[#allocation2 + $0x1e1] sm:$0xff] }
 0x2ff   :  { %2240 = vrot.lane.b32.xlu1 %v671_v54, %s4385_s11  ;;  %v5913_v54 = vpop.permute.xlu0 %2002 }
 0x300   :  { %2432 = vrot.lane.b32.xlu0 %v703_v46, %s4386_s22 }
 0x301   :  { %v5909_v15 = vpop.permute.xlu1 %2000 }
 0x302   :  { %7723 = vst [vmem:[#allocation267_spill] sm:$0xff] %v5909_v15 }
 0x303   :  { %2494 = vrot.lane.b32.xlu1 %v734_v16, %s4386_s22  ;;  %v5919_v0 = vpop.permute.xlu0 %2006 }
 0x304   :  { %7724 = vst [vmem:[#allocation268_spill] sm:$0xff] %v5919_v0  ;;  %2686 = vrot.lane.b32.xlu0 %v5538_v47, %s4387_s1  ;;  %v704_v47 = vld [vmem:[#allocation2 + $0x49] sm:$0xff] }
 0x305   :  { %v5915_v43 = vpop.permute.xlu1 %2004 }
 0x307   :  { %2496 = vrot.lane.b32.xlu1 %v735_v26, %s4386_s22  ;;  %v5927_v16 = vpop.permute.xlu0 %2010  ;;  %v673_v26 = vld [vmem:[#allocation2 + $0x200] sm:$0xff] }
 0x308   :  { %7726 = vst [vmem:[#allocation270_spill] sm:$0xff] %v5927_v16  ;;  %2688 = vrot.lane.b32.xlu0 %v5542_v29, %s4387_s1  ;;  %v705_v29 = vld [vmem:[#allocation2 + $0x51] sm:$0xff] }
 0x309   :  { %v5921_v15 = vpop.permute.xlu1 %2008 }
 0x30a   :  { %7725 = vst [vmem:[#allocation269_spill] sm:$0xff] %v5921_v15 }
 0x30b   :  { %2750 = vrot.lane.b32.xlu1 %v5658_v8, %s4387_s1  ;;  %v5935_v46 = vpop.permute.xlu0 %2014 }
 0x30c   :  { %7728 = vst [vmem:[#allocation272_spill] sm:$0xff] %v5935_v46  ;;  %2242 = vrot.lane.b32.xlu0 %v672_v13, %s4385_s11  ;;  %v737_v46 = vld [vmem:[#allocation2 + $0x201] sm:$0xff] }
 0x30d   :  { %v5929_v59 = vpop.permute.xlu1 %2012 }
 0x30e   :  { %7727 = vst [vmem:[#allocation271_spill] sm:$0xff] %v5929_v59  ;;  %v736_v59 = vld [vmem:[#allocation2 + $0x1f9] sm:$0xff] }
 0x30f   :  { %2752 = vrot.lane.b32.xlu1 %v5662_v32, %s4387_s1  ;;  %v5941_v8 = vpop.permute.xlu0 %2018 }
 0x310   :  { %7730 = vst [vmem:[#allocation274_spill] sm:$0xff] %v5941_v8  ;;  %2434 = vrot.lane.b32.xlu0 %v704_v47, %s4386_s22 }
 0x311   :  { %v5937_v15 = vpop.permute.xlu1 %2016 }
 0x312   :  { %7729 = vst [vmem:[#allocation273_spill] sm:$0xff] %v5937_v15  ;;  %v742_v15 = vld [vmem:[#allocation2 + $0x241] sm:$0xff] }
 0x313   :  { %2244 = vrot.lane.b32.xlu1 %v673_v26, %s4385_s11  ;;  %v5947_v32 = vpop.permute.xlu0 %2022 }
 0x314   :  { %7732 = vst [vmem:[#allocation276_spill] sm:$0xff] %v5947_v32  ;;  %2436 = vrot.lane.b32.xlu0 %v705_v29, %s4386_s22 }
 0x315   :  { %v5943_v16 = vpop.permute.xlu1 %2020 }
 0x316   :  { %7731 = vst [vmem:[#allocation275_spill] sm:$0xff] %v5943_v16  ;;  %v679_v16 = vld [vmem:[#allocation2 + $0x248] sm:$0xff] }
 0x317   :  { %2498 = vrot.lane.b32.xlu1 %v736_v59, %s4386_s22  ;;  %v5953_v13 = vpop.permute.xlu0 %2026 }
 0x318   :  { %7734 = vst [vmem:[#allocation278_spill] sm:$0xff] %v5953_v13  ;;  %2690 = vrot.lane.b32.xlu0 %v5550_v41, %s4387_s1  ;;  %v706_v41 = vld [vmem:[#allocation2 + $0x61] sm:$0xff] }
 0x319   :  { %v5949_v0 = vpop.permute.xlu1 %2024 }
 0x31a   :  { %7733 = vst [vmem:[#allocation277_spill] sm:$0xff] %v5949_v0 }
 0x31b   :  { %2500 = vrot.lane.b32.xlu1 %v737_v46, %s4386_s22  ;;  %v5961_v59 = vpop.permute.xlu0 %2030  ;;  %v674_v46 = vld [vmem:[#allocation2 + $0x210] sm:$0xff] }
 0x31c   :  { %7736 = vst [vmem:[#allocation280_spill] sm:$0xff] %v5961_v59  ;;  %2692 = vrot.lane.b32.xlu0 %v5554_v53, %s4387_s1  ;;  %v707_v53 = vld [vmem:[#allocation2 + $0x69] sm:$0xff] }
 0x31d   :  { %v5955_v26 = vpop.permute.xlu1 %2028 }
 0x31e   :  { %7735 = vst [vmem:[#allocation279_spill] sm:$0xff] %v5955_v26  ;;  %v675_v26 = vld [vmem:[#allocation2 + $0x218] sm:$0xff] }
 0x31f   :  { %2754 = vrot.lane.b32.xlu1 %v5670_v3, %s4387_s1  ;;  %v5969_v29 = vpop.permute.xlu0 %2034 }
 0x320   :  { %7738 = vst [vmem:[#allocation282_spill] sm:$0xff] %v5969_v29  ;;  %2246 = vrot.lane.b32.xlu0 %v674_v46, %s4385_s11  ;;  %v739_v29 = vld [vmem:[#allocation2 + $0x219] sm:$0xff] }
 0x321   :  { %v5963_v47 = vpop.permute.xlu1 %2032 }
 0x322   :  { %7737 = vst [vmem:[#allocation281_spill] sm:$0xff] %v5963_v47  ;;  %v738_v47 = vld [vmem:[#allocation2 + $0x211] sm:$0xff] }
 0x323   :  { %2756 = vrot.lane.b32.xlu1 %v5674_v12, %s4387_s1  ;;  %v5975_v3 = vpop.permute.xlu0 %2038 }
 0x324   :  { %7740 = vst [vmem:[#allocation284_spill] sm:$0xff] %v5975_v3  ;;  %2438 = vrot.lane.b32.xlu0 %v706_v41, %s4386_s22 }
 0x325   :  { %v5971_v13 = vpop.permute.xlu1 %2036 }
 0x326   :  { %7739 = vst [vmem:[#allocation283_spill] sm:$0xff] %v5971_v13  ;;  %v741_v13 = vld [vmem:[#allocation2 + $0x231] sm:$0xff] }
 0x327   :  { %2248 = vrot.lane.b32.xlu1 %v675_v26, %s4385_s11  ;;  %v5981_v12 = vpop.permute.xlu0 %2042 }
 0x328   :  { %7742 = vst [vmem:[#allocation286_spill] sm:$0xff] %v5981_v12  ;;  %2440 = vrot.lane.b32.xlu0 %v707_v53, %s4386_s22 }
 0x329   :  { %v5977_v59 = vpop.permute.xlu1 %2040 }
 0x32a   :  { %7741 = vst [vmem:[#allocation285_spill] sm:$0xff] %v5977_v59  ;;  %v740_v59 = vld [vmem:[#allocation2 + $0x229] sm:$0xff] }
 0x32b   :  { %2502 = vrot.lane.b32.xlu1 %v738_v47, %s4386_s22  ;;  %v5987_v26 = vpop.permute.xlu0 %2174 }
 0x32c   :  { %2694 = vrot.lane.b32.xlu0 %v5562_v22, %s4387_s1 }
 0x32d   :  { %v5983_v0 = vpop.permute.xlu1 %2044 }
 0x32e   :  { %7743 = vst [vmem:[#allocation287_spill] sm:$0xff] %v5983_v0  ;;  %v677_v0 = vld [vmem:[#allocation2 + $0x230] sm:$0xff] }
 0x32f   :  { %2504 = vrot.lane.b32.xlu1 %v739_v29, %s4386_s22  ;;  %v5995_v47 = vpop.permute.xlu0 %2178  ;;  %v676_v29 = vld [vmem:[#allocation2 + $0x228] sm:$0xff] }
 0x330   :  { %2696 = vrot.lane.b32.xlu0 %v5566_v35, %s4387_s1 }
 0x331   :  { %v5989_v46 = vpop.permute.xlu1 %2176 }
 0x333   :  { %2758 = vrot.lane.b32.xlu1 %v5682_v51, %s4387_s1  ;;  %v6003_v53 = vpop.permute.xlu0 %2182  ;;  %v708_v51 = vld [vmem:[#allocation2 + $0x79] sm:$0xff] }
 0x334   :  { %2250 = vrot.lane.b32.xlu0 %v676_v29, %s4385_s11 }
 0x335   :  { %v5997_v41 = vpop.permute.xlu1 %2180 }
 0x337   :  { %2760 = vrot.lane.b32.xlu1 %v5686_v4, %s4387_s1  ;;  %v6009_v22 = vpop.permute.xlu0 %2186  ;;  %v709_v4 = vld [vmem:[#allocation2 + $0x81] sm:$0xff] }
 0x338   :  { %2442 = vrot.lane.b32.xlu0 %v708_v51, %s4386_s22 }
 0x339   :  { %v6005_v12 = vpop.permute.xlu1 %2184 }
 0x33b   :  { %2252 = vrot.lane.b32.xlu1 %v677_v0, %s4385_s11  ;;  %v6015_v35 = vpop.permute.xlu0 %2190 }
 0x33c   :  { %2444 = vrot.lane.b32.xlu0 %v709_v4, %s4386_s22 }
 0x33d   :  { %v6011_v3 = vpop.permute.xlu1 %2188 }
 0x33f   :  { %2506 = vrot.lane.b32.xlu1 %v740_v59, %s4386_s22  ;;  %v6021_v0 = vpop.permute.xlu0 %2194 }
 0x340   :  { %2698 = vrot.lane.b32.xlu0 %v5574_v28, %s4387_s1  ;;  %v710_v28 = vld [vmem:[#allocation2 + $0x91] sm:$0xff] }
 0x341   :  { %v6017_v32 = vpop.permute.xlu1 %2192 }
 0x343   :  { %2508 = vrot.lane.b32.xlu1 %v741_v13, %s4386_s22  ;;  %v6029_v59 = vpop.permute.xlu0 %2198  ;;  %v678_v13 = vld [vmem:[#allocation2 + $0x240] sm:$0xff] }
 0x344   :  { %7744 = vst [vmem:[#allocation288_spill] sm:$0xff] %v6029_v59  ;;  %2700 = vrot.lane.b32.xlu0 %v5578_v42, %s4387_s1 }
 0x345   :  { %v6023_v29 = vpop.permute.xlu1 %2196 }
 0x347   :  { %2762 = vrot.lane.b32.xlu1 %v5694_v21, %s4387_s1  ;;  %v6037_v4 = vpop.permute.xlu0 %2202 }
 0x348   :  { %7746 = vst [vmem:[#allocation290_spill] sm:$0xff] %v6037_v4  ;;  %2254 = vrot.lane.b32.xlu0 %v678_v13, %s4385_s11  ;;  %v743_v4 = vld [vmem:[#allocation2 + $0x249] sm:$0xff] }
 0x349   :  { %v6031_v51 = vpop.permute.xlu1 %2200 }
 0x34a   :  { %7745 = vst [vmem:[#allocation289_spill] sm:$0xff] %v6031_v51 }
 0x34b   :  { %2764 = vrot.lane.b32.xlu1 %v5698_v48, %s4387_s1  ;;  %v6043_v21 = vpop.permute.xlu0 %2206  ;;  %v711_v48 = vld [vmem:[#allocation2 + $0x99] sm:$0xff] }
 0x34c   :  { %7748 = vst [vmem:[#allocation292_spill] sm:$0xff] %v6043_v21  ;;  %2446 = vrot.lane.b32.xlu0 %v710_v28, %s4386_s22 }
 0x34d   :  { %v6039_v8 = vpop.permute.xlu1 %2204 }
 0x34e   :  { %7747 = vst [vmem:[#allocation291_spill] sm:$0xff] %v6039_v8 }
 0x34f   :  { %2256 = vrot.lane.b32.xlu1 %v679_v16, %s4385_s11  ;;  %v6049_v42 = vpop.permute.xlu0 %2210  ;;  %v774_v16 = vld [vmem:[#allocation2 + $0x92] sm:$0xff] }
 0x350   :  { %7750 = vst [vmem:[#allocation294_spill] sm:$0xff] %v6049_v42  ;;  %2448 = vrot.lane.b32.xlu0 %v711_v48, %s4386_s22 }
 0x351   :  { %v6045_v51 = vpop.permute.xlu1 %2208 }
 0x352   :  { %7749 = vst [vmem:[#allocation293_spill] sm:$0xff] %v6045_v51  ;;  %v714_v51 = vld [vmem:[#allocation2 + $0xc1] sm:$0xff] }
 0x353   :  { %2510 = vrot.lane.b32.xlu1 %v742_v15, %s4386_s22  ;;  %v6055_v13 = vpop.permute.xlu0 %2214  ;;  %v775_v15 = vld [vmem:[#allocation2 + $0x9a] sm:$0xff] }
 0x354   :  { %7752 = vst [vmem:[#allocation296_spill] sm:$0xff] %v6055_v13  ;;  %2702 = vrot.lane.b32.xlu0 %v774_v16, %s4387_s1  ;;  %v681_v13 = vld [vmem:[#allocation2 + $0x260] sm:$0xff] }
 0x355   :  { %v6051_v59 = vpop.permute.xlu1 %2212 }
 0x356   :  { %7751 = vst [vmem:[#allocation295_spill] sm:$0xff] %v6051_v59 }
 0x357   :  { %2512 = vrot.lane.b32.xlu1 %v743_v4, %s4386_s22  ;;  %v6062_v28 = vpop.permute.xlu0 %2218  ;;  %v680_v4 = vld [vmem:[#allocation2 + $0x258] sm:$0xff] }
 0x358   :  { %7754 = vst [vmem:[#allocation298_spill] sm:$0xff] %v6062_v28  ;;  %2704 = vrot.lane.b32.xlu0 %v775_v15, %s4387_s1  ;;  %v744_v28 = vld [vmem:[#allocation2 + $0x259] sm:$0xff] }
 0x359   :  { %v6057_v21 = vpop.permute.xlu1 %2216 }
 0x35a   :  { %7753 = vst [vmem:[#allocation297_spill] sm:$0xff] %v6057_v21 }
 0x35b   :  { %2766 = vrot.lane.b32.xlu1 %v5706_v19, %s4387_s1  ;;  %v6069_v48 = vpop.permute.xlu0 %2222  ;;  %v712_v19 = vld [vmem:[#allocation2 + $0xa9] sm:$0xff] }
 0x35c   :  { %7756 = vst [vmem:[#allocation300_spill] sm:$0xff] %v6069_v48  ;;  %2258 = vrot.lane.b32.xlu0 %v680_v4, %s4385_s11  ;;  %v745_v48 = vld [vmem:[#allocation2 + $0x261] sm:$0xff] }
 0x35d   :  { %v6064_v42 = vpop.permute.xlu1 %2220 }
 0x35e   :  { %7755 = vst [vmem:[#allocation299_spill] sm:$0xff] %v6064_v42 }
 0x35f   :  { %2768 = vrot.lane.b32.xlu1 %v5710_v7, %s4387_s1  ;;  %v6075_v16 = vpop.permute.xlu0 %2226  ;;  %v713_v7 = vld [vmem:[#allocation2 + $0xb1] sm:$0xff] }
 0x360   :  { %7758 = vst [vmem:[#allocation302_spill] sm:$0xff] %v6075_v16  ;;  %2450 = vrot.lane.b32.xlu0 %v712_v19, %s4386_s22 }
 0x361   :  { %v6071_v21 = vpop.permute.xlu1 %2224 }
 0x362   :  { %7757 = vst [vmem:[#allocation301_spill] sm:$0xff] %v6071_v21  ;;  %v286_v21 = vld [vmem:[#allocation2 + $0x1b8] sm:$0xff] }
 0x363   :  { %2260 = vrot.lane.b32.xlu1 %v681_v13, %s4385_s11  ;;  %v6081_v15 = vpop.permute.xlu0 %2230  ;;  %v776_v13 = vld [vmem:[#allocation2 + $0xaa] sm:$0xff] }
 0x364   :  { %7760 = vst [vmem:[#allocation304_spill] sm:$0xff] %v6081_v15  ;;  %2452 = vrot.lane.b32.xlu0 %v713_v7, %s4386_s22  ;;  %v285_v7 = vld [vmem:[#allocation2 + $0x1b0] sm:$0xff] }
 0x365   :  { %v6077_v42 = vpop.permute.xlu1 %2228 }
 0x366   :  { %7759 = vst [vmem:[#allocation303_spill] sm:$0xff] %v6077_v42  ;;  %v254_v42 = vld [vmem:[#allocation2 + $0x8] sm:$0xff] }
 0x367   :  { %2514 = vrot.lane.b32.xlu1 %v744_v28, %s4386_s22  ;;  %v6087_v4 = vpop.permute.xlu0 %2234  ;;  %v777_v28 = vld [vmem:[#allocation2 + $0xb2] sm:$0xff] }
 0x368   :  { %7762 = vst [vmem:[#allocation306_spill] sm:$0xff] %v6087_v4  ;;  %2706 = vrot.lane.b32.xlu0 %v776_v13, %s4387_s1 }
 0x369   :  { %v6083_v59 = vpop.permute.xlu1 %2232 }
 0x36a   :  { %7761 = vst [vmem:[#allocation305_spill] sm:$0xff] %v6083_v59  ;;  %v253_v59 = vld [vmem:[#allocation2] sm:$0xff] }
 0x36b   :  { %2516 = vrot.lane.b32.xlu1 %v745_v48, %s4386_s22  ;;  %v2239_v19 = vpop.permute.xlu0 %2238  ;;  %v682_v48 = vld [vmem:[#allocation2 + $0x270] sm:$0xff] }
 0x36c   :  { %2708 = vrot.lane.b32.xlu0 %v777_v28, %s4387_s1  ;;  %v2910_v28 = vsel %vm14_vm0, %v285_v7, %v5018_v57  ;;  %v2879_v57 = vsel %vm14_vm0, %v254_v42, %v4928_v60 }
 0x36d   :  { %v6089_v16 = vpop.permute.xlu1 %2236  ;;  %v2975_v8 = vsel %vm2942_vm3, %v2910_v28, %v5226_v36  ;;  %v2911_v36 = vsel %vm14_vm0, %v286_v21, %v5020_v61  ;;  %v2944_v60 = vsel %vm2942_vm3, %v2879_v57, %v5124_v52  ;;  %v715_v61 = vld [vmem:[#allocation2 + $0xc9] sm:$0xff]  ;;  %v747_v21 = vld [vmem:[#allocation2 + $0x279] sm:$0xff] }
 0x36e   :  { %7763 = vst [vmem:[#allocation307_spill] sm:$0xff] %v6089_v16  ;;  %v683_v16 = vld [vmem:[#allocation2 + $0x278] sm:$0xff]  ;;  %v3040_v7 = vsel %vm3007_vm4, %v2975_v8, %v5418_v49 }
 0x36f   :  { %2770 = vrot.lane.b32.xlu1 %v5718_v18, %s4387_s1  ;;  %v2431_v4 = vpop.permute.xlu0 %2430  ;;  %v2878_v18 = vsel %vm14_vm0, %v253_v59, %v4922_v56 }
 0x370   :  { %2262 = vrot.lane.b32.xlu0 %v682_v48, %s4385_s11  ;;  %v746_v48 = vld [vmem:[#allocation2 + $0x271] sm:$0xff] }
 0x371   :  { %v6094_v15 = vpop.permute.xlu1 %2240 }
 0x373   :  { %2772 = vrot.lane.b32.xlu1 %v5722_v17, %s4387_s1  ;;  %v2943_v17 = vsel %vm2942_vm3, %v2878_v18, %v5122_v27  ;;  %v2433_v59 = vpop.permute.xlu0 %2432 }
 0x374   :  { %v3008_v56 = vsel %vm3007_vm4, %v2943_v17, %v5322_v40  ;;  %v3105_v40 = vsel %vm3072_vm5, %v3040_v7, %v5634_v39  ;;  %2454 = vrot.lane.b32.xlu0 %v714_v51, %s4386_s22  ;;  %v2976_v39 = vsel %vm2942_vm3, %v2911_v36, %v5228_v23  ;;  %v684_v7 = vld [vmem:[#allocation2 + $0x288] sm:$0xff] }
 0x375   :  { %v2495_v13 = vpop.permute.xlu1 %2494  ;;  %v3073_v27 = vsel %vm3072_vm5, %v3008_v56, %v5514_v14  ;;  %v3170_v49 = vsel %vm3137_vm6, %v3105_v40, %v5868_v50  ;;  %v3041_v50 = vsel %vm3007_vm4, %v2976_v39, %v5420_v31  ;;  %v4319_v40 = vld [vmem:[#allocation2 + $0x18] sm:$0xff] }
 0x376   :  { %v3138_v18 = vsel %vm3137_vm6, %v3073_v27, %v5772_v10  ;;  %v3009_v10 = vsel %vm3007_vm4, %v2944_v60, %v5324_v24  ;;  %v3235_v8 = vsel %vm3202_vm7, %v3170_v49, %v2239_v19  ;;  %v3106_v24 = vsel %vm3072_vm5, %v3041_v50, %v5636_v30  ;;  %v778_v30 = vld [vmem:[#allocation2 + $0xc2] sm:$0xff] }
 0x377   :  { %2264 = vrot.lane.b32.xlu1 %v683_v16, %s4385_s11  ;;  %v3203_v14 = vsel %vm3202_vm7, %v3138_v18, %v5987_v26  ;;  %v2687_v51 = vpop.permute.xlu0 %2686  ;;  %v3074_v26 = vsel %vm3072_vm5, %v3009_v10, %v5516_v1  ;;  %v3300_v42 = vsel %vm3267_vm8, %v3235_v8, %v2495_v13  ;;  %v3171_v1 = vsel %vm3137_vm6, %v3106_v24, %v5870_v33  ;;  %v7764_v50 = vld [vmem:[#allocation87_spill] sm:$0xff]  ;;  %v7766_v24 = vld [vmem:[#allocation145_spill] sm:$0xff] }
 0x378   :  { %v3268_v52 = vsel %vm3267_vm8, %v3203_v14, %v2431_v4  ;;  %v3139_v19 = vsel %vm3137_vm6, %v3074_v26, %v5774_v25  ;;  %2456 = vrot.lane.b32.xlu0 %v715_v61, %s4386_s22  ;;  %v3236_v25 = vsel %vm3202_vm7, %v3171_v1, %v6094_v15  ;;  %v2880_v18 = vsel %vm14_vm0, %v4319_v40, %v4924_v58  ;;  %v748_v58 = vld [vmem:[#allocation2 + $0x289] sm:$0xff] }
 0x379   :  { %v2497_v16 = vpop.permute.xlu1 %2496  ;;  %v3333_v23 = vsel %vm3332_vm9, %v3268_v52, %v2687_v51  ;;  %v3204_v4 = vsel %vm3202_vm7, %v3139_v19, %v5989_v46  ;;  %v779_v46 = vld [vmem:[#allocation2 + $0xca] sm:$0xff]  ;;  %v2945_v49 = vsel %vm2942_vm3, %v2880_v18, %v5136_v63  ;;  %v4321_v52 = vld [vmem:[#allocation2 + $0x20] sm:$0xff]  ;;  %v7767_v19 = vld [vmem:[#allocation174_spill] sm:$0xff] }
 0x37a   :  { %4204 = vmatprep.mubr.msk.f32.mxu0 %vm3409_vm10, %v3333_v23  ;;  %v3269_v13 = vsel %vm3267_vm8, %v3204_v4, %v2433_v59  ;;  %v3301_v56 = vsel %vm3267_vm8, %v3236_v25, %v2497_v16  ;;  %v685_v16 = vld [vmem:[#allocation2 + $0x290] sm:$0xff]  ;;  %v3010_v61 = vsel %vm3007_vm4, %v2945_v49, %v5328_v20  ;;  %v2881_v63 = vsel %vm14_vm0, %v4321_v52, %v4930_v62  ;;  %v7765_v26 = vld [vmem:[#allocation116_spill] sm:$0xff]  ;;  %v7772_v52 = vld [vmem:[#allocation31_spill] sm:$0xff] }
 0x37b   :  { %2518 = vrot.lane.b32.xlu1 %v746_v48, %s4386_s22  ;;  %v2689_v17 = vpop.permute.xlu0 %2688  ;;  %v4322_v20 = vld [vmem:[#allocation2 + $0x1d0] sm:$0xff] }
 0x37c   :  { %v3334_v48 = vsel %vm3332_vm9, %v3269_v13, %v2689_v17  ;;  %2710 = vrot.lane.b32.xlu0 %v778_v30, %s4387_s1  ;;  %v749_v23 = vld [vmem:[#allocation2 + $0x291] sm:$0xff]  ;;  %v7768_v30 = vld [vmem:[#allocation203_spill] sm:$0xff]  ;;  %v7769_v13 = vld [vmem:[#allocation232_spill] sm:$0xff] }
 0x37d   :  { %v2751_v28 = vpop.permute.xlu1 %2750  ;;  %4205 = vmatmul.mubr.msk.f32.vlgmr.msra.gmra.mxu0 %vm3409_vm10, %v3334_v48  ;;  %v7770_v48 = vld [vmem:[#allocation261_spill] sm:$0xff] }
 0x37e   :  { %v3365_v31 = vsel %vm3332_vm9, %v3300_v42, %v2751_v28 }
 0x37f   :  { %2520 = vrot.lane.b32.xlu1 %v747_v21, %s4386_s22  ;;  %4252 = vmatprep.mubr.msk.f32.mxu1 %vm3409_vm10, %v3365_v31  ;;  %v2243_v15 = vpop.permute.xlu0 %2242 }
 0x380   :  { %2712 = vrot.lane.b32.xlu0 %v779_v46, %s4387_s1  ;;  %v780_v46 = vld [vmem:[#allocation2 + $0xda] sm:$0xff] }
 0x381   :  { %v2753_v57 = vpop.permute.xlu1 %2752 }
 0x382   :  { %v3366_v33 = vsel %vm3332_vm9, %v3301_v56, %v2753_v57 }
 0x383   :  { %2774 = vrot.lane.b32.xlu1 %v5730_v44, %s4387_s1  ;;  %4253 = vmatmul.mubr.msk.f32.vlgmr.msra.gmra.mxu1 %vm3409_vm10, %v3366_v33  ;;  %v2435_v27 = vpop.permute.xlu0 %2434  ;;  %v4320_v44 = vld [vmem:[#allocation2 + $0x1c8] sm:$0xff] }
 0x384   :  { %2266 = vrot.lane.b32.xlu0 %v684_v7, %s4385_s11  ;;  %v2912_v60 = vsel %vm14_vm0, %v4320_v44, %v5032_v5  ;;  %v3075_v5 = vsel %vm3072_vm5, %v3010_v61, %v5520_v37  ;;  %v2946_v37 = vsel %vm2942_vm3, %v2881_v63, %v5138_v11  ;;  %v687_v61 = vld [vmem:[#allocation2 + $0x2a8] sm:$0xff] }
 0x385   :  { %v2245_v59 = vpop.permute.xlu1 %2244  ;;  %v2977_v14 = vsel %vm2942_vm3, %v2912_v60, %v5232_v34  ;;  %v3140_v34 = vsel %vm3137_vm6, %v3075_v5, %v5778_v45  ;;  %v3011_v42 = vsel %vm3007_vm4, %v2946_v37, %v7765_v26  ;;  %v813_v60 = vld [vmem:[#allocation2 + $0x292] sm:$0xff] }
 0x386   :  { %v3042_v10 = vsel %vm3007_vm4, %v2977_v14, %v5424_v38  ;;  %v2913_v38 = vsel %vm14_vm0, %v4322_v20, %v5034_v9  ;;  %v3205_v62 = vsel %vm3202_vm7, %v3140_v34, %v5995_v47  ;;  %v3076_v47 = vsel %vm3072_vm5, %v3011_v42, %v7767_v19  ;;  %v718_v20 = vld [vmem:[#allocation2 + $0xf1] sm:$0xff]  ;;  %v7777_v42 = vld [vmem:[#allocation175_spill] sm:$0xff] }
 0x387   :  { %2776 = vrot.lane.b32.xlu1 %v5734_v2, %s4387_s1  ;;  %v716_v2 = vld [vmem:[#allocation2 + $0xd9] sm:$0xff]  ;;  %v2437_v39 = vpop.permute.xlu0 %2436  ;;  %v3107_v51 = vsel %vm3072_vm5, %v3042_v10, %v5640_v6  ;;  %v717_v6 = vld [vmem:[#allocation2 + $0xe1] sm:$0xff]  ;;  %v2978_v45 = vsel %vm2942_vm3, %v2913_v38, %v7764_v50  ;;  %v3270_v28 = vsel %vm3267_vm8, %v3205_v62, %v2435_v27  ;;  %v3141_v17 = vsel %vm3137_vm6, %v3076_v47, %v7769_v13  ;;  %v7780_v47 = vld [vmem:[#allocation233_spill] sm:$0xff] }
 0x388   :  { %2458 = vrot.lane.b32.xlu0 %v716_v2, %s4386_s22  ;;  %v3172_v21 = vsel %vm3137_vm6, %v3107_v51, %v5874_v55  ;;  %v3043_v55 = vsel %vm3007_vm4, %v2978_v45, %v7766_v24  ;;  %v3206_v33 = vsel %vm3202_vm7, %v3141_v17, %v5997_v41  ;;  %v781_v41 = vld [vmem:[#allocation2 + $0xe2] sm:$0xff]  ;;  %v7776_v45 = vld [vmem:[#allocation146_spill] sm:$0xff] }
 0x389   :  { %v2499_v36 = vpop.permute.xlu1 %2498  ;;  %v3237_v9 = vsel %vm3202_vm7, %v3172_v21, %v2243_v15  ;;  %v3108_v25 = vsel %vm3072_vm5, %v3043_v55, %v7768_v30  ;;  %v3271_v7 = vsel %vm3267_vm8, %v3206_v33, %v2437_v39  ;;  %v686_v2 = vld [vmem:[#allocation2 + $0x2a0] sm:$0xff]  ;;  %v7774_v38 = vld [vmem:[#allocation88_spill] sm:$0xff]  ;;  %v7775_v21 = vld [vmem:[#allocation117_spill] sm:$0xff] }
 0x38a   :  { %v3302_v31 = vsel %vm3267_vm8, %v3237_v9, %v2499_v36  ;;  %v3173_v57 = vsel %vm3137_vm6, %v3108_v25, %v7770_v48  ;;  %v7771_v10 = vld [vmem:[#allocation3_spill] sm:$0xff]  ;;  %v7779_v55 = vld [vmem:[#allocation204_spill] sm:$0xff]  ;;  %v7783_v17 = vld [vmem:[#allocation262_spill] sm:$0xff] }
 0x38b   :  { %2268 = vrot.lane.b32.xlu1 %v685_v16, %s4385_s11  ;;  %v2691_v11 = vpop.permute.xlu0 %2690  ;;  %v3238_v15 = vsel %vm3202_vm7, %v3173_v57, %v2245_v59  ;;  %v812_v16 = vld [vmem:[#allocation2 + $0x28a] sm:$0xff]  ;;  %v7773_v51 = vld [vmem:[#allocation59_spill] sm:$0xff] }
 0x38c   :  { %v3335_v1 = vsel %vm3332_vm9, %v3270_v28, %v2691_v11  ;;  %2460 = vrot.lane.b32.xlu0 %v717_v6, %s4386_s22  ;;  %v750_v50 = vld [vmem:[#allocation2 + $0x2a1] sm:$0xff]  ;;  %v4325_v11 = vld [vmem:[#allocation2 + $0x38] sm:$0xff]  ;;  %v7784_v33 = vld [vmem:[#allocation89_spill] sm:$0xff] }
 0x38d   :  { %v2501_v8 = vpop.permute.xlu1 %2500  ;;  %4207 = vmatprep.mubr.msk.f32.mxu0 %vm3409_vm10, %v3335_v1  ;;  %v4326_v1 = vld [vmem:[#allocation2 + $0x1e8] sm:$0xff]  ;;  %v719_v57 = vld [vmem:[#allocation2 + $0xf9] sm:$0xff] }
 0x38e   :  { %v3303_v36 = vsel %vm3267_vm8, %v3238_v15, %v2501_v8  ;;  %v4324_v8 = vld [vmem:[#allocation2 + $0x1e0] sm:$0xff]  ;;  %v7782_v25 = vld [vmem:[#allocation60_spill] sm:$0xff]  ;;  %v7785_v15 = vld [vmem:[#allocation118_spill] sm:$0xff] }
 0x38f   :  { %2522 = vrot.lane.b32.xlu1 %v748_v58, %s4386_s22  ;;  %v2693_v27 = vpop.permute.xlu0 %2692  ;;  %v4323_v58 = vld [vmem:[#allocation2 + $0x30] sm:$0xff]  ;;  %v2914_v63 = vsel %vm14_vm0, %v4324_v8, %v7772_v52  ;;  %v7790_v8 = vld [vmem:[#allocation263_spill] sm:$0xff] }
 0x390   :  { %v3336_v40 = vsel %vm3332_vm9, %v3271_v7, %v2693_v27  ;;  %2714 = vrot.lane.b32.xlu0 %v780_v46, %s4387_s1  ;;  %v2882_v5 = vsel %vm14_vm0, %v4323_v58, %v7771_v10  ;;  %v2979_v37 = vsel %vm2942_vm3, %v2914_v63, %v7774_v38  ;;  %v7788_v58 = vld [vmem:[#allocation205_spill] sm:$0xff]  ;;  %v814_v38 = vld [vmem:[#allocation2 + $0x2a2] sm:$0xff] }
 0x391   :  { %v2755_v4 = vpop.permute.xlu1 %2754  ;;  %4208 = vmatmul.mubr.msk.f32.gmra.mxu0 %vm3409_vm10, %v3336_v40  ;;  %v2947_v34 = vsel %vm2942_vm3, %v2882_v5, %v7773_v51  ;;  %v3044_v26 = vsel %vm3007_vm4, %v2979_v37, %v7776_v45  ;;  %v751_v40 = vld [vmem:[#allocation2 + $0x2a9] sm:$0xff]  ;;  %v7789_v5 = vld [vmem:[#allocation234_spill] sm:$0xff] }
 0x392   :  { %v3367_v56 = vsel %vm3332_vm9, %v3302_v31, %v2755_v4  ;;  %v3012_v62 = vsel %vm3007_vm4, %v2947_v34, %v7775_v21  ;;  %v3109_v19 = vsel %vm3072_vm5, %v3044_v26, %v7779_v55  ;;  %v7781_v4 = vld [vmem:[#allocation32_spill] sm:$0xff]  ;;  %v782_v63 = vld [vmem:[#allocation2 + $0xf2] sm:$0xff] }
 0x393   :  { %2524 = vrot.lane.b32.xlu1 %v749_v23, %s4386_s22  ;;  %4255 = vmatprep.mubr.msk.f32.mxu1 %vm3409_vm10, %v3367_v56  ;;  %v2247_v59 = vpop.permute.xlu0 %2246  ;;  %v3077_v9 = vsel %vm3072_vm5, %v3012_v62, %v7777_v42  ;;  %v7778_v23 = vld [vmem:[#allocation4_spill] sm:$0xff]  ;;  %v2915_v30 = vsel %vm14_vm0, %v4326_v1, %v7781_v4  ;;  %v3174_v56 = vsel %vm3137_vm6, %v3109_v19, %v7783_v17  ;;  %v688_v26 = vld [vmem:[#allocation2 + $0x2b8] sm:$0xff]  ;;  %v7792_v19 = vld [vmem:[#allocation33_spill] sm:$0xff] }
 0x394   :  { %2716 = vrot.lane.b32.xlu0 %v781_v41, %s4387_s1  ;;  %v2883_v24 = vsel %vm14_vm0, %v4325_v11, %v7778_v23  ;;  %v3142_v31 = vsel %vm3137_vm6, %v3077_v9, %v7780_v47  ;;  %v2980_v46 = vsel %vm2942_vm3, %v2915_v30, %v7784_v33  ;;  %v3239_v27 = vsel %vm3202_vm7, %v3174_v56, %v2247_v59  ;;  %v7787_v41 = vld [vmem:[#allocation176_spill] sm:$0xff]  ;;  %v689_v9 = vld [vmem:[#allocation2 + $0x2c0] sm:$0xff]  ;;  %v7791_v23 = vld [vmem:[#allocation5_spill] sm:$0xff] }
 0x395   :  { %v2757_v18 = vpop.permute.xlu1 %2756  ;;  %v2948_v13 = vsel %vm2942_vm3, %v2883_v24, %v7782_v25  ;;  %v3207_v48 = vsel %vm3202_vm7, %v3142_v31, %v6003_v53  ;;  %v4327_v11 = vld [vmem:[#allocation2 + $0x48] sm:$0xff]  ;;  %v4328_v55 = vld [vmem:[#allocation2 + $0x1f8] sm:$0xff]  ;;  %v7793_v31 = vld [vmem:[#allocation61_spill] sm:$0xff] }
 0x396   :  { %v3368_v44 = vsel %vm3332_vm9, %v3303_v36, %v2757_v18  ;;  %v3013_v7 = vsel %vm3007_vm4, %v2948_v13, %v7785_v15  ;;  %v7786_v18 = vld [vmem:[#allocation147_spill] sm:$0xff]  ;;  %v2884_v24 = vsel %vm14_vm0, %v4327_v11, %v7791_v23  ;;  %v2916_v47 = vsel %vm14_vm0, %v4328_v55, %v7792_v19  ;;  %v720_v4 = vld [vmem:[#allocation2 + $0x109] sm:$0xff]  ;;  %v7794_v30 = vld [vmem:[#allocation90_spill] sm:$0xff] }
 0x397   :  { %2778 = vrot.lane.b32.xlu1 %v812_v16, %s4387_s1  ;;  %4256 = vmatmul.mubr.msk.f32.gmra.mxu1 %vm3409_vm10, %v3368_v44  ;;  %v2439_v14 = vpop.permute.xlu0 %2438  ;;  %v3045_v44 = vsel %vm3007_vm4, %v2980_v46, %v7786_v18  ;;  %v3078_v53 = vsel %vm3072_vm5, %v3013_v7, %v7787_v41  ;;  %v2949_v1 = vsel %vm2942_vm3, %v2884_v24, %v7793_v31  ;;  %v7795_v13 = vld [vmem:[#allocation119_spill] sm:$0xff]  ;;  %v7797_v46 = vld [vmem:[#allocation177_spill] sm:$0xff]  ;;  %v7809_v11 = vld [vmem:[#allocation236_spill] sm:$0xff] }
 0x398   :  { %2270 = vrot.lane.b32.xlu0 %v686_v2, %s4385_s11  ;;  %v3272_v16 = vsel %vm3267_vm8, %v3207_v48, %v2439_v14  ;;  %v3110_v10 = vsel %vm3072_vm5, %v3045_v44, %v7788_v58  ;;  %v3143_v59 = vsel %vm3137_vm6, %v3078_v53, %v7789_v5  ;;  %v2981_v25 = vsel %vm2942_vm3, %v2916_v47, %v7794_v30  ;;  %v752_v48 = vld [vmem:[#allocation2 + $0x2b9] sm:$0xff]  ;;  %v7810_v23 = vld [vmem:[#allocation265_spill] sm:$0xff] }
 0x399   :  { %v2249_v49 = vpop.permute.xlu1 %2248  ;;  %v3175_v52 = vsel %vm3137_vm6, %v3110_v10, %v7790_v8  ;;  %v3014_v17 = vsel %vm3007_vm4, %v2949_v1, %v7795_v13  ;;  %v7800_v44 = vld [vmem:[#allocation235_spill] sm:$0xff]  ;;  %v7803_v10 = vld [vmem:[#allocation264_spill] sm:$0xff] }
 0x39a   :  { %v3240_v51 = vsel %vm3202_vm7, %v3175_v52, %v2249_v49  ;;  %v3079_v15 = vsel %vm3072_vm5, %v3014_v17, %v7797_v46  ;;  %v4330_v53 = vld [vmem:[#allocation2 + $0x200] sm:$0xff]  ;;  %v784_v55 = vld [vmem:[#allocation2 + $0x10a] sm:$0xff] }
 0x39b   :  { %2780 = vrot.lane.b32.xlu1 %v813_v60, %s4387_s1  ;;  %v2441_v6 = vpop.permute.xlu0 %2440  ;;  %v3144_v41 = vsel %vm3137_vm6, %v3079_v15, %v7800_v44  ;;  %v7804_v8 = vld [vmem:[#allocation91_spill] sm:$0xff] }
 0x39c   :  { %2462 = vrot.lane.b32.xlu0 %v718_v20, %s4386_s22  ;;  %v816_v1 = vld [vmem:[#allocation2 + $0x2ba] sm:$0xff]  ;;  %v817_v17 = vld [vmem:[#allocation2 + $0x2c2] sm:$0xff] }
 0x39d   :  { %v2503_v39 = vpop.permute.xlu1 %2502  ;;  %v4331_v15 = vld [vmem:[#allocation2 + $0x60] sm:$0xff] }
 0x39e   :  { %v3304_v60 = vsel %vm3267_vm8, %v3239_v27, %v2503_v39  ;;  %v3208_v39 = vsel %vm3202_vm7, %v3143_v59, %v6005_v12  ;;  %v783_v12 = vld [vmem:[#allocation2 + $0xfa] sm:$0xff]  ;;  %v4329_v27 = vld [vmem:[#allocation2 + $0x50] sm:$0xff]  ;;  %v3209_v59 = vsel %vm3202_vm7, %v3144_v41, %v6009_v22 }
 0x39f   :  { %2272 = vrot.lane.b32.xlu1 %v687_v61, %s4385_s11  ;;  %v2695_v36 = vpop.permute.xlu0 %2694  ;;  %v3273_v34 = vsel %vm3267_vm8, %v3208_v39, %v2441_v6  ;;  %v815_v6 = vld [vmem:[#allocation2 + $0x2aa] sm:$0xff]  ;;  %v722_v41 = vld [vmem:[#allocation2 + $0x121] sm:$0xff] }
 0x3a0   :  { %v3337_v2 = vsel %vm3332_vm9, %v3272_v16, %v2695_v36  ;;  %2464 = vrot.lane.b32.xlu0 %v719_v57, %s4386_s22  ;;  %v7796_v57 = vld [vmem:[#allocation148_spill] sm:$0xff]  ;;  %v7798_v16 = vld [vmem:[#allocation6_spill] sm:$0xff] }
 0x3a1   :  { %v2505_v28 = vpop.permute.xlu1 %2504  ;;  %4210 = vmatprep.mubr.msk.f32.mxu0 %vm3409_vm10, %v3337_v2  ;;  %v3046_v33 = vsel %vm3007_vm4, %v2981_v25, %v7796_v57  ;;  %v2885_v36 = vsel %vm14_vm0, %v4329_v27, %v7798_v16  ;;  %v7805_v39 = vld [vmem:[#allocation120_spill] sm:$0xff]  ;;  %v4332_v16 = vld [vmem:[#allocation2 + $0x210] sm:$0xff] }
 0x3a2   :  { %v3305_v37 = vsel %vm3267_vm8, %v3240_v51, %v2505_v28 }
 0x3a3   :  { %2526 = vrot.lane.b32.xlu1 %v750_v50, %s4386_s22  ;;  %v2697_v20 = vpop.permute.xlu0 %2696 }
 0x3a4   :  { %v3338_v21 = vsel %vm3332_vm9, %v3273_v34, %v2697_v20  ;;  %2718 = vrot.lane.b32.xlu0 %v782_v63, %s4387_s1 }
 0x3a5   :  { %v2759_v61 = vpop.permute.xlu1 %2758  ;;  %4211 = vmatmul.mubr.msk.f32.gmra.mxu0 %vm3409_vm10, %v3338_v21 }
 0x3a6   :  { %v3369_v14 = vsel %vm3332_vm9, %v3304_v60, %v2759_v61  ;;  %v7801_v60 = vld [vmem:[#allocation34_spill] sm:$0xff] }
 0x3a7   :  { %2528 = vrot.lane.b32.xlu1 %v751_v40, %s4386_s22  ;;  %4258 = vmatprep.mubr.msk.f32.mxu1 %vm3409_vm10, %v3369_v14  ;;  %v2251_v49 = vpop.permute.xlu0 %2250  ;;  %v7799_v40 = vld [vmem:[#allocation206_spill] sm:$0xff]  ;;  %v2917_v2 = vsel %vm14_vm0, %v4330_v53, %v7801_v60  ;;  %v7814_v53 = vld [vmem:[#allocation92_spill] sm:$0xff] }
 0x3a8   :  { %2720 = vrot.lane.b32.xlu0 %v783_v12, %s4387_s1  ;;  %v3111_v18 = vsel %vm3072_vm5, %v3046_v33, %v7799_v40  ;;  %v7802_v61 = vld [vmem:[#allocation62_spill] sm:$0xff]  ;;  %v2982_v52 = vsel %vm2942_vm3, %v2917_v2, %v7804_v8  ;;  %v7815_v2 = vld [vmem:[#allocation121_spill] sm:$0xff] }
 0x3a9   :  { %v2761_v62 = vpop.permute.xlu1 %2760  ;;  %v2950_v58 = vsel %vm2942_vm3, %v2885_v36, %v7802_v61  ;;  %v3176_v5 = vsel %vm3137_vm6, %v3111_v18, %v7803_v10  ;;  %v721_v14 = vld [vmem:[#allocation2 + $0x111] sm:$0xff]  ;;  %v7812_v36 = vld [vmem:[#allocation35_spill] sm:$0xff] }
 0x3aa   :  { %v3370_v50 = vsel %vm3332_vm9, %v3305_v37, %v2761_v62  ;;  %v3015_v63 = vsel %vm3007_vm4, %v2950_v58, %v7805_v39  ;;  %v3241_v51 = vsel %vm3202_vm7, %v3176_v5, %v2251_v49  ;;  %v7806_v37 = vld [vmem:[#allocation149_spill] sm:$0xff]  ;;  %v7807_v62 = vld [vmem:[#allocation178_spill] sm:$0xff]  ;;  %v2918_v40 = vsel %vm14_vm0, %v4332_v16, %v7812_v36  ;;  %v7813_v18 = vld [vmem:[#allocation63_spill] sm:$0xff] }
 0x3ab   :  { %2782 = vrot.lane.b32.xlu1 %v814_v38, %s4387_s1  ;;  %4259 = vmatmul.mubr.msk.f32.gmra.mxu1 %vm3409_vm10, %v3370_v50  ;;  %v2443_v42 = vpop.permute.xlu0 %2442  ;;  %v753_v38 = vld [vmem:[#allocation2 + $0x2c1] sm:$0xff]  ;;  %v3047_v21 = vsel %vm3007_vm4, %v2982_v52, %v7806_v37  ;;  %v3080_v22 = vsel %vm3072_vm5, %v3015_v63, %v7807_v62  ;;  %v691_v33 = vld [vmem:[#allocation2 + $0x2d8] sm:$0xff]  ;;  %v2983_v60 = vsel %vm2942_vm3, %v2918_v40, %v7814_v53 }
 0x3ac   :  { %2274 = vrot.lane.b32.xlu0 %v688_v26, %s4385_s11  ;;  %v3274_v34 = vsel %vm3267_vm8, %v3209_v59, %v2443_v42  ;;  %v7808_v26 = vld [vmem:[#allocation207_spill] sm:$0xff]  ;;  %v3145_v49 = vsel %vm3137_vm6, %v3080_v22, %v7809_v11  ;;  %v754_v10 = vld [vmem:[#allocation2 + $0x2d1] sm:$0xff]  ;;  %v4333_v39 = vld [vmem:[#allocation2 + $0x68] sm:$0xff] }
 0x3ad   :  { %v2253_v45 = vpop.permute.xlu1 %2252  ;;  %v7816_v5 = vld [vmem:[#allocation150_spill] sm:$0xff]  ;;  %v7818_v63 = vld [vmem:[#allocation8_spill] sm:$0xff] }
 0x3ae   :  { %v3048_v59 = vsel %vm3007_vm4, %v2983_v60, %v7816_v5  ;;  %v7821_v62 = vld [vmem:[#allocation36_spill] sm:$0xff]  ;;  %v818_v40 = vld [vmem:[#allocation2 + $0x2d2] sm:$0xff]  ;;  %v819_v60 = vld [vmem:[#allocation2 + $0x2da] sm:$0xff] }
 0x3af   :  { %2784 = vrot.lane.b32.xlu1 %v815_v6, %s4387_s1  ;;  %v2445_v56 = vpop.permute.xlu0 %2444  ;;  %v723_v11 = vld [vmem:[#allocation2 + $0x129] sm:$0xff] }
 0x3b0   :  { %2466 = vrot.lane.b32.xlu0 %v720_v4, %s4386_s22 }
 0x3b1   :  { %v2507_v28 = vpop.permute.xlu1 %2506 }
 0x3b2   :  { %v3306_v50 = vsel %vm3267_vm8, %v3241_v51, %v2507_v28  ;;  %v3210_v28 = vsel %vm3202_vm7, %v3145_v49, %v6011_v3  ;;  %v785_v3 = vld [vmem:[#allocation2 + $0x112] sm:$0xff]  ;;  %v2887_v51 = vsel %vm14_vm0, %v4333_v39, %v7818_v63 }
 0x3b3   :  { %2276 = vrot.lane.b32.xlu1 %v689_v9, %s4385_s11  ;;  %v2699_v20 = vpop.permute.xlu0 %2698  ;;  %v3112_v9 = vsel %vm3072_vm5, %v3047_v21, %v7808_v26  ;;  %v3275_v47 = vsel %vm3267_vm8, %v3210_v28, %v2445_v56  ;;  %v4334_v21 = vld [vmem:[#allocation2 + $0x218] sm:$0xff]  ;;  %v7824_v49 = vld [vmem:[#allocation93_spill] sm:$0xff] }
 0x3b4   :  { %v3339_v12 = vsel %vm3332_vm9, %v3274_v34, %v2699_v20  ;;  %2468 = vrot.lane.b32.xlu0 %v721_v14, %s4386_s22  ;;  %v3177_v24 = vsel %vm3137_vm6, %v3112_v9, %v7810_v23  ;;  %v7817_v14 = vld [vmem:[#allocation179_spill] sm:$0xff]  ;;  %v7819_v34 = vld [vmem:[#allocation208_spill] sm:$0xff]  ;;  %v2919_v22 = vsel %vm14_vm0, %v4334_v21, %v7821_v62  ;;  %v7825_v23 = vld [vmem:[#allocation122_spill] sm:$0xff] }
 0x3b5   :  { %v2509_v7 = vpop.permute.xlu1 %2508  ;;  %4213 = vmatprep.mubr.msk.f32.mxu0 %vm3409_vm10, %v3339_v12  ;;  %v3242_v19 = vsel %vm3202_vm7, %v3177_v24, %v2253_v45  ;;  %v3113_v20 = vsel %vm3072_vm5, %v3048_v59, %v7819_v34  ;;  %v4335_v59 = vld [vmem:[#allocation2 + $0x78] sm:$0xff]  ;;  %v7832_v39 = vld [vmem:[#allocation37_spill] sm:$0xff]  ;;  %v7835_v21 = vld [vmem:[#allocation123_spill] sm:$0xff] }
 0x3b6   :  { %v3307_v4 = vsel %vm3267_vm8, %v3242_v19, %v2509_v7  ;;  %v7811_v7 = vld [vmem:[#allocation7_spill] sm:$0xff] }
 0x3b7   :  { %2530 = vrot.lane.b32.xlu1 %v752_v48, %s4386_s22  ;;  %v2701_v31 = vpop.permute.xlu0 %2700  ;;  %v690_v48 = vld [vmem:[#allocation2 + $0x2d0] sm:$0xff]  ;;  %v2886_v27 = vsel %vm14_vm0, %v4331_v15, %v7811_v7  ;;  %v786_v7 = vld [vmem:[#allocation2 + $0x122] sm:$0xff] }
 0x3b8   :  { %v3340_v30 = vsel %vm3332_vm9, %v3275_v47, %v2701_v31  ;;  %2722 = vrot.lane.b32.xlu0 %v784_v55, %s4387_s1  ;;  %v2951_v44 = vsel %vm2942_vm3, %v2886_v27, %v7813_v18  ;;  %v755_v47 = vld [vmem:[#allocation2 + $0x2d9] sm:$0xff] }
 0x3b9   :  { %v2763_v6 = vpop.permute.xlu1 %2762  ;;  %4214 = vmatmul.mubr.msk.f32.gmra.mxu0 %vm3409_vm10, %v3340_v30  ;;  %v3016_v61 = vsel %vm3007_vm4, %v2951_v44, %v7815_v2  ;;  %v7826_v31 = vld [vmem:[#allocation151_spill] sm:$0xff] }
 0x3ba   :  { %v3371_v42 = vsel %vm3332_vm9, %v3306_v50, %v2763_v6  ;;  %v3081_v8 = vsel %vm3072_vm5, %v3016_v61, %v7817_v14  ;;  %v7822_v50 = vld [vmem:[#allocation64_spill] sm:$0xff]  ;;  %v7823_v6 = vld [vmem:[#allocation266_spill] sm:$0xff]  ;;  %v7831_v14 = vld [vmem:[#allocation9_spill] sm:$0xff] }
 0x3bb   :  { %2532 = vrot.lane.b32.xlu1 %v753_v38, %s4386_s22  ;;  %4261 = vmatprep.mubr.msk.f32.mxu1 %vm3409_vm10, %v3371_v42  ;;  %v2255_v45 = vpop.permute.xlu0 %2254  ;;  %v7820_v38 = vld [vmem:[#allocation237_spill] sm:$0xff]  ;;  %v2952_v12 = vsel %vm2942_vm3, %v2887_v51, %v7822_v50  ;;  %v3178_v26 = vsel %vm3137_vm6, %v3113_v20, %v7823_v6  ;;  %v2984_v42 = vsel %vm2942_vm3, %v2919_v22, %v7824_v49  ;;  %v692_v61 = vld [vmem:[#allocation2 + $0x2e8] sm:$0xff]  ;;  %v724_v20 = vld [vmem:[#allocation2 + $0x139] sm:$0xff] }
 0x3bc   :  { %2724 = vrot.lane.b32.xlu0 %v785_v3, %s4387_s1  ;;  %v3146_v37 = vsel %vm3137_vm6, %v3081_v8, %v7820_v38  ;;  %v3017_v24 = vsel %vm3007_vm4, %v2952_v12, %v7825_v23  ;;  %v3243_v28 = vsel %vm3202_vm7, %v3178_v26, %v2255_v45  ;;  %v7828_v3 = vld [vmem:[#allocation209_spill] sm:$0xff]  ;;  %v2888_v8 = vsel %vm14_vm0, %v4335_v59, %v7831_v14  ;;  %v7834_v38 = vld [vmem:[#allocation94_spill] sm:$0xff]  ;;  %v7836_v12 = vld [vmem:[#allocation152_spill] sm:$0xff] }
 0x3bd   :  { %v2765_v25 = vpop.permute.xlu1 %2764  ;;  %v3211_v9 = vsel %vm3202_vm7, %v3146_v37, %v6015_v35  ;;  %v7833_v51 = vld [vmem:[#allocation65_spill] sm:$0xff]  ;;  %v4337_v49 = vld [vmem:[#allocation2 + $0x80] sm:$0xff] }
 0x3be   :  { %v3372_v13 = vsel %vm3332_vm9, %v3307_v4, %v2765_v25  ;;  %v7827_v4 = vld [vmem:[#allocation180_spill] sm:$0xff]  ;;  %v2953_v34 = vsel %vm2942_vm3, %v2888_v8, %v7833_v51  ;;  %v7837_v26 = vld [vmem:[#allocation181_spill] sm:$0xff]  ;;  %v694_v51 = vld [vmem:[#allocation2 + $0x300] sm:$0xff] }
 0x3bf   :  { %2786 = vrot.lane.b32.xlu1 %v816_v1, %s4387_s1  ;;  %4262 = vmatmul.mubr.msk.f32.gmra.mxu1 %vm3409_vm10, %v3372_v13  ;;  %v2447_v57 = vpop.permute.xlu0 %2446  ;;  %v3049_v1 = vsel %vm3007_vm4, %v2984_v42, %v7826_v31  ;;  %v3082_v35 = vsel %vm3072_vm5, %v3017_v24, %v7827_v4  ;;  %v3018_v62 = vsel %vm3007_vm4, %v2953_v34, %v7835_v21  ;;  %v756_v50 = vld [vmem:[#allocation2 + $0x2e9] sm:$0xff]  ;;  %v7838_v42 = vld [vmem:[#allocation10_spill] sm:$0xff]  ;;  %v7849_v21 = vld [vmem:[#allocation11_spill] sm:$0xff] }
 0x3c0   :  { %2278 = vrot.lane.b32.xlu0 %v690_v48, %s4385_s11  ;;  %v3276_v55 = vsel %vm3267_vm8, %v3211_v9, %v2447_v57  ;;  %v7829_v48 = vld [vmem:[#allocation238_spill] sm:$0xff]  ;;  %v3083_v9 = vsel %vm3072_vm5, %v3018_v62, %v7837_v26  ;;  %v2889_v23 = vsel %vm14_vm0, %v4337_v49, %v7838_v42  ;;  %v820_v59 = vld [vmem:[#allocation2 + $0x2ea] sm:$0xff] }
 0x3c1   :  { %v2257_v56 = vpop.permute.xlu1 %2256  ;;  %v3147_v45 = vsel %vm3137_vm6, %v3082_v35, %v7829_v48  ;;  %v7839_v24 = vld [vmem:[#allocation210_spill] sm:$0xff]  ;;  %v7844_v48 = vld [vmem:[#allocation124_spill] sm:$0xff]  ;;  %v7853_v42 = vld [vmem:[#allocation125_spill] sm:$0xff] }
 0x3c2   :  { %v7841_v31 = vld [vmem:[#allocation38_spill] sm:$0xff] }
 0x3c3   :  { %2788 = vrot.lane.b32.xlu1 %v817_v17, %s4387_s1  ;;  %v2449_v58 = vpop.permute.xlu0 %2448  ;;  %v3114_v17 = vsel %vm3072_vm5, %v3049_v1, %v7828_v3  ;;  %v7842_v4 = vld [vmem:[#allocation66_spill] sm:$0xff]  ;;  %v7843_v3 = vld [vmem:[#allocation95_spill] sm:$0xff] }
 0x3c4   :  { %2470 = vrot.lane.b32.xlu0 %v722_v41, %s4386_s22  ;;  %v2954_v35 = vsel %vm2942_vm3, %v2889_v23, %v7842_v4  ;;  %v4341_v4 = vld [vmem:[#allocation2 + $0x98] sm:$0xff] }
 0x3c5   :  { %v2511_v46 = vpop.permute.xlu1 %2510 }
 0x3c6   :  { %v3308_v30 = vsel %vm3267_vm8, %v3243_v28, %v2511_v46  ;;  %v3212_v46 = vsel %vm3202_vm7, %v3147_v45, %v6017_v32  ;;  %v787_v32 = vld [vmem:[#allocation2 + $0x12a] sm:$0xff]  ;;  %v3019_v45 = vsel %vm3007_vm4, %v2954_v35, %v7844_v48 }
 0x3c7   :  { %2280 = vrot.lane.b32.xlu1 %v691_v33, %s4385_s11  ;;  %v2703_v19 = vpop.permute.xlu0 %2702  ;;  %v7830_v33 = vld [vmem:[#allocation267_spill] sm:$0xff]  ;;  %v3277_v16 = vsel %vm3267_vm8, %v3212_v46, %v2449_v58  ;;  %v757_v46 = vld [vmem:[#allocation2 + $0x2f1] sm:$0xff]  ;;  %v7856_v35 = vld [vmem:[#allocation12_spill] sm:$0xff] }
 0x3c8   :  { %v3341_v25 = vsel %vm3332_vm9, %v3276_v55, %v2703_v19  ;;  %2472 = vrot.lane.b32.xlu0 %v723_v11, %s4386_s22  ;;  %v3179_v15 = vsel %vm3137_vm6, %v3114_v17, %v7830_v33  ;;  %v7840_v55 = vld [vmem:[#allocation239_spill] sm:$0xff]  ;;  %v4342_v48 = vld [vmem:[#allocation2 + $0x248] sm:$0xff] }
 0x3c9   :  { %v2513_v52 = vpop.permute.xlu1 %2512  ;;  %4216 = vmatprep.mubr.msk.f32.mxu0 %vm3409_vm10, %v3341_v25  ;;  %v3244_v27 = vsel %vm3202_vm7, %v3179_v15, %v2257_v56  ;;  %v3148_v19 = vsel %vm3137_vm6, %v3083_v9, %v7840_v55  ;;  %v726_v9 = vld [vmem:[#allocation2 + $0x151] sm:$0xff] }
 0x3ca   :  { %v3309_v18 = vsel %vm3267_vm8, %v3244_v27, %v2513_v52  ;;  %v4336_v52 = vld [vmem:[#allocation2 + $0x228] sm:$0xff]  ;;  %v3213_v25 = vsel %vm3202_vm7, %v3148_v19, %v6021_v0  ;;  %v7846_v27 = vld [vmem:[#allocation182_spill] sm:$0xff] }
 0x3cb   :  { %2534 = vrot.lane.b32.xlu1 %v754_v10, %s4386_s22  ;;  %v2705_v36 = vpop.permute.xlu0 %2704  ;;  %v693_v10 = vld [vmem:[#allocation2 + $0x2f0] sm:$0xff]  ;;  %v2920_v63 = vsel %vm14_vm0, %v4336_v52, %v7832_v39  ;;  %v3084_v0 = vsel %vm3072_vm5, %v3019_v45, %v7846_v27  ;;  %v7854_v55 = vld [vmem:[#allocation154_spill] sm:$0xff]  ;;  %v7859_v45 = vld [vmem:[#allocation40_spill] sm:$0xff] }
 0x3cc   :  { %v3342_v44 = vsel %vm3332_vm9, %v3277_v16, %v2705_v36  ;;  %2726 = vrot.lane.b32.xlu0 %v786_v7, %s4387_s1  ;;  %v2985_v37 = vsel %vm2942_vm3, %v2920_v63, %v7834_v38  ;;  %v7845_v7 = vld [vmem:[#allocation153_spill] sm:$0xff] }
 0x3cd   :  { %v2767_v13 = vpop.permute.xlu1 %2766  ;;  %4217 = vmatmul.mubr.msk.f32.gmra.mxu0 %vm3409_vm10, %v3342_v44  ;;  %v3050_v6 = vsel %vm3007_vm4, %v2985_v37, %v7836_v12  ;;  %v821_v39 = vld [vmem:[#allocation2 + $0x2f2] sm:$0xff] }
 0x3ce   :  { %v3373_v57 = vsel %vm3332_vm9, %v3308_v30, %v2767_v13  ;;  %v3115_v28 = vsel %vm3072_vm5, %v3050_v6, %v7839_v24  ;;  %v725_v13 = vld [vmem:[#allocation2 + $0x141] sm:$0xff]  ;;  %v4339_v37 = vld [vmem:[#allocation2 + $0x90] sm:$0xff] }
 0x3cf   :  { %2536 = vrot.lane.b32.xlu1 %v755_v47, %s4386_s22  ;;  %4264 = vmatprep.mubr.msk.f32.mxu1 %vm3409_vm10, %v3373_v57  ;;  %v2259_v56 = vpop.permute.xlu0 %2258  ;;  %v4338_v47 = vld [vmem:[#allocation2 + $0x230] sm:$0xff]  ;;  %v3180_v30 = vsel %vm3137_vm6, %v3115_v28, %v5913_v54  ;;  %v2890_v62 = vsel %vm14_vm0, %v4339_v37, %v7849_v21  ;;  %v7851_v6 = vld [vmem:[#allocation67_spill] sm:$0xff] }
 0x3d0   :  { %2728 = vrot.lane.b32.xlu0 %v787_v32, %s4387_s1  ;;  %v2921_v1 = vsel %vm14_vm0, %v4338_v47, %v7841_v31  ;;  %v3245_v57 = vsel %vm3202_vm7, %v3180_v30, %v2259_v56  ;;  %v2955_v26 = vsel %vm2942_vm3, %v2890_v62, %v7851_v6  ;;  %v758_v28 = vld [vmem:[#allocation2 + $0x301] sm:$0xff]  ;;  %v2891_v30 = vsel %vm14_vm0, %v4341_v4, %v7856_v35  ;;  %v7873_v4 = vld [vmem:[#allocation69_spill] sm:$0xff] }
 0x3d1   :  { %v2769_v41 = vpop.permute.xlu1 %2768  ;;  %v2986_v17 = vsel %vm2942_vm3, %v2921_v1, %v7843_v3  ;;  %v3020_v23 = vsel %vm3007_vm4, %v2955_v26, %v7853_v42  ;;  %v7855_v47 = vld [vmem:[#allocation183_spill] sm:$0xff]  ;;  %v7858_v3 = vld [vmem:[#allocation241_spill] sm:$0xff] }
 0x3d2   :  { %v3374_v53 = vsel %vm3332_vm9, %v3309_v18, %v2769_v41  ;;  %v3051_v54 = vsel %vm3007_vm4, %v2986_v17, %v7845_v7  ;;  %v7847_v18 = vld [vmem:[#allocation211_spill] sm:$0xff]  ;;  %v7848_v41 = vld [vmem:[#allocation240_spill] sm:$0xff]  ;;  %v3085_v31 = vsel %vm3072_vm5, %v3020_v23, %v7855_v47  ;;  %v4344_v47 = vld [vmem:[#allocation2 + $0x258] sm:$0xff] }
 0x3d3   :  { %2790 = vrot.lane.b32.xlu1 %v818_v40, %s4387_s1  ;;  %4265 = vmatmul.mubr.msk.f32.gmra.mxu1 %vm3409_vm10, %v3374_v53  ;;  %v2451_v58 = vpop.permute.xlu0 %2450  ;;  %v3116_v44 = vsel %vm3072_vm5, %v3051_v54, %v7847_v18  ;;  %v3149_v53 = vsel %vm3137_vm6, %v3084_v0, %v7848_v41  ;;  %v3150_v17 = vsel %vm3137_vm6, %v3085_v31, %v7858_v3  ;;  %v7862_v54 = vld [vmem:[#allocation288_spill] sm:$0xff]  ;;  %v727_v0 = vld [vmem:[#allocation2 + $0x159] sm:$0xff]  ;;  %v7872_v31 = vld [vmem:[#allocation41_spill] sm:$0xff] }
 0x3d4   :  { %2282 = vrot.lane.b32.xlu0 %v692_v61, %s4385_s11  ;;  %v3278_v33 = vsel %vm3267_vm8, %v3213_v25, %v2451_v58  ;;  %v3181_v56 = vsel %vm3137_vm6, %v3116_v44, %v5915_v43  ;;  %v788_v61 = vld [vmem:[#allocation2 + $0x13a] sm:$0xff]  ;;  %v7857_v25 = vld [vmem:[#allocation212_spill] sm:$0xff]  ;;  %v3215_v27 = vsel %vm3202_vm7, %v3150_v17, %v7862_v54  ;;  %v4345_v54 = vld [vmem:[#allocation2 + $0xb0] sm:$0xff] }
 0x3d5   :  { %v2261_v2 = vpop.permute.xlu1 %2260  ;;  %v822_v62 = vld [vmem:[#allocation2 + $0x302] sm:$0xff] }
 0x3d6   :  { %v3246_v58 = vsel %vm3202_vm7, %v3181_v56, %v2261_v2  ;;  %v7865_v56 = vld [vmem:[#allocation155_spill] sm:$0xff] }
 0x3d7   :  { %2792 = vrot.lane.b32.xlu1 %v819_v60, %s4387_s1  ;;  %v2453_v22 = vpop.permute.xlu0 %2452  ;;  %v3214_v60 = vsel %vm3202_vm7, %v3149_v53, %v6023_v29  ;;  %v789_v29 = vld [vmem:[#allocation2 + $0x142] sm:$0xff] }
 0x3d8   :  { %2474 = vrot.lane.b32.xlu0 %v724_v20, %s4386_s22  ;;  %v695_v20 = vld [vmem:[#allocation2 + $0x308] sm:$0xff]  ;;  %v697_v23 = vld [vmem:[#allocation2 + $0x320] sm:$0xff] }
 0x3d9   :  { %v2515_v5 = vpop.permute.xlu1 %2514  ;;  %v7875_v3 = vld [vmem:[#allocation127_spill] sm:$0xff] }
 0x3da   :  { %v3310_v16 = vsel %vm3267_vm8, %v3245_v57, %v2515_v5  ;;  %v2923_v57 = vsel %vm14_vm0, %v4342_v48, %v7859_v45  ;;  %v760_v45 = vld [vmem:[#allocation2 + $0x319] sm:$0xff] }
 0x3db   :  { %2284 = vrot.lane.b32.xlu1 %v693_v10, %s4385_s11  ;;  %v2707_v15 = vpop.permute.xlu0 %2706  ;;  %v3279_v10 = vsel %vm3267_vm8, %v3214_v60, %v2453_v22  ;;  %v4340_v22 = vld [vmem:[#allocation2 + $0x240] sm:$0xff] }
 0x3dc   :  { %v3343_v36 = vsel %vm3332_vm9, %v3278_v33, %v2707_v15  ;;  %2476 = vrot.lane.b32.xlu0 %v725_v13, %s4386_s22  ;;  %v7860_v33 = vld [vmem:[#allocation68_spill] sm:$0xff] }
 0x3dd   :  { %v2517_v11 = vpop.permute.xlu1 %2516  ;;  %4219 = vmatprep.mubr.msk.f32.mxu0 %vm3409_vm10, %v3343_v36  ;;  %v2956_v15 = vsel %vm2942_vm3, %v2891_v30, %v7860_v33  ;;  %v728_v30 = vld [vmem:[#allocation2 + $0x169] sm:$0xff] }
 0x3de   :  { %v3311_v14 = vsel %vm3267_vm8, %v3246_v58, %v2517_v11  ;;  %v7852_v11 = vld [vmem:[#allocation96_spill] sm:$0xff] }
 0x3df   :  { %2538 = vrot.lane.b32.xlu1 %v756_v50, %s4386_s22  ;;  %v2709_v5 = vpop.permute.xlu0 %2708  ;;  %v7850_v50 = vld [vmem:[#allocation39_spill] sm:$0xff] }
 0x3e0   :  { %v3344_v8 = vsel %vm3332_vm9, %v3279_v10, %v2709_v5  ;;  %2730 = vrot.lane.b32.xlu0 %v788_v61, %s4387_s1  ;;  %v2922_v12 = vsel %vm14_vm0, %v4340_v22, %v7850_v50  ;;  %v7866_v61 = vld [vmem:[#allocation184_spill] sm:$0xff] }
 0x3e1   :  { %v2771_v40 = vpop.permute.xlu1 %2770  ;;  %4220 = vmatmul.mubr.msk.f32.gmra.mxu0 %vm3409_vm10, %v3344_v8  ;;  %v2987_v49 = vsel %vm2942_vm3, %v2922_v12, %v7852_v11 }
 0x3e2   :  { %v3375_v32 = vsel %vm3332_vm9, %v3310_v16, %v2771_v40  ;;  %v3052_v19 = vsel %vm3007_vm4, %v2987_v49, %v7854_v55  ;;  %v7863_v16 = vld [vmem:[#allocation97_spill] sm:$0xff]  ;;  %v7864_v40 = vld [vmem:[#allocation126_spill] sm:$0xff] }
 0x3e3   :  { %2540 = vrot.lane.b32.xlu1 %v757_v46, %s4386_s22  ;;  %4267 = vmatprep.mubr.msk.f32.mxu1 %vm3409_vm10, %v3375_v32  ;;  %v2263_v2 = vpop.permute.xlu0 %2262  ;;  %v3117_v13 = vsel %vm3072_vm5, %v3052_v19, %v7857_v25  ;;  %v7861_v46 = vld [vmem:[#allocation268_spill] sm:$0xff]  ;;  %v2988_v36 = vsel %vm2942_vm3, %v2923_v57, %v7863_v16  ;;  %v3021_v18 = vsel %vm3007_vm4, %v2956_v15, %v7864_v40  ;;  %v696_v49 = vld [vmem:[#allocation2 + $0x318] sm:$0xff]  ;;  %v7871_v55 = vld [vmem:[#allocation13_spill] sm:$0xff] }
 0x3e4   :  { %2732 = vrot.lane.b32.xlu0 %v789_v29, %s4387_s1  ;;  %v3182_v7 = vsel %vm3137_vm6, %v3117_v13, %v7861_v46  ;;  %v759_v32 = vld [vmem:[#allocation2 + $0x309] sm:$0xff]  ;;  %v3053_v60 = vsel %vm3007_vm4, %v2988_v36, %v7865_v56  ;;  %v3086_v58 = vsel %vm3072_vm5, %v3021_v18, %v7866_v61  ;;  %v7874_v25 = vld [vmem:[#allocation98_spill] sm:$0xff]  ;;  %v7880_v40 = vld [vmem:[#allocation243_spill] sm:$0xff] }
 0x3e5   :  { %v2773_v52 = vpop.permute.xlu1 %2772  ;;  %v3247_v44 = vsel %vm3202_vm7, %v3182_v7, %v2263_v2  ;;  %v7869_v2 = vld [vmem:[#allocation269_spill] sm:$0xff]  ;;  %v7876_v57 = vld [vmem:[#allocation156_spill] sm:$0xff]  ;;  %v7879_v16 = vld [vmem:[#allocation214_spill] sm:$0xff] }
 0x3e6   :  { %v3376_v43 = vsel %vm3332_vm9, %v3311_v14, %v2773_v52  ;;  %v7867_v14 = vld [vmem:[#allocation213_spill] sm:$0xff]  ;;  %v7868_v52 = vld [vmem:[#allocation242_spill] sm:$0xff] }
 0x3e7   :  { %2794 = vrot.lane.b32.xlu1 %v820_v59, %s4387_s1  ;;  %4268 = vmatmul.mubr.msk.f32.gmra.mxu1 %vm3409_vm10, %v3376_v43  ;;  %v2455_v34 = vpop.permute.xlu0 %2454  ;;  %v3118_v8 = vsel %vm3072_vm5, %v3053_v60, %v7867_v14  ;;  %v3151_v43 = vsel %vm3137_vm6, %v3086_v58, %v7868_v52  ;;  %v7877_v15 = vld [vmem:[#allocation185_spill] sm:$0xff]  ;;  %v7883_v60 = vld [vmem:[#allocation270_spill] sm:$0xff] }
 0x3e8   :  { %2286 = vrot.lane.b32.xlu0 %v694_v51, %s4385_s11  ;;  %v3280_v41 = vsel %vm3267_vm8, %v3215_v27, %v2455_v34  ;;  %v7870_v51 = vld [vmem:[#allocation289_spill] sm:$0xff]  ;;  %v7878_v27 = vld [vmem:[#allocation14_spill] sm:$0xff] }
 0x3e9   :  { %v2265_v63 = vpop.permute.xlu1 %2264  ;;  %v3216_v34 = vsel %vm3202_vm7, %v3151_v43, %v7870_v51  ;;  %v7884_v58 = vld [vmem:[#allocation290_spill] sm:$0xff]  ;;  %v7887_v51 = vld [vmem:[#allocation157_spill] sm:$0xff] }
 0x3eb   :  { %2796 = vrot.lane.b32.xlu1 %v821_v39, %s4387_s1  ;;  %v2457_v24 = vpop.permute.xlu0 %2456  ;;  %v3183_v39 = vsel %vm3137_vm6, %v3118_v8, %v7869_v2  ;;  %v7886_v8 = vld [vmem:[#allocation128_spill] sm:$0xff] }
 0x3ec   :  { %2478 = vrot.lane.b32.xlu0 %v726_v9, %s4386_s22  ;;  %v3281_v37 = vsel %vm3267_vm8, %v3216_v34, %v2457_v24  ;;  %v823_v9 = vld [vmem:[#allocation2 + $0x30a] sm:$0xff] }
 0x3ed   :  { %v2519_v38 = vpop.permute.xlu1 %2518 }
 0x3ee   :  { %v3312_v10 = vsel %vm3267_vm8, %v3247_v44, %v2519_v38  ;;  %v3248_v38 = vsel %vm3202_vm7, %v3183_v39, %v2265_v63  ;;  %v791_v63 = vld [vmem:[#allocation2 + $0x15a] sm:$0xff] }
 0x3ef   :  { %2288 = vrot.lane.b32.xlu1 %v695_v20, %s4385_s11  ;;  %v2711_v53 = vpop.permute.xlu0 %2710  ;;  %v790_v20 = vld [vmem:[#allocation2 + $0x152] sm:$0xff]  ;;  %v4346_v44 = vld [vmem:[#allocation2 + $0x260] sm:$0xff] }
 0x3f0   :  { %v3345_v5 = vsel %vm3332_vm9, %v3280_v41, %v2711_v53  ;;  %2480 = vrot.lane.b32.xlu0 %v727_v0, %s4386_s22  ;;  %v2893_v0 = vsel %vm14_vm0, %v4345_v54, %v7878_v27  ;;  %v7881_v41 = vld [vmem:[#allocation42_spill] sm:$0xff]  ;;  %v761_v39 = vld [vmem:[#allocation2 + $0x321] sm:$0xff] }
 0x3f1   :  { %v2521_v1 = vpop.permute.xlu1 %2520  ;;  %4222 = vmatprep.mubr.msk.f32.mxu0 %vm3409_vm10, %v3345_v5  ;;  %v2925_v53 = vsel %vm14_vm0, %v4346_v44, %v7881_v41  ;;  %v729_v5 = vld [vmem:[#allocation2 + $0x171] sm:$0xff]  ;;  %v7895_v54 = vld [vmem:[#allocation71_spill] sm:$0xff] }
 0x3f2   :  { %v3313_v22 = vsel %vm3267_vm8, %v3248_v38, %v2521_v1  ;;  %v2924_v1 = vsel %vm14_vm0, %v4344_v47, %v7872_v31  ;;  %v762_v41 = vld [vmem:[#allocation2 + $0x331] sm:$0xff] }
 0x3f3   :  { %2542 = vrot.lane.b32.xlu1 %v758_v28, %s4386_s22  ;;  %v2713_v21 = vpop.permute.xlu0 %2712  ;;  %v4343_v28 = vld [vmem:[#allocation2 + $0xa8] sm:$0xff]  ;;  %v2989_v13 = vsel %vm2942_vm3, %v2924_v1, %v7874_v25 }
 0x3f4   :  { %v3346_v50 = vsel %vm3332_vm9, %v3281_v37, %v2713_v21  ;;  %2734 = vrot.lane.b32.xlu0 %v790_v20, %s4387_s1  ;;  %v2892_v19 = vsel %vm14_vm0, %v4343_v28, %v7871_v55  ;;  %v3054_v33 = vsel %vm3007_vm4, %v2989_v13, %v7876_v57  ;;  %v7888_v20 = vld [vmem:[#allocation186_spill] sm:$0xff]  ;;  %v698_v13 = vld [vmem:[#allocation2 + $0x330] sm:$0xff]  ;;  %v7893_v57 = vld [vmem:[#allocation15_spill] sm:$0xff] }
 0x3f5   :  { %v2775_v59 = vpop.permute.xlu1 %2774  ;;  %4223 = vmatmul.mubr.msk.f32.gmra.mxu0 %vm3409_vm10, %v3346_v50  ;;  %v2957_v35 = vsel %vm2942_vm3, %v2892_v19, %v7873_v4  ;;  %v3119_v36 = vsel %vm3072_vm5, %v3054_v33, %v7879_v16  ;;  %v824_v19 = vld [vmem:[#allocation2 + $0x31a] sm:$0xff]  ;;  %v7896_v16 = vld [vmem:[#allocation100_spill] sm:$0xff] }
 0x3f6   :  { %v3377_v29 = vsel %vm3332_vm9, %v3312_v10, %v2775_v59  ;;  %v3022_v17 = vsel %vm3007_vm4, %v2957_v35, %v7875_v3  ;;  %v3184_v61 = vsel %vm3137_vm6, %v3119_v36, %v7883_v60  ;;  %v7885_v59 = vld [vmem:[#allocation99_spill] sm:$0xff] }
 0x3f7   :  { %2544 = vrot.lane.b32.xlu1 %v759_v32, %s4386_s22  ;;  %4270 = vmatprep.mubr.msk.f32.mxu1 %vm3409_vm10, %v3377_v29  ;;  %v2267_v26 = vpop.permute.xlu0 %2266  ;;  %v3087_v46 = vsel %vm3072_vm5, %v3022_v17, %v7877_v15  ;;  %v7882_v32 = vld [vmem:[#allocation70_spill] sm:$0xff]  ;;  %v2990_v14 = vsel %vm2942_vm3, %v2925_v53, %v7885_v59  ;;  %v4348_v15 = vld [vmem:[#allocation2 + $0x270] sm:$0xff]  ;;  %v7901_v59 = vld [vmem:[#allocation216_spill] sm:$0xff] }
 0x3f8   :  { %2736 = vrot.lane.b32.xlu0 %v791_v63, %s4387_s1  ;;  %v3152_v18 = vsel %vm3137_vm6, %v3087_v46, %v7880_v40  ;;  %v2958_v56 = vsel %vm2942_vm3, %v2893_v0, %v7882_v32  ;;  %v3249_v43 = vsel %vm3202_vm7, %v3184_v61, %v2267_v26  ;;  %v3055_v34 = vsel %vm3007_vm4, %v2990_v14, %v7887_v51  ;;  %v7891_v26 = vld [vmem:[#allocation271_spill] sm:$0xff]  ;;  %v699_v17 = vld [vmem:[#allocation2 + $0x338] sm:$0xff]  ;;  %v7897_v40 = vld [vmem:[#allocation129_spill] sm:$0xff] }
 0x3f9   :  { %v2777_v12 = vpop.permute.xlu1 %2776  ;;  %v3217_v10 = vsel %vm3202_vm7, %v3152_v18, %v7884_v58  ;;  %v3023_v52 = vsel %vm3007_vm4, %v2958_v56, %v7886_v8  ;;  %v7894_v46 = vld [vmem:[#allocation43_spill] sm:$0xff]  ;;  %v7898_v53 = vld [vmem:[#allocation158_spill] sm:$0xff]  ;;  %v4349_v58 = vld [vmem:[#allocation2 + $0xc8] sm:$0xff] }
 0x3fa   :  { %v3378_v6 = vsel %vm3332_vm9, %v3313_v22, %v2777_v12  ;;  %v3088_v38 = vsel %vm3072_vm5, %v3023_v52, %v7888_v20  ;;  %v7889_v22 = vld [vmem:[#allocation215_spill] sm:$0xff]  ;;  %v7890_v12 = vld [vmem:[#allocation244_spill] sm:$0xff]  ;;  %v7902_v8 = vld [vmem:[#allocation245_spill] sm:$0xff] }
 0x3fb   :  { %2798 = vrot.lane.b32.xlu1 %v822_v62, %s4387_s1  ;;  %4271 = vmatmul.mubr.msk.f32.gmra.mxu1 %vm3409_vm10, %v3378_v6  ;;  %v2459_v42 = vpop.permute.xlu0 %2458  ;;  %v3120_v50 = vsel %vm3072_vm5, %v3055_v34, %v7889_v22  ;;  %v3153_v6 = vsel %vm3137_vm6, %v3088_v38, %v7890_v12  ;;  %v730_v0 = vld [vmem:[#allocation2 + $0x181] sm:$0xff] }
 0x3fc   :  { %2290 = vrot.lane.b32.xlu0 %v696_v49, %s4385_s11  ;;  %v3282_v29 = vsel %vm3267_vm8, %v3217_v10, %v2459_v42  ;;  %v7892_v49 = vld [vmem:[#allocation291_spill] sm:$0xff]  ;;  %v7900_v10 = vld [vmem:[#allocation16_spill] sm:$0xff] }
 0x3fd   :  { %v2269_v11 = vpop.permute.xlu1 %2268  ;;  %v3218_v42 = vsel %vm3202_vm7, %v3153_v6, %v7892_v49  ;;  %v7899_v56 = vld [vmem:[#allocation187_spill] sm:$0xff]  ;;  %v7905_v34 = vld [vmem:[#allocation272_spill] sm:$0xff] }
 0x3fe   :  { %v7906_v38 = vld [vmem:[#allocation292_spill] sm:$0xff]  ;;  %v7909_v49 = vld [vmem:[#allocation159_spill] sm:$0xff] }
 0x3ff   :  { %2800 = vrot.lane.b32.xlu1 %v823_v9, %s4387_s1  ;;  %v2461_v48 = vpop.permute.xlu0 %2460  ;;  %v3185_v9 = vsel %vm3137_vm6, %v3120_v50, %v7891_v26  ;;  %v7908_v50 = vld [vmem:[#allocation130_spill] sm:$0xff] }
 0x400   :  { %2482 = vrot.lane.b32.xlu0 %v728_v30, %s4386_s22  ;;  %v3283_v28 = vsel %vm3267_vm8, %v3218_v42, %v2461_v48  ;;  %v825_v30 = vld [vmem:[#allocation2 + $0x322] sm:$0xff] }
 0x401   :  { %v2523_v24 = vpop.permute.xlu1 %2522 }
 0x402   :  { %v3314_v37 = vsel %vm3267_vm8, %v3249_v43, %v2523_v24  ;;  %v3250_v24 = vsel %vm3202_vm7, %v3185_v9, %v2269_v11  ;;  %v793_v11 = vld [vmem:[#allocation2 + $0x172] sm:$0xff] }
 0x403   :  { %2292 = vrot.lane.b32.xlu1 %v697_v23, %s4385_s11  ;;  %v2715_v2 = vpop.permute.xlu0 %2714  ;;  %v792_v23 = vld [vmem:[#allocation2 + $0x16a] sm:$0xff]  ;;  %v4350_v43 = vld [vmem:[#allocation2 + $0x278] sm:$0xff] }
 0x404   :  { %v3347_v21 = vsel %vm3332_vm9, %v3282_v29, %v2715_v2  ;;  %2484 = vrot.lane.b32.xlu0 %v729_v5, %s4386_s22  ;;  %v2895_v5 = vsel %vm14_vm0, %v4349_v58, %v7900_v10  ;;  %v7903_v29 = vld [vmem:[#allocation44_spill] sm:$0xff]  ;;  %v763_v9 = vld [vmem:[#allocation2 + $0x339] sm:$0xff]  ;;  %v7917_v58 = vld [vmem:[#allocation73_spill] sm:$0xff] }
 0x405   :  { %v2525_v7 = vpop.permute.xlu1 %2524  ;;  %4225 = vmatprep.mubr.msk.f32.mxu0 %vm3409_vm10, %v3347_v21  ;;  %v2927_v2 = vsel %vm14_vm0, %v4350_v43, %v7903_v29  ;;  %v731_v21 = vld [vmem:[#allocation2 + $0x189] sm:$0xff] }
 0x406   :  { %v3315_v47 = vsel %vm3267_vm8, %v3250_v24, %v2525_v7  ;;  %v2926_v7 = vsel %vm14_vm0, %v4348_v15, %v7894_v46  ;;  %v764_v29 = vld [vmem:[#allocation2 + $0x349] sm:$0xff] }
 0x407   :  { %2546 = vrot.lane.b32.xlu1 %v760_v45, %s4386_s22  ;;  %v2717_v55 = vpop.permute.xlu0 %2716  ;;  %v4347_v45 = vld [vmem:[#allocation2 + $0xc0] sm:$0xff]  ;;  %v2991_v36 = vsel %vm2942_vm3, %v2926_v7, %v7896_v16 }
 0x408   :  { %v3348_v31 = vsel %vm3332_vm9, %v3283_v28, %v2717_v55  ;;  %2738 = vrot.lane.b32.xlu0 %v792_v23, %s4387_s1  ;;  %v2894_v33 = vsel %vm14_vm0, %v4347_v45, %v7893_v57  ;;  %v3056_v32 = vsel %vm3007_vm4, %v2991_v36, %v7898_v53  ;;  %v7910_v23 = vld [vmem:[#allocation188_spill] sm:$0xff]  ;;  %v7915_v53 = vld [vmem:[#allocation17_spill] sm:$0xff] }
 0x409   :  { %v2779_v62 = vpop.permute.xlu1 %2778  ;;  %4226 = vmatmul.mubr.msk.f32.gmra.mxu0 %vm3409_vm10, %v3348_v31  ;;  %v2959_v27 = vsel %vm2942_vm3, %v2894_v33, %v7895_v54  ;;  %v3121_v14 = vsel %vm3072_vm5, %v3056_v32, %v7901_v59  ;;  %v826_v33 = vld [vmem:[#allocation2 + $0x332] sm:$0xff]  ;;  %v700_v36 = vld [vmem:[#allocation2 + $0x348] sm:$0xff] }
 0x40a   :  { %v3379_v63 = vsel %vm3332_vm9, %v3314_v37, %v2779_v62  ;;  %v3024_v18 = vsel %vm3007_vm4, %v2959_v27, %v7897_v40  ;;  %v3186_v20 = vsel %vm3137_vm6, %v3121_v14, %v7905_v34  ;;  %v7907_v62 = vld [vmem:[#allocation101_spill] sm:$0xff]  ;;  %v7918_v59 = vld [vmem:[#allocation102_spill] sm:$0xff] }
 0x40b   :  { %2548 = vrot.lane.b32.xlu1 %v761_v39, %s4386_s22  ;;  %4273 = vmatprep.mubr.msk.f32.mxu1 %vm3409_vm10, %v3379_v63  ;;  %v2271_v35 = vpop.permute.xlu0 %2270  ;;  %v3089_v60 = vsel %vm3072_vm5, %v3024_v18, %v7899_v56  ;;  %v7904_v39 = vld [vmem:[#allocation72_spill] sm:$0xff]  ;;  %v2992_v22 = vsel %vm2942_vm3, %v2927_v2, %v7907_v62  ;;  %v701_v18 = vld [vmem:[#allocation2 + $0x350] sm:$0xff]  ;;  %v7923_v62 = vld [vmem:[#allocation218_spill] sm:$0xff] }
 0x40c   :  { %2740 = vrot.lane.b32.xlu0 %v793_v11, %s4387_s1  ;;  %v3154_v52 = vsel %vm3137_vm6, %v3089_v60, %v7902_v8  ;;  %v2960_v51 = vsel %vm2942_vm3, %v2895_v5, %v7904_v39  ;;  %v3251_v6 = vsel %vm3202_vm7, %v3186_v20, %v2271_v35  ;;  %v3057_v42 = vsel %vm3007_vm4, %v2992_v22, %v7909_v49  ;;  %v7913_v35 = vld [vmem:[#allocation273_spill] sm:$0xff]  ;;  %v4352_v56 = vld [vmem:[#allocation2 + $0x288] sm:$0xff]  ;;  %v732_v5 = vld [vmem:[#allocation2 + $0x199] sm:$0xff] }
 0x40d   :  { %v2781_v1 = vpop.permute.xlu1 %2780  ;;  %v3219_v37 = vsel %vm3202_vm7, %v3154_v52, %v7906_v38  ;;  %v3025_v12 = vsel %vm3007_vm4, %v2960_v51, %v7908_v50  ;;  %v7916_v60 = vld [vmem:[#allocation45_spill] sm:$0xff]  ;;  %v7919_v8 = vld [vmem:[#allocation131_spill] sm:$0xff]  ;;  %v7920_v2 = vld [vmem:[#allocation160_spill] sm:$0xff] }
 0x40e   :  { %v3380_v4 = vsel %vm3332_vm9, %v3315_v47, %v2781_v1  ;;  %v3090_v24 = vsel %vm3072_vm5, %v3025_v12, %v7910_v23  ;;  %v7911_v47 = vld [vmem:[#allocation217_spill] sm:$0xff]  ;;  %v7912_v1 = vld [vmem:[#allocation246_spill] sm:$0xff]  ;;  %v4353_v38 = vld [vmem:[#allocation2 + $0xe0] sm:$0xff] }
 0x40f   :  { %2802 = vrot.lane.b32.xlu1 %v824_v19, %s4387_s1  ;;  %4274 = vmatmul.mubr.msk.f32.gmra.mxu1 %vm3409_vm10, %v3380_v4  ;;  %v2463_v3 = vpop.permute.xlu0 %2462  ;;  %v3122_v31 = vsel %vm3072_vm5, %v3057_v42, %v7911_v47  ;;  %v3155_v4 = vsel %vm3137_vm6, %v3090_v24, %v7912_v1  ;;  %v7921_v51 = vld [vmem:[#allocation189_spill] sm:$0xff]  ;;  %v7924_v50 = vld [vmem:[#allocation247_spill] sm:$0xff]  ;;  %v7927_v42 = vld [vmem:[#allocation274_spill] sm:$0xff] }
 0x410   :  { %2294 = vrot.lane.b32.xlu0 %v698_v13, %s4385_s11  ;;  %v3284_v63 = vsel %vm3267_vm8, %v3219_v37, %v2463_v3  ;;  %v7914_v13 = vld [vmem:[#allocation293_spill] sm:$0xff]  ;;  %v7922_v37 = vld [vmem:[#allocation18_spill] sm:$0xff] }
 0x411   :  { %v2273_v25 = vpop.permute.xlu1 %2272  ;;  %v3220_v3 = vsel %vm3202_vm7, %v3155_v4, %v7914_v13  ;;  %v7928_v24 = vld [vmem:[#allocation294_spill] sm:$0xff]  ;;  %v7931_v13 = vld [vmem:[#allocation161_spill] sm:$0xff] }
 0x413   :  { %2804 = vrot.lane.b32.xlu1 %v825_v30, %s4387_s1  ;;  %v2465_v44 = vpop.permute.xlu0 %2464  ;;  %v3187_v30 = vsel %vm3137_vm6, %v3122_v31, %v7913_v35  ;;  %v7930_v31 = vld [vmem:[#allocation132_spill] sm:$0xff] }
 0x414   :  { %2486 = vrot.lane.b32.xlu0 %v730_v0, %s4386_s22  ;;  %v3285_v45 = vsel %vm3267_vm8, %v3220_v3, %v2465_v44  ;;  %v827_v0 = vld [vmem:[#allocation2 + $0x33a] sm:$0xff] }
 0x415   :  { %v2527_v48 = vpop.permute.xlu1 %2526 }
 0x416   :  { %v3316_v28 = vsel %vm3267_vm8, %v3251_v6, %v2527_v48  ;;  %v3252_v48 = vsel %vm3202_vm7, %v3187_v30, %v2273_v25  ;;  %v795_v25 = vld [vmem:[#allocation2 + $0x18a] sm:$0xff] }
 0x417   :  { %2296 = vrot.lane.b32.xlu1 %v699_v17, %s4385_s11  ;;  %v2719_v26 = vpop.permute.xlu0 %2718  ;;  %v794_v17 = vld [vmem:[#allocation2 + $0x182] sm:$0xff]  ;;  %v4354_v6 = vld [vmem:[#allocation2 + $0x290] sm:$0xff] }
 0x418   :  { %v3349_v55 = vsel %vm3332_vm9, %v3284_v63, %v2719_v26  ;;  %2488 = vrot.lane.b32.xlu0 %v731_v21, %s4386_s22  ;;  %v2897_v21 = vsel %vm14_vm0, %v4353_v38, %v7922_v37  ;;  %v7925_v63 = vld [vmem:[#allocation46_spill] sm:$0xff]  ;;  %v7940_v38 = vld [vmem:[#allocation104_spill] sm:$0xff] }
 0x419   :  { %v2529_v61 = vpop.permute.xlu1 %2528  ;;  %4228 = vmatprep.mubr.msk.f32.mxu0 %vm3409_vm10, %v3349_v55  ;;  %v2929_v26 = vsel %vm14_vm0, %v4354_v6, %v7925_v63  ;;  %v733_v55 = vld [vmem:[#allocation2 + $0x1a1] sm:$0xff]  ;;  %v765_v30 = vld [vmem:[#allocation2 + $0x351] sm:$0xff] }
 0x41a   :  { %v3317_v15 = vsel %vm3267_vm8, %v3252_v48, %v2529_v61  ;;  %v2928_v61 = vsel %vm14_vm0, %v4352_v56, %v7916_v60  ;;  %v7942_v6 = vld [vmem:[#allocation20_spill] sm:$0xff] }
 0x41b   :  { %2550 = vrot.lane.b32.xlu1 %v762_v41, %s4386_s22  ;;  %v2721_v57 = vpop.permute.xlu0 %2720  ;;  %v4351_v41 = vld [vmem:[#allocation2 + $0xd8] sm:$0xff]  ;;  %v2993_v14 = vsel %vm2942_vm3, %v2928_v61, %v7918_v59 }
 0x41c   :  { %v3350_v46 = vsel %vm3332_vm9, %v3285_v45, %v2721_v57  ;;  %2742 = vrot.lane.b32.xlu0 %v794_v17, %s4387_s1  ;;  %v2896_v32 = vsel %vm14_vm0, %v4351_v41, %v7915_v53  ;;  %v3058_v39 = vsel %vm3007_vm4, %v2993_v14, %v7920_v2  ;;  %v7932_v17 = vld [vmem:[#allocation190_spill] sm:$0xff]  ;;  %v4356_v2 = vld [vmem:[#allocation2 + $0x2a0] sm:$0xff] }
 0x41d   :  { %v2783_v19 = vpop.permute.xlu1 %2782  ;;  %4229 = vmatmul.mubr.msk.f32.gmra.mxu0 %vm3409_vm10, %v3350_v46  ;;  %v2961_v10 = vsel %vm2942_vm3, %v2896_v32, %v7917_v58  ;;  %v3123_v22 = vsel %vm3072_vm5, %v3058_v39, %v7923_v62  ;;  %v828_v32 = vld [vmem:[#allocation2 + $0x34a] sm:$0xff]  ;;  %v7938_v39 = vld [vmem:[#allocation47_spill] sm:$0xff] }
 0x41e   :  { %v3381_v11 = vsel %vm3332_vm9, %v3316_v28, %v2783_v19  ;;  %v3026_v52 = vsel %vm3007_vm4, %v2961_v10, %v7919_v8  ;;  %v3188_v23 = vsel %vm3137_vm6, %v3123_v22, %v7927_v42  ;;  %v7929_v19 = vld [vmem:[#allocation103_spill] sm:$0xff]  ;;  %v7944_v42 = vld [vmem:[#allocation162_spill] sm:$0xff] }
 0x41f   :  { %2552 = vrot.lane.b32.xlu1 %v763_v9, %s4386_s22  ;;  %4276 = vmatprep.mubr.msk.f32.mxu1 %vm3409_vm10, %v3381_v11  ;;  %v2275_v27 = vpop.permute.xlu0 %2274  ;;  %v3091_v34 = vsel %vm3072_vm5, %v3026_v52, %v7921_v51  ;;  %v7926_v9 = vld [vmem:[#allocation74_spill] sm:$0xff]  ;;  %v2994_v47 = vsel %vm2942_vm3, %v2929_v26, %v7929_v19  ;;  %v4355_v52 = vld [vmem:[#allocation2 + $0xf0] sm:$0xff]  ;;  %v2930_v51 = vsel %vm14_vm0, %v4356_v2, %v7938_v39  ;;  %v4358_v26 = vld [vmem:[#allocation2 + $0x2a8] sm:$0xff] }
 0x420   :  { %2744 = vrot.lane.b32.xlu0 %v795_v25, %s4387_s1  ;;  %v3156_v12 = vsel %vm3137_vm6, %v3091_v34, %v7924_v50  ;;  %v2962_v49 = vsel %vm2942_vm3, %v2897_v21, %v7926_v9  ;;  %v3253_v4 = vsel %vm3202_vm7, %v3188_v23, %v2275_v27  ;;  %v3059_v3 = vsel %vm3007_vm4, %v2994_v47, %v7931_v13  ;;  %v7935_v27 = vld [vmem:[#allocation275_spill] sm:$0xff]  ;;  %v7941_v21 = vld [vmem:[#allocation133_spill] sm:$0xff]  ;;  %v7943_v9 = vld [vmem:[#allocation48_spill] sm:$0xff] }
 0x421   :  { %v2785_v7 = vpop.permute.xlu1 %2784  ;;  %v3221_v28 = vsel %vm3202_vm7, %v3156_v12, %v7928_v24  ;;  %v3027_v1 = vsel %vm3007_vm4, %v2962_v49, %v7930_v31  ;;  %v7939_v34 = vld [vmem:[#allocation75_spill] sm:$0xff]  ;;  %v2995_v37 = vsel %vm2942_vm3, %v2930_v51, %v7940_v38  ;;  %v4357_v12 = vld [vmem:[#allocation2 + $0xf8] sm:$0xff]  ;;  %v2931_v49 = vsel %vm14_vm0, %v4358_v26, %v7943_v9  ;;  %v7946_v19 = vld [vmem:[#allocation76_spill] sm:$0xff] }
 0x422   :  { %v3382_v54 = vsel %vm3332_vm9, %v3317_v15, %v2785_v7  ;;  %v3092_v48 = vsel %vm3072_vm5, %v3027_v1, %v7932_v17  ;;  %v7933_v15 = vld [vmem:[#allocation219_spill] sm:$0xff]  ;;  %v7934_v7 = vld [vmem:[#allocation248_spill] sm:$0xff]  ;;  %v2899_v63 = vsel %vm14_vm0, %v4357_v12, %v7942_v6  ;;  %v3060_v23 = vsel %vm3007_vm4, %v2995_v37, %v7944_v42  ;;  %v7947_v31 = vld [vmem:[#allocation105_spill] sm:$0xff] }
 0x423   :  { %2806 = vrot.lane.b32.xlu1 %v826_v33, %s4387_s1  ;;  %4277 = vmatmul.mubr.msk.f32.gmra.mxu1 %vm3409_vm10, %v3382_v54  ;;  %v2467_v40 = vpop.permute.xlu0 %2466  ;;  %v3124_v46 = vsel %vm3072_vm5, %v3059_v3, %v7933_v15  ;;  %v3157_v54 = vsel %vm3137_vm6, %v3092_v48, %v7934_v7  ;;  %v6795_v50 = vld [vmem:[%s7457_s2] ss:$0 sm:$0xff]  ;;  %v2964_v47 = vsel %vm2942_vm3, %v2899_v63, %v7946_v19  ;;  %v7950_v3 = vld [vmem:[#allocation134_spill] sm:$0xff]  ;;  %v7951_v48 = vld [vmem:[#allocation276_spill] sm:$0xff] }
 0x424   :  { %2298 = vrot.lane.b32.xlu0 %v700_v36, %s4385_s11  ;;  %v3286_v11 = vsel %vm3267_vm8, %v3221_v28, %v2467_v40  ;;  %v7936_v36 = vld [vmem:[#allocation295_spill] sm:$0xff]  ;;  %v2996_v1 = vsel %vm2942_vm3, %v2931_v49, %v7947_v31  ;;  %v3029_v17 = vsel %vm3007_vm4, %v2964_v47, %v7950_v3  ;;  %v4359_v12 = vld [vmem:[#allocation2 + $0x108] sm:$0xff]  ;;  %v7959_v6 = vld [vmem:[#allocation21_spill] sm:$0xff] }
 0x425   :  { %v2277_v16 = vpop.permute.xlu1 %2276  ;;  %v3222_v40 = vsel %vm3202_vm7, %v3157_v54, %v7936_v36  ;;  %v7945_v24 = vld [vmem:[#allocation191_spill] sm:$0xff]  ;;  %v2900_v63 = vsel %vm14_vm0, %v4359_v12, %v7959_v6  ;;  %v4360_v26 = vld [vmem:[#allocation2 + $0x2b8] sm:$0xff]  ;;  %v7960_v9 = vld [vmem:[#allocation49_spill] sm:$0xff] }
 0x426   :  { %v7953_v7 = vld [vmem:[#allocation163_spill] sm:$0xff]  ;;  %v2932_v49 = vsel %vm14_vm0, %v4360_v26, %v7960_v9  ;;  %v7961_v42 = vld [vmem:[#allocation77_spill] sm:$0xff] }
 0x427   :  { %2808 = vrot.lane.b32.xlu1 %v827_v0, %s4387_s1  ;;  %v2469_v43 = vpop.permute.xlu0 %2468  ;;  %v3189_v0 = vsel %vm3137_vm6, %v3124_v46, %v7935_v27  ;;  %v3061_v54 = vsel %vm3007_vm4, %v2996_v1, %v7953_v7  ;;  %v4361_v31 = vld [vmem:[#allocation2 + $0x110] sm:$0xff]  ;;  %v7964_v1 = vld [vmem:[#allocation22_spill] sm:$0xff]  ;;  %v7980_v6 = vld [vmem:[#allocation299_spill] sm:$0xff] }
 0x428   :  { %2490 = vrot.lane.b32.xlu0 %v732_v5, %s4386_s22  ;;  %v3287_v41 = vsel %vm3267_vm8, %v3222_v40, %v2469_v43  ;;  %v829_v5 = vld [vmem:[#allocation2 + $0x352] sm:$0xff]  ;;  %v7937_v43 = vld [vmem:[#allocation19_spill] sm:$0xff] }
 0x429   :  { %v2531_v44 = vpop.permute.xlu1 %2530  ;;  %v7970_v7 = vld [vmem:[#allocation222_spill] sm:$0xff] }
 0x42a   :  { %v3318_v45 = vsel %vm3267_vm8, %v3253_v4, %v2531_v44  ;;  %v3254_v44 = vsel %vm3202_vm7, %v3189_v0, %v2277_v16  ;;  %v797_v16 = vld [vmem:[#allocation2 + $0x1a2] sm:$0xff] }
 0x42b   :  { %2300 = vrot.lane.b32.xlu1 %v701_v18, %s4385_s11  ;;  %v2723_v35 = vpop.permute.xlu0 %2722  ;;  %v796_v18 = vld [vmem:[#allocation2 + $0x19a] sm:$0xff]  ;;  %v7948_v4 = vld [vmem:[#allocation220_spill] sm:$0xff] }
 0x42c   :  { %v3351_v57 = vsel %vm3332_vm9, %v3286_v11, %v2723_v35  ;;  %2492 = vrot.lane.b32.xlu0 %v733_v55, %s4386_s22  ;;  %v3125_v11 = vsel %vm3072_vm5, %v3060_v23, %v7948_v4  ;;  %v7949_v35 = vld [vmem:[#allocation249_spill] sm:$0xff]  ;;  %v2965_v23 = vsel %vm2942_vm3, %v2900_v63, %v7961_v42  ;;  %v2901_v4 = vsel %vm14_vm0, %v4361_v31, %v7964_v1  ;;  %v4363_v31 = vld [vmem:[#allocation2 + $0x120] sm:$0xff] }
 0x42d   :  { %v2533_v20 = vpop.permute.xlu1 %2532  ;;  %4231 = vmatprep.mubr.msk.f32.mxu0 %vm3409_vm10, %v3351_v57  ;;  %v7952_v57 = vld [vmem:[#allocation296_spill] sm:$0xff]  ;;  %v7981_v1 = vld [vmem:[#allocation23_spill] sm:$0xff] }
 0x42e   :  { %v3319_v56 = vsel %vm3267_vm8, %v3254_v44, %v2533_v20 }
 0x42f   :  { %2554 = vrot.lane.b32.xlu1 %v764_v29, %s4386_s22  ;;  %v2725_v53 = vpop.permute.xlu0 %2724  ;;  %v2898_v29 = vsel %vm14_vm0, %v4355_v52, %v7937_v43  ;;  %v7958_v43 = vld [vmem:[#allocation297_spill] sm:$0xff] }
 0x430   :  { %v3352_v60 = vsel %vm3332_vm9, %v3287_v41, %v2725_v53  ;;  %2746 = vrot.lane.b32.xlu0 %v796_v18, %s4387_s1  ;;  %v2963_v20 = vsel %vm2942_vm3, %v2898_v29, %v7939_v34  ;;  %v7954_v18 = vld [vmem:[#allocation192_spill] sm:$0xff] }
 0x431   :  { %v2787_v33 = vpop.permute.xlu1 %2786  ;;  %4232 = vmatmul.mubr.msk.f32.gmra.mxu0 %vm3409_vm10, %v3352_v60  ;;  %v3028_v62 = vsel %vm3007_vm4, %v2963_v20, %v7941_v21  ;;  %v3094_v44 = vsel %vm3072_vm5, %v3029_v17, %v7954_v18  ;;  %v7967_v17 = vld [vmem:[#allocation193_spill] sm:$0xff]  ;;  %v7973_v18 = vld [vmem:[#allocation278_spill] sm:$0xff] }
 0x432   :  { %v3383_v25 = vsel %vm3332_vm9, %v3318_v45, %v2787_v33  ;;  %v3093_v28 = vsel %vm3072_vm5, %v3028_v62, %v7945_v24  ;;  %v3190_v45 = vsel %vm3137_vm6, %v3125_v11, %v7951_v48  ;;  %v7962_v24 = vld [vmem:[#allocation106_spill] sm:$0xff]  ;;  %v4362_v11 = vld [vmem:[#allocation2 + $0x2c0] sm:$0xff] }
 0x433   :  { %2556 = vrot.lane.b32.xlu1 %v765_v30, %s4386_s22  ;;  %4279 = vmatprep.mubr.msk.f32.mxu1 %vm3409_vm10, %v3383_v25  ;;  %v2279_v10 = vpop.permute.xlu0 %2278  ;;  %v3158_v30 = vsel %vm3137_vm6, %v3093_v28, %v7949_v35  ;;  %v2997_v28 = vsel %vm2942_vm3, %v2932_v49, %v7962_v24  ;;  %v7965_v35 = vld [vmem:[#allocation50_spill] sm:$0xff] }
 0x434   :  { %2748 = vrot.lane.b32.xlu0 %v797_v16, %s4387_s1  ;;  %v3223_v33 = vsel %vm3202_vm7, %v3158_v30, %v7952_v57  ;;  %v3255_v25 = vsel %vm3202_vm7, %v3190_v45, %v2279_v10  ;;  %v7956_v16 = vld [vmem:[#allocation250_spill] sm:$0xff]  ;;  %v2933_v30 = vsel %vm14_vm0, %v4362_v11, %v7965_v35  ;;  %v4364_v11 = vld [vmem:[#allocation2 + $0x2d0] sm:$0xff]  ;;  %v7982_v35 = vld [vmem:[#allocation51_spill] sm:$0xff] }
 0x435   :  { %v2789_v61 = vpop.permute.xlu1 %2788  ;;  %v3159_v10 = vsel %vm3137_vm6, %v3094_v44, %v7956_v16  ;;  %v7968_v57 = vld [vmem:[#allocation78_spill] sm:$0xff] }
 0x436   :  { %v3384_v58 = vsel %vm3332_vm9, %v3319_v56, %v2789_v61  ;;  %v7955_v61 = vld [vmem:[#allocation221_spill] sm:$0xff]  ;;  %v3224_v29 = vsel %vm3202_vm7, %v3159_v10, %v7958_v43 }
 0x437   :  { %2810 = vrot.lane.b32.xlu1 %v828_v32, %s4387_s1  ;;  %4280 = vmatmul.mubr.msk.f32.gmra.mxu1 %vm3409_vm10, %v3384_v58  ;;  %v2471_v14 = vpop.permute.xlu0 %2470  ;;  %v3126_v58 = vsel %vm3072_vm5, %v3061_v54, %v7955_v61 }
 0x438   :  { %v3288_v27 = vsel %vm3267_vm8, %v3223_v33, %v2471_v14  ;;  %v2966_v33 = vsel %vm2942_vm3, %v2901_v4, %v7968_v57  ;;  %v2902_v4 = vsel %vm14_vm0, %v4363_v31, %v7981_v1  ;;  %v8002_v1 = vld [vmem:[#allocation301_spill] sm:$0xff] }
 0x439   :  { %v2281_v59 = vpop.permute.xlu1 %2280 }
 0x43b   :  { %2812 = vrot.lane.b32.xlu1 %v829_v5, %s4387_s1  ;;  %v2473_v22 = vpop.permute.xlu0 %2472 }
 0x43c   :  { %v3289_v39 = vsel %vm3267_vm8, %v3224_v29, %v2473_v22 }
 0x43d   :  { %v2535_v8 = vpop.permute.xlu1 %2534  ;;  %v4206_v13 = vpop.f32.mrf.mxu0 }
 0x43e   :  { %v3678_v15 = vadd.f32 %v4206_v13, %v6795_v50  ;;  %v3320_v41 = vsel %vm3267_vm8, %v3255_v25, %v2535_v8  ;;  %v7957_v8 = vld [vmem:[#allocation277_spill] sm:$0xff]  ;;  %v7966_v13 = vld [vmem:[#allocation164_spill] sm:$0xff]  ;;  %v7971_v25 = vld [vmem:[#allocation251_spill] sm:$0xff] }
 0x43f   :  { %v2727_v36 = vpop.permute.xlu0 %2726  ;;  %v3672_v40 = vpop.f32.mrf.mxu0  ;;  %v3191_v52 = vsel %vm3137_vm6, %v3126_v58, %v7957_v8  ;;  %v3062_v3 = vsel %vm3007_vm4, %v2997_v28, %v7966_v13  ;;  %v7976_v8 = vld [vmem:[#allocation194_spill] sm:$0xff]  ;;  %v7983_v13 = vld [vmem:[#allocation79_spill] sm:$0xff] }
 0x440   :  { %3992 = vst.msk [vmem:[%s7458_s3 + $0x8] sm:$0xff] %vm2942_vm3, %v3678_v15  ;;  %v3353_v53 = vsel %vm3332_vm9, %v3288_v27, %v2727_v36  ;;  %v3673_v32 = vadd.f32 %v6795_v50, %v3672_v40  ;;  %v3256_v2 = vsel %vm3202_vm7, %v3191_v52, %v2281_v59  ;;  %v7969_v15 = vld [vmem:[#allocation107_spill] sm:$0xff]  ;;  %v3127_v54 = vsel %vm3072_vm5, %v3062_v3, %v7970_v7  ;;  %v7972_v36 = vld [vmem:[#allocation136_spill] sm:$0xff] }
 0x441   :  { %v2537_v55 = vpop.permute.xlu1 %2536  ;;  %4234 = vmatprep.mubr.msk.f32.mxu0 %vm3409_vm10, %v3353_v53  ;;  %v3031_v40 = vsel %vm3007_vm4, %v2966_v33, %v7972_v36  ;;  %v3192_v44 = vsel %vm3137_vm6, %v3127_v54, %v7973_v18  ;;  %v2967_v3 = vsel %vm2942_vm3, %v2902_v4, %v7983_v13  ;;  %v4366_v54 = vld [vmem:[#allocation2 + $0x2d8] sm:$0xff] }
 0x442   :  { %3991 = vst.msk [vmem:[%s7458_s3] sm:$0xff] %vm2942_vm3, %v3673_v32  ;;  %v3321_v34 = vsel %vm3267_vm8, %v3256_v2, %v2537_v55  ;;  %v7963_v55 = vld [vmem:[#allocation135_spill] sm:$0xff]  ;;  %v3096_v52 = vsel %vm3072_vm5, %v3031_v40, %v7976_v8  ;;  %v7995_v8 = vld [vmem:[#allocation280_spill] sm:$0xff] }
 0x443   :  { %v4254_v46 = vpop.f32.mrf.mxu1  ;;  %v2729_v51 = vpop.permute.xlu0 %2728  ;;  %v3030_v19 = vsel %vm3007_vm4, %v2965_v23, %v7963_v55  ;;  %v7989_v40 = vld [vmem:[#allocation195_spill] sm:$0xff] }
 0x444   :  { %v3838_v0 = vadd.f32 %v4254_v46, %v6795_v50  ;;  %v3354_v20 = vsel %vm3332_vm9, %v3289_v39, %v2729_v51  ;;  %v3095_v48 = vsel %vm3072_vm5, %v3030_v19, %v7967_v17  ;;  %v2998_v46 = vsel %vm2942_vm3, %v2933_v30, %v7969_v15  ;;  %v7984_v17 = vld [vmem:[#allocation108_spill] sm:$0xff] }
 0x445   :  { %v3832_v56 = vpop.f32.mrf.mxu1  ;;  %v2791_v60 = vpop.permute.xlu1 %2790  ;;  %4235 = vmatmul.mubr.msk.f32.gmra.mxu0 %vm3409_vm10, %v3354_v20  ;;  %v3160_v27 = vsel %vm3137_vm6, %v3095_v48, %v7971_v25  ;;  %v2934_v30 = vsel %vm14_vm0, %v4364_v11, %v7982_v35  ;;  %v4365_v15 = vld [vmem:[#allocation2 + $0x128] sm:$0xff] }
 0x446   :  { %4024 = vst.msk [vmem:[%s7458_s3 + $0x108] sm:$0xff] %vm2942_vm3, %v3838_v0  ;;  %v3833_v5 = vadd.f32 %v6795_v50, %v3832_v56  ;;  %v3385_v14 = vsel %vm3332_vm9, %v3320_v41, %v2791_v60  ;;  %v7974_v41 = vld [vmem:[#allocation298_spill] sm:$0xff]  ;;  %v7975_v60 = vld [vmem:[#allocation165_spill] sm:$0xff]  ;;  %v2999_v48 = vsel %vm2942_vm3, %v2934_v30, %v7984_v17  ;;  %v7987_v25 = vld [vmem:[#allocation52_spill] sm:$0xff] }
 0x447   :  { %4282 = vmatprep.mubr.msk.f32.mxu1 %vm3409_vm10, %v3385_v14  ;;  %v2283_v59 = vpop.permute.xlu0 %2282  ;;  %v3225_v53 = vsel %vm3202_vm7, %v3160_v27, %v7974_v41  ;;  %v3063_v61 = vsel %vm3007_vm4, %v2998_v46, %v7975_v60  ;;  %v7986_v46 = vld [vmem:[#allocation24_spill] sm:$0xff]  ;;  %v2935_v27 = vsel %vm14_vm0, %v4366_v54, %v7987_v25  ;;  %v8004_v25 = vld [vmem:[#allocation53_spill] sm:$0xff] }
 0x448   :  { %4023 = vst.msk [vmem:[%s7458_s3 + $0x100] sm:$0xff] %vm2942_vm3, %v3833_v5  ;;  %v3257_v58 = vsel %vm3202_vm7, %v3192_v44, %v2283_v59  ;;  %v2903_v7 = vsel %vm14_vm0, %v4365_v15, %v7986_v46  ;;  %v7990_v41 = vld [vmem:[#allocation80_spill] sm:$0xff]  ;;  %v4367_v15 = vld [vmem:[#allocation2 + $0x138] sm:$0xff]  ;;  %v8003_v46 = vld [vmem:[#allocation25_spill] sm:$0xff] }
 0x449   :  { %v2793_v38 = vpop.permute.xlu1 %2792  ;;  %v7992_v60 = vld [vmem:[#allocation224_spill] sm:$0xff] }
 0x44a   :  { %v3386_v37 = vsel %vm3332_vm9, %v3321_v34, %v2793_v38  ;;  %v7977_v34 = vld [vmem:[#allocation223_spill] sm:$0xff]  ;;  %v7978_v38 = vld [vmem:[#allocation252_spill] sm:$0xff] }
 0x44b   :  { %4283 = vmatmul.mubr.msk.f32.gmra.mxu1 %vm3409_vm10, %v3386_v37  ;;  %v2475_v62 = vpop.permute.xlu0 %2474  ;;  %v3128_v20 = vsel %vm3072_vm5, %v3063_v61, %v7977_v34  ;;  %v3161_v37 = vsel %vm3137_vm6, %v3096_v52, %v7978_v38  ;;  %v4368_v54 = vld [vmem:[#allocation2 + $0x2e8] sm:$0xff] }
 0x44c   :  { %v3290_v16 = vsel %vm3267_vm8, %v3225_v53, %v2475_v62  ;;  %v3226_v63 = vsel %vm3202_vm7, %v3161_v37, %v7980_v6  ;;  %v2968_v53 = vsel %vm2942_vm3, %v2903_v7, %v7990_v41  ;;  %v2904_v7 = vsel %vm14_vm0, %v4367_v15, %v8003_v46  ;;  %v8024_v46 = vld [vmem:[#allocation303_spill] sm:$0xff] }
 0x44d   :  { %v2285_v21 = vpop.permute.xlu1 %2284 }
 0x44f   :  { %v2477_v47 = vpop.permute.xlu0 %2476 }
 0x450   :  { %v3291_v9 = vsel %vm3267_vm8, %v3226_v63, %v2477_v47 }
 0x451   :  { %v2539_v22 = vpop.permute.xlu1 %2538  ;;  %v4209_v0 = vpop.f32.mrf.mxu0 }
 0x452   :  { %v3688_v32 = vadd.f32 %v4209_v0, %v6795_v50  ;;  %v3322_v43 = vsel %vm3267_vm8, %v3257_v58, %v2539_v22  ;;  %v7979_v22 = vld [vmem:[#allocation279_spill] sm:$0xff]  ;;  %v7988_v0 = vld [vmem:[#allocation166_spill] sm:$0xff]  ;;  %v7993_v58 = vld [vmem:[#allocation253_spill] sm:$0xff] }
 0x453   :  { %v2731_v5 = vpop.permute.xlu0 %2730  ;;  %v3682_v14 = vpop.f32.mrf.mxu0  ;;  %v3193_v12 = vsel %vm3137_vm6, %v3128_v20, %v7979_v22  ;;  %v3064_v36 = vsel %vm3007_vm4, %v2999_v48, %v7988_v0  ;;  %v7998_v22 = vld [vmem:[#allocation196_spill] sm:$0xff]  ;;  %v8005_v0 = vld [vmem:[#allocation81_spill] sm:$0xff] }
 0x454   :  { %3994 = vst.msk [vmem:[%s7458_s3 + $0x18] sm:$0xff] %vm2942_vm3, %v3688_v32  ;;  %v3355_v29 = vsel %vm3332_vm9, %v3290_v16, %v2731_v5  ;;  %v3683_v2 = vadd.f32 %v6795_v50, %v3682_v14  ;;  %v3258_v26 = vsel %vm3202_vm7, %v3193_v12, %v2285_v21  ;;  %v7991_v32 = vld [vmem:[#allocation109_spill] sm:$0xff]  ;;  %v3129_v61 = vsel %vm3072_vm5, %v3064_v36, %v7992_v60  ;;  %v7994_v5 = vld [vmem:[#allocation138_spill] sm:$0xff] }
 0x455   :  { %v2541_v45 = vpop.permute.xlu1 %2540  ;;  %4237 = vmatprep.mubr.msk.f32.mxu0 %vm3409_vm10, %v3355_v29  ;;  %v3033_v14 = vsel %vm3007_vm4, %v2968_v53, %v7994_v5  ;;  %v3194_v52 = vsel %vm3137_vm6, %v3129_v61, %v7995_v8  ;;  %v2969_v36 = vsel %vm2942_vm3, %v2904_v7, %v8005_v0  ;;  %v4370_v61 = vld [vmem:[#allocation2 + $0x2f0] sm:$0xff] }
 0x456   :  { %3993 = vst.msk [vmem:[%s7458_s3 + $0x10] sm:$0xff] %vm2942_vm3, %v3683_v2  ;;  %v3323_v42 = vsel %vm3267_vm8, %v3258_v26, %v2541_v45  ;;  %v7985_v45 = vld [vmem:[#allocation137_spill] sm:$0xff]  ;;  %v3098_v12 = vsel %vm3072_vm5, %v3033_v14, %v7998_v22  ;;  %v8017_v22 = vld [vmem:[#allocation282_spill] sm:$0xff] }
 0x457   :  { %v4257_v56 = vpop.f32.mrf.mxu1  ;;  %v2733_v49 = vpop.permute.xlu0 %2732  ;;  %v3032_v57 = vsel %vm3007_vm4, %v2967_v3, %v7985_v45  ;;  %v8011_v14 = vld [vmem:[#allocation197_spill] sm:$0xff] }
 0x458   :  { %v3848_v10 = vadd.f32 %v4257_v56, %v6795_v50  ;;  %v3356_v23 = vsel %vm3332_vm9, %v3291_v9, %v2733_v49  ;;  %v3097_v18 = vsel %vm3072_vm5, %v3032_v57, %v7989_v40  ;;  %v3000_v56 = vsel %vm2942_vm3, %v2935_v27, %v7991_v32  ;;  %v8006_v40 = vld [vmem:[#allocation110_spill] sm:$0xff]  ;;  %v4369_v32 = vld [vmem:[#allocation2 + $0x140] sm:$0xff] }
 0x459   :  { %v3842_v39 = vpop.f32.mrf.mxu1  ;;  %v2795_v51 = vpop.permute.xlu1 %2794  ;;  %4238 = vmatmul.mubr.msk.f32.gmra.mxu0 %vm3409_vm10, %v3356_v23  ;;  %v3162_v16 = vsel %vm3137_vm6, %v3097_v18, %v7993_v58  ;;  %v2936_v27 = vsel %vm14_vm0, %v4368_v54, %v8004_v25  ;;  %v8009_v58 = vld [vmem:[#allocation54_spill] sm:$0xff] }
 0x45a   :  { %4026 = vst.msk [vmem:[%s7458_s3 + $0x118] sm:$0xff] %vm2942_vm3, %v3848_v10  ;;  %v3843_v59 = vadd.f32 %v6795_v50, %v3842_v39  ;;  %v3387_v62 = vsel %vm3332_vm9, %v3322_v43, %v2795_v51  ;;  %v7996_v43 = vld [vmem:[#allocation300_spill] sm:$0xff]  ;;  %v7997_v51 = vld [vmem:[#allocation167_spill] sm:$0xff]  ;;  %v3001_v18 = vsel %vm2942_vm3, %v2936_v27, %v8006_v40 }
 0x45b   :  { %4285 = vmatprep.mubr.msk.f32.mxu1 %vm3409_vm10, %v3387_v62  ;;  %v2287_v21 = vpop.permute.xlu0 %2286  ;;  %v3227_v29 = vsel %vm3202_vm7, %v3162_v16, %v7996_v43  ;;  %v3065_v34 = vsel %vm3007_vm4, %v3000_v56, %v7997_v51  ;;  %v8008_v56 = vld [vmem:[#allocation26_spill] sm:$0xff]  ;;  %v2937_v16 = vsel %vm14_vm0, %v4370_v61, %v8009_v58  ;;  %v4372_v61 = vld [vmem:[#allocation2 + $0x300] sm:$0xff] }
 0x45c   :  { %4025 = vst.msk [vmem:[%s7458_s3 + $0x110] sm:$0xff] %vm2942_vm3, %v3843_v59  ;;  %v3259_v20 = vsel %vm3202_vm7, %v3194_v52, %v2287_v21  ;;  %v2905_v60 = vsel %vm14_vm0, %v4369_v32, %v8008_v56  ;;  %v8012_v43 = vld [vmem:[#allocation82_spill] sm:$0xff]  ;;  %v4371_v32 = vld [vmem:[#allocation2 + $0x150] sm:$0xff]  ;;  %v8025_v56 = vld [vmem:[#allocation27_spill] sm:$0xff] }
 0x45d   :  { %v2797_v24 = vpop.permute.xlu1 %2796  ;;  %v8014_v51 = vld [vmem:[#allocation226_spill] sm:$0xff]  ;;  %v8026_v58 = vld [vmem:[#allocation55_spill] sm:$0xff] }
 0x45e   :  { %v3388_v28 = vsel %vm3332_vm9, %v3323_v42, %v2797_v24  ;;  %v7999_v42 = vld [vmem:[#allocation225_spill] sm:$0xff]  ;;  %v8000_v24 = vld [vmem:[#allocation254_spill] sm:$0xff] }
 0x45f   :  { %4286 = vmatmul.mubr.msk.f32.gmra.mxu1 %vm3409_vm10, %v3388_v28  ;;  %v2479_v19 = vpop.permute.xlu0 %2478  ;;  %v3130_v23 = vsel %vm3072_vm5, %v3065_v34, %v7999_v42  ;;  %v3163_v28 = vsel %vm3137_vm6, %v3098_v12, %v8000_v24 }
 0x460   :  { %v3292_v38 = vsel %vm3267_vm8, %v3227_v29, %v2479_v19  ;;  %v3228_v4 = vsel %vm3202_vm7, %v3163_v28, %v8002_v1  ;;  %v2970_v29 = vsel %vm2942_vm3, %v2905_v60, %v8012_v43  ;;  %v2906_v60 = vsel %vm14_vm0, %v4371_v32, %v8025_v56  ;;  %v8046_v56 = vld [vmem:[#allocation305_spill] sm:$0xff] }
 0x461   :  { %v2289_v55 = vpop.permute.xlu1 %2288 }
 0x463   :  { %v2481_v33 = vpop.permute.xlu0 %2480 }
 0x464   :  { %v3293_v35 = vsel %vm3267_vm8, %v3228_v4, %v2481_v33 }
 0x465   :  { %v2543_v47 = vpop.permute.xlu1 %2542  ;;  %v4212_v10 = vpop.f32.mrf.mxu0 }
 0x466   :  { %v3698_v2 = vadd.f32 %v4212_v10, %v6795_v50  ;;  %v3324_v6 = vsel %vm3267_vm8, %v3259_v20, %v2543_v47  ;;  %v8001_v47 = vld [vmem:[#allocation281_spill] sm:$0xff]  ;;  %v8010_v10 = vld [vmem:[#allocation168_spill] sm:$0xff]  ;;  %v8015_v20 = vld [vmem:[#allocation255_spill] sm:$0xff] }
 0x467   :  { %v2735_v59 = vpop.permute.xlu0 %2734  ;;  %v3692_v62 = vpop.f32.mrf.mxu0  ;;  %v3195_v31 = vsel %vm3137_vm6, %v3130_v23, %v8001_v47  ;;  %v3066_v5 = vsel %vm3007_vm4, %v3001_v18, %v8010_v10  ;;  %v8020_v47 = vld [vmem:[#allocation198_spill] sm:$0xff]  ;;  %v8027_v10 = vld [vmem:[#allocation83_spill] sm:$0xff] }
 0x468   :  { %3996 = vst.msk [vmem:[%s7458_s3 + $0x28] sm:$0xff] %vm2942_vm3, %v3698_v2  ;;  %v3357_v63 = vsel %vm3332_vm9, %v3292_v38, %v2735_v59  ;;  %v3693_v26 = vadd.f32 %v6795_v50, %v3692_v62  ;;  %v3260_v11 = vsel %vm3202_vm7, %v3195_v31, %v2289_v55  ;;  %v8013_v2 = vld [vmem:[#allocation111_spill] sm:$0xff]  ;;  %v3131_v34 = vsel %vm3072_vm5, %v3066_v5, %v8014_v51  ;;  %v8016_v59 = vld [vmem:[#allocation140_spill] sm:$0xff] }
 0x469   :  { %v2545_v44 = vpop.permute.xlu1 %2544  ;;  %4240 = vmatprep.mubr.msk.f32.mxu0 %vm3409_vm10, %v3357_v63  ;;  %v3035_v62 = vsel %vm3007_vm4, %v2970_v29, %v8016_v59  ;;  %v3196_v12 = vsel %vm3137_vm6, %v3131_v34, %v8017_v22  ;;  %v2971_v5 = vsel %vm2942_vm3, %v2906_v60, %v8027_v10  ;;  %v4374_v34 = vld [vmem:[#allocation2 + $0x308] sm:$0xff] }
 0x46a   :  { %3995 = vst.msk [vmem:[%s7458_s3 + $0x20] sm:$0xff] %vm2942_vm3, %v3693_v26  ;;  %v3325_v13 = vsel %vm3267_vm8, %v3260_v11, %v2545_v44  ;;  %v8007_v44 = vld [vmem:[#allocation139_spill] sm:$0xff]  ;;  %v3100_v31 = vsel %vm3072_vm5, %v3035_v62, %v8020_v47  ;;  %v8039_v47 = vld [vmem:[#allocation284_spill] sm:$0xff] }
 0x46b   :  { %v4260_v39 = vpop.f32.mrf.mxu1  ;;  %v2737_v30 = vpop.permute.xlu0 %2736  ;;  %v3034_v41 = vsel %vm3007_vm4, %v2969_v36, %v8007_v44  ;;  %v8033_v62 = vld [vmem:[#allocation199_spill] sm:$0xff] }
 0x46c   :  { %v3858_v37 = vadd.f32 %v4260_v39, %v6795_v50  ;;  %v3358_v3 = vsel %vm3332_vm9, %v3293_v35, %v2737_v30  ;;  %v3099_v8 = vsel %vm3072_vm5, %v3034_v41, %v8011_v14  ;;  %v3002_v39 = vsel %vm2942_vm3, %v2937_v16, %v8013_v2  ;;  %v8028_v14 = vld [vmem:[#allocation112_spill] sm:$0xff]  ;;  %v4373_v2 = vld [vmem:[#allocation2 + $0x158] sm:$0xff] }
 0x46d   :  { %v3852_v9 = vpop.f32.mrf.mxu1  ;;  %v2799_v49 = vpop.permute.xlu1 %2798  ;;  %4241 = vmatmul.mubr.msk.f32.gmra.mxu0 %vm3409_vm10, %v3358_v3  ;;  %v3164_v38 = vsel %vm3137_vm6, %v3099_v8, %v8015_v20  ;;  %v2938_v16 = vsel %vm14_vm0, %v4372_v61, %v8026_v58  ;;  %v8031_v20 = vld [vmem:[#allocation56_spill] sm:$0xff] }
 0x46e   :  { %4028 = vst.msk [vmem:[%s7458_s3 + $0x128] sm:$0xff] %vm2942_vm3, %v3858_v37  ;;  %v3853_v21 = vadd.f32 %v6795_v50, %v3852_v9  ;;  %v3389_v19 = vsel %vm3332_vm9, %v3324_v6, %v2799_v49  ;;  %v8018_v6 = vld [vmem:[#allocation302_spill] sm:$0xff]  ;;  %v8019_v49 = vld [vmem:[#allocation169_spill] sm:$0xff]  ;;  %v3003_v8 = vsel %vm2942_vm3, %v2938_v16, %v8028_v14 }
 0x46f   :  { %4288 = vmatprep.mubr.msk.f32.mxu1 %vm3409_vm10, %v3389_v19  ;;  %v2291_v55 = vpop.permute.xlu0 %2290  ;;  %v3229_v63 = vsel %vm3202_vm7, %v3164_v38, %v8018_v6  ;;  %v3067_v42 = vsel %vm3007_vm4, %v3002_v39, %v8019_v49  ;;  %v8030_v39 = vld [vmem:[#allocation28_spill] sm:$0xff]  ;;  %v2939_v38 = vsel %vm14_vm0, %v4374_v34, %v8031_v20  ;;  %v4376_v34 = vld [vmem:[#allocation2 + $0x318] sm:$0xff]  ;;  %v8048_v20 = vld [vmem:[#allocation57_spill] sm:$0xff] }
 0x470   :  { %4027 = vst.msk [vmem:[%s7458_s3 + $0x120] sm:$0xff] %vm2942_vm3, %v3853_v21  ;;  %v3261_v23 = vsel %vm3202_vm7, %v3196_v12, %v2291_v55  ;;  %v2907_v51 = vsel %vm14_vm0, %v4373_v2, %v8030_v39  ;;  %v8034_v6 = vld [vmem:[#allocation84_spill] sm:$0xff]  ;;  %v8047_v39 = vld [vmem:[#allocation29_spill] sm:$0xff] }
 0x471   :  { %v2801_v17 = vpop.permute.xlu1 %2800  ;;  %v8036_v49 = vld [vmem:[#allocation228_spill] sm:$0xff] }
 0x472   :  { %v3390_v48 = vsel %vm3332_vm9, %v3325_v13, %v2801_v17  ;;  %v8021_v13 = vld [vmem:[#allocation227_spill] sm:$0xff]  ;;  %v8022_v17 = vld [vmem:[#allocation256_spill] sm:$0xff] }
 0x473   :  { %4289 = vmatmul.mubr.msk.f32.gmra.mxu1 %vm3409_vm10, %v3390_v48  ;;  %v2483_v57 = vpop.permute.xlu0 %2482  ;;  %v3132_v3 = vsel %vm3072_vm5, %v3067_v42, %v8021_v13  ;;  %v3165_v48 = vsel %vm3137_vm6, %v3100_v31, %v8022_v17  ;;  %v4375_v2 = vld [vmem:[#allocation2 + $0x168] sm:$0xff] }
 0x474   :  { %v3294_v24 = vsel %vm3267_vm8, %v3229_v63, %v2483_v57  ;;  %v3230_v7 = vsel %vm3202_vm7, %v3165_v48, %v8024_v46  ;;  %v2972_v63 = vsel %vm2942_vm3, %v2907_v51, %v8034_v6  ;;  %v2908_v51 = vsel %vm14_vm0, %v4375_v2, %v8047_v39  ;;  %v8068_v39 = vld [vmem:[#allocation307_spill] sm:$0xff] }
 0x475   :  { %v2293_v45 = vpop.permute.xlu1 %2292 }
 0x477   :  { %v2485_v53 = vpop.permute.xlu0 %2484 }
 0x478   :  { %v3295_v25 = vsel %vm3267_vm8, %v3230_v7, %v2485_v53 }
 0x479   :  { %v2547_v33 = vpop.permute.xlu1 %2546  ;;  %v4215_v37 = vpop.f32.mrf.mxu0 }
 0x47a   :  { %v3708_v26 = vadd.f32 %v4215_v37, %v6795_v50  ;;  %v3326_v1 = vsel %vm3267_vm8, %v3261_v23, %v2547_v33  ;;  %v8023_v33 = vld [vmem:[#allocation283_spill] sm:$0xff]  ;;  %v8032_v37 = vld [vmem:[#allocation170_spill] sm:$0xff]  ;;  %v8037_v23 = vld [vmem:[#allocation257_spill] sm:$0xff] }
 0x47b   :  { %v2739_v21 = vpop.permute.xlu0 %2738  ;;  %v3702_v19 = vpop.f32.mrf.mxu0  ;;  %v3197_v15 = vsel %vm3137_vm6, %v3132_v3, %v8023_v33  ;;  %v3068_v59 = vsel %vm3007_vm4, %v3003_v8, %v8032_v37  ;;  %v8042_v33 = vld [vmem:[#allocation200_spill] sm:$0xff]  ;;  %v8049_v37 = vld [vmem:[#allocation85_spill] sm:$0xff] }
 0x47c   :  { %3998 = vst.msk [vmem:[%s7458_s3 + $0x38] sm:$0xff] %vm2942_vm3, %v3708_v26  ;;  %v3359_v4 = vsel %vm3332_vm9, %v3294_v24, %v2739_v21  ;;  %v3703_v11 = vadd.f32 %v6795_v50, %v3702_v19  ;;  %v3262_v54 = vsel %vm3202_vm7, %v3197_v15, %v2293_v45  ;;  %v8035_v26 = vld [vmem:[#allocation113_spill] sm:$0xff]  ;;  %v3133_v42 = vsel %vm3072_vm5, %v3068_v59, %v8036_v49  ;;  %v8038_v21 = vld [vmem:[#allocation142_spill] sm:$0xff] }
 0x47d   :  { %v2549_v52 = vpop.permute.xlu1 %2548  ;;  %4243 = vmatprep.mubr.msk.f32.mxu0 %vm3409_vm10, %v3359_v4  ;;  %v3037_v19 = vsel %vm3007_vm4, %v2972_v63, %v8038_v21  ;;  %v3198_v31 = vsel %vm3137_vm6, %v3133_v42, %v8039_v47  ;;  %v2973_v59 = vsel %vm2942_vm3, %v2908_v51, %v8049_v37  ;;  %v4378_v42 = vld [vmem:[#allocation2 + $0x320] sm:$0xff] }
 0x47e   :  { %3997 = vst.msk [vmem:[%s7458_s3 + $0x30] sm:$0xff] %vm2942_vm3, %v3703_v11  ;;  %v3327_v0 = vsel %vm3267_vm8, %v3262_v54, %v2549_v52  ;;  %v8029_v52 = vld [vmem:[#allocation141_spill] sm:$0xff]  ;;  %v3102_v15 = vsel %vm3072_vm5, %v3037_v19, %v8042_v33  ;;  %v8061_v33 = vld [vmem:[#allocation286_spill] sm:$0xff] }
 0x47f   :  { %v4263_v9 = vpop.f32.mrf.mxu1  ;;  %v2741_v27 = vpop.permute.xlu0 %2740  ;;  %v3036_v43 = vsel %vm3007_vm4, %v2971_v5, %v8029_v52  ;;  %v8055_v19 = vld [vmem:[#allocation201_spill] sm:$0xff] }
 0x480   :  { %v3868_v28 = vadd.f32 %v4263_v9, %v6795_v50  ;;  %v3360_v36 = vsel %vm3332_vm9, %v3295_v25, %v2741_v27  ;;  %v3101_v22 = vsel %vm3072_vm5, %v3036_v43, %v8033_v62  ;;  %v3004_v9 = vsel %vm2942_vm3, %v2939_v38, %v8035_v26  ;;  %v8050_v62 = vld [vmem:[#allocation114_spill] sm:$0xff]  ;;  %v4377_v26 = vld [vmem:[#allocation2 + $0x170] sm:$0xff] }
 0x481   :  { %v3862_v35 = vpop.f32.mrf.mxu1  ;;  %v2803_v30 = vpop.permute.xlu1 %2802  ;;  %4244 = vmatmul.mubr.msk.f32.gmra.mxu0 %vm3409_vm10, %v3360_v36  ;;  %v3166_v24 = vsel %vm3137_vm6, %v3101_v22, %v8037_v23  ;;  %v2940_v38 = vsel %vm14_vm0, %v4376_v34, %v8048_v20  ;;  %v8053_v23 = vld [vmem:[#allocation58_spill] sm:$0xff] }
 0x482   :  { %4030 = vst.msk [vmem:[%s7458_s3 + $0x138] sm:$0xff] %vm2942_vm3, %v3868_v28  ;;  %v3863_v55 = vadd.f32 %v6795_v50, %v3862_v35  ;;  %v3391_v57 = vsel %vm3332_vm9, %v3326_v1, %v2803_v30  ;;  %v8040_v1 = vld [vmem:[#allocation304_spill] sm:$0xff]  ;;  %v8041_v30 = vld [vmem:[#allocation171_spill] sm:$0xff]  ;;  %v3005_v22 = vsel %vm2942_vm3, %v2940_v38, %v8050_v62 }
 0x483   :  { %4291 = vmatprep.mubr.msk.f32.mxu1 %vm3409_vm10, %v3391_v57  ;;  %v2295_v45 = vpop.permute.xlu0 %2294  ;;  %v3231_v4 = vsel %vm3202_vm7, %v3166_v24, %v8040_v1  ;;  %v3069_v13 = vsel %vm3007_vm4, %v3004_v9, %v8041_v30  ;;  %v8052_v9 = vld [vmem:[#allocation30_spill] sm:$0xff]  ;;  %v2941_v24 = vsel %vm14_vm0, %v4378_v42, %v8053_v23 }
 0x484   :  { %4029 = vst.msk [vmem:[%s7458_s3 + $0x130] sm:$0xff] %vm2942_vm3, %v3863_v55  ;;  %v3263_v3 = vsel %vm3202_vm7, %v3198_v31, %v2295_v45  ;;  %v2909_v49 = vsel %vm14_vm0, %v4377_v26, %v8052_v9  ;;  %v8056_v1 = vld [vmem:[#allocation86_spill] sm:$0xff] }
 0x485   :  { %v2805_v40 = vpop.permute.xlu1 %2804  ;;  %v8058_v30 = vld [vmem:[#allocation230_spill] sm:$0xff] }
 0x486   :  { %v3392_v18 = vsel %vm3332_vm9, %v3327_v0, %v2805_v40  ;;  %v8043_v0 = vld [vmem:[#allocation229_spill] sm:$0xff]  ;;  %v8044_v40 = vld [vmem:[#allocation258_spill] sm:$0xff] }
 0x487   :  { %4292 = vmatmul.mubr.msk.f32.gmra.mxu1 %vm3409_vm10, %v3392_v18  ;;  %v2487_v41 = vpop.permute.xlu0 %2486  ;;  %v3134_v36 = vsel %vm3072_vm5, %v3069_v13, %v8043_v0  ;;  %v3167_v18 = vsel %vm3137_vm6, %v3102_v15, %v8044_v40 }
 0x488   :  { %v3296_v17 = vsel %vm3267_vm8, %v3231_v4, %v2487_v41  ;;  %v3232_v60 = vsel %vm3202_vm7, %v3167_v18, %v8046_v56  ;;  %v2974_v4 = vsel %vm2942_vm3, %v2909_v49, %v8056_v1 }
 0x489   :  { %v2297_v44 = vpop.permute.xlu1 %2296 }
 0x48b   :  { %v2489_v29 = vpop.permute.xlu0 %2488 }
 0x48c   :  { %v3297_v58 = vsel %vm3267_vm8, %v3232_v60, %v2489_v29 }
 0x48d   :  { %v2551_v53 = vpop.permute.xlu1 %2550  ;;  %v4218_v28 = vpop.f32.mrf.mxu0 }
 0x48e   :  { %v3718_v11 = vadd.f32 %v4218_v28, %v6795_v50  ;;  %v3328_v46 = vsel %vm3267_vm8, %v3263_v3, %v2551_v53  ;;  %v8045_v53 = vld [vmem:[#allocation285_spill] sm:$0xff]  ;;  %v8054_v28 = vld [vmem:[#allocation172_spill] sm:$0xff]  ;;  %v8059_v3 = vld [vmem:[#allocation259_spill] sm:$0xff] }
 0x48f   :  { %v2743_v55 = vpop.permute.xlu0 %2742  ;;  %v3712_v57 = vpop.f32.mrf.mxu0  ;;  %v3199_v32 = vsel %vm3137_vm6, %v3134_v36, %v8045_v53  ;;  %v3070_v21 = vsel %vm3007_vm4, %v3005_v22, %v8054_v28  ;;  %v8064_v53 = vld [vmem:[#allocation202_spill] sm:$0xff] }
 0x490   :  { %4000 = vst.msk [vmem:[%s7458_s3 + $0x48] sm:$0xff] %vm2942_vm3, %v3718_v11  ;;  %v3361_v7 = vsel %vm3332_vm9, %v3296_v17, %v2743_v55  ;;  %v3713_v54 = vadd.f32 %v6795_v50, %v3712_v57  ;;  %v3264_v61 = vsel %vm3202_vm7, %v3199_v32, %v2297_v44  ;;  %v8057_v11 = vld [vmem:[#allocation115_spill] sm:$0xff]  ;;  %v3135_v13 = vsel %vm3072_vm5, %v3070_v21, %v8058_v30  ;;  %v8060_v55 = vld [vmem:[#allocation144_spill] sm:$0xff] }
 0x491   :  { %v2553_v12 = vpop.permute.xlu1 %2552  ;;  %4246 = vmatprep.mubr.msk.f32.mxu0 %vm3409_vm10, %v3361_v7  ;;  %v3039_v57 = vsel %vm3007_vm4, %v2974_v4, %v8060_v55  ;;  %v3200_v15 = vsel %vm3137_vm6, %v3135_v13, %v8061_v33 }
 0x492   :  { %3999 = vst.msk [vmem:[%s7458_s3 + $0x40] sm:$0xff] %vm2942_vm3, %v3713_v54  ;;  %v3329_v10 = vsel %vm3267_vm8, %v3264_v61, %v2553_v12  ;;  %v8051_v12 = vld [vmem:[#allocation143_spill] sm:$0xff]  ;;  %v3104_v32 = vsel %vm3072_vm5, %v3039_v57, %v8064_v53 }
 0x493   :  { %v4266_v35 = vpop.f32.mrf.mxu1  ;;  %v2745_v16 = vpop.permute.xlu0 %2744  ;;  %v3038_v6 = vsel %vm3007_vm4, %v2973_v59, %v8051_v12 }
 0x494   :  { %v3878_v48 = vadd.f32 %v4266_v35, %v6795_v50  ;;  %v3362_v5 = vsel %vm3332_vm9, %v3297_v58, %v2745_v16  ;;  %v3103_v47 = vsel %vm3072_vm5, %v3038_v6, %v8055_v19  ;;  %v3006_v35 = vsel %vm2942_vm3, %v2941_v24, %v8057_v11 }
 0x495   :  { %v3872_v25 = vpop.f32.mrf.mxu1  ;;  %v2807_v27 = vpop.permute.xlu1 %2806  ;;  %4247 = vmatmul.mubr.msk.f32.gmra.mxu0 %vm3409_vm10, %v3362_v5  ;;  %v3168_v17 = vsel %vm3137_vm6, %v3103_v47, %v8059_v3 }
 0x496   :  { %4032 = vst.msk [vmem:[%s7458_s3 + $0x148] sm:$0xff] %vm2942_vm3, %v3878_v48  ;;  %v3873_v45 = vadd.f32 %v6795_v50, %v3872_v25  ;;  %v3393_v41 = vsel %vm3332_vm9, %v3328_v46, %v2807_v27  ;;  %v8062_v46 = vld [vmem:[#allocation306_spill] sm:$0xff]  ;;  %v8063_v27 = vld [vmem:[#allocation173_spill] sm:$0xff] }
 0x497   :  { %4294 = vmatprep.mubr.msk.f32.mxu1 %vm3409_vm10, %v3393_v41  ;;  %v2299_v44 = vpop.permute.xlu0 %2298  ;;  %v3233_v7 = vsel %vm3202_vm7, %v3168_v17, %v8062_v46  ;;  %v3071_v0 = vsel %vm3007_vm4, %v3006_v35, %v8063_v27 }
 0x498   :  { %4031 = vst.msk [vmem:[%s7458_s3 + $0x140] sm:$0xff] %vm2942_vm3, %v3873_v45  ;;  %v3265_v36 = vsel %vm3202_vm7, %v3200_v15, %v2299_v44 }
 0x499   :  { %v2809_v14 = vpop.permute.xlu1 %2808 }
 0x49a   :  { %v3394_v8 = vsel %vm3332_vm9, %v3329_v10, %v2809_v14  ;;  %v8065_v10 = vld [vmem:[#allocation231_spill] sm:$0xff]  ;;  %v8066_v14 = vld [vmem:[#allocation260_spill] sm:$0xff] }
 0x49b   :  { %4295 = vmatmul.mubr.msk.f32.gmra.mxu1 %vm3409_vm10, %v3394_v8  ;;  %v2491_v43 = vpop.permute.xlu0 %2490  ;;  %v3136_v5 = vsel %vm3072_vm5, %v3071_v0, %v8065_v10  ;;  %v3169_v8 = vsel %vm3137_vm6, %v3104_v32, %v8066_v14 }
 0x49c   :  { %v3298_v40 = vsel %vm3267_vm8, %v3233_v7, %v2491_v43  ;;  %v3234_v51 = vsel %vm3202_vm7, %v3169_v8, %v8068_v39 }
 0x49d   :  { %v2301_v52 = vpop.permute.xlu1 %2300 }
 0x49f   :  { %v2493_v63 = vpop.permute.xlu0 %2492 }
 0x4a0   :  { %v3299_v20 = vsel %vm3267_vm8, %v3234_v51, %v2493_v63 }
 0x4a1   :  { %v2555_v29 = vpop.permute.xlu1 %2554  ;;  %v4221_v48 = vpop.f32.mrf.mxu0 }
 0x4a2   :  { %v3728_v54 = vadd.f32 %v4221_v48, %v6795_v50  ;;  %v3330_v56 = vsel %vm3267_vm8, %v3265_v36, %v2555_v29  ;;  %v8067_v29 = vld [vmem:[#allocation287_spill] sm:$0xff] }
 0x4a3   :  { %v2747_v45 = vpop.permute.xlu0 %2746  ;;  %v3722_v41 = vpop.f32.mrf.mxu0  ;;  %v3201_v2 = vsel %vm3137_vm6, %v3136_v5, %v8067_v29 }
 0x4a4   :  { %4002 = vst.msk [vmem:[%s7458_s3 + $0x58] sm:$0xff] %vm2942_vm3, %v3728_v54  ;;  %v3363_v60 = vsel %vm3332_vm9, %v3298_v40, %v2747_v45  ;;  %v3723_v61 = vadd.f32 %v6795_v50, %v3722_v41  ;;  %v3266_v34 = vsel %vm3202_vm7, %v3201_v2, %v2301_v52 }
 0x4a5   :  { %v2557_v31 = vpop.permute.xlu1 %2556  ;;  %4249 = vmatprep.mubr.msk.f32.mxu0 %vm3409_vm10, %v3363_v60 }
 0x4a6   :  { %4001 = vst.msk [vmem:[%s7458_s3 + $0x50] sm:$0xff] %vm2942_vm3, %v3723_v61  ;;  %v3331_v37 = vsel %vm3267_vm8, %v3266_v34, %v2557_v31 }
 0x4a7   :  { %v4269_v25 = vpop.f32.mrf.mxu1  ;;  %v2749_v38 = vpop.permute.xlu0 %2748 }
 0x4a8   :  { %v3888_v18 = vadd.f32 %v4269_v25, %v6795_v50  ;;  %v3364_v59 = vsel %vm3332_vm9, %v3299_v20, %v2749_v38 }
 0x4a9   :  { %v3882_v58 = vpop.f32.mrf.mxu1  ;;  %v2811_v16 = vpop.permute.xlu1 %2810  ;;  %4250 = vmatmul.mubr.msk.f32.gmra.mxu0 %vm3409_vm10, %v3364_v59 }
 0x4aa   :  { %4034 = vst.msk [vmem:[%s7458_s3 + $0x158] sm:$0xff] %vm2942_vm3, %v3888_v18  ;;  %v3883_v44 = vadd.f32 %v6795_v50, %v3882_v58  ;;  %v3395_v43 = vsel %vm3332_vm9, %v3330_v56, %v2811_v16 }
 0x4ab   :  { %4297 = vmatprep.mubr.msk.f32.mxu1 %vm3409_vm10, %v3395_v43 }
 0x4ac   :  { %4033 = vst.msk [vmem:[%s7458_s3 + $0x150] sm:$0xff] %vm2942_vm3, %v3883_v44 }
 0x4ad   :  { %v2813_v62 = vpop.permute.xlu1 %2812 }
 0x4ae   :  { %v3396_v22 = vsel %vm3332_vm9, %v3331_v37, %v2813_v62 }
 0x4af   :  { %4298 = vmatmul.mubr.msk.f32.gmra.mxu1 %vm3409_vm10, %v3396_v22 }
 0x4b5   :  { %v4224_v52 = vpop.f32.mrf.mxu0 }
 0x4b6   :  { %v3738_v12 = vadd.f32 %v4224_v52, %v6795_v50 }
 0x4b7   :  { %v3732_v26 = vpop.f32.mrf.mxu0 }
 0x4b8   :  { %4004 = vst.msk [vmem:[%s7458_s3 + $0x68] sm:$0xff] %vm2942_vm3, %v3738_v12  ;;  %v3733_v9 = vadd.f32 %v6795_v50, %v3732_v26 }
 0x4ba   :  { %4003 = vst.msk [vmem:[%s7458_s3 + $0x60] sm:$0xff] %vm2942_vm3, %v3733_v9 }
 0x4bb   :  { %v4272_v6 = vpop.f32.mrf.mxu1 }
 0x4bc   :  { %v3898_v63 = vadd.f32 %v4272_v6, %v6795_v50 }
 0x4bd   :  { %v3892_v49 = vpop.f32.mrf.mxu1 }
 0x4be   :  { %4036 = vst.msk [vmem:[%s7458_s3 + $0x168] sm:$0xff] %vm2942_vm3, %v3898_v63  ;;  %v3893_v42 = vadd.f32 %v6795_v50, %v3892_v49 }
 0x4c0   :  { %4035 = vst.msk [vmem:[%s7458_s3 + $0x160] sm:$0xff] %vm2942_vm3, %v3893_v42 }
 0x4c9   :  { %v4227_v23 = vpop.f32.mrf.mxu0 }
 0x4ca   :  { %v3748_v24 = vadd.f32 %v4227_v23, %v6795_v50 }
 0x4cb   :  { %v3742_v19 = vpop.f32.mrf.mxu0 }
 0x4cc   :  { %4006 = vst.msk [vmem:[%s7458_s3 + $0x78] sm:$0xff] %vm2942_vm3, %v3748_v24  ;;  %v3743_v47 = vadd.f32 %v6795_v50, %v3742_v19 }
 0x4ce   :  { %4005 = vst.msk [vmem:[%s7458_s3 + $0x70] sm:$0xff] %vm2942_vm3, %v3743_v47 }
 0x4cf   :  { %v4275_v28 = vpop.f32.mrf.mxu1 }
 0x4d0   :  { %v3908_v21 = vadd.f32 %v4275_v28, %v6795_v50 }
 0x4d1   :  { %v3902_v31 = vpop.f32.mrf.mxu1 }
 0x4d2   :  { %4038 = vst.msk [vmem:[%s7458_s3 + $0x178] sm:$0xff] %vm2942_vm3, %v3908_v21  ;;  %v3903_v1 = vadd.f32 %v6795_v50, %v3902_v31 }
 0x4d4   :  { %4037 = vst.msk [vmem:[%s7458_s3 + $0x170] sm:$0xff] %vm2942_vm3, %v3903_v1 }
 0x4dd   :  { %v4230_v4 = vpop.f32.mrf.mxu0 }
 0x4de   :  { %v3758_v11 = vadd.f32 %v4230_v4, %v6795_v50 }
 0x4df   :  { %v3752_v13 = vpop.f32.mrf.mxu0 }
 0x4e0   :  { %4008 = vst.msk [vmem:[%s7458_s3 + $0x88] sm:$0xff] %vm2942_vm3, %v3758_v11  ;;  %v3753_v3 = vadd.f32 %v6795_v50, %v3752_v13 }
 0x4e2   :  { %4007 = vst.msk [vmem:[%s7458_s3 + $0x80] sm:$0xff] %vm2942_vm3, %v3753_v3 }
 0x4e3   :  { %v4278_v35 = vpop.f32.mrf.mxu1 }
 0x4e4   :  { %v3918_v30 = vadd.f32 %v4278_v35, %v6795_v50 }
 0x4e5   :  { %v3912_v17 = vpop.f32.mrf.mxu1 }
 0x4e6   :  { %4040 = vst.msk [vmem:[%s7458_s3 + $0x188] sm:$0xff] %vm2942_vm3, %v3918_v30  ;;  %v3913_v48 = vadd.f32 %v6795_v50, %v3912_v17 }
 0x4e8   :  { %4039 = vst.msk [vmem:[%s7458_s3 + $0x180] sm:$0xff] %vm2942_vm3, %v3913_v48 }
 0x4f1   :  { %v4233_v55 = vpop.f32.mrf.mxu0 }
 0x4f2   :  { %v3768_v57 = vadd.f32 %v4233_v55, %v6795_v50 }
 0x4f3   :  { %v3762_v46 = vpop.f32.mrf.mxu0 }
 0x4f4   :  { %4010 = vst.msk [vmem:[%s7458_s3 + $0x98] sm:$0xff] %vm2942_vm3, %v3768_v57  ;;  %v3763_v7 = vadd.f32 %v6795_v50, %v3762_v46 }
 0x4f6   :  { %4009 = vst.msk [vmem:[%s7458_s3 + $0x90] sm:$0xff] %vm2942_vm3, %v3763_v7 }
 0x4f7   :  { %v4281_v33 = vpop.f32.mrf.mxu1 }
 0x4f8   :  { %v3928_v15 = vadd.f32 %v4281_v33, %v6795_v50 }
 0x4f9   :  { %v3922_v54 = vpop.f32.mrf.mxu1 }
 0x4fa   :  { %4042 = vst.msk [vmem:[%s7458_s3 + $0x198] sm:$0xff] %vm2942_vm3, %v3928_v15  ;;  %v3923_v25 = vadd.f32 %v6795_v50, %v3922_v54 }
 0x4fc   :  { %4041 = vst.msk [vmem:[%s7458_s3 + $0x190] sm:$0xff] %vm2942_vm3, %v3923_v25 }
 0x505   :  { %v4236_v27 = vpop.f32.mrf.mxu0 }
 0x506   :  { %v3778_v0 = vadd.f32 %v4236_v27, %v6795_v50 }
 0x507   :  { %v3772_v18 = vpop.f32.mrf.mxu0 }
 0x508   :  { %4012 = vst.msk [vmem:[%s7458_s3 + $0xa8] sm:$0xff] %vm2942_vm3, %v3778_v0  ;;  %v3773_v45 = vadd.f32 %v6795_v50, %v3772_v18 }
 0x50a   :  { %4011 = vst.msk [vmem:[%s7458_s3 + $0xa0] sm:$0xff] %vm2942_vm3, %v3773_v45 }
 0x50b   :  { %v4284_v36 = vpop.f32.mrf.mxu1 }
 0x50c   :  { %v3938_v40 = vadd.f32 %v4284_v36, %v6795_v50 }
 0x50d   :  { %v3932_v41 = vpop.f32.mrf.mxu1 }
 0x50e   :  { %4044 = vst.msk [vmem:[%s7458_s3 + $0x1a8] sm:$0xff] %vm2942_vm3, %v3938_v40  ;;  %v3933_v53 = vadd.f32 %v6795_v50, %v3932_v41 }
 0x510   :  { %4043 = vst.msk [vmem:[%s7458_s3 + $0x1a0] sm:$0xff] %vm2942_vm3, %v3933_v53 }
 0x519   :  { %v4239_v32 = vpop.f32.mrf.mxu0 }
 0x51a   :  { %v3788_v56 = vadd.f32 %v4239_v32, %v6795_v50 }
 0x51b   :  { %v3782_v58 = vpop.f32.mrf.mxu0 }
 0x51c   :  { %4014 = vst.msk [vmem:[%s7458_s3 + $0xb8] sm:$0xff] %vm2942_vm3, %v3788_v56  ;;  %v3783_v16 = vadd.f32 %v6795_v50, %v3782_v58 }
 0x51e   :  { %4013 = vst.msk [vmem:[%s7458_s3 + $0xb0] sm:$0xff] %vm2942_vm3, %v3783_v16 }
 0x51f   :  { %v4287_v60 = vpop.f32.mrf.mxu1 }
 0x520   :  { %v3948_v61 = vadd.f32 %v4287_v60, %v6795_v50 }
 0x521   :  { %v3942_v10 = vpop.f32.mrf.mxu1 }
 0x522   :  { %4046 = vst.msk [vmem:[%s7458_s3 + $0x1b8] sm:$0xff] %vm2942_vm3, %v3948_v61  ;;  %v3943_v5 = vadd.f32 %v6795_v50, %v3942_v10 }
 0x524   :  { %4045 = vst.msk [vmem:[%s7458_s3 + $0x1b0] sm:$0xff] %vm2942_vm3, %v3943_v5 }
 0x52d   :  { %v4242_v14 = vpop.f32.mrf.mxu0 }
 0x52e   :  { %v3798_v8 = vadd.f32 %v4242_v14, %v6795_v50 }
 0x52f   :  { %v3792_v29 = vpop.f32.mrf.mxu0 }
 0x530   :  { %4016 = vst.msk [vmem:[%s7458_s3 + $0xc8] sm:$0xff] %vm2942_vm3, %v3798_v8  ;;  %v3793_v2 = vadd.f32 %v6795_v50, %v3792_v29 }
 0x532   :  { %4015 = vst.msk [vmem:[%s7458_s3 + $0xc0] sm:$0xff] %vm2942_vm3, %v3793_v2 }
 0x533   :  { %v4290_v44 = vpop.f32.mrf.mxu1 }
 0x534   :  { %v3958_v43 = vadd.f32 %v4290_v44, %v6795_v50 }
 0x535   :  { %v3952_v39 = vpop.f32.mrf.mxu1 }
 0x536   :  { %4048 = vst.msk [vmem:[%s7458_s3 + $0x1c8] sm:$0xff] %vm2942_vm3, %v3958_v43  ;;  %v3953_v51 = vadd.f32 %v6795_v50, %v3952_v39 }
 0x538   :  { %4047 = vst.msk [vmem:[%s7458_s3 + $0x1c0] sm:$0xff] %vm2942_vm3, %v3953_v51 }
 0x541   :  { %v4245_v34 = vpop.f32.mrf.mxu0 }
 0x542   :  { %v3808_v20 = vadd.f32 %v4245_v34, %v6795_v50 }
 0x543   :  { %v3802_v59 = vpop.f32.mrf.mxu0 }
 0x544   :  { %4018 = vst.msk [vmem:[%s7458_s3 + $0xd8] sm:$0xff] %vm2942_vm3, %v3808_v20  ;;  %v3803_v62 = vadd.f32 %v6795_v50, %v3802_v59 }
 0x546   :  { %4017 = vst.msk [vmem:[%s7458_s3 + $0xd0] sm:$0xff] %vm2942_vm3, %v3803_v62 }
 0x547   :  { %v4293_v38 = vpop.f32.mrf.mxu1 }
 0x548   :  { %v3968_v37 = vadd.f32 %v4293_v38, %v6795_v50 }
 0x549   :  { %v3962_v22 = vpop.f32.mrf.mxu1 }
 0x54a   :  { %4050 = vst.msk [vmem:[%s7458_s3 + $0x1d8] sm:$0xff] %vm2942_vm3, %v3968_v37  ;;  %v3963_v52 = vadd.f32 %v6795_v50, %v3962_v22 }
 0x54c   :  { %4049 = vst.msk [vmem:[%s7458_s3 + $0x1d0] sm:$0xff] %vm2942_vm3, %v3963_v52 }
 0x555   :  { %v4248_v12 = vpop.f32.mrf.mxu0 }
 0x556   :  { %v3818_v6 = vadd.f32 %v4248_v12, %v6795_v50 }
 0x557   :  { %v3812_v9 = vpop.f32.mrf.mxu0 }
 0x558   :  { %4020 = vst.msk [vmem:[%s7458_s3 + $0xe8] sm:$0xff] %vm2942_vm3, %v3818_v6  ;;  %v3813_v49 = vadd.f32 %v6795_v50, %v3812_v9 }
 0x55a   :  { %4019 = vst.msk [vmem:[%s7458_s3 + $0xe0] sm:$0xff] %vm2942_vm3, %v3813_v49 }
 0x55b   :  { %v4296_v63 = vpop.f32.mrf.mxu1 }
 0x55c   :  { %v3978_v26 = vadd.f32 %v4296_v63, %v6795_v50 }
 0x55d   :  { %v3972_v42 = vpop.f32.mrf.mxu1 }
 0x55e   :  { %4052 = vst.msk [vmem:[%s7458_s3 + $0x1e8] sm:$0xff] %vm2942_vm3, %v3978_v26  ;;  %v3973_v23 = vadd.f32 %v6795_v50, %v3972_v42 }
 0x560   :  { %4051 = vst.msk [vmem:[%s7458_s3 + $0x1e0] sm:$0xff] %vm2942_vm3, %v3973_v23 }
 0x569   :  { %v4251_v24 = vpop.f32.mrf.mxu0 }
 0x56a   :  { %v3828_v28 = vadd.f32 %v4251_v24, %v6795_v50 }
 0x56b   :  { %v3822_v47 = vpop.f32.mrf.mxu0 }
 0x56c   :  { %4022 = vst.msk [vmem:[%s7458_s3 + $0xf8] sm:$0xff] %vm2942_vm3, %v3828_v28  ;;  %v3823_v31 = vadd.f32 %v6795_v50, %v3822_v47 }
 0x56e   :  { %4021 = vst.msk [vmem:[%s7458_s3 + $0xf0] sm:$0xff] %vm2942_vm3, %v3823_v31 }
 0x56f   :  { %v4299_v21 = vpop.f32.mrf.mxu1 }
 0x570   :  { %v3988_v19 = vadd.f32 %v4299_v21, %v6795_v50 }
 0x571   :  { %v3982_v1 = vpop.f32.mrf.mxu1 }
 0x572   :  { %4054 = vst.msk [vmem:[%s7458_s3 + $0x1f8] sm:$0xff] %vm2942_vm3, %v3988_v19  ;;  %v3983_v4 = vadd.f32 %v6795_v50, %v3982_v1 }
 0x574   :  { %4053 = vst.msk [vmem:[%s7458_s3 + $0x1f0] sm:$0xff] %vm2942_vm3, %v3983_v4 }

</bundles_post_ra>
